<compile_context>
chip_gen: v7x
topology: tpu7x:2x2x1
jax: 0.10.0
libtpu: 0.0.40
codegen_flags: <defaults>
</compile_context>

<pallas_src>
import functools
import math

import jax
import jax.numpy as jnp
from jax import lax
from jax.experimental import pallas as pl
from jax.experimental.pallas import tpu as pltpu


def dynamic_conv_kernel(x_ref, w1_ref, b1_ref, w2_ref, b2_ref, wt_ref, bt_ref, o_ref,
                        *, pool_h, pool_w, out_h, out_w, K, dilation, tau):
    """One grid step == one block of Nb samples.

    x_ref  : (Nb, Hp, Wp, Ci)   padded NHWC input block (bf16)
    w1_ref : (Ci, Cm)           att fc1 weight (transposed 1x1 conv), f32
    b1_ref : (1, Cm)
    w2_ref : (Cm, M)            att fc2 weight (transposed 1x1 conv), f32
    b2_ref : (1, M)
    wt_ref : (M, K*K*Ci*Co)     candidate kernels, wt[m, ((kh*K+kw)*Ci+ci)*Co+co]
    bt_ref : (M, Co)            candidate biases
    o_ref  : (Nb, Co, out_h*out_w)   lane-dense output (spatial last)
    """
    Nb, Hp, Wp, Ci = x_ref.shape
    Co = bt_ref.shape[-1]
    KKC = K * K * Ci
    HW = out_h * out_w

    x = x_ref[...]                                        # (Nb, Hp, Wp, Ci) bf16

    # ---- attention over kernels -------------------------------------------------
    # The spatial zero-padding contributes nothing to the sum, so pool over the whole
    # padded tile and divide by the *unpadded* pixel count.
    xf = x.astype(jnp.float32).reshape(Nb, Hp * Wp, Ci)
    pooled = jnp.sum(xf, axis=1) * (1.0 / (pool_h * pool_w))                 # (Nb, Ci)
    h1 = jnp.maximum(
        jnp.dot(pooled, w1_ref[...], preferred_element_type=jnp.float32) + b1_ref[...],
        0.0)                                                                 # (Nb, Cm)
    logits = (jnp.dot(h1, w2_ref[...], preferred_element_type=jnp.float32)
              + b2_ref[...]) * tau                                           # (Nb, M)
    logits = logits - jnp.max(logits, axis=1, keepdims=True)
    e = jnp.exp(logits)
    pi = e * pl.reciprocal(jnp.sum(e, axis=1, keepdims=True), approx=True)   # (Nb, M)

    # ---- mix candidate kernels / biases ONCE per block (hoisted out of tap loop) --
    wmix = jnp.dot(pi, wt_ref[...], preferred_element_type=jnp.float32)      # (Nb, KKC*Co)
    wmix = wmix.reshape(Nb, KKC, Co).astype(jnp.bfloat16)
    bmix = jnp.dot(pi, bt_ref[...], preferred_element_type=jnp.float32)      # (Nb, Co)

    # ---- im2col: K*K shifted slices concatenated on the lane axis ----------------
    taps = []
    for kh in range(K):
        for kw in range(K):
            taps.append(
                x[:, kh * dilation:kh * dilation + out_h,
                  kw * dilation:kw * dilation + out_w, :].reshape(Nb, HW, Ci))
    patch = jnp.concatenate(taps, axis=-1)                                   # (Nb, HW, KKC) bf16

    # ---- one fused MXU matmul per sample; transposed store -> lane-dense output --
    for n in range(Nb):
        y = jnp.dot(patch[n], wmix[n], preferred_element_type=jnp.float32)   # (HW, Co)
        o_ref[n] = (y + bmix[n:n + 1]).T.astype(o_ref.dtype)                 # (Co, HW)


def dynamic_conv(x_nchw, params, *, kernel_size, stride=1, padding=0, dilation=1,
                 temperature=30, block_n=None):
    # TODO(synk): stride > 1 would need strided im2col slices; not supported in the kernel.
    assert stride == 1
    W_ker = params["weights"]          # (1, Co, M, Ci, K, K)
    B_ker = params["biases"]           # (1, Co, M, 1, 1)
    fc1_w, fc1_b = params["fc1_w"], params["fc1_b"]   # (Cm, Ci, 1, 1), (Cm,)
    fc2_w, fc2_b = params["fc2_w"], params["fc2_b"]   # (M, Cm, 1, 1),  (M,)

    N, Ci, H, Wd = x_nchw.shape
    _, Co, M, _, K, _ = W_ker.shape
    Cm = fc1_w.shape[0]
    tau = 1.0 / temperature

    Hout = (H + 2 * padding - dilation * (K - 1) - 1) // stride + 1
    Wout = (Wd + 2 * padding - dilation * (K - 1) - 1) // stride + 1
    assert Hout == H and Wout == Wd, "reference conv_dynamic assumes 'same' spatial size"

    # Batch blocking: several samples per grid step to amortize per-step overhead.
    if block_n is None:
        block_n = next(b for b in (8, 4, 2, 1) if N % b == 0)
    assert N % block_n == 0

    # NCHW (PyTorch) -> NHWC (kernel layout), pad spatially, cast activations to bf16.
    # TODO(synk): at ResNet-scale spatial sizes, add a row-block grid axis (and handle the
    # halo in-kernel) so per-step VMEM stays within v7x's 64 MiB budget.
    x_nhwc = jnp.transpose(x_nchw, (0, 2, 3, 1)).astype(jnp.bfloat16)
    x_pad = jnp.pad(x_nhwc, ((0, 0), (padding, padding), (padding, padding), (0, 0)))
    Hp, Wp = H + 2 * padding, Wd + 2 * padding

    # Parameter re-layout (glue):
    #   wt[m, ((kh*K+kw)*Ci + ci)*Co + co] = W_ker[0, co, m, ci, kh, kw]   (lane-dense last dim)
    wt = jnp.transpose(W_ker[0], (1, 3, 4, 2, 0)).reshape(M, K * K * Ci * Co)
    wt = wt.astype(jnp.float32)
    bt = jnp.transpose(B_ker[0, :, :, 0, 0], (1, 0)).astype(jnp.float32)     # (M, Co)
    w1t = jnp.transpose(fc1_w[:, :, 0, 0], (1, 0)).astype(jnp.float32)       # (Ci, Cm)
    b1r = fc1_b.reshape(1, Cm).astype(jnp.float32)
    w2t = jnp.transpose(fc2_w[:, :, 0, 0], (1, 0)).astype(jnp.float32)       # (Cm, M)
    b2r = fc2_b.reshape(1, M).astype(jnp.float32)

    kernel = functools.partial(
        dynamic_conv_kernel,
        pool_h=H, pool_w=Wd, out_h=Hout, out_w=Wout,
        K=K, dilation=dilation, tau=tau)

    out = pl.pallas_call(
        kernel,
        out_shape=jax.ShapeDtypeStruct((N, Co, Hout * Wout), jnp.float32),
        grid_spec=pltpu.PrefetchScalarGridSpec(
            num_scalar_prefetch=0,
            grid=(N // block_n,),
            in_specs=[
                pl.BlockSpec((block_n, Hp, Wp, Ci), lambda n: (n, 0, 0, 0)),
                pl.BlockSpec((Ci, Cm), lambda n: (0, 0)),
                pl.BlockSpec((1, Cm), lambda n: (0, 0)),
                pl.BlockSpec((Cm, M), lambda n: (0, 0)),
                pl.BlockSpec((1, M), lambda n: (0, 0)),
                pl.BlockSpec((M, K * K * Ci * Co), lambda n: (0, 0)),
                pl.BlockSpec((M, Co), lambda n: (0, 0)),
            ],
            out_specs=pl.BlockSpec((block_n, Co, Hout * Wout), lambda n: (n, 0, 0)),
        ),
        # samples are independent -> parallel (sharded across both TCs on v7x).
        compiler_params=pltpu.CompilerParams(dimension_semantics=("parallel",)),
    )(x_pad, w1t, b1r, w2t, b2r, wt, bt)

    return out.reshape(N, Co, Hout, Wout)      # already NCHW


def reference(x, params, kernel_size, stride, padding, dilation, temperature):
    """Plain-JAX reference (mirrors the intended PyTorch semantics), pure f32."""
    W_ker, B_ker = params["weights"], params["biases"]
    N, Ci, H, Wd = x.shape
    _, Co, M, _, K, _ = W_ker.shape
    tau = 1.0 / temperature

    pooled = jnp.mean(x, axis=(2, 3))                                   # (N, Ci)
    h1 = jax.nn.relu(pooled @ params["fc1_w"][:, :, 0, 0].T + params["fc1_b"])
    logits = h1 @ params["fc2_w"][:, :, 0, 0].T + params["fc2_b"]
    pi = jax.nn.softmax(logits * tau, axis=1)                           # (N, M)

    w_n = jnp.einsum("nm,cmikl->ncikl", pi, W_ker[0])                   # (N, Co, Ci, K, K)
    b_n = jnp.einsum("nm,cm->nc", pi, B_ker[0, :, :, 0, 0])             # (N, Co)

    xg = x.reshape(1, N * Ci, H, Wd)
    wg = w_n.reshape(N * Co, Ci, K, K)
    y = lax.conv_general_dilated(
        xg, wg, window_strides=(stride, stride),
        padding=[(padding, padding), (padding, padding)],
        rhs_dilation=(dilation, dilation),
        dimension_numbers=("NCHW", "OIHW", "NCHW"),
        feature_group_count=N).reshape(N, Co, H, Wd)
    return y + b_n[:, :, None, None]


if __name__ == "__main__":
    N, Ci, Co, H, W, K, M = 2, 8, 8, 16, 16, 3, 4
    stride, padding, dilation, temperature = 1, 1, 1, 30
    Cm = Ci // M

    key = jax.random.PRNGKey(0)
    k0, k1, k2, k3, k4, kx = jax.random.split(key, 6)

    # Deterministic parameter init (shapes from DynamicConv.__init__).
    fan_out = M * Ci * K * K                       # PyTorch fan_out for (1,Co,M,Ci,K,K)
    std = math.sqrt(2.0 / fan_out)                 # kaiming_normal_, fan_out, relu
    params = {
        "weights": std * jax.random.normal(k0, (1, Co, M, Ci, K, K), jnp.float32),
        "biases": jnp.zeros((1, Co, M, 1, 1), jnp.float32),
        "fc1_w": 0.1 * jax.random.normal(k1, (Cm, Ci, 1, 1), jnp.float32),
        "fc1_b": 0.1 * jax.random.normal(k2, (Cm,), jnp.float32),
        "fc2_w": 0.1 * jax.random.normal(k3, (M, Cm, 1, 1), jnp.float32),
        "fc2_b": 0.1 * jax.random.normal(k4, (M,), jnp.float32),
    }

    x = jax.random.normal(kx, (N, Ci, H, W), jnp.float32)

    y = dynamic_conv(x, params, kernel_size=K, stride=stride, padding=padding,
                     dilation=dilation, temperature=temperature)
    y = jax.block_until_ready(y)

    y_ref = reference(x, params, K, stride, padding, dilation, temperature)
    err = float(jnp.max(jnp.abs(y - y_ref)))
    # Tolerance loosened vs. the f32 version: conv operands go through the MXU in bf16.
    assert jnp.allclose(y, y_ref, rtol=3e-2, atol=3e-2), f"max abs err {err}"
    print("KERNEL_OK")
</pallas_src>

<mosaic_0001>
module attributes {stable_mosaic.version = 11 : i64} {
  func.func @dynamic_conv_kernel(%arg0: i32, %arg1: memref<2x18x18x8xbf16, #tpu.memory_space<vmem>>, %arg2: memref<8x2xf32, #tpu.memory_space<vmem>>, %arg3: memref<1x2xf32, #tpu.memory_space<vmem>>, %arg4: memref<2x4xf32, #tpu.memory_space<vmem>>, %arg5: memref<1x4xf32, #tpu.memory_space<vmem>>, %arg6: memref<4x576xf32, #tpu.memory_space<vmem>>, %arg7: memref<4x8xf32, #tpu.memory_space<vmem>>, %arg8: memref<2x8x256xf32, #tpu.memory_space<vmem>>) attributes {dimension_semantics = [#tpu.dimension_semantics<parallel>], iteration_bounds = array<i64: 1>, scalar_prefetch = 0 : i64, scratch_operands = 0 : i64, tpu.core_type = #tpu.core_type<tc>, window_params = [{transform_indices = @transform_0, window_bounds = array<i64: 2, 18, 18, 8>}, {pipeline_mode = #tpu.pipeline_mode<synchronous>, transform_indices = @transform_1, window_bounds = array<i64: 8, 2>}, {pipeline_mode = #tpu.pipeline_mode<synchronous>, transform_indices = @transform_2, window_bounds = array<i64: 1, 2>}, {pipeline_mode = #tpu.pipeline_mode<synchronous>, transform_indices = @transform_3, window_bounds = array<i64: 2, 4>}, {pipeline_mode = #tpu.pipeline_mode<synchronous>, transform_indices = @transform_4, window_bounds = array<i64: 1, 4>}, {pipeline_mode = #tpu.pipeline_mode<synchronous>, transform_indices = @transform_5, window_bounds = array<i64: 4, 576>}, {pipeline_mode = #tpu.pipeline_mode<synchronous>, transform_indices = @transform_6, window_bounds = array<i64: 4, 8>}, {transform_indices = @transform_7, window_bounds = array<i64: 2, 8, 256>}]} {
    %c0 = arith.constant 0 : index
    %c0_0 = arith.constant 0 : index
    %c0_1 = arith.constant 0 : index
    %c0_2 = arith.constant 0 : index
    %0 = vector.load %arg1[%c0, %c0_0, %c0_1, %c0_2] : memref<2x18x18x8xbf16, #tpu.memory_space<vmem>>, vector<2x18x18x8xbf16>
    %1 = arith.extf %0 : vector<2x18x18x8xbf16> to vector<2x18x18x8xf32>
    %2 = vector.shape_cast %1 : vector<2x18x18x8xf32> to vector<2x324x8xf32>
    %cst = arith.constant dense<0.000000e+00> : vector<2x8xf32>
    %3 = vector.multi_reduction <add>, %2, %cst [1] : vector<2x324x8xf32> to vector<2x8xf32>
    %cst_3 = arith.constant 3.906250e-03 : f32
    %4 = vector.broadcast %cst_3 : f32 to vector<2x8xf32>
    %5 = arith.mulf %3, %4 : vector<2x8xf32>
    %c0_4 = arith.constant 0 : index
    %c0_5 = arith.constant 0 : index
    %6 = vector.load %arg2[%c0_4, %c0_5] : memref<8x2xf32, #tpu.memory_space<vmem>>, vector<8x2xf32>
    %cst_6 = arith.constant dense<0.000000e+00> : vector<2x2xf32>
    %7 = tpu.matmul %5, %6, %cst_6 {dimension_numbers = #tpu.dot_dimension_numbers<[1], [0], [0], [1], [0, 0, 1, 1], [], []>} : vector<2x8xf32>, vector<8x2xf32>, vector<2x2xf32> -> vector<2x2xf32>
    %c0_7 = arith.constant 0 : index
    %c0_8 = arith.constant 0 : index
    %8 = vector.load %arg3[%c0_7, %c0_8] : memref<1x2xf32, #tpu.memory_space<vmem>>, vector<1x2xf32>
    %9 = vector.broadcast %8 : vector<1x2xf32> to vector<2x2xf32>
    %10 = arith.addf %7, %9 : vector<2x2xf32>
    %cst_9 = arith.constant 0.000000e+00 : f32
    %11 = vector.broadcast %cst_9 : f32 to vector<2x2xf32>
    %12 = arith.maximumf %10, %11 : vector<2x2xf32>
    %c0_10 = arith.constant 0 : index
    %c0_11 = arith.constant 0 : index
    %13 = vector.load %arg4[%c0_10, %c0_11] : memref<2x4xf32, #tpu.memory_space<vmem>>, vector<2x4xf32>
    %cst_12 = arith.constant dense<0.000000e+00> : vector<2x4xf32>
    %14 = tpu.matmul %12, %13, %cst_12 {dimension_numbers = #tpu.dot_dimension_numbers<[1], [0], [0], [1], [0, 0, 1, 1], [], []>} : vector<2x2xf32>, vector<2x4xf32>, vector<2x4xf32> -> vector<2x4xf32>
    %c0_13 = arith.constant 0 : index
    %c0_14 = arith.constant 0 : index
    %15 = vector.load %arg5[%c0_13, %c0_14] : memref<1x4xf32, #tpu.memory_space<vmem>>, vector<1x4xf32>
    %16 = vector.broadcast %15 : vector<1x4xf32> to vector<2x4xf32>
    %17 = arith.addf %14, %16 : vector<2x4xf32>
    %cst_15 = arith.constant 0.0333333351 : f32
    %18 = vector.broadcast %cst_15 : f32 to vector<2x4xf32>
    %19 = arith.mulf %17, %18 : vector<2x4xf32>
    %cst_16 = arith.constant dense<0xFF800000> : vector<2xf32>
    %20 = vector.multi_reduction <maximumf>, %19, %cst_16 [1] : vector<2x4xf32> to vector<2xf32>
    %21 = vector.shape_cast %20 : vector<2xf32> to vector<2x1xf32>
    %22 = vector.broadcast %21 : vector<2x1xf32> to vector<2x4xf32>
    %23 = arith.subf %19, %22 : vector<2x4xf32>
    %24 = math.exp %23 : vector<2x4xf32>
    %cst_17 = arith.constant dense<0.000000e+00> : vector<2xf32>
    %25 = vector.multi_reduction <add>, %24, %cst_17 [1] : vector<2x4xf32> to vector<2xf32>
    %26 = vector.shape_cast %25 : vector<2xf32> to vector<2x1xf32>
    %27 = tpu.reciprocal %26 {approx = true} : vector<2x1xf32> -> vector<2x1xf32>
    %28 = vector.broadcast %27 : vector<2x1xf32> to vector<2x4xf32>
    %29 = arith.mulf %24, %28 : vector<2x4xf32>
    %c0_18 = arith.constant 0 : index
    %c0_19 = arith.constant 0 : index
    %30 = vector.load %arg6[%c0_18, %c0_19] : memref<4x576xf32, #tpu.memory_space<vmem>>, vector<4x576xf32>
    %cst_20 = arith.constant dense<0.000000e+00> : vector<2x576xf32>
    %31 = tpu.matmul %29, %30, %cst_20 {dimension_numbers = #tpu.dot_dimension_numbers<[1], [0], [0], [1], [0, 0, 1, 1], [], []>} : vector<2x4xf32>, vector<4x576xf32>, vector<2x576xf32> -> vector<2x576xf32>
    %32 = vector.shape_cast %31 : vector<2x576xf32> to vector<2x72x8xf32>
    %33 = arith.truncf %32 : vector<2x72x8xf32> to vector<2x72x8xbf16>
    %c0_21 = arith.constant 0 : index
    %c0_22 = arith.constant 0 : index
    %34 = vector.load %arg7[%c0_21, %c0_22] : memref<4x8xf32, #tpu.memory_space<vmem>>, vector<4x8xf32>
    %cst_23 = arith.constant dense<0.000000e+00> : vector<2x8xf32>
    %35 = tpu.matmul %29, %34, %cst_23 {dimension_numbers = #tpu.dot_dimension_numbers<[1], [0], [0], [1], [0, 0, 1, 1], [], []>} : vector<2x4xf32>, vector<4x8xf32>, vector<2x8xf32> -> vector<2x8xf32>
    %36 = vector.extract_strided_slice %0 {offsets = [0, 0, 0, 0], sizes = [2, 16, 16, 8], strides = [1, 1, 1, 1]} : vector<2x18x18x8xbf16> to vector<2x16x16x8xbf16>
    %37 = vector.shape_cast %36 : vector<2x16x16x8xbf16> to vector<2x256x8xbf16>
    %38 = vector.extract_strided_slice %0 {offsets = [0, 0, 1, 0], sizes = [2, 16, 16, 8], strides = [1, 1, 1, 1]} : vector<2x18x18x8xbf16> to vector<2x16x16x8xbf16>
    %39 = vector.shape_cast %38 : vector<2x16x16x8xbf16> to vector<2x256x8xbf16>
    %40 = vector.extract_strided_slice %0 {offsets = [0, 0, 2, 0], sizes = [2, 16, 16, 8], strides = [1, 1, 1, 1]} : vector<2x18x18x8xbf16> to vector<2x16x16x8xbf16>
    %41 = vector.shape_cast %40 : vector<2x16x16x8xbf16> to vector<2x256x8xbf16>
    %42 = vector.extract_strided_slice %0 {offsets = [0, 1, 0, 0], sizes = [2, 16, 16, 8], strides = [1, 1, 1, 1]} : vector<2x18x18x8xbf16> to vector<2x16x16x8xbf16>
    %43 = vector.shape_cast %42 : vector<2x16x16x8xbf16> to vector<2x256x8xbf16>
    %44 = vector.extract_strided_slice %0 {offsets = [0, 1, 1, 0], sizes = [2, 16, 16, 8], strides = [1, 1, 1, 1]} : vector<2x18x18x8xbf16> to vector<2x16x16x8xbf16>
    %45 = vector.shape_cast %44 : vector<2x16x16x8xbf16> to vector<2x256x8xbf16>
    %46 = vector.extract_strided_slice %0 {offsets = [0, 1, 2, 0], sizes = [2, 16, 16, 8], strides = [1, 1, 1, 1]} : vector<2x18x18x8xbf16> to vector<2x16x16x8xbf16>
    %47 = vector.shape_cast %46 : vector<2x16x16x8xbf16> to vector<2x256x8xbf16>
    %48 = vector.extract_strided_slice %0 {offsets = [0, 2, 0, 0], sizes = [2, 16, 16, 8], strides = [1, 1, 1, 1]} : vector<2x18x18x8xbf16> to vector<2x16x16x8xbf16>
    %49 = vector.shape_cast %48 : vector<2x16x16x8xbf16> to vector<2x256x8xbf16>
    %50 = vector.extract_strided_slice %0 {offsets = [0, 2, 1, 0], sizes = [2, 16, 16, 8], strides = [1, 1, 1, 1]} : vector<2x18x18x8xbf16> to vector<2x16x16x8xbf16>
    %51 = vector.shape_cast %50 : vector<2x16x16x8xbf16> to vector<2x256x8xbf16>
    %52 = vector.extract_strided_slice %0 {offsets = [0, 2, 2, 0], sizes = [2, 16, 16, 8], strides = [1, 1, 1, 1]} : vector<2x18x18x8xbf16> to vector<2x16x16x8xbf16>
    %53 = vector.shape_cast %52 : vector<2x16x16x8xbf16> to vector<2x256x8xbf16>
    %54 = tpu.concatenate %37, %39, %41, %43, %45, %47, %49, %51, %53 in 2 : vector<2x256x8xbf16>, vector<2x256x8xbf16>, vector<2x256x8xbf16>, vector<2x256x8xbf16>, vector<2x256x8xbf16>, vector<2x256x8xbf16>, vector<2x256x8xbf16>, vector<2x256x8xbf16>, vector<2x256x8xbf16> -> vector<2x256x72xbf16>
    %55 = vector.extract_strided_slice %54 {offsets = [0, 0, 0], sizes = [1, 256, 72], strides = [1, 1, 1]} : vector<2x256x72xbf16> to vector<1x256x72xbf16>
    %56 = vector.shape_cast %55 : vector<1x256x72xbf16> to vector<256x72xbf16>
    %57 = vector.extract_strided_slice %33 {offsets = [0, 0, 0], sizes = [1, 72, 8], strides = [1, 1, 1]} : vector<2x72x8xbf16> to vector<1x72x8xbf16>
    %58 = vector.shape_cast %57 : vector<1x72x8xbf16> to vector<72x8xbf16>
    %cst_24 = arith.constant dense<0.000000e+00> : vector<256x8xf32>
    %59 = tpu.matmul %56, %58, %cst_24 {dimension_numbers = #tpu.dot_dimension_numbers<[1], [0], [0], [1], [0, 0, 1, 1], [], []>} : vector<256x72xbf16>, vector<72x8xbf16>, vector<256x8xf32> -> vector<256x8xf32>
    %60 = vector.extract_strided_slice %35 {offsets = [0, 0], sizes = [1, 8], strides = [1, 1]} : vector<2x8xf32> to vector<1x8xf32>
    %61 = vector.broadcast %60 : vector<1x8xf32> to vector<256x8xf32>
    %62 = arith.addf %59, %61 : vector<256x8xf32>
    %63 = tpu.transpose %62, [1, 0] : vector<256x8xf32> -> vector<8x256xf32>
    %c0_25 = arith.constant 0 : index
    %c0_26 = arith.constant 0 : index
    %c0_27 = arith.constant 0 : index
    %64 = vector.load %arg8[%c0_25, %c0_26, %c0_27] : memref<2x8x256xf32, #tpu.memory_space<vmem>>, vector<1x8x256xf32>
    %65 = vector.shape_cast %64 : vector<1x8x256xf32> to vector<8x256xf32>
    %66 = vector.shape_cast %63 : vector<8x256xf32> to vector<1x8x256xf32>
    tpu.vector_store %arg8[%c0_25, %c0_26, %c0_27], %66 {strides = array<i32>} : memref<2x8x256xf32, #tpu.memory_space<vmem>>, vector<1x8x256xf32>,
    %67 = vector.extract_strided_slice %54 {offsets = [1, 0, 0], sizes = [1, 256, 72], strides = [1, 1, 1]} : vector<2x256x72xbf16> to vector<1x256x72xbf16>
    %68 = vector.shape_cast %67 : vector<1x256x72xbf16> to vector<256x72xbf16>
    %69 = vector.extract_strided_slice %33 {offsets = [1, 0, 0], sizes = [1, 72, 8], strides = [1, 1, 1]} : vector<2x72x8xbf16> to vector<1x72x8xbf16>
    %70 = vector.shape_cast %69 : vector<1x72x8xbf16> to vector<72x8xbf16>
    %cst_28 = arith.constant dense<0.000000e+00> : vector<256x8xf32>
    %71 = tpu.matmul %68, %70, %cst_28 {dimension_numbers = #tpu.dot_dimension_numbers<[1], [0], [0], [1], [0, 0, 1, 1], [], []>} : vector<256x72xbf16>, vector<72x8xbf16>, vector<256x8xf32> -> vector<256x8xf32>
    %72 = vector.extract_strided_slice %35 {offsets = [1, 0], sizes = [1, 8], strides = [1, 1]} : vector<2x8xf32> to vector<1x8xf32>
    %73 = vector.broadcast %72 : vector<1x8xf32> to vector<256x8xf32>
    %74 = arith.addf %71, %73 : vector<256x8xf32>
    %75 = tpu.transpose %74, [1, 0] : vector<256x8xf32> -> vector<8x256xf32>
    %c1 = arith.constant 1 : index
    %c0_29 = arith.constant 0 : index
    %c0_30 = arith.constant 0 : index
    %76 = vector.load %arg8[%c1, %c0_29, %c0_30] : memref<2x8x256xf32, #tpu.memory_space<vmem>>, vector<1x8x256xf32>
    %77 = vector.shape_cast %76 : vector<1x8x256xf32> to vector<8x256xf32>
    %78 = vector.shape_cast %75 : vector<8x256xf32> to vector<1x8x256xf32>
    tpu.vector_store %arg8[%c1, %c0_29, %c0_30], %78 {strides = array<i32>} : memref<2x8x256xf32, #tpu.memory_space<vmem>>, vector<1x8x256xf32>,
    return
  }
  func.func @transform_0(%arg0: i32) -> (i32, i32, i32, i32) {
    %c0_i32 = arith.constant 0 : i32
    %c0_i32_0 = arith.constant 0 : i32
    %c0_i32_1 = arith.constant 0 : i32
    %c0_i32_2 = arith.constant 0 : i32
    return %arg0, %c0_i32, %c0_i32_0, %c0_i32_1 : i32, i32, i32, i32
  }
  func.func @transform_1(%arg0: i32) -> (i32, i32) {
    %c0_i32 = arith.constant 0 : i32
    %c0_i32_0 = arith.constant 0 : i32
    %c0_i32_1 = arith.constant 0 : i32
    return %c0_i32, %c0_i32_0 : i32, i32
  }
  func.func @transform_2(%arg0: i32) -> (i32, i32) {
    %c0_i32 = arith.constant 0 : i32
    %c0_i32_0 = arith.constant 0 : i32
    %c0_i32_1 = arith.constant 0 : i32
    return %c0_i32, %c0_i32_0 : i32, i32
  }
  func.func @transform_3(%arg0: i32) -> (i32, i32) {
    %c0_i32 = arith.constant 0 : i32
    %c0_i32_0 = arith.constant 0 : i32
    %c0_i32_1 = arith.constant 0 : i32
    return %c0_i32, %c0_i32_0 : i32, i32
  }
  func.func @transform_4(%arg0: i32) -> (i32, i32) {
    %c0_i32 = arith.constant 0 : i32
    %c0_i32_0 = arith.constant 0 : i32
    %c0_i32_1 = arith.constant 0 : i32
    return %c0_i32, %c0_i32_0 : i32, i32
  }
  func.func @transform_5(%arg0: i32) -> (i32, i32) {
    %c0_i32 = arith.constant 0 : i32
    %c0_i32_0 = arith.constant 0 : i32
    %c0_i32_1 = arith.constant 0 : i32
    return %c0_i32, %c0_i32_0 : i32, i32
  }
  func.func @transform_6(%arg0: i32) -> (i32, i32) {
    %c0_i32 = arith.constant 0 : i32
    %c0_i32_0 = arith.constant 0 : i32
    %c0_i32_1 = arith.constant 0 : i32
    return %c0_i32, %c0_i32_0 : i32, i32
  }
  func.func @transform_7(%arg0: i32) -> (i32, i32, i32) {
    %c0_i32 = arith.constant 0 : i32
    %c0_i32_0 = arith.constant 0 : i32
    %c0_i32_1 = arith.constant 0 : i32
    return %arg0, %c0_i32, %c0_i32_0 : i32, i32, i32
  }
}

</mosaic_0001>

<bundles_post_ra>
// kernel: tpu_custom_call.1
= control target key start
LH: loop header
LB: loop body
LE: loop exit
PB: predicated region body
PF: predicated region fallthrough
CT: control target
= control target key end

     0   :  { %v356_v3 = vlaneseq  ;;  %vm4623_vm0 = vsmask.f32 3328  ;;  %v8362_v6 = vmov 1983009808   ;;  %vm4624_vm1 = vsmask.f32 7440  ;;  %s12851_s0 = inlined_call_operand.vmem [shape: bf16[2,18,18,8], index: 0, kind: input, shape index: {}]   ;;  %s12852_s1 = inlined_call_operand.vmem [shape: f32[8,2], index: 1, kind: input, shape index: {}]   ;;  %s12853_s2 = inlined_call_operand.vmem [shape: f32[1,2], index: 2, kind: input, shape index: {}]   ;;  %s12854_s3 = inlined_call_operand.vmem [shape: f32[2,4], index: 3, kind: input, shape index: {}]   ;;  %s12855_s4 = inlined_call_operand.vmem [shape: f32[1,4], index: 4, kind: input, shape index: {}]   ;;  %s12856_s5 = inlined_call_operand.vmem [shape: f32[4,576], index: 5, kind: input, shape index: {}]   ;;  %s12857_s6 = inlined_call_operand.vmem [shape: f32[4,8], index: 6, kind: input, shape index: {}]   ;;  %s12858_s7 = inlined_call_operand.hbm [shape: f32[2,8,256], index: 7, kind: output, shape index: {}]  }
   0x1   :  { %v31_v0 = vld [vmem:[%s12851_s0 + $0xc] sm:$0xf]  ;;  %v32_v1 = vld [vmem:[%s12851_s0 + $0x10] sm:$0xf]  ;;  %v33_v2 = vld [vmem:[%s12851_s0 + $0x14] sm:$0x1]  ;;  %v354_v7 = vunpack.c.l.s4 %v8362_v6 }
   0x2   :  { %v140_v4 = vunpack.c.l.bf16 %v32_v1  ;;  %v141_v5 = vunpack.c.l.bf16 %v33_v2  ;;  %v8432_v8 = vshrl.u32 %v356_v3, 7  ;;  %v4651_v9 = vshrl.u32 %v31_v0, 16  ;;  %v38_v14 = vld [vmem:[%s12851_s0 + $0x28] sm:$0xf]  ;;  %v37_v18 = vld [vmem:[%s12851_s0 + $0x24] sm:$0xf]  ;;  %vm8453_vm2 = vmor %vm4623_vm0, %vm4624_vm1 }
   0x3   :  { %v4654_v11 = vshll.u32 %v31_v0, 16  ;;  %v4660_v12 = vshll.u32 %v32_v1, 16  ;;  %v4664_v13 = vshrl.u32 %v32_v1, 16  ;;  %v355_v15 = vunpack.c.0.s8 %v354_v7  ;;  %v39_v19 = vld [vmem:[%s12851_s0 + $0x2c] sm:$0x1]  ;;  %s8363_s15 = smov 8  }
   0x4   :  { %13004 = vst [vmem:[#allocation5_spill] sm:$0xff] %v8432_v8  ;;  %v410_v10 = vcombine.high %v140_v4, %v140_v4  ;;  %v4653_v16 = vrot.slane %v4651_v9, 4  ;;  %v4670_v17 = vshll.u32 %v33_v2, 16  ;;  %v146_v20 = vunpack.c.l.bf16 %v38_v14  ;;  %v43_v57 = vld [vmem:[%s12851_s0 + $0x3c] sm:$0xf] }
   0x5   :  { %v4656_v21 = vrot.slane %v4654_v11, 5  ;;  %v4662_v22 = vrot.slane %v4660_v12, 5  ;;  %v4666_v23 = vrot.slane %v4664_v13, 4  ;;  %v147_v24 = vunpack.c.l.bf16 %v39_v19  ;;  %v44_v61 = vld [vmem:[%s12851_s0 + $0x40] sm:$0xf] }
   0x6   :  { %v8444_v25 = vsub.s32 %v355_v15, %v8432_v8  ;;  %v4672_v26 = vrot.slane %v4670_v17, 5  ;;  %v492_v27 = vcombine.high %v146_v20, %v146_v20  ;;  %v4699_v30 = vshrl.u32 %v37_v18, 16  ;;  %v45_v2 = vld [vmem:[%s12851_s0 + $0x44] sm:$0x1] }
   0x7   :  { %v4657_v28 = vor.u32 %v4656_v21, %v4653_v16  ;;  %v4667_v29 = vor.u32 %v4666_v23, %v4662_v22  ;;  %v4702_v31 = vshll.u32 %v37_v18, 16  ;;  %v13006_v35 = vmov 0 }
   0x8   :  { %13005 = vst [vmem:[#allocation6_spill] sm:$0xff] %v8444_v25  ;;  %v8447_v32 = vrot.slane %v140_v4, %v8444_v25  ;;  %v424_v33 = vrot.slane %v410_v10, %v8444_v25  ;;  %v433_v34 = vrot.slane %v141_v5, %v8444_v25  ;;  %v13007_v35 = vsel %vm8453_vm2, 4294967295, %v13006_v35 }
   0x9   :  { %13008 = vst [vmem:[#allocation7_spill] sm:$0xff] %v13007_v35  ;;  %v8458_v36 = vrot.slane %v146_v20, %v8444_v25  ;;  %v4658_v37 = vrot.slane %v4657_v28, 4  ;;  %v4668_v38 = vrot.slane %v4667_v29, 4  ;;  %v506_v39 = vrot.slane %v492_v27, %v8444_v25 }
   0xa   :  { %v515_v40 = vrot.slane %v147_v24, %v8444_v25  ;;  %v425_v41 = vcombine.high %v8447_v32, %v8447_v32  ;;  %v426_v42 = vcombine.high %v424_v33, %v424_v33  ;;  %v4701_v44 = vrot.slane %v4699_v30, 4  ;;  %v50_v24 = vld [vmem:[%s12851_s0 + $0x58] sm:$0xf] }
   0xb   :  { %v507_v43 = vcombine.high %v8458_v36, %v8458_v36  ;;  %v4663_v45 = vsel %vm8453_vm2, %v4658_v37, %v4662_v22  ;;  %v4673_v46 = vsel %vm8453_vm2, %v4668_v38, %v4672_v26  ;;  %v508_v47 = vcombine.high %v506_v39, %v506_v39  ;;  %v49_v37 = vld [vmem:[%s12851_s0 + $0x54] sm:$0xf]  ;;  %v51_v38 = vld [vmem:[%s12851_s0 + $0x5c] sm:$0x1] }
   0xc   :  { %v4704_v48 = vrot.slane %v4702_v31, 5  ;;  %v8470_v49 = vcombine.low %v425_v41, %v424_v33  ;;  %v8472_v50 = vcombine.low %v426_v42, %v433_v34  ;;  %v8474_v51 = vcombine.low %v4663_v45, %v4673_v46 }
   0xd   :  { %v1964_v52 = vcombine.low %v507_v43, %v506_v39  ;;  %v1965_v53 = vcombine.low %v508_v47, %v515_v40  ;;  %v4708_v55 = vshll.u32 %v38_v14, 16  ;;  %v4712_v56 = vshrl.u32 %v38_v14, 16 }
   0xe   :  { %13009 = vst [vmem:[#allocation8_spill] sm:$0xff] %v8474_v51  ;;  %v4705_v54 = vor.u32 %v4704_v48, %v4701_v44  ;;  %6047 = vrot.lane.b32.xlu1 %v8474_v51, %s8363_s15  ;;  %vm3286_vm3 = vcmask 64512   ;;  %v4718_v60 = vshll.u32 %v39_v19, 16  ;;  %v152_v4 = vunpack.c.l.bf16 %v44_v61 }
   0xf   :  { %v1972_v59 = vrot.slane %v1964_v52, %v8444_v25  ;;  %v1979_v62 = vrot.slane %v1965_v53, %v8444_v25  ;;  %v4710_v0 = vrot.slane %v4708_v55, 5  ;;  %v4714_v1 = vrot.slane %v4712_v56, 4 }
  0x10   :  { %v4706_v63 = vrot.slane %v4705_v54, 4  ;;  %v153_v5 = vunpack.c.l.bf16 %v45_v2  ;;  %v4747_v6 = vshrl.u32 %v43_v57, 16  ;;  %v4720_v10 = vrot.slane %v4718_v60, 5 }
  0x11   :  { %v1980_v7 = vcombine.low %v1972_v59, %v1979_v62  ;;  %v4715_v9 = vor.u32 %v4714_v1, %v4710_v0  ;;  %v4750_v11 = vshll.u32 %v43_v57, 16  ;;  %v574_v13 = vcombine.high %v152_v4, %v152_v4 }
  0x12   :  { %v4711_v12 = vsel %vm8453_vm2, %v4706_v63, %v4710_v0  ;;  %v8496_v14 = vrot.slane %v152_v4, %v8444_v25  ;;  %v4749_v15 = vrot.slane %v4747_v6, 4  ;;  %v597_v17 = vrot.slane %v153_v5, %v8444_v25  ;;  %v58_v4 = vld [vmem:[%s12851_s0 + $0x78] sm:$0xf] }
  0x13   :  { %v4716_v16 = vrot.slane %v4715_v9, 4  ;;  %v4752_v18 = vrot.slane %v4750_v11, 5  ;;  %v4756_v19 = vshll.u32 %v44_v61, 16  ;;  %v588_v20 = vrot.slane %v574_v13, %v8444_v25  ;;  %v56_v11 = vld [vmem:[%s12851_s0 + $0x70] sm:$0xf] }
  0x14   :  { %v589_v21 = vcombine.high %v8496_v14, %v8496_v14  ;;  %v4760_v22 = vshrl.u32 %v44_v61, 16  ;;  %v4766_v23 = vshll.u32 %v45_v2, 16  ;;  %v158_v29 = vunpack.c.l.bf16 %v50_v24 }
  0x15   :  { %v4721_v26 = vsel %vm8453_vm2, %v4716_v16, %v4720_v10  ;;  %v4753_v27 = vor.u32 %v4752_v18, %v4749_v15  ;;  %v4758_v28 = vrot.slane %v4756_v19, 5  ;;  %v590_v31 = vcombine.high %v588_v20, %v588_v20  ;;  %v55_v10 = vld [vmem:[%s12851_s0 + $0x6c] sm:$0xf]  ;;  %v57_v16 = vld [vmem:[%s12851_s0 + $0x74] sm:$0x1] }
  0x16   :  { %v8507_v30 = vcombine.low %v4711_v12, %v4721_v26  ;;  %v8509_v33 = vcombine.low %v589_v21, %v588_v20  ;;  %v4762_v34 = vrot.slane %v4760_v22, 4  ;;  %v8518_v39 = vsel %vm3286_vm3, %v1980_v7, 0.0 }
  0x17   :  { %v4754_v40 = vrot.slane %v4753_v27, 4  ;;  %v159_v41 = vunpack.c.l.bf16 %v51_v38  ;;  %v656_v42 = vcombine.high %v158_v29, %v158_v29  ;;  %v4768_v45 = vrot.slane %v4766_v23, 5 }
  0x18   :  { %13010 = vst [vmem:[#allocation9_spill] sm:$0xff] %v8507_v30  ;;  %6051 = vrot.lane.b32.xlu1 %v8507_v30, %s8363_s15  ;;  %v4763_v44 = vor.u32 %v4762_v34, %v4758_v28  ;;  %v8525_v46 = vrot.slane %v158_v29, %v8444_v25  ;;  %v8527_v47 = vcombine.low %v590_v31, %v597_v17  ;;  %v4795_v53 = vshrl.u32 %v49_v37, 16 }
  0x19   :  { %v670_v48 = vrot.slane %v656_v42, %v8444_v25  ;;  %v679_v52 = vrot.slane %v159_v41, %v8444_v25  ;;  %v4759_v54 = vsel %vm8453_vm2, %v4754_v40, %v4758_v28  ;;  %v4798_v57 = vshll.u32 %v49_v37, 16 }
  0x1a   :  { %v4764_v55 = vrot.slane %v4763_v44, 4  ;;  %v671_v56 = vcombine.high %v8525_v46, %v8525_v46  ;;  %v4797_v60 = vrot.slane %v4795_v53, 4  ;;  %v4804_v61 = vshll.u32 %v50_v24, 16 }
  0x1b   :  { %v672_v59 = vcombine.high %v670_v48, %v670_v48  ;;  %v4808_v62 = vshrl.u32 %v50_v24, 16  ;;  %v4800_v1 = vrot.slane %v4798_v57, 5  ;;  %v4814_v2 = vshll.u32 %v51_v38, 16 }
  0x1c   :  { %v4769_v63 = vsel %vm8453_vm2, %v4764_v55, %v4768_v45  ;;  %v2117_v0 = vcombine.low %v671_v56, %v670_v48  ;;  %v4806_v7 = vrot.slane %v4804_v61, 5  ;;  %v164_v17 = vunpack.c.l.bf16 %v56_v11 }
  0x1d   :  { %v8540_v5 = vcombine.low %v4759_v54, %v4769_v63  ;;  %v2118_v6 = vcombine.low %v672_v59, %v679_v52  ;;  %v4810_v9 = vrot.slane %v4808_v62, 4  ;;  %v4801_v13 = vor.u32 %v4800_v1, %v4797_v60 }
  0x1e   :  { %v2125_v12 = vrot.slane %v2117_v0, %v8444_v25  ;;  %v4816_v15 = vrot.slane %v4814_v2, 5 }
  0x1f   :  { %13011 = vst [vmem:[#allocation10_spill] sm:$0xff] %v8540_v5 }
  0x20   :  { %12 = vsyncpa [#allocation3], 0  ;;  %6055 = vrot.lane.b32.xlu1 %v8540_v5, %s8363_s15  ;;  %v2132_v18 = vrot.slane %v2118_v6, %v8444_v25  ;;  %v4811_v19 = vor.u32 %v4810_v9, %v4806_v7  ;;  %v165_v20 = vunpack.c.l.bf16 %v57_v16  ;;  %v166_v21 = vunpack.c.l.bf16 %v58_v4  ;;  %v59_v60 = vld [vmem:[%s12851_s0 + $0x7c] sm:$0xf]  ;;  %v60_v1 = vld [vmem:[%s12851_s0 + $0x80] sm:$0x1] }
  0x21   :  { %v4802_v22 = vrot.slane %v4801_v13, 4  ;;  %v738_v23 = vcombine.high %v164_v17, %v164_v17  ;;  %v8556_v24 = vrot.slane %v164_v17, %v8444_v25  ;;  %v4843_v26 = vshrl.u32 %v55_v10, 16  ;;  %v62_v17 = vld [vmem:[%s12851_s0 + $0x88] sm:$0xf]  ;;  %s8364_s18 = smov 16   ;;  %s8367_s11 = smov 24  }
  0x22   :  { %v2133_v27 = vcombine.low %v2125_v12, %v2132_v18  ;;  %v4812_v28 = vrot.slane %v4811_v19, 4  ;;  %v761_v29 = vrot.slane %v165_v20, %v8444_v25  ;;  %v762_v31 = vcombine.high %v166_v21, %v166_v21  ;;  %v61_v12 = vld [vmem:[%s12851_s0 + $0x84] sm:$0xf]  ;;  %v63_v18 = vld [vmem:[%s12851_s0 + $0x8c] sm:$0x1]  ;;  %s8368_s30 = smov 32  }
  0x23   :  { %v4807_v34 = vsel %vm8453_vm2, %v4802_v22, %v4806_v7  ;;  %v752_v37 = vrot.slane %v738_v23, %v8444_v25  ;;  %v753_v38 = vcombine.high %v8556_v24, %v8556_v24  ;;  %v769_v40 = vrot.slane %v166_v21, %v8444_v25  ;;  %s8369_s16 = smov 40   ;;  %s8370_s17 = smov 48  }
  0x24   :  { %v8568_v42 = vsel %vm3286_vm3, %v2133_v27, 0.0  ;;  %v4817_v44 = vsel %vm8453_vm2, %v4812_v28, %v4816_v15  ;;  %v776_v45 = vrot.slane %v762_v31, %v8444_v25  ;;  %v4845_v55 = vrot.slane %v4843_v26, 4  ;;  %s8371_s19 = smov 56   ;;  %s8372_s20 = smov 64  }
  0x25   :  { %v8573_v48 = vcombine.low %v4807_v34, %v4817_v44  ;;  %v754_v52 = vcombine.high %v752_v37, %v752_v37  ;;  %v777_v53 = vcombine.high %v769_v40, %v769_v40  ;;  %v8575_v54 = vcombine.low %v753_v38, %v752_v37  ;;  %s8375_s12 = smov 112   ;;  %s8376_s13 = smov 96  }
  0x26   :  { %v4846_v56 = vshll.u32 %v55_v10, 16  ;;  %v4852_v57 = vshll.u32 %v56_v11, 16  ;;  %v4856_v59 = vshrl.u32 %v56_v11, 16  ;;  %v778_v61 = vcombine.high %v776_v45, %v776_v45  ;;  %s8377_s14 = smov 88   ;;  %s8378_s21 = smov 80  }
  0x27   :  { %13012 = vst [vmem:[#allocation11_spill] sm:$0xff] %v8573_v48  ;;  %6059 = vrot.lane.b32.xlu1 %v8573_v48, %s8363_s15  ;;  %v2202_v62 = vcombine.low %v754_v52, %v761_v29  ;;  %v2203_v63 = vcombine.low %v769_v40, %v777_v53  ;;  %v4862_v0 = vshll.u32 %v57_v16, 16  ;;  %v8592_v13 = vunpack.c.l.bf16 %v59_v60  ;;  %s8379_s22 = smov 72  }
  0x28   :  { %v4848_v4 = vrot.slane %v4846_v56, 5  ;;  %v4854_v6 = vrot.slane %v4852_v57, 5  ;;  %v4858_v7 = vrot.slane %v4856_v59, 4  ;;  %v168_v19 = vunpack.c.l.bf16 %v60_v1 }
  0x29   :  { %v2210_v9 = vrot.slane %v2202_v62, %v8444_v25  ;;  %v2217_v10 = vrot.slane %v2203_v63, %v8444_v25  ;;  %v4864_v11 = vrot.slane %v4862_v0, 5  ;;  %v169_v20 = vunpack.c.l.bf16 %v61_v12 }
  0x2a   :  { %v4849_v15 = vor.u32 %v4848_v4, %v4845_v55  ;;  %v4859_v16 = vor.u32 %v4858_v7, %v4854_v6  ;;  %v8600_v21 = vcombine.low %v776_v45, %v778_v61  ;;  %v170_v22 = vunpack.c.l.bf16 %v62_v17 }
  0x2b   :  { %v171_v23 = vunpack.c.l.bf16 %v63_v18  ;;  %v779_v26 = vcombine.high %v8592_v13, %v8592_v13  ;;  %v802_v29 = vrot.slane %v168_v19, %v8444_v25  ;;  %v803_v31 = vcombine.high %v169_v20, %v169_v20 }
  0x2c   :  { %v4850_v27 = vrot.slane %v4849_v15, 4  ;;  %v4860_v28 = vrot.slane %v4859_v16, 4  ;;  %v2218_v34 = vcombine.low %v2210_v9, %v2217_v10  ;;  %v810_v38 = vrot.slane %v169_v20, %v8444_v25 }
  0x2d   :  { %v793_v37 = vrot.slane %v779_v26, %v8444_v25  ;;  %v820_v40 = vcombine.high %v170_v22, %v170_v22  ;;  %v817_v52 = vrot.slane %v803_v31, %v8444_v25  ;;  %v827_v53 = vrot.slane %v170_v22, %v8444_v25  ;;  %v66_v22 = vld [vmem:[%s12851_s0 + $0x98] sm:$0x1] }
  0x2e   :  { %v4855_v44 = vsel %vm8453_vm2, %v4850_v27, %v4854_v6  ;;  %v4865_v45 = vsel %vm8453_vm2, %v4860_v28, %v4864_v11  ;;  %v818_v57 = vcombine.high %v810_v38, %v810_v38  ;;  %v843_v62 = vrot.slane %v171_v23, %v8444_v25 }
  0x2f   :  { %v8613_v55 = vcombine.low %v4855_v44, %v4865_v45  ;;  %v795_v56 = vcombine.high %v793_v37, %v793_v37  ;;  %v834_v59 = vrot.slane %v820_v40, %v8444_v25  ;;  %v819_v60 = vcombine.high %v817_v52, %v817_v52  ;;  %v67_v45 = vld [vmem:[%s12851_s0 + $0x9c] sm:$0xf] }
  0x30   :  { %v835_v61 = vcombine.high %v827_v53, %v827_v53  ;;  %v2237_v63 = vcombine.low %v802_v29, %v810_v38  ;;  %v2253_v4 = vcombine.low %v818_v57, %v817_v52  ;;  %v4891_v6 = vshrl.u32 %v61_v12, 16  ;;  %v70_v52 = vld [vmem:[%s12851_s0 + $0xa8] sm:$0xf] }
  0x31   :  { %13013 = vst [vmem:[#allocation12_spill] sm:$0xff] %v8613_v55  ;;  %6063 = vrot.lane.b32.xlu1 %v8613_v55, %s8363_s15  ;;  %v836_v0 = vcombine.high %v834_v59, %v834_v59  ;;  %v2236_v1 = vcombine.low %v793_v37, %v795_v56  ;;  %v2254_v9 = vcombine.low %v819_v60, %v827_v53  ;;  %v4894_v11 = vshll.u32 %v61_v12, 16 }
  0x32   :  { %v2251_v7 = vrot.slane %v2237_v63, %v8444_v25  ;;  %v2270_v10 = vcombine.low %v835_v61, %v834_v59  ;;  %v2261_v16 = vrot.slane %v2253_v4, %v8444_v25  ;;  %v4893_v20 = vrot.slane %v4891_v6, 4 }
  0x33   :  { %v2244_v15 = vrot.slane %v2236_v1, %v8444_v25  ;;  %v2271_v19 = vcombine.low %v836_v0, %v843_v62  ;;  %v2268_v23 = vrot.slane %v2254_v9, %v8444_v25  ;;  %v4896_v27 = vrot.slane %v4894_v11, 5 }
  0x34   :  { %v2278_v26 = vrot.slane %v2270_v10, %v8444_v25  ;;  %v4900_v28 = vshll.u32 %v62_v17, 16  ;;  %v8628_v29 = vsel %vm3286_vm3, %v2218_v34, 0.0  ;;  %v4904_v31 = vshrl.u32 %v62_v17, 16  ;;  %v68_v17 = vld [vmem:[%s12851_s0 + $0xa0] sm:$0xf] }
  0x35   :  { %v2285_v12 = vrot.slane %v2271_v19, %v8444_v25  ;;  %v4910_v37 = vshll.u32 %v63_v18, 16  ;;  %v2269_v38 = vcombine.low %v2261_v16, %v2268_v23  ;;  %v4897_v40 = vor.u32 %v4896_v27, %v4893_v20  ;;  %v8645_v18 = vld [vmem:[%s12851_s0 + $0xa4] sm:$0x1] }
  0x36   :  { %v4902_v44 = vrot.slane %v4900_v28, 5  ;;  %v174_v53 = vunpack.c.l.bf16 %v66_v22  ;;  %v8637_v56 = vcombine.low %v2244_v15, %v2251_v7  ;;  %v4906_v57 = vrot.slane %v4904_v31, 4 }
  0x37   :  { %v2286_v34 = vcombine.low %v2278_v26, %v2285_v12  ;;  %v175_v59 = vunpack.c.l.bf16 %v67_v45  ;;  %v4898_v60 = vrot.slane %v4897_v40, 4  ;;  %v4912_v61 = vrot.slane %v4910_v37, 5 }
  0x38   :  { %v176_v62 = vunpack.c.l.bf16 %v68_v17  ;;  %v177_v63 = vunpack.c.l.bf16 %v8645_v18  ;;  %v8649_v0 = vsel %vm3286_vm3, %v2269_v38, 0.0  ;;  %v4907_v1 = vor.u32 %v4906_v57, %v4902_v44 }
  0x39   :  { %v178_v4 = vunpack.c.l.bf16 %v70_v52  ;;  %v884_v6 = vrot.slane %v174_v53, %v8444_v25  ;;  %v4903_v7 = vsel %vm8453_vm2, %v4898_v60, %v4902_v44  ;;  %v885_v9 = vcombine.high %v175_v59, %v175_v59 }
  0x3a   :  { %v892_v10 = vrot.slane %v175_v59, %v8444_v25  ;;  %v902_v11 = vcombine.high %v176_v62, %v176_v62  ;;  %v4908_v15 = vrot.slane %v4907_v1, 4  ;;  %v909_v16 = vrot.slane %v176_v62, %v8444_v25 }
  0x3b   :  { %v925_v19 = vrot.slane %v177_v63, %v8444_v25  ;;  %v926_v20 = vcombine.high %v178_v4, %v178_v4  ;;  %v899_v22 = vrot.slane %v885_v9, %v8444_v25  ;;  %v933_v27 = vrot.slane %v178_v4, %v8444_v25 }
  0x3c   :  { %v900_v23 = vcombine.high %v892_v10, %v892_v10  ;;  %v916_v26 = vrot.slane %v902_v11, %v8444_v25  ;;  %v4913_v28 = vsel %vm8453_vm2, %v4908_v15, %v4912_v61  ;;  %v917_v12 = vcombine.high %v909_v16, %v909_v16 }
  0x3d   :  { %v940_v31 = vrot.slane %v926_v20, %v8444_v25  ;;  %v2321_v37 = vcombine.low %v884_v6, %v892_v10  ;;  %v8663_v38 = vcombine.low %v4903_v7, %v4913_v28  ;;  %v901_v40 = vcombine.high %v899_v22, %v899_v22  ;;  %v72_v10 = vld [vmem:[%s12851_s0 + $0xb0] sm:$0x1] }
  0x3e   :  { %v918_v44 = vcombine.high %v916_v26, %v916_v26  ;;  %v941_v52 = vcombine.high %v933_v27, %v933_v27  ;;  %v2322_v57 = vcombine.low %v900_v23, %v899_v22  ;;  %v2339_v60 = vcombine.low %v917_v12, %v916_v26 }
  0x3f   :  { %13014 = vst [vmem:[#allocation13_spill] sm:$0xff] %v8663_v38  ;;  %v942_v53 = vcombine.high %v940_v31, %v940_v31  ;;  %v2329_v59 = vrot.slane %v2321_v37, %v8444_v25  ;;  %6067 = vrot.lane.b32.xlu1 %v8663_v38, %s8363_s15  ;;  %v2338_v62 = vcombine.low %v901_v40, %v909_v16  ;;  %v4939_v1 = vshrl.u32 %v67_v45, 16 }
  0x40   :  { %v2355_v63 = vcombine.low %v918_v44, %v925_v19  ;;  %v2356_v61 = vcombine.low %v933_v27, %v941_v52  ;;  %v8669_v4 = vsel %vm3286_vm3, %v2286_v34, 0.0  ;;  %v2336_v6 = vrot.slane %v2322_v57, %v8444_v25  ;;  %v73_v52 = vld [vmem:[%s12851_s0 + $0xb4] sm:$0xf]  ;;  %v74_v57 = vld [vmem:[%s12851_s0 + $0xb8] sm:$0xf] }
  0x41   :  { %v2353_v7 = vrot.slane %v2339_v60, %v8444_v25  ;;  %v4942_v9 = vshll.u32 %v67_v45, 16  ;;  %v2346_v11 = vrot.slane %v2338_v62, %v8444_v25  ;;  %v4941_v19 = vrot.slane %v4939_v1, 4 }
  0x42   :  { %v2363_v15 = vrot.slane %v2355_v63, %v8444_v25  ;;  %v2370_v16 = vrot.slane %v2356_v61, %v8444_v25  ;;  %v2337_v20 = vcombine.low %v2329_v59, %v2336_v6  ;;  %v4948_v34 = vshll.u32 %v68_v17, 16 }
  0x43   :  { %v4944_v22 = vrot.slane %v4942_v9, 5  ;;  %v4952_v23 = vshrl.u32 %v68_v17, 16  ;;  %v2354_v26 = vcombine.low %v2346_v11, %v2353_v7  ;;  %v8679_v27 = vcombine.low %v940_v31, %v942_v53  ;;  %v75_v53 = vld [vmem:[%s12851_s0 + $0xbc] sm:$0x1] }
  0x44   :  { %v4958_v45 = vshll.u32 %v8645_v18, 16  ;;  %v180_v28 = vunpack.c.l.bf16 %v72_v10  ;;  %v2371_v12 = vcombine.low %v2363_v15, %v2370_v16  ;;  %v4950_v40 = vrot.slane %v4948_v34, 5 }
  0x45   :  { %v4945_v37 = vor.u32 %v4944_v22, %v4941_v19  ;;  %v4954_v44 = vrot.slane %v4952_v23, 4  ;;  %v8689_v17 = vsel %vm3286_vm3, %v2337_v20, 0.0  ;;  %v8692_v31 = vsel %vm3286_vm3, %v2354_v26, 0.0 }
  0x46   :  { %13015 = vst [vmem:[#allocation14_spill] sm:$0xff] %v8689_v17  ;;  %13016 = vst [vmem:[#allocation15_spill] sm:$0xff] %v8692_v31  ;;  %v4960_v18 = vrot.slane %v4958_v45, 5  ;;  %v181_v59 = vunpack.c.l.bf16 %v73_v52  ;;  %v182_v63 = vunpack.c.l.bf16 %v74_v57  ;;  %v183_v61 = vunpack.c.l.bf16 %v75_v53 }
  0x47   :  { %v4946_v60 = vrot.slane %v4945_v37, 4  ;;  %v4955_v62 = vor.u32 %v4954_v44, %v4950_v40  ;;  %v966_v1 = vrot.slane %v180_v28, %v8444_v25  ;;  %v4987_v9 = vshrl.u32 %v73_v52, 16  ;;  %v82_v37 = vld [vmem:[%s12851_s0 + $0xd8] sm:$0xf] }
  0x48   :  { %v967_v6 = vcombine.high %v181_v59, %v181_v59  ;;  %v974_v7 = vrot.slane %v181_v59, %v8444_v25  ;;  %v984_v15 = vcombine.high %v182_v63, %v182_v63  ;;  %v991_v16 = vrot.slane %v182_v63, %v8444_v25 }
  0x49   :  { %v4951_v10 = vsel %vm8453_vm2, %v4946_v60, %v4950_v40  ;;  %v4956_v11 = vrot.slane %v4955_v62, 4  ;;  %v8703_v19 = vsel %vm3286_vm3, %v2371_v12, 0.0  ;;  %v1007_v28 = vrot.slane %v183_v61, %v8444_v25  ;;  %v84_v61 = vld [vmem:[%s12851_s0 + $0xe0] sm:$0x1] }
  0x4a   :  { %13017 = vst [vmem:[#allocation16_spill] sm:$0xff] %v8703_v19  ;;  %v981_v20 = vrot.slane %v967_v6, %v8444_v25  ;;  %v982_v22 = vcombine.high %v974_v7, %v974_v7  ;;  %v2390_v34 = vcombine.low %v966_v1, %v974_v7  ;;  %v998_v26 = vrot.slane %v984_v15, %v8444_v25  ;;  %v83_v1 = vld [vmem:[%s12851_s0 + $0xdc] sm:$0xf] }
  0x4b   :  { %v4961_v23 = vsel %vm8453_vm2, %v4956_v11, %v4960_v18  ;;  %v999_v45 = vcombine.high %v991_v16, %v991_v16  ;;  %v4989_v59 = vrot.slane %v4987_v9, 4  ;;  %v4990_v63 = vshll.u32 %v73_v52, 16  ;;  %v8731_v52 = vld [vmem:[%s12851_s0 + $0xe4] sm:$0xf]  ;;  %v8736_v9 = vld [vmem:[%s12851_s0 + $0xe8] sm:$0xf] }
  0x4c   :  { %v8713_v40 = vcombine.low %v4951_v10, %v4961_v23  ;;  %v983_v12 = vcombine.high %v981_v20, %v981_v20  ;;  %v8716_v44 = vrot.slane %v2390_v34, %v8444_v25  ;;  %v1000_v60 = vcombine.high %v998_v26, %v998_v26 }
  0x4d   :  { %v2423_v62 = vcombine.low %v999_v45, %v998_v26  ;;  %v4996_v18 = vshll.u32 %v74_v57, 16  ;;  %v8726_v6 = vcombine.low %v982_v22, %v981_v20  ;;  %v5000_v7 = vshrl.u32 %v74_v57, 16  ;;  %v8742_v57 = vld [vmem:[%s12851_s0 + $0xec] sm:$0x1] }
  0x4e   :  { %13018 = vst [vmem:[#allocation17_spill] sm:$0xff] %v8713_v40  ;;  %6071 = vrot.lane.b32.xlu1 %v8713_v40, %s8363_s15  ;;  %v5006_v10 = vshll.u32 %v75_v53, 16  ;;  %v190_v11 = vunpack.c.l.bf16 %v82_v37  ;;  %v2424_v15 = vcombine.low %v1000_v60, %v1007_v28  ;;  %v4992_v23 = vrot.slane %v4990_v63, 5  ;;  %v88_v53 = vld [vmem:[%s12851_s0 + $0xf0] sm:$0xf] }
  0x4f   :  { %v2431_v34 = vrot.slane %v2423_v62, %v8444_v25  ;;  %v4998_v26 = vrot.slane %v4996_v18, 5  ;;  %v8747_v20 = vcombine.low %v983_v12, %v991_v16  ;;  %v5002_v22 = vrot.slane %v5000_v7, 4  ;;  %v89_v28 = vld [vmem:[%s12851_s0 + $0xf4] sm:$0xf] }
  0x50   :  { %v5008_v45 = vrot.slane %v5006_v10, 5  ;;  %v191_v37 = vunpack.c.l.bf16 %v83_v1  ;;  %v2438_v60 = vrot.slane %v2424_v15, %v8444_v25  ;;  %v4993_v62 = vor.u32 %v4992_v23, %v4989_v59 }
  0x51   :  { %v192_v63 = vunpack.c.l.bf16 %v84_v61  ;;  %v193_v18 = vunpack.c.l.bf16 %v8731_v52  ;;  %v5003_v2 = vor.u32 %v5002_v22, %v4998_v26  ;;  %v194_v41 = vunpack.c.l.bf16 %v8736_v9 }
  0x52   :  { %v195_v43 = vunpack.c.l.bf16 %v8742_v57  ;;  %v196_v16 = vunpack.c.l.bf16 %v88_v53  ;;  %v2439_v12 = vcombine.low %v2431_v34, %v2438_v60  ;;  %v4994_v7 = vrot.slane %v4993_v62, 4 }
  0x53   :  { %v8756_v10 = vunpack.c.l.bf16 %v89_v28  ;;  %v1090_v3 = vcombine.high %v190_v11, %v190_v11  ;;  %v5004_v58 = vrot.slane %v5003_v2, 4  ;;  %v1097_v1 = vrot.slane %v190_v11, %v8444_v25 }
  0x54   :  { %v1107_v8 = vcombine.high %v191_v37, %v191_v37  ;;  %v1114_v59 = vrot.slane %v191_v37, %v8444_v25  ;;  %v8761_v61 = vsel %vm3286_vm3, %v2439_v12, 0.0  ;;  %v4999_v15 = vsel %vm8453_vm2, %v4994_v7, %v4998_v26 }
  0x55   :  { %13019 = vst [vmem:[#allocation18_spill] sm:$0xff] %v8761_v61  ;;  %v1104_v23 = vrot.slane %v1090_v3, %v8444_v25  ;;  %v1130_v34 = vrot.slane %v192_v63, %v8444_v25  ;;  %v5009_v53 = vsel %vm8453_vm2, %v5004_v58, %v5008_v45  ;;  %v1105_v22 = vcombine.high %v1097_v1, %v1097_v1 }
  0x56   :  { %v1121_v2 = vrot.slane %v1107_v8, %v8444_v25  ;;  %v1122_v11 = vcombine.high %v1114_v59, %v1114_v59  ;;  %v8770_v28 = vcombine.low %v4999_v15, %v5009_v53  ;;  %v1131_v60 = vcombine.high %v193_v18, %v193_v18 }
  0x57   :  { %v1106_v37 = vcombine.high %v1104_v23, %v1104_v23  ;;  %v1138_v62 = vrot.slane %v193_v18, %v8444_v25  ;;  %v1148_v40 = vcombine.high %v194_v41, %v194_v41  ;;  %v1155_v26 = vrot.slane %v194_v41, %v8444_v25 }
  0x58   :  { %13020 = vst [vmem:[#allocation19_spill] sm:$0xff] %v8770_v28  ;;  %v1123_v12 = vcombine.high %v1121_v2, %v1121_v2  ;;  %v1171_v3 = vrot.slane %v195_v43, %v8444_v25  ;;  %6075 = vrot.lane.b32.xlu1 %v8770_v28, %s8363_s15  ;;  %v1145_v58 = vrot.slane %v1131_v60, %v8444_v25  ;;  %vm5490_vm4 = vcmask 1042432  }
  0x59   :  { %v1146_v45 = vcombine.high %v1138_v62, %v1138_v62  ;;  %v1172_v8 = vcombine.high %v196_v16, %v196_v16  ;;  %v1179_v63 = vrot.slane %v196_v16, %v8444_v25  ;;  %v1162_v7 = vrot.slane %v1148_v40, %v8444_v25 }
  0x5a   :  { %v1163_v15 = vcombine.high %v1155_v26, %v1155_v26  ;;  %v1196_v18 = vrot.slane %v8756_v10, %v8444_v25  ;;  %v2516_v53 = vcombine.low %v1097_v1, %v1105_v22  ;;  %v1147_v38 = vcombine.high %v1145_v58, %v1145_v58 }
  0x5b   :  { %v1186_v41 = vrot.slane %v1172_v8, %v8444_v25  ;;  %v1187_v43 = vcombine.high %v1179_v63, %v1179_v63  ;;  %v2517_v55 = vcombine.low %v1104_v23, %v1106_v37  ;;  %v1164_v48 = vcombine.high %v1162_v7, %v1162_v7 }
  0x5c   :  { %v1204_v28 = vcombine.high %v1196_v18, %v1196_v18  ;;  %v2524_v60 = vrot.slane %v2516_v53, %v8444_v25  ;;  %v2533_v5 = vcombine.low %v1114_v59, %v1122_v11  ;;  %v2534_v51 = vcombine.low %v1121_v2, %v1123_v12 }
  0x5d   :  { %v1188_v30 = vcombine.high %v1186_v41, %v1186_v41  ;;  %v2531_v16 = vrot.slane %v2517_v55, %v8444_v25  ;;  %v2550_v40 = vcombine.low %v1130_v34, %v1138_v62  ;;  %v2551_v19 = vcombine.low %v1146_v45, %v1145_v58  ;;  %v8806_v45 = vld [vmem:[%s12851_s0 + $0xfc] sm:$0xf] }
  0x5e   :  { %v2541_v61 = vrot.slane %v2533_v5, %v8444_v25  ;;  %v2567_v31 = vcombine.low %v1147_v38, %v1155_v26  ;;  %v2568_v1 = vcombine.low %v1163_v15, %v1162_v7  ;;  %v2548_v8 = vrot.slane %v2534_v51, %v8444_v25 }
  0x5f   :  { %v2532_v22 = vcombine.low %v2524_v60, %v2531_v16  ;;  %v2558_v23 = vrot.slane %v2550_v40, %v8444_v25  ;;  %v2584_v37 = vcombine.low %v1164_v48, %v1171_v3  ;;  %v2565_v17 = vrot.slane %v2551_v19, %v8444_v25 }
  0x60   :  { %v2575_v59 = vrot.slane %v2567_v31, %v8444_v25  ;;  %v2582_v11 = vrot.slane %v2568_v1, %v8444_v25  ;;  %v2585_v55 = vcombine.low %v1179_v63, %v1187_v43  ;;  %v2549_v2 = vcombine.low %v2541_v61, %v2548_v8  ;;  %v90_v61 = vld [vmem:[%s12851_s0 + $0xf8] sm:$0x1]  ;;  %v8811_v63 = vld [vmem:[%s12851_s0 + $0x100] sm:$0xf]  ;;  %v94_v1 = vld [vmem:[%s12851_s0 + $0x108] sm:$0xf] }
  0x61   :  { %v2592_v34 = vrot.slane %v2584_v37, %v8444_v25  ;;  %v2601_v5 = vcombine.low %v1186_v41, %v1188_v30  ;;  %v2602_v62 = vcombine.low %v1196_v18, %v1204_v28  ;;  %v2566_v38 = vcombine.low %v2558_v23, %v2565_v17  ;;  %v8818_v41 = vld [vmem:[%s12851_s0 + $0x104] sm:$0x1]  ;;  %v95_v23 = vld [vmem:[%s12851_s0 + $0x10c] sm:$0xf] }
  0x62   :  { %v2583_v12 = vcombine.low %v2575_v59, %v2582_v11  ;;  %v2599_v26 = vrot.slane %v2585_v55, %v8444_v25  ;;  %v3375_v51 = vsel %vm3286_vm3, %v2532_v22, 0.0  ;;  %v3376_v31 = vsel %vm3286_vm3, %v2549_v2, 0.0 }
  0x63   :  { %v2609_v48 = vrot.slane %v2601_v5, %v8444_v25  ;;  %v2616_v19 = vrot.slane %v2602_v62, %v8444_v25  ;;  %v5035_v3 = vshrl.u32 %v8731_v52, 16  ;;  %v3377_v28 = vadd.f32 %v3376_v31, %v3375_v51 }
  0x64   :  { %v2600_v30 = vcombine.low %v2592_v34, %v2599_v26  ;;  %v3378_v17 = vsel %vm3286_vm3, %v2566_v38, 0.0  ;;  %v3380_v58 = vsel %vm3286_vm3, %v2583_v12, 0.0  ;;  %v5038_v18 = vshll.u32 %v8731_v52, 16 }
  0x65   :  { %v2617_v7 = vcombine.low %v2609_v48, %v2616_v19  ;;  %v5037_v15 = vrot.slane %v5035_v3, 4  ;;  %v5044_v53 = vshll.u32 %v8736_v9, 16  ;;  %v3379_v43 = vadd.f32 %v3378_v17, %v3377_v28 }
  0x66   :  { %v3382_v60 = vsel %vm3286_vm3, %v2600_v30, 0.0  ;;  %v5048_v16 = vshrl.u32 %v8736_v9, 16  ;;  %v5054_v40 = vshll.u32 %v8742_v57, 16  ;;  %v5040_v22 = vrot.slane %v5038_v18, 5 }
  0x67   :  { %v3384_v52 = vsel %vm3286_vm3, %v2617_v7, 0.0  ;;  %v5046_v8 = vrot.slane %v5044_v53, 5  ;;  %v198_v37 = vunpack.c.l.bf16 %v90_v61  ;;  %v3381_v59 = vadd.f32 %v3380_v58, %v3379_v43 }
  0x68   :  { %v5050_v11 = vrot.slane %v5048_v16, 4  ;;  %v5056_v55 = vrot.slane %v5054_v40, 5  ;;  %v199_v9 = vunpack.c.l.bf16 %v8806_v45  ;;  %v5041_v2 = vor.u32 %v5040_v22, %v5037_v15 }
  0x69   :  { %v200_v57 = vunpack.c.l.bf16 %v8811_v63  ;;  %v201_v34 = vunpack.c.l.bf16 %v8818_v41  ;;  %v202_v5 = vunpack.c.l.bf16 %v94_v1  ;;  %v3383_v62 = vadd.f32 %v3382_v60, %v3381_v59 }
  0x6a   :  { %v5051_v38 = vor.u32 %v5050_v11, %v5046_v8  ;;  %v203_v12 = vunpack.c.l.bf16 %v95_v23  ;;  %v1189_v26 = vcombine.high %v8756_v10, %v8756_v10  ;;  %v5042_v51 = vrot.slane %v5041_v2, 4 }
  0x6b   :  { %v1212_v48 = vrot.slane %v198_v37, %v8444_v25  ;;  %v1213_v19 = vcombine.high %v199_v9, %v199_v9  ;;  %v1220_v31 = vrot.slane %v199_v9, %v8444_v25  ;;  %v3385_v3 = vadd.f32 %v3384_v52, %v3383_v62 }
  0x6c   :  { %v5052_v61 = vrot.slane %v5051_v38, 4  ;;  %v1203_v30 = vrot.slane %v1189_v26, %v8444_v25  ;;  %v1230_v28 = vcombine.high %v200_v57, %v200_v57  ;;  %v5047_v17 = vsel %vm8453_vm2, %v5042_v51, %v5046_v8 }
  0x6d   :  { %v1227_v58 = vrot.slane %v1213_v19, %v8444_v25  ;;  %v1228_v7 = vcombine.high %v1220_v31, %v1220_v31  ;;  %v1237_v15 = vrot.slane %v200_v57, %v8444_v25  ;;  %v1253_v43 = vrot.slane %v201_v34, %v8444_v25 }
  0x6e   :  { %v5057_v10 = vsel %vm8453_vm2, %v5052_v61, %v5056_v55  ;;  %v1205_v18 = vcombine.high %v1203_v30, %v1203_v30  ;;  %v1244_v53 = vrot.slane %v1230_v28, %v8444_v25  ;;  %v1254_v1 = vcombine.high %v202_v5, %v202_v5 }
  0x6f   :  { %v8846_v60 = vcombine.low %v5047_v17, %v5057_v10  ;;  %v1229_v16 = vcombine.high %v1227_v58, %v1227_v58  ;;  %v1245_v40 = vcombine.high %v1237_v15, %v1237_v15  ;;  %v1261_v22 = vrot.slane %v202_v5, %v8444_v25 }
  0x70   :  { %v1246_v52 = vcombine.high %v1244_v53, %v1244_v53  ;;  %v1271_v8 = vcombine.high %v203_v12, %v203_v12  ;;  %v1278_v23 = vrot.slane %v203_v12, %v8444_v25  ;;  %v1268_v37 = vrot.slane %v1254_v1, %v8444_v25 }
  0x71   :  { %13021 = vst [vmem:[#allocation20_spill] sm:$0xff] %v8846_v60  ;;  %6079 = vrot.lane.b32.xlu1 %v8846_v60, %s8363_s15  ;;  %v2618_v59 = vcombine.low %v1203_v30, %v1205_v18  ;;  %v2619_v11 = vcombine.low %v1212_v48, %v1220_v31  ;;  %v2635_v55 = vcombine.low %v1228_v7, %v1227_v58  ;;  %vm5491_vm5 = vcmask 1046532  }
  0x72   :  { %v1269_v9 = vcombine.high %v1261_v22, %v1261_v22  ;;  %v1285_v2 = vrot.slane %v1271_v8, %v8444_v25  ;;  %v1286_v57 = vcombine.high %v1278_v23, %v1278_v23  ;;  %v2636_v34 = vcombine.low %v1229_v16, %v1237_v15  ;;  %vm9243_vm6 = vmor %vm5490_vm4, %vm5491_vm5 }
  0x73   :  { %v1270_v62 = vcombine.high %v1268_v37, %v1268_v37  ;;  %v2626_v38 = vrot.slane %v2618_v59, %v8444_v25  ;;  %v2633_v5 = vrot.slane %v2619_v11, %v8444_v25  ;;  %v2643_v12 = vrot.slane %v2635_v55, %v8444_v25  ;;  %v8875_v11 = vld [vmem:[%s12851_s0 + $0x114] sm:$0xf] }
  0x74   :  { %v1287_v26 = vcombine.high %v1285_v2, %v1285_v2  ;;  %v2650_v51 = vrot.slane %v2636_v34, %v8444_v25  ;;  %v2652_v19 = vcombine.low %v1245_v40, %v1244_v53  ;;  %v2653_v61 = vcombine.low %v1246_v52, %v1253_v43 }
  0x75   :  { %v2634_v30 = vcombine.low %v2626_v38, %v2633_v5  ;;  %v2669_v48 = vcombine.low %v1261_v22, %v1269_v9  ;;  %v2670_v31 = vcombine.low %v1268_v37, %v1270_v62  ;;  %v2686_v28 = vcombine.low %v1278_v23, %v1286_v57  ;;  %v96_v22 = vld [vmem:[%s12851_s0 + $0x110] sm:$0x1]  ;;  %v8882_v57 = vld [vmem:[%s12851_s0 + $0x118] sm:$0xf] }
  0x76   :  { %v2651_v17 = vcombine.low %v2643_v12, %v2650_v51  ;;  %v2660_v58 = vrot.slane %v2652_v19, %v8444_v25  ;;  %v2667_v7 = vrot.slane %v2653_v61, %v8444_v25  ;;  %v2687_v15 = vcombine.low %v1285_v2, %v1287_v26  ;;  %v100_v12 = vld [vmem:[%s12851_s0 + $0x120] sm:$0xf]  ;;  %v101_v61 = vld [vmem:[%s12851_s0 + $0x124] sm:$0xf] }
  0x77   :  { %v2677_v10 = vrot.slane %v2669_v48, %v8444_v25  ;;  %v2684_v18 = vrot.slane %v2670_v31, %v8444_v25  ;;  %v2694_v16 = vrot.slane %v2686_v28, %v8444_v25  ;;  %v3386_v1 = vsel %vm3286_vm3, %v2634_v30, 0.0 }
  0x78   :  { %v2668_v53 = vcombine.low %v2660_v58, %v2667_v7  ;;  %v2701_v43 = vrot.slane %v2687_v15, %v8444_v25  ;;  %v3387_v40 = vadd.f32 %v3386_v1, %v3385_v3  ;;  %v3388_v52 = vsel %vm3286_vm3, %v2651_v17, 0.0 }
  0x79   :  { %v2685_v8 = vcombine.low %v2677_v10, %v2684_v18  ;;  %v5083_v23 = vshrl.u32 %v8806_v45, 16  ;;  %v5086_v37 = vshll.u32 %v8806_v45, 16  ;;  %v5092_v59 = vshll.u32 %v8811_v63, 16  ;;  %v8887_v45 = vld [vmem:[%s12851_s0 + $0x11c] sm:$0x1] }
  0x7a   :  { %v2702_v55 = vcombine.low %v2694_v16, %v2701_v43  ;;  %v3389_v3 = vadd.f32 %v3388_v52, %v3387_v40  ;;  %v3390_v9 = vsel %vm3286_vm3, %v2668_v53, 0.0  ;;  %v5096_v2 = vshrl.u32 %v8811_v63, 16 }
  0x7b   :  { %v3392_v34 = vsel %vm3286_vm3, %v2685_v8, 0.0  ;;  %v5085_v62 = vrot.slane %v5083_v23, 4  ;;  %v5088_v38 = vrot.slane %v5086_v37, 5  ;;  %v5094_v5 = vrot.slane %v5092_v59, 5 }
  0x7c   :  { %v3391_v63 = vadd.f32 %v3390_v9, %v3389_v3  ;;  %v3394_v26 = vsel %vm3286_vm3, %v2702_v55, 0.0  ;;  %v5098_v51 = vrot.slane %v5096_v2, 4  ;;  %v5102_v19 = vshll.u32 %v8818_v41, 16 }
  0x7d   :  { %v5089_v30 = vor.u32 %v5088_v38, %v5085_v62  ;;  %v204_v48 = vunpack.c.l.bf16 %v96_v22  ;;  %v205_v31 = vunpack.c.l.bf16 %v8875_v11  ;;  %v206_v28 = vunpack.c.l.bf16 %v8882_v57 }
  0x7e   :  { %v3393_v17 = vadd.f32 %v3392_v34, %v3391_v63  ;;  %v5099_v58 = vor.u32 %v5098_v51, %v5094_v5  ;;  %v5104_v7 = vrot.slane %v5102_v19, 5  ;;  %v207_v15 = vunpack.c.l.bf16 %v8887_v45 }
  0x7f   :  { %v5090_v10 = vrot.slane %v5089_v30, 4  ;;  %v208_v18 = vunpack.c.l.bf16 %v100_v12  ;;  %v8901_v16 = vunpack.c.l.bf16 %v101_v61  ;;  %v1294_v41 = vrot.slane %v204_v48, %v8444_v25 }
  0x80   :  { %v3395_v1 = vadd.f32 %v3394_v26, %v3393_v17  ;;  %v5100_v53 = vrot.slane %v5099_v58, 4  ;;  %v1295_v43 = vcombine.high %v205_v31, %v205_v31  ;;  %v1302_v40 = vrot.slane %v205_v31, %v8444_v25 }
  0x81   :  { %v5095_v52 = vsel %vm8453_vm2, %v5090_v10, %v5094_v5  ;;  %v1312_v22 = vcombine.high %v206_v28, %v206_v28  ;;  %v1319_v8 = vrot.slane %v206_v28, %v8444_v25  ;;  %v1335_v23 = vrot.slane %v207_v15, %v8444_v25 }
  0x82   :  { %v5105_v37 = vsel %vm8453_vm2, %v5100_v53, %v5104_v7  ;;  %v1309_v59 = vrot.slane %v1295_v43, %v8444_v25  ;;  %v1310_v55 = vcombine.high %v1302_v40, %v1302_v40  ;;  %v1336_v3 = vcombine.high %v208_v18, %v208_v18 }
  0x83   :  { %v8912_v9 = vcombine.low %v5095_v52, %v5105_v37  ;;  %v1326_v2 = vrot.slane %v1312_v22, %v8444_v25  ;;  %v1327_v34 = vcombine.high %v1319_v8, %v1319_v8  ;;  %v1343_v62 = vrot.slane %v208_v18, %v8444_v25 }
  0x84   :  { %v1311_v38 = vcombine.high %v1309_v59, %v1309_v59  ;;  %v1350_v5 = vrot.slane %v1336_v3, %v8444_v25  ;;  %v1360_v12 = vrot.slane %v8901_v16, %v8444_v25  ;;  %v2703_v63 = vcombine.low %v1294_v41, %v1302_v40 }
  0x85   :  { %13022 = vst [vmem:[#allocation21_spill] sm:$0xff] %v8912_v9  ;;  %6083 = vrot.lane.b32.xlu1 %v8912_v9, %s8363_s15  ;;  %v1328_v26 = vcombine.high %v1326_v2, %v1326_v2  ;;  %v1351_v51 = vcombine.high %v1343_v62, %v1343_v62  ;;  %v2704_v19 = vcombine.low %v1310_v55, %v1309_v59  ;;  %v5131_v53 = vshrl.u32 %v8875_v11, 16  ;;  %v102_v55 = vld [vmem:[%s12851_s0 + $0x128] sm:$0x1] }
  0x86   :  { %v2721_v61 = vcombine.low %v1327_v34, %v1326_v2  ;;  %v1352_v30 = vcombine.high %v1350_v5, %v1350_v5  ;;  %v1368_v48 = vcombine.high %v1360_v12, %v1360_v12  ;;  %v2711_v31 = vrot.slane %v2703_v63, %v8444_v25 }
  0x87   :  { %v2720_v28 = vcombine.low %v1311_v38, %v1319_v8  ;;  %v2718_v17 = vrot.slane %v2704_v19, %v8444_v25  ;;  %v2737_v7 = vcombine.low %v1328_v26, %v1335_v23  ;;  %v2738_v15 = vcombine.low %v1343_v62, %v1351_v51  ;;  %v8946_v26 = vld [vmem:[%s12851_s0 + $0x130] sm:$0xf]  ;;  %v8951_v51 = vld [vmem:[%s12851_s0 + $0x134] sm:$0x1] }
  0x88   :  { %v2735_v58 = vrot.slane %v2721_v61, %v8444_v25  ;;  %v2754_v18 = vcombine.low %v1350_v5, %v1352_v30  ;;  %v2755_v41 = vcombine.low %v1360_v12, %v1368_v48  ;;  %v5134_v22 = vshll.u32 %v8875_v11, 16  ;;  %v8939_v11 = vld [vmem:[%s12851_s0 + $0x12c] sm:$0xf] }
  0x89   :  { %v2728_v10 = vrot.slane %v2720_v28, %v8444_v25  ;;  %v2719_v43 = vcombine.low %v2711_v31, %v2718_v17  ;;  %v2745_v40 = vrot.slane %v2737_v7, %v8444_v25  ;;  %v2752_v52 = vrot.slane %v2738_v15, %v8444_v25  ;;  %v107_v17 = vld [vmem:[%s12851_s0 + $0x13c] sm:$0xf] }
  0x8a   :  { %v2762_v37 = vrot.slane %v2754_v18, %v8444_v25  ;;  %v2769_v59 = vrot.slane %v2755_v41, %v8444_v25  ;;  %v5133_v23 = vrot.slane %v5131_v53, 4  ;;  %v5136_v34 = vrot.slane %v5134_v22, 5 }
  0x8b   :  { %v2736_v8 = vcombine.low %v2728_v10, %v2735_v58  ;;  %v2753_v3 = vcombine.low %v2745_v40, %v2752_v52  ;;  %v3396_v2 = vsel %vm3286_vm3, %v2719_v43, 0.0  ;;  %v5140_v62 = vshll.u32 %v8882_v57, 16 }
  0x8c   :  { %v2770_v38 = vcombine.low %v2762_v37, %v2769_v59  ;;  %v3397_v5 = vadd.f32 %v3396_v2, %v3395_v1  ;;  %v5144_v63 = vshrl.u32 %v8882_v57, 16  ;;  %v5137_v61 = vor.u32 %v5136_v34, %v5133_v23  ;;  %v106_v57 = vld [vmem:[%s12851_s0 + $0x138] sm:$0xf] }
  0x8d   :  { %v3398_v12 = vsel %vm3286_vm3, %v2736_v8, 0.0  ;;  %v3400_v19 = vsel %vm3286_vm3, %v2753_v3, 0.0  ;;  %v5142_v30 = vrot.slane %v5140_v62, 5  ;;  %v5150_v1 = vshll.u32 %v8887_v45, 16 }
  0x8e   :  { %v3399_v48 = vadd.f32 %v3398_v12, %v3397_v5  ;;  %v3402_v31 = vsel %vm3286_vm3, %v2770_v38, 0.0  ;;  %v5146_v28 = vrot.slane %v5144_v63, 4  ;;  %v210_v58 = vunpack.c.l.bf16 %v102_v55 }
  0x8f   :  { %v5138_v7 = vrot.slane %v5137_v61, 4  ;;  %v5152_v15 = vrot.slane %v5150_v1, 5  ;;  %v211_v10 = vunpack.c.l.bf16 %v8939_v11  ;;  %v212_v18 = vunpack.c.l.bf16 %v8946_v26 }
  0x90   :  { %v3401_v45 = vadd.f32 %v3400_v19, %v3399_v48  ;;  %v5147_v41 = vor.u32 %v5146_v28, %v5142_v30  ;;  %v213_v53 = vunpack.c.l.bf16 %v8951_v51  ;;  %v214_v43 = vunpack.c.l.bf16 %v106_v57 }
  0x91   :  { %v5143_v40 = vsel %vm8453_vm2, %v5138_v7, %v5142_v30  ;;  %v215_v52 = vunpack.c.l.bf16 %v107_v17  ;;  %v1353_v22 = vcombine.high %v8901_v16, %v8901_v16  ;;  %v1376_v8 = vrot.slane %v210_v58, %v8444_v25 }
  0x92   :  { %v3403_v37 = vadd.f32 %v3402_v31, %v3401_v45  ;;  %v5148_v59 = vrot.slane %v5147_v41, 4  ;;  %v1377_v23 = vcombine.high %v211_v10, %v211_v10  ;;  %v1384_v55 = vrot.slane %v211_v10, %v8444_v25 }
  0x93   :  { %v1367_v3 = vrot.slane %v1353_v22, %v8444_v25  ;;  %v1394_v2 = vcombine.high %v212_v18, %v212_v18  ;;  %v1401_v34 = vrot.slane %v212_v18, %v8444_v25  ;;  %v1417_v62 = vrot.slane %v213_v53, %v8444_v25 }
  0x94   :  { %v5153_v38 = vsel %vm8453_vm2, %v5148_v59, %v5152_v15  ;;  %v1391_v5 = vrot.slane %v1377_v23, %v8444_v25  ;;  %v1392_v16 = vcombine.high %v1384_v55, %v1384_v55  ;;  %v1418_v12 = vcombine.high %v214_v43, %v214_v43 }
  0x95   :  { %v8977_v63 = vcombine.low %v5143_v40, %v5153_v38  ;;  %v1369_v19 = vcombine.high %v1367_v3, %v1367_v3  ;;  %v1408_v61 = vrot.slane %v1394_v2, %v8444_v25  ;;  %v1409_v30 = vcombine.high %v1401_v34, %v1401_v34 }
  0x96   :  { %v1393_v1 = vcombine.high %v1391_v5, %v1391_v5  ;;  %v1425_v57 = vrot.slane %v214_v43, %v8444_v25  ;;  %v1432_v48 = vrot.slane %v1418_v12, %v8444_v25  ;;  %v1435_v31 = vcombine.high %v215_v52, %v215_v52 }
  0x97   :  { %13023 = vst [vmem:[#allocation22_spill] sm:$0xff] %v8977_v63  ;;  %6087 = vrot.lane.b32.xlu1 %v8977_v63, %s8363_s15  ;;  %v1410_v28 = vcombine.high %v1408_v61, %v1408_v61  ;;  %v1442_v17 = vrot.slane %v215_v52, %v8444_v25  ;;  %v2771_v58 = vcombine.low %v1367_v3, %v1369_v19  ;;  %vm8366_vm7 = vmmov 0  }
  0x98   :  { %v2772_v7 = vcombine.low %v1376_v8, %v1384_v55  ;;  %v1433_v15 = vcombine.high %v1425_v57, %v1425_v57  ;;  %v1434_v10 = vcombine.high %v1432_v48, %v1432_v48  ;;  %v1449_v18 = vrot.slane %v1435_v31, %v8444_v25 }
  0x99   :  { %v2788_v45 = vcombine.low %v1392_v16, %v1391_v5  ;;  %v1450_v41 = vcombine.high %v1442_v17, %v1442_v17  ;;  %v2779_v53 = vrot.slane %v2771_v58, %v8444_v25  ;;  %v2789_v40 = vcombine.low %v1393_v1, %v1401_v34 }
  0x9a   :  { %v2786_v43 = vrot.slane %v2772_v7, %v8444_v25  ;;  %v1451_v22 = vcombine.high %v1449_v18, %v1449_v18  ;;  %v2805_v23 = vcombine.low %v1409_v30, %v1408_v61  ;;  %v2806_v2 = vcombine.low %v1410_v28, %v1417_v62 }
  0x9b   :  { %v2796_v59 = vrot.slane %v2788_v45, %v8444_v25  ;;  %v2803_v52 = vrot.slane %v2789_v40, %v8444_v25  ;;  %v2822_v8 = vcombine.low %v1425_v57, %v1433_v15  ;;  %v2823_v55 = vcombine.low %v1432_v48, %v1434_v10  ;;  %v9000_v48 = vld [vmem:[%s12851_s0 + $0x144] sm:$0xf]  ;;  %v108_v15 = vld [vmem:[%s12851_s0 + $0x140] sm:$0x1] }
  0x9c   :  { %v2787_v38 = vcombine.low %v2779_v53, %v2786_v43  ;;  %v2813_v3 = vrot.slane %v2805_v23, %v8444_v25  ;;  %v2820_v5 = vrot.slane %v2806_v2, %v8444_v25  ;;  %v2839_v16 = vcombine.low %v1442_v17, %v1450_v41  ;;  %v9013_v41 = vld [vmem:[%s12851_s0 + $0x148] sm:$0xf]  ;;  %v112_v53 = vld [vmem:[%s12851_s0 + $0x150] sm:$0xf] }
  0x9d   :  { %v2840_v12 = vcombine.low %v1449_v18, %v1451_v22  ;;  %v2804_v19 = vcombine.low %v2796_v59, %v2803_v52  ;;  %v2830_v31 = vrot.slane %v2822_v8, %v8444_v25  ;;  %v2837_v34 = vrot.slane %v2823_v55, %v8444_v25  ;;  %v9023_v59 = vld [vmem:[%s12851_s0 + $0x14c] sm:$0x1]  ;;  %v113_v8 = vld [vmem:[%s12851_s0 + $0x154] sm:$0xf] }
  0x9e   :  { %v3404_v1 = vsel %vm3286_vm3, %v2787_v38, 0.0  ;;  %v2821_v61 = vcombine.low %v2813_v3, %v2820_v5  ;;  %v2847_v62 = vrot.slane %v2839_v16, %v8444_v25  ;;  %v5179_v58 = vshrl.u32 %v8939_v11, 16 }
  0x9f   :  { %v2854_v30 = vrot.slane %v2840_v12, %v8444_v25  ;;  %v3405_v57 = vadd.f32 %v3404_v1, %v3403_v37  ;;  %v2838_v28 = vcombine.low %v2830_v31, %v2837_v34  ;;  %v3406_v17 = vsel %vm3286_vm3, %v2804_v19, 0.0 }
  0xa0   :  { %v5182_v7 = vshll.u32 %v8939_v11, 16  ;;  %v3408_v37 = vsel %vm3286_vm3, %v2821_v61, 0.0  ;;  %v5188_v45 = vshll.u32 %v8946_v26, 16  ;;  %v5181_v43 = vrot.slane %v5179_v58, 4 }
  0xa1   :  { %v2855_v10 = vcombine.low %v2847_v62, %v2854_v30  ;;  %v3407_v18 = vadd.f32 %v3406_v17, %v3405_v57  ;;  %v3410_v11 = vsel %vm3286_vm3, %v2838_v28, 0.0  ;;  %v5192_v22 = vshrl.u32 %v8946_v26, 16 }
  0xa2   :  { %v5184_v40 = vrot.slane %v5182_v7, 5  ;;  %v5190_v38 = vrot.slane %v5188_v45, 5  ;;  %v5198_v52 = vshll.u32 %v8951_v51, 16  ;;  %v216_v5 = vunpack.c.l.bf16 %v108_v15 }
  0xa3   :  { %v3409_v23 = vadd.f32 %v3408_v37, %v3407_v18  ;;  %v3412_v2 = vsel %vm3286_vm3, %v2855_v10, 0.0  ;;  %v5194_v3 = vrot.slane %v5192_v22, 4  ;;  %v217_v26 = vunpack.c.l.bf16 %v9000_v48 }
  0xa4   :  { %v5185_v55 = vor.u32 %v5184_v40, %v5181_v43  ;;  %v5200_v12 = vrot.slane %v5198_v52, 5  ;;  %v218_v19 = vunpack.c.l.bf16 %v9013_v41  ;;  %v219_v31 = vunpack.c.l.bf16 %v9023_v59 }
  0xa5   :  { %v3411_v16 = vadd.f32 %v3410_v11, %v3409_v23  ;;  %v5195_v1 = vor.u32 %v5194_v3, %v5190_v38  ;;  %v220_v61 = vunpack.c.l.bf16 %v112_v53  ;;  %v9033_v62 = vunpack.c.l.bf16 %v113_v8 }
  0xa6   :  { %v5186_v34 = vrot.slane %v5185_v55, 4  ;;  %v1458_v30 = vrot.slane %v216_v5, %v8444_v25  ;;  %v1459_v57 = vcombine.high %v217_v26, %v217_v26  ;;  %v1466_v28 = vrot.slane %v217_v26, %v8444_v25 }
  0xa7   :  { %v3413_v51 = vadd.f32 %v3412_v2, %v3411_v16  ;;  %v5196_v58 = vrot.slane %v5195_v1, 4  ;;  %v1476_v7 = vcombine.high %v218_v19, %v218_v19  ;;  %v1483_v15 = vrot.slane %v218_v19, %v8444_v25 }
  0xa8   :  { %v5191_v17 = vsel %vm8453_vm2, %v5186_v34, %v5190_v38  ;;  %v1473_v10 = vrot.slane %v1459_v57, %v8444_v25  ;;  %v1474_v18 = vcombine.high %v1466_v28, %v1466_v28  ;;  %v1499_v37 = vrot.slane %v219_v31, %v8444_v25 }
  0xa9   :  { %v1500_v45 = vcombine.high %v220_v61, %v220_v61  ;;  %v5201_v53 = vsel %vm8453_vm2, %v5196_v58, %v5200_v12  ;;  %v1490_v11 = vrot.slane %v1476_v7, %v8444_v25  ;;  %v1491_v43 = vcombine.high %v1483_v15, %v1483_v15 }
  0xaa   :  { %v1507_v40 = vrot.slane %v220_v61, %v8444_v25  ;;  %v9046_v22 = vcombine.low %v5191_v17, %v5201_v53  ;;  %v1475_v23 = vcombine.high %v1473_v10, %v1473_v10  ;;  %v1524_v38 = vrot.slane %v9033_v62, %v8444_v25  ;;  %v9066_v53 = vld [vmem:[%s12851_s0 + $0x15c] sm:$0xf] }
  0xab   :  { %v1514_v2 = vrot.slane %v1500_v45, %v8444_v25  ;;  %v1492_v52 = vcombine.high %v1490_v11, %v1490_v11  ;;  %v2856_v55 = vcombine.low %v1458_v30, %v1466_v28  ;;  %v2857_v3 = vcombine.low %v1474_v18, %v1473_v10 }
  0xac   :  { %13024 = vst [vmem:[#allocation23_spill] sm:$0xff] %v9046_v22  ;;  %v1515_v8 = vcombine.high %v1507_v40, %v1507_v40  ;;  %6091 = vrot.lane.b32.xlu1 %v9046_v22, %s8363_s15  ;;  %v1532_v26 = vcombine.high %v1524_v38, %v1524_v38  ;;  %v2873_v16 = vcombine.low %v1475_v23, %v1483_v15  ;;  %v5227_v15 = vshrl.u32 %v9000_v48, 16 }
  0xad   :  { %v1516_v5 = vcombine.high %v1514_v2, %v1514_v2  ;;  %v2874_v12 = vcombine.low %v1491_v43, %v1490_v11  ;;  %v2864_v19 = vrot.slane %v2856_v55, %v8444_v25  ;;  %v2871_v31 = vrot.slane %v2857_v3, %v8444_v25  ;;  %v9077_v55 = vld [vmem:[%s12851_s0 + $0x160] sm:$0xf]  ;;  %v118_v3 = vld [vmem:[%s12851_s0 + $0x168] sm:$0xf] }
  0xae   :  { %v2890_v34 = vcombine.low %v1492_v52, %v1499_v37  ;;  %v2891_v1 = vcombine.low %v1507_v40, %v1515_v8  ;;  %v2881_v61 = vrot.slane %v2873_v16, %v8444_v25  ;;  %v2908_v30 = vcombine.low %v1524_v38, %v1532_v26 }
  0xaf   :  { %v2888_v57 = vrot.slane %v2874_v12, %v8444_v25  ;;  %v2907_v17 = vcombine.low %v1514_v2, %v1516_v5  ;;  %v2872_v28 = vcombine.low %v2864_v19, %v2871_v31  ;;  %v5230_v37 = vshll.u32 %v9000_v48, 16  ;;  %v114_v2 = vld [vmem:[%s12851_s0 + $0x158] sm:$0x1] }
  0xb0   :  { %v2898_v58 = vrot.slane %v2890_v34, %v8444_v25  ;;  %v2905_v7 = vrot.slane %v2891_v1, %v8444_v25  ;;  %v2922_v45 = vrot.slane %v2908_v30, %v8444_v25  ;;  %v5229_v40 = vrot.slane %v5227_v15, 4  ;;  %v119_v1 = vld [vmem:[%s12851_s0 + $0x16c] sm:$0xf] }
  0xb1   :  { %v2889_v10 = vcombine.low %v2881_v61, %v2888_v57  ;;  %v2915_v18 = vrot.slane %v2907_v17, %v8444_v25  ;;  %v3414_v43 = vsel %vm3286_vm3, %v2872_v28, 0.0  ;;  %v5236_v23 = vshll.u32 %v9013_v41, 16 }
  0xb2   :  { %v2906_v11 = vcombine.low %v2898_v58, %v2905_v7  ;;  %v3415_v52 = vadd.f32 %v3414_v43, %v3413_v51  ;;  %v5232_v48 = vrot.slane %v5230_v37, 5  ;;  %v5240_v16 = vshrl.u32 %v9013_v41, 16  ;;  %v9088_v51 = vld [vmem:[%s12851_s0 + $0x164] sm:$0x1] }
  0xb3   :  { %v2923_v38 = vcombine.low %v2915_v18, %v2922_v45  ;;  %v3416_v8 = vsel %vm3286_vm3, %v2889_v10, 0.0  ;;  %v5238_v26 = vrot.slane %v5236_v23, 5  ;;  %v5246_v12 = vshll.u32 %v9023_v59, 16 }
  0xb4   :  { %v3418_v5 = vsel %vm3286_vm3, %v2906_v11, 0.0  ;;  %v3417_v19 = vadd.f32 %v3416_v8, %v3415_v52  ;;  %v5233_v34 = vor.u32 %v5232_v48, %v5229_v40  ;;  %v222_v61 = vunpack.c.l.bf16 %v114_v2 }
  0xb5   :  { %v3420_v31 = vsel %vm3286_vm3, %v2923_v38, 0.0  ;;  %v5242_v57 = vrot.slane %v5240_v16, 4  ;;  %v5248_v17 = vrot.slane %v5246_v12, 5  ;;  %v223_v41 = vunpack.c.l.bf16 %v9066_v53 }
  0xb6   :  { %v224_v59 = vunpack.c.l.bf16 %v9077_v55  ;;  %v3419_v30 = vadd.f32 %v3418_v5, %v3417_v19  ;;  %v5234_v28 = vrot.slane %v5233_v34, 4  ;;  %v225_v58 = vunpack.c.l.bf16 %v9088_v51 }
  0xb7   :  { %v226_v7 = vunpack.c.l.bf16 %v118_v3  ;;  %v5243_v15 = vor.u32 %v5242_v57, %v5238_v26  ;;  %v227_v10 = vunpack.c.l.bf16 %v119_v1  ;;  %v1517_v18 = vcombine.high %v9033_v62, %v9033_v62 }
  0xb8   :  { %v1540_v45 = vrot.slane %v222_v61, %v8444_v25  ;;  %v3421_v37 = vadd.f32 %v3420_v31, %v3419_v30  ;;  %v5239_v11 = vsel %vm8453_vm2, %v5234_v28, %v5238_v26  ;;  %v1541_v43 = vcombine.high %v223_v41, %v223_v41 }
  0xb9   :  { %v1548_v40 = vrot.slane %v223_v41, %v8444_v25  ;;  %v5244_v23 = vrot.slane %v5243_v15, 4  ;;  %v1531_v2 = vrot.slane %v1517_v18, %v8444_v25  ;;  %v1558_v38 = vcombine.high %v224_v59, %v224_v59 }
  0xba   :  { %v1565_v52 = vrot.slane %v224_v59, %v8444_v25  ;;  %v1555_v8 = vrot.slane %v1541_v43, %v8444_v25  ;;  %v1581_v62 = vrot.slane %v225_v58, %v8444_v25  ;;  %v1582_v3 = vcombine.high %v226_v7, %v226_v7 }
  0xbb   :  { %v1556_v48 = vcombine.high %v1548_v40, %v1548_v40  ;;  %v5249_v5 = vsel %vm8453_vm2, %v5244_v23, %v5248_v17  ;;  %v1533_v16 = vcombine.high %v1531_v2, %v1531_v2  ;;  %v1572_v26 = vrot.slane %v1558_v38, %v8444_v25 }
  0xbc   :  { %v1573_v12 = vcombine.high %v1565_v52, %v1565_v52  ;;  %v9110_v19 = vcombine.low %v5239_v11, %v5249_v5  ;;  %v1557_v31 = vcombine.high %v1555_v8, %v1555_v8  ;;  %v1589_v34 = vrot.slane %v226_v7, %v8444_v25 }
  0xbd   :  { %v1596_v1 = vrot.slane %v1582_v3, %v8444_v25  ;;  %v1574_v61 = vcombine.high %v1572_v26, %v1572_v26  ;;  %v1599_v57 = vcombine.high %v227_v10, %v227_v10  ;;  %v1606_v41 = vrot.slane %v227_v10, %v8444_v25 }
  0xbe   :  { %13025 = vst [vmem:[#allocation24_spill] sm:$0xff] %v9110_v19  ;;  %v2924_v59 = vcombine.low %v1531_v2, %v1533_v16  ;;  %6095 = vrot.lane.b32.xlu1 %v9110_v19, %s8363_s15  ;;  %v1597_v17 = vcombine.high %v1589_v34, %v1589_v34  ;;  %v2925_v28 = vcombine.low %v1540_v45, %v1548_v40  ;;  %vm3366_vm8 = vcmask 60416  }
  0xbf   :  { %v1598_v30 = vcombine.high %v1596_v1, %v1596_v1  ;;  %v2941_v58 = vcombine.low %v1556_v48, %v1555_v8  ;;  %v1613_v15 = vrot.slane %v1599_v57, %v8444_v25  ;;  %v1614_v18 = vcombine.high %v1606_v41, %v1606_v41 }
  0xc0   :  { %v2932_v11 = vrot.slane %v2924_v59, %v8444_v25  ;;  %v2942_v7 = vcombine.low %v1557_v31, %v1565_v52  ;;  %v2939_v43 = vrot.slane %v2925_v28, %v8444_v25  ;;  %v2958_v38 = vcombine.low %v1573_v12, %v1572_v26 }
  0xc1   :  { %v2949_v23 = vrot.slane %v2941_v58, %v8444_v25  ;;  %v2959_v10 = vcombine.low %v1574_v61, %v1581_v62  ;;  %v1615_v2 = vcombine.high %v1613_v15, %v1613_v15  ;;  %v2975_v5 = vcombine.low %v1589_v34, %v1597_v17 }
  0xc2   :  { %v2956_v3 = vrot.slane %v2942_v7, %v8444_v25  ;;  %v2976_v16 = vcombine.low %v1596_v1, %v1598_v30  ;;  %v2940_v19 = vcombine.low %v2932_v11, %v2939_v43  ;;  %v2966_v45 = vrot.slane %v2958_v38, %v8444_v25  ;;  %v124_v43 = vld [vmem:[%s12851_s0 + $0x180] sm:$0xf] }
  0xc3   :  { %v2973_v40 = vrot.slane %v2959_v10, %v8444_v25  ;;  %v2992_v8 = vcombine.low %v1606_v41, %v1614_v18  ;;  %v2983_v52 = vrot.slane %v2975_v5, %v8444_v25  ;;  %v2993_v57 = vcombine.low %v1613_v15, %v1615_v2  ;;  %v120_v41 = vld [vmem:[%s12851_s0 + $0x170] sm:$0x1]  ;;  %v125_v10 = vld [vmem:[%s12851_s0 + $0x184] sm:$0xf] }
  0xc4   :  { %v2957_v48 = vcombine.low %v2949_v23, %v2956_v3  ;;  %v2990_v31 = vrot.slane %v2976_v16, %v8444_v25  ;;  %v3422_v26 = vsel %vm3286_vm3, %v2940_v19, 0.0  ;;  %v5275_v12 = vshrl.u32 %v9066_v53, 16  ;;  %v9155_v16 = vld [vmem:[%s12851_s0 + $0x178] sm:$0xf] }
  0xc5   :  { %v2974_v59 = vcombine.low %v2966_v45, %v2973_v40  ;;  %v3000_v62 = vrot.slane %v2992_v8, %v8444_v25  ;;  %v3007_v1 = vrot.slane %v2993_v57, %v8444_v25  ;;  %v3423_v61 = vadd.f32 %v3422_v26, %v3421_v37  ;;  %v9142_v37 = vld [vmem:[%s12851_s0 + $0x174] sm:$0xf]  ;;  %v9160_v45 = vld [vmem:[%s12851_s0 + $0x17c] sm:$0x1] }
  0xc6   :  { %v2991_v34 = vcombine.low %v2983_v52, %v2990_v31  ;;  %v3424_v17 = vsel %vm3286_vm3, %v2957_v48, 0.0  ;;  %v5277_v28 = vrot.slane %v5275_v12, 4  ;;  %v5278_v58 = vshll.u32 %v9066_v53, 16 }
  0xc7   :  { %v3426_v30 = vsel %vm3286_vm3, %v2974_v59, 0.0  ;;  %v5284_v15 = vshll.u32 %v9077_v55, 16  ;;  %v3008_v19 = vcombine.low %v3000_v62, %v3007_v1  ;;  %v3425_v18 = vadd.f32 %v3424_v17, %v3423_v61 }
  0xc8   :  { %v3428_v11 = vsel %vm3286_vm3, %v2991_v34, 0.0  ;;  %v5288_v7 = vshrl.u32 %v9077_v55, 16  ;;  %v5280_v23 = vrot.slane %v5278_v58, 5  ;;  %v5294_v53 = vshll.u32 %v9088_v51, 16 }
  0xc9   :  { %v5286_v38 = vrot.slane %v5284_v15, 5  ;;  %v228_v2 = vunpack.c.l.bf16 %v120_v41  ;;  %v3427_v3 = vadd.f32 %v3426_v30, %v3425_v18  ;;  %v3430_v55 = vsel %vm3286_vm3, %v3008_v19, 0.0 }
  0xca   :  { %v5290_v5 = vrot.slane %v5288_v7, 4  ;;  %v229_v51 = vunpack.c.l.bf16 %v9142_v37  ;;  %v5281_v40 = vor.u32 %v5280_v23, %v5277_v28  ;;  %v5296_v8 = vrot.slane %v5294_v53, 5 }
  0xcb   :  { %v230_v48 = vunpack.c.l.bf16 %v9155_v16  ;;  %v231_v52 = vunpack.c.l.bf16 %v9160_v45  ;;  %v3429_v31 = vadd.f32 %v3428_v11, %v3427_v3  ;;  %v232_v59 = vunpack.c.l.bf16 %v124_v43 }
  0xcc   :  { %v5291_v57 = vor.u32 %v5290_v5, %v5286_v38  ;;  %v9165_v62 = vunpack.c.l.bf16 %v125_v10  ;;  %v5282_v26 = vrot.slane %v5281_v40, 4  ;;  %v1622_v12 = vrot.slane %v228_v2, %v8444_v25 }
  0xcd   :  { %v1623_v34 = vcombine.high %v229_v51, %v229_v51  ;;  %v1630_v1 = vrot.slane %v229_v51, %v8444_v25  ;;  %v3431_v61 = vadd.f32 %v3430_v55, %v3429_v31  ;;  %v1640_v41 = vcombine.high %v230_v48, %v230_v48 }
  0xce   :  { %v5292_v17 = vrot.slane %v5291_v57, 4  ;;  %v1647_v30 = vrot.slane %v230_v48, %v8444_v25  ;;  %v5287_v28 = vsel %vm8453_vm2, %v5282_v26, %v5286_v38  ;;  %v1663_v19 = vrot.slane %v231_v52, %v8444_v25 }
  0xcf   :  { %v1637_v58 = vrot.slane %v1623_v34, %v8444_v25  ;;  %v1638_v15 = vcombine.high %v1630_v1, %v1630_v1  ;;  %v1654_v11 = vrot.slane %v1640_v41, %v8444_v25  ;;  %v1664_v43 = vcombine.high %v232_v59, %v232_v59 }
  0xd0   :  { %v5297_v18 = vsel %vm8453_vm2, %v5292_v17, %v5296_v8  ;;  %v1655_v7 = vcombine.high %v1647_v30, %v1647_v30  ;;  %v1671_v10 = vrot.slane %v232_v59, %v8444_v25  ;;  %v1688_v38 = vrot.slane %v9165_v62, %v8444_v25 }
  0xd1   :  { %v9177_v23 = vcombine.low %v5287_v28, %v5297_v18  ;;  %v1639_v53 = vcombine.high %v1637_v58, %v1637_v58  ;;  %v1656_v2 = vcombine.high %v1654_v11, %v1654_v11  ;;  %v1678_v3 = vrot.slane %v1664_v43, %v8444_v25 }
  0xd2   :  { %v3009_v55 = vcombine.low %v1622_v12, %v1630_v1  ;;  %v3010_v5 = vcombine.low %v1638_v15, %v1637_v58  ;;  %v1679_v51 = vcombine.high %v1671_v10, %v1671_v10  ;;  %v1696_v40 = vcombine.high %v1688_v38, %v1688_v38 }
  0xd3   :  { %13026 = vst [vmem:[#allocation25_spill] sm:$0xff] %v9177_v23  ;;  %6099 = vrot.lane.b32.xlu1 %v9177_v23, %s8363_s15  ;;  %v3026_v8 = vcombine.low %v1639_v53, %v1647_v30  ;;  %v3027_v48 = vcombine.low %v1655_v7, %v1654_v11  ;;  %v1680_v52 = vcombine.high %v1678_v3, %v1678_v3  ;;  %v5323_v58 = vshrl.u32 %v9142_v37, 16 }
  0xd4   :  { %v3017_v31 = vrot.slane %v3009_v55, %v8444_v25  ;;  %v3024_v57 = vrot.slane %v3010_v5, %v8444_v25  ;;  %v3043_v59 = vcombine.low %v1656_v2, %v1663_v19  ;;  %v3044_v17 = vcombine.low %v1671_v10, %v1679_v51  ;;  %v126_v10 = vld [vmem:[%s12851_s0 + $0x188] sm:$0x1] }
  0xd5   :  { %v3034_v26 = vrot.slane %v3026_v8, %v8444_v25  ;;  %v3041_v34 = vrot.slane %v3027_v48, %v8444_v25  ;;  %v3061_v12 = vcombine.low %v1688_v38, %v1696_v40  ;;  %v3060_v28 = vcombine.low %v1678_v3, %v1680_v52 }
  0xd6   :  { %v3025_v1 = vcombine.low %v3017_v31, %v3024_v57  ;;  %v3051_v41 = vrot.slane %v3043_v59, %v8444_v25  ;;  %v3058_v15 = vrot.slane %v3044_v17, %v8444_v25  ;;  %v5326_v11 = vshll.u32 %v9142_v37, 16  ;;  %v127_v31 = vld [vmem:[%s12851_s0 + $0x18c] sm:$0xf] }
  0xd7   :  { %v3042_v30 = vcombine.low %v3034_v26, %v3041_v34  ;;  %v3075_v18 = vrot.slane %v3061_v12, %v8444_v25  ;;  %v3068_v19 = vrot.slane %v3060_v28, %v8444_v25  ;;  %v5325_v43 = vrot.slane %v5323_v58, 4 }
  0xd8   :  { %v3432_v7 = vsel %vm3286_vm3, %v3025_v1, 0.0  ;;  %v5332_v53 = vshll.u32 %v9155_v16, 16  ;;  %v3059_v38 = vcombine.low %v3051_v41, %v3058_v15  ;;  %v5328_v55 = vrot.slane %v5326_v11, 5 }
  0xd9   :  { %v3433_v2 = vadd.f32 %v3432_v7, %v3431_v61  ;;  %v3434_v3 = vsel %vm3286_vm3, %v3042_v30, 0.0  ;;  %v3076_v5 = vcombine.low %v3068_v19, %v3075_v18  ;;  %v5336_v37 = vshrl.u32 %v9155_v16, 16  ;;  %v128_v16 = vld [vmem:[%s12851_s0 + $0x190] sm:$0xf] }
  0xda   :  { %v5334_v51 = vrot.slane %v5332_v53, 5  ;;  %v5342_v40 = vshll.u32 %v9160_v45, 16  ;;  %v3436_v48 = vsel %vm3286_vm3, %v3059_v38, 0.0  ;;  %v5329_v52 = vor.u32 %v5328_v55, %v5325_v43  ;;  %v129_v45 = vld [vmem:[%s12851_s0 + $0x194] sm:$0x1] }
  0xdb   :  { %v3435_v8 = vadd.f32 %v3434_v3, %v3433_v2  ;;  %v234_v57 = vunpack.c.l.bf16 %v126_v10  ;;  %v5338_v59 = vrot.slane %v5336_v37, 4  ;;  %v235_v34 = vunpack.c.l.bf16 %v127_v31 }
  0xdc   :  { %v5344_v26 = vrot.slane %v5342_v40, 5  ;;  %v5330_v12 = vrot.slane %v5329_v52, 4  ;;  %v236_v1 = vunpack.c.l.bf16 %v128_v16  ;;  %v237_v41 = vunpack.c.l.bf16 %v129_v45 }
  0xdd   :  { %v3437_v17 = vadd.f32 %v3436_v48, %v3435_v8  ;;  %v5339_v28 = vor.u32 %v5338_v59, %v5334_v51  ;;  %v1704_v58 = vrot.slane %v234_v57, %v8444_v25  ;;  %v1705_v30 = vcombine.high %v235_v34, %v235_v34 }
  0xde   :  { %v1712_v15 = vrot.slane %v235_v34, %v8444_v25  ;;  %v3438_v18 = vsel %vm3286_vm3, %v3076_v5, 0.0  ;;  %v5335_v11 = vsel %vm8453_vm2, %v5330_v12, %v5334_v51  ;;  %v1722_v19 = vcombine.high %v236_v1, %v236_v1 }
  0xdf   :  { %v1729_v7 = vrot.slane %v236_v1, %v8444_v25  ;;  %v5340_v43 = vrot.slane %v5339_v28, 4  ;;  %v1719_v53 = vrot.slane %v1705_v30, %v8444_v25  ;;  %v1745_v38 = vrot.slane %v237_v41, %v8444_v25 }
  0xe0   :  { %v1720_v10 = vcombine.high %v1712_v15, %v1712_v15  ;;  %v1736_v2 = vrot.slane %v1722_v19, %v8444_v25  ;;  %v3078_v55 = vcombine.low %v1704_v58, %v1712_v15  ;;  %v5371_v37 = vshrl.u32 %v127_v31, 16 }
  0xe1   :  { %v1737_v3 = vcombine.high %v1729_v7, %v1729_v7  ;;  %v9224_v40 = vadd.f32 %v3438_v18, %v3437_v17  ;;  %v5345_v5 = vsel %vm8453_vm2, %v5340_v43, %v5344_v26  ;;  %v1721_v51 = vcombine.high %v1719_v53, %v1719_v53 }
  0xe2   :  { %v5374_v8 = vshll.u32 %v127_v31, 16  ;;  %v9228_v48 = vcombine.low %v5335_v11, %v5345_v5  ;;  %v1738_v52 = vcombine.high %v1736_v2, %v1736_v2  ;;  %v9230_v57 = vcombine.low %v1720_v10, %v1719_v53  ;;  %v8201_v53 = vld [vmem:[%s12851_s0 + $0x10] sm:$0xf] }
  0xe3   :  { %13027 = vst [vmem:[#allocation26_spill] sm:$0xff] %v9224_v40  ;;  %v3111_v59 = vcombine.low %v1737_v3, %v1736_v2  ;;  %v9232_v34 = vcombine.low %v1721_v51, %v1729_v7  ;;  %v5373_v12 = vrot.slane %v5371_v37, 4  ;;  %v5380_v41 = vshll.u32 %v128_v16, 16  ;;  %v9259_v37 = vld [vmem:[%s12851_s0 + $0x24] sm:$0xf] }
  0xe4   :  { %13028 = vst [vmem:[#allocation27_spill] sm:$0xff] %v9228_v48  ;;  %v5376_v1 = vrot.slane %v5374_v8, 5  ;;  %6103 = vrot.lane.b32.xlu1 %v9228_v48, %s8363_s15  ;;  %v9237_v17 = vrot.slane %v3078_v55, %v8444_v25  ;;  %v3112_v26 = vcombine.low %v1738_v52, %v1745_v38  ;;  %v5384_v28 = vshrl.u32 %v128_v16, 16  ;;  %v8200_v16 = vld [vmem:[%s12851_s0 + $0xc] sm:$0xf] }
  0xe5   :  { %v5390_v31 = vshll.u32 %v129_v45, 16  ;;  %v3119_v58 = vrot.slane %v3111_v59, %v8444_v25  ;;  %v5382_v15 = vrot.slane %v5380_v41, 5  ;;  %v13029_v43 = vmov 0  ;;  %v8202_v38 = vld [vmem:[%s12851_s0 + $0x14] sm:$0x1] }
  0xe6   :  { %v5377_v30 = vor.u32 %v5376_v1, %v5373_v12  ;;  %v3126_v11 = vrot.slane %v3112_v26, %v8444_v25  ;;  %v5386_v19 = vrot.slane %v5384_v28, 4  ;;  %v13030_v43 = vsel %vm9243_vm6, 4294967295, %v13029_v43  ;;  %v8204_v51 = vld [vmem:[%s12851_s0 + $0x28] sm:$0xf]  ;;  %v8205_v1 = vld [vmem:[%s12851_s0 + $0x2c] sm:$0x1] }
  0xe7   :  { %13031 = vst [vmem:[#allocation28_spill] sm:$0xff] %v13030_v43  ;;  %v7806_v45 = vrot.slane %v8200_v16, 9  ;;  %v5502_v10 = vrot.slane %v8201_v53, 5  ;;  %v5505_v2 = vrot.slane %v8202_v38, 5  ;;  %v5392_v55 = vrot.slane %v5390_v31, 5 }
  0xe8   :  { %v5378_v7 = vrot.slane %v5377_v30, 4  ;;  %v5387_v3 = vor.u32 %v5386_v19, %v5382_v15  ;;  %v7808_v5 = vrot.slane %v9259_v37, 9  ;;  %v5516_v8 = vrot.slane %v8204_v51, 5  ;;  %v29_v51 = vld [vmem:[%s12851_s0 + $0x4] sm:$0xf] }
  0xe9   :  { %v9265_v52 = vcombine.low %v3119_v58, %v3126_v11  ;;  %v5503_v59 = vsel %vm9243_vm6, %v7806_v45, %v5502_v10  ;;  %v5504_v12 = vrot.slane %v5502_v10, 4  ;;  %v5519_v41 = vrot.slane %v8205_v1, 5  ;;  %v9281_v11 = vld [vmem:[%s12851_s0 + $0x3c] sm:$0xf]  ;;  %v8207_v45 = vld [vmem:[%s12851_s0 + $0x40] sm:$0xf] }
  0xea   :  { %v5383_v26 = vsel %vm8453_vm2, %v5378_v7, %v5382_v15  ;;  %v5388_v28 = vrot.slane %v5387_v3, 4  ;;  %v5517_v31 = vsel %vm9243_vm6, %v7808_v5, %v5516_v8  ;;  %v5518_v30 = vrot.slane %v5516_v8, 4  ;;  %v8208_v7 = vld [vmem:[%s12851_s0 + $0x44] sm:$0x1]  ;;  %v9299_v3 = vld [vmem:[%s12851_s0 + $0x54] sm:$0xf] }
  0xeb   :  { %v5506_v58 = vsel %vm9243_vm6, %v5504_v12, %v5505_v2  ;;  %v7810_v19 = vrot.slane %v9281_v11, 9  ;;  %v5530_v15 = vrot.slane %v8207_v45, 5  ;;  %v5533_v53 = vrot.slane %v8208_v7, 5  ;;  %v8214_v7 = vld [vmem:[%s12851_s0 + $0x74] sm:$0x1] }
  0xec   :  { %v5393_v10 = vsel %vm8453_vm2, %v5388_v28, %v5392_v55  ;;  %v9292_v38 = vcombine.low %v5503_v59, %v5506_v58  ;;  %v5520_v2 = vsel %vm9243_vm6, %v5518_v30, %v5519_v41  ;;  %v7812_v5 = vrot.slane %v9299_v3, 9  ;;  %v9308_v55 = vld [vmem:[%s12851_s0 + $0x8] sm:$0x1]  ;;  %v8210_v41 = vld [vmem:[%s12851_s0 + $0x58] sm:$0xf] }
  0xed   :  { %v9310_v8 = vcombine.low %v5383_v26, %v5393_v10  ;;  %v9312_v59 = vcombine.low %v5517_v31, %v5520_v2  ;;  %v5531_v12 = vsel %vm9243_vm6, %v7810_v19, %v5530_v15  ;;  %v5532_v1 = vrot.slane %v5530_v15, 4  ;;  %v8211_v30 = vld [vmem:[%s12851_s0 + $0x5c] sm:$0x1]  ;;  %v9325_v26 = vld [vmem:[%s12851_s0 + $0x6c] sm:$0xf] }
  0xee   :  { %13032 = vst [vmem:[#allocation29_spill] sm:$0xff] %v9292_v38  ;;  %v5544_v28 = vrot.slane %v8210_v41, 5  ;;  %v5547_v58 = vrot.slane %v8211_v30, 5  ;;  %v7814_v31 = vrot.slane %v9325_v26, 9  ;;  %v8213_v19 = vld [vmem:[%s12851_s0 + $0x70] sm:$0xf]  ;;  %v137_v2 = vunpack.c.l.bf16 %v29_v51 }
  0xef   :  { %13033 = vst [vmem:[#allocation30_spill] sm:$0xff] %v9310_v8  ;;  %13034 = vst [vmem:[#allocation31_spill] sm:$0xff] %v9312_v59  ;;  %v5558_v45 = vrot.slane %v8213_v19, 5  ;;  %6107 = vrot.lane.b32.xlu1 %v9310_v8, %s8363_s15  ;;  %v5534_v15 = vsel %vm9243_vm6, %v5532_v1, %v5533_v53  ;;  %v5561_v10 = vrot.slane %v8214_v7, 5  ;;  %v138_v41 = vunpack.c.l.bf16 %v9308_v55  ;;  %v28_v53 = vld [vmem:[%s12851_s0] sm:$0xf] }
  0xf0   :  { %v9339_v30 = vcombine.low %v5531_v12, %v5534_v15  ;;  %v5545_v18 = vsel %vm9243_vm6, %v7812_v5, %v5544_v28  ;;  %v5546_v19 = vrot.slane %v5544_v28, 4  ;;  %v139_v1 = vunpack.c.l.bf16 %v8200_v16 }
  0xf1   :  { %v5559_v61 = vsel %vm9243_vm6, %v7814_v31, %v5558_v45  ;;  %v5560_v8 = vrot.slane %v5558_v45, 4  ;;  %v369_v23 = vcombine.high %v137_v2, %v137_v2  ;;  %v376_v7 = vrot.slane %v137_v2, %v8444_v25 }
  0xf2   :  { %13035 = vst [vmem:[#allocation32_spill] sm:$0xff] %v9339_v30  ;;  %v5548_v12 = vsel %vm9243_vm6, %v5546_v19, %v5547_v58  ;;  %v392_v15 = vrot.slane %v138_v41, %v8444_v25  ;;  %v4627_v22 = vshrl.u32 %v28_v53, 16  ;;  %v4630_v5 = vshll.u32 %v28_v53, 16 }
  0xf3   :  { %6207 = vrot.lane.b32.xlu1 %v9292_v38, %s8364_s18  ;;  %v9354_v28 = vcombine.low %v5545_v18, %v5548_v12  ;;  %v5562_v31 = vsel %vm9243_vm6, %v5560_v8, %v5561_v10  ;;  %v383_v16 = vrot.slane %v369_v23, %v8444_v25  ;;  %v384_v45 = vcombine.high %v376_v7, %v376_v7 }
  0xf4   :  { %v9359_v2 = vcombine.low %v5559_v61, %v5562_v31  ;;  %v393_v48 = vcombine.high %v139_v1, %v139_v1  ;;  %v400_v58 = vrot.slane %v139_v1, %v8444_v25  ;;  %v4629_v41 = vrot.slane %v4627_v22, 4 }
  0xf5   :  { %13036 = vst [vmem:[#allocation33_spill] sm:$0xff] %v9354_v28  ;;  %v385_v19 = vcombine.high %v383_v16, %v383_v16  ;;  %v1845_v63 = vcombine.low %v376_v7, %v384_v45  ;;  %v4632_v9 = vrot.slane %v4630_v5, 5  ;;  %v4636_v60 = vshll.u32 %v29_v51, 16 }
  0xf6   :  { %13037 = vst [vmem:[#allocation34_spill] sm:$0xff] %v9359_v2  ;;  %v407_v38 = vrot.slane %v393_v48, %v8444_v25  ;;  %v408_v18 = vcombine.high %v400_v58, %v400_v58  ;;  %v1862_v12 = vcombine.low %v392_v15, %v400_v58  ;;  %v4640_v40 = vshrl.u32 %v29_v51, 16 }
  0xf7   :  { %6211 = vrot.lane.b32.xlu1 %v9312_v59, %s8364_s18  ;;  %v1846_v23 = vcombine.low %v383_v16, %v385_v19  ;;  %v1853_v61 = vrot.slane %v1845_v63, %v8444_v25  ;;  %v4633_v8 = vor.u32 %v4632_v9, %v4629_v41  ;;  %v4638_v10 = vrot.slane %v4636_v60, 5  ;;  %v8215_v60 = vld [vmem:[%s12851_s0 + $0x84] sm:$0xf] }
  0xf8   :  { %v409_v31 = vcombine.high %v407_v38, %v407_v38  ;;  %v1863_v1 = vcombine.low %v408_v18, %v407_v38  ;;  %v1870_v22 = vrot.slane %v1862_v12, %v8444_v25  ;;  %v4642_v7 = vrot.slane %v4640_v40, 4  ;;  %v9383_v18 = vld [vmem:[%s12851_s0 + $0x18] sm:$0xf] }
  0xf9   :  { %v1860_v5 = vrot.slane %v1846_v23, %v8444_v25  ;;  %v4634_v45 = vrot.slane %v4633_v8, 4  ;;  %v4646_v48 = vshll.u32 %v9308_v55, 16  ;;  %v136_v15 = vunpack.c.l.bf16 %v28_v53 }
  0xfa   :  { %v1877_v51 = vrot.slane %v1863_v1, %v8444_v25  ;;  %v1879_v58 = vcombine.low %v409_v31, %v8447_v32  ;;  %v4643_v16 = vor.u32 %v4642_v7, %v4638_v10  ;;  %v7816_v9 = vrot.slane %v8215_v60, 9  ;;  %v9396_v1 = vld [vmem:[%s12851_s0 + $0x1c] sm:$0xf] }
  0xfb   :  { %6215 = vrot.lane.b32.xlu1 %v9339_v30, %s8364_s18  ;;  %v1861_v63 = vcombine.low %v1853_v61, %v1860_v5  ;;  %v4639_v40 = vsel %vm8453_vm2, %v4634_v45, %v4638_v10  ;;  %v4648_v38 = vrot.slane %v4646_v48, 5  ;;  %v352_v55 = vcombine.high %v136_v15, %v136_v15  ;;  %v8216_v61 = vld [vmem:[%s12851_s0 + $0x88] sm:$0xf]  ;;  %v8217_v10 = vld [vmem:[%s12851_s0 + $0x8c] sm:$0x1] }
  0xfc   :  { %v1878_v53 = vcombine.low %v1870_v22, %v1877_v51  ;;  %v1887_v41 = vrot.slane %v1879_v58, %v8444_v25  ;;  %v4644_v19 = vrot.slane %v4643_v16, 4  ;;  %v359_v32 = vrot.slane %v136_v15, %v8444_v25  ;;  %v9407_v15 = vld [vmem:[%s12851_s0 + $0x20] sm:$0x1] }
  0xfd   :  { %v3288_v12 = vsel %vm3286_vm3, %v1861_v63, 0.0  ;;  %v366_v23 = vrot.slane %v352_v55, %v8444_v25  ;;  %v5572_v8 = vrot.slane %v8216_v61, 5  ;;  %v5575_v31 = vrot.slane %v8217_v10, 5 }
  0xfe   :  { %v13038_v22 = vrot.slane %v8470_v49, %v8444_v25  ;;  %v3290_v5 = vsel %vm3286_vm3, %v1878_v53, 0.0  ;;  %v4649_v45 = vsel %vm8453_vm2, %v4644_v19, %v4648_v38  ;;  %v367_v48 = vcombine.high %v359_v32, %v359_v32 }
  0xff   :  { %6219 = vrot.lane.b32.xlu1 %v9354_v28, %s8364_s18  ;;  %v7873_v51 = vcombine.low %v4639_v40, %v4649_v45  ;;  %v368_v58 = vcombine.high %v366_v23, %v366_v23  ;;  %v5573_v49 = vsel %vm9243_vm6, %v7816_v9, %v5572_v8  ;;  %v5574_v16 = vrot.slane %v5572_v8, 4 }
 0x100   :  { %v1895_v7 = vcombine.low %v1887_v41, %v13038_v22  ;;  %v1828_v63 = vcombine.low %v359_v32, %v367_v48  ;;  %v142_v38 = vunpack.c.l.bf16 %v9383_v18  ;;  %v143_v55 = vunpack.c.l.bf16 %v9396_v1 }
 0x101   :  { %6045 = vrot.lane.b32.xlu0 %v7873_v51, %s8363_s15  ;;  %v1829_v53 = vcombine.low %v366_v23, %v368_v58  ;;  %v5576_v41 = vsel %vm9243_vm6, %v5574_v16, %v5575_v31  ;;  %v144_v40 = vunpack.c.l.bf16 %v9407_v15  ;;  %v145_v19 = vunpack.c.l.bf16 %v9259_v37 }
 0x102   :  { %v3292_v60 = vsel %vm3286_vm3, %v1895_v7, 0.0  ;;  %v1836_v9 = vrot.slane %v1828_v63, %v8444_v25  ;;  %v9422_v61 = vcombine.low %v5573_v49, %v5576_v41  ;;  %v434_v8 = vcombine.high %v142_v38, %v142_v38 }
 0x103   :  { %v441_v32 = vrot.slane %v142_v38, %v8444_v25  ;;  %6223 = vrot.lane.b32.xlu1 %v9359_v2, %s8364_s18  ;;  %v1843_v10 = vrot.slane %v1829_v53, %v8444_v25  ;;  %v451_v23 = vcombine.high %v143_v55, %v143_v55  ;;  %v458_v22 = vrot.slane %v143_v55, %v8444_v25 }
 0x104   :  { %13039 = vst [vmem:[#allocation35_spill] sm:$0xff] %v9422_v61  ;;  %v474_v31 = vrot.slane %v144_v40, %v8444_v25  ;;  %v448_v7 = vrot.slane %v434_v8, %v8444_v25  ;;  %v475_v45 = vcombine.high %v145_v19, %v145_v19  ;;  %v482_v48 = vrot.slane %v145_v19, %v8444_v25 }
 0x105   :  { %v449_v37 = vcombine.high %v441_v32, %v441_v32  ;;  %v1844_v51 = vcombine.low %v1836_v9, %v1843_v10  ;;  %v465_v58 = vrot.slane %v451_v23, %v8444_v25  ;;  %v466_v49 = vcombine.high %v458_v22, %v458_v22 }
 0x106   :  { %v4675_v16 = vshrl.u32 %v9383_v18, 16  ;;  %v450_v63 = vcombine.high %v448_v7, %v448_v7  ;;  %v489_v38 = vrot.slane %v475_v45, %v8444_v25  ;;  %v490_v53 = vcombine.high %v482_v48, %v482_v48 }
 0x107   :  { %v1897_v41 = vcombine.low %v441_v32, %v449_v37  ;;  %v3287_v55 = vsel %vm3286_vm3, %v1844_v51, 0.0  ;;  %6227 = vrot.lane.b32.xlu1 %v9422_v61, %s8364_s18  ;;  %v467_v40 = vcombine.high %v465_v58, %v465_v58  ;;  %v1914_v8 = vcombine.low %v458_v22, %v466_v49 }
 0x108   :  { %v1931_v2 = vcombine.low %v474_v31, %v482_v48  ;;  %v3289_v19 = vadd.f32 %v3288_v12, %v3287_v55  ;;  %v491_v9 = vcombine.high %v489_v38, %v489_v38  ;;  %v1913_v23 = vcombine.low %v448_v7, %v450_v63 }
 0x109   :  { %v1911_v10 = vrot.slane %v1897_v41, %v8444_v25  ;;  %v1928_v28 = vrot.slane %v1914_v8, %v8444_v25  ;;  %v1930_v30 = vcombine.low %v465_v58, %v467_v40  ;;  %v1947_v59 = vcombine.low %v490_v53, %v489_v38 }
 0x10a   :  { %v1945_v45 = vrot.slane %v1931_v2, %v8444_v25  ;;  %v3291_v32 = vadd.f32 %v3290_v5, %v3289_v19  ;;  %v13040_v37 = vrot.slane %v8472_v50, %v8444_v25  ;;  %v1921_v61 = vrot.slane %v1913_v23, %v8444_v25  ;;  %v8218_v19 = vld [vmem:[%s12851_s0 + $0x9c] sm:$0xf] }
 0x10b   :  { %v1948_v22 = vcombine.low %v491_v9, %v8458_v36  ;;  %v1938_v12 = vrot.slane %v1930_v30, %v8444_v25  ;;  %v1955_v31 = vrot.slane %v1947_v59, %v8444_v25  ;;  %v4677_v7 = vrot.slane %v4675_v16, 4 }
 0x10c   :  { %v1912_v51 = vcombine.low %v13040_v37, %v1911_v10  ;;  %v4678_v48 = vshll.u32 %v9383_v18, 16  ;;  %v3293_v58 = vadd.f32 %v3292_v60, %v3291_v32  ;;  %v1929_v49 = vcombine.low %v1921_v61, %v1928_v28  ;;  %v9458_v28 = vld [vmem:[%s12851_s0 + $0x30] sm:$0xf]  ;;  %v9463_v18 = vld [vmem:[%s12851_s0 + $0x34] sm:$0xf] }
 0x10d   :  { %v1962_v2 = vrot.slane %v1948_v22, %v8444_v25  ;;  %v1946_v63 = vcombine.low %v1938_v12, %v1945_v45  ;;  %v4684_v38 = vshll.u32 %v9396_v1, 16  ;;  %v4688_v53 = vshrl.u32 %v9396_v1, 16  ;;  %v8219_v45 = vld [vmem:[%s12851_s0 + $0xa0] sm:$0xf]  ;;  %v8220_v37 = vld [vmem:[%s12851_s0 + $0xa4] sm:$0x1] }
 0x10e   :  { %v3294_v5 = vsel %vm3286_vm3, %v1912_v51, 0.0  ;;  %v4680_v50 = vrot.slane %v4678_v48, 5  ;;  %v3296_v30 = vsel %vm3286_vm3, %v1929_v49, 0.0  ;;  %v4694_v59 = vshll.u32 %v9407_v15, 16  ;;  %v9469_v15 = vld [vmem:[%s12851_s0 + $0x38] sm:$0x1] }
 0x10f   :  { %v1963_v36 = vcombine.low %v1955_v31, %v1962_v2  ;;  %v3295_v16 = vadd.f32 %v3294_v5, %v3293_v58  ;;  %v3298_v60 = vsel %vm3286_vm3, %v1946_v63, 0.0  ;;  %v4686_v1 = vrot.slane %v4684_v38, 5 }
 0x110   :  { %v4681_v61 = vor.u32 %v4680_v50, %v4677_v7  ;;  %v4690_v41 = vrot.slane %v4688_v53, 4  ;;  %v4696_v40 = vrot.slane %v4694_v59, 5  ;;  %v7818_v9 = vrot.slane %v8218_v19, 9 }
 0x111   :  { %v3300_v55 = vsel %vm3286_vm3, %v1963_v36, 0.0  ;;  %v3297_v8 = vadd.f32 %v3296_v30, %v3295_v16  ;;  %v5586_v32 = vrot.slane %v8219_v45, 5  ;;  %v5589_v51 = vrot.slane %v8220_v37, 5 }
 0x112   :  { %v4682_v10 = vrot.slane %v4681_v61, 4  ;;  %v4691_v23 = vor.u32 %v4690_v41, %v4686_v1  ;;  %v148_v12 = vunpack.c.l.bf16 %v9458_v28  ;;  %v149_v31 = vunpack.c.l.bf16 %v9463_v18 }
 0x113   :  { %v3299_v22 = vadd.f32 %v3298_v60, %v3297_v8  ;;  %v150_v7 = vunpack.c.l.bf16 %v9469_v15  ;;  %v5587_v49 = vsel %vm9243_vm6, %v7818_v9, %v5586_v32  ;;  %v5588_v2 = vrot.slane %v5586_v32, 4 }
 0x114   :  { %v4687_v48 = vsel %vm8453_vm2, %v4682_v10, %v4686_v1  ;;  %v4692_v58 = vrot.slane %v4691_v23, 4  ;;  %v151_v63 = vunpack.c.l.bf16 %v9281_v11  ;;  %v516_v50 = vcombine.high %v148_v12, %v148_v12 }
 0x115   :  { %v3301_v5 = vadd.f32 %v3300_v55, %v3299_v22  ;;  %v523_v38 = vrot.slane %v148_v12, %v8444_v25  ;;  %v5590_v36 = vsel %vm9243_vm6, %v5588_v2, %v5589_v51  ;;  %v533_v30 = vcombine.high %v149_v31, %v149_v31 }
 0x116   :  { %v4697_v53 = vsel %vm8453_vm2, %v4692_v58, %v4696_v40  ;;  %v540_v59 = vrot.slane %v149_v31, %v8444_v25  ;;  %v9498_v61 = vcombine.low %v5587_v49, %v5590_v36  ;;  %v530_v11 = vrot.slane %v516_v50, %v8444_v25 }
 0x117   :  { %v9495_v16 = vcombine.low %v4687_v48, %v4697_v53  ;;  %v3303_v60 = vadd.f32 %v8518_v39, %v3301_v5  ;;  %v531_v1 = vcombine.high %v523_v38, %v523_v38  ;;  %v547_v41 = vrot.slane %v533_v30, %v8444_v25 }
 0x118   :  { %13042 = vst [vmem:[#allocation37_spill] sm:$0xff] %v9498_v61  ;;  %v548_v55 = vcombine.high %v540_v59, %v540_v59  ;;  %v556_v40 = vrot.slane %v150_v7, %v8444_v25  ;;  %6231 = vrot.lane.b32.xlu1 %v9498_v61, %s8364_s18  ;;  %v532_v8 = vcombine.high %v530_v11, %v530_v11  ;;  %v4723_v9 = vshrl.u32 %v9458_v28, 16 }
 0x119   :  { %13041 = vst [vmem:[#allocation36_spill] sm:$0xff] %v9495_v16  ;;  %6049 = vrot.lane.b32.xlu0 %v9495_v16, %s8363_s15  ;;  %v557_v19 = vcombine.high %v151_v63, %v151_v63  ;;  %v564_v39 = vrot.slane %v151_v63, %v8444_v25  ;;  %v549_v10 = vcombine.high %v547_v41, %v547_v41  ;;  %v4726_v32 = vshll.u32 %v9458_v28, 16 }
 0x11a   :  { %v1981_v23 = vcombine.low %v523_v38, %v531_v1  ;;  %v1998_v45 = vcombine.low %v540_v59, %v548_v55  ;;  %v1982_v22 = vcombine.low %v530_v11, %v532_v8  ;;  %v4725_v58 = vrot.slane %v4723_v9, 4 }
 0x11b   :  { %v571_v37 = vrot.slane %v557_v19, %v8444_v25  ;;  %v572_v51 = vcombine.high %v564_v39, %v564_v39  ;;  %v2015_v12 = vcombine.low %v556_v40, %v564_v39  ;;  %v1999_v7 = vcombine.low %v547_v41, %v549_v10 }
 0x11c   :  { %v1989_v31 = vrot.slane %v1981_v23, %v8444_v25  ;;  %v2006_v48 = vrot.slane %v1998_v45, %v8444_v25  ;;  %v1996_v2 = vrot.slane %v1982_v22, %v8444_v25  ;;  %v4728_v28 = vrot.slane %v4726_v32, 5  ;;  %v8221_v22 = vld [vmem:[%s12851_s0 + $0xb4] sm:$0xf] }
 0x11d   :  { %v573_v49 = vcombine.high %v571_v37, %v571_v37  ;;  %v2016_v5 = vcombine.low %v572_v51, %v571_v37  ;;  %v2023_v63 = vrot.slane %v2015_v12, %v8444_v25  ;;  %v2013_v50 = vrot.slane %v1999_v7, %v8444_v25  ;;  %v8222_v12 = vld [vmem:[%s12851_s0 + $0xb8] sm:$0xf]  ;;  %v9545_v7 = vld [vmem:[%s12851_s0 + $0x50] sm:$0x1] }
 0x11e   :  { %v4732_v38 = vshll.u32 %v9463_v18, 16  ;;  %v4736_v53 = vshrl.u32 %v9463_v18, 16  ;;  %v1997_v36 = vcombine.low %v1989_v31, %v1996_v2  ;;  %v4742_v11 = vshll.u32 %v9469_v15, 16  ;;  %v9530_v15 = vld [vmem:[%s12851_s0 + $0x4c] sm:$0xf] }
 0x11f   :  { %v2030_v30 = vrot.slane %v2016_v5, %v8444_v25  ;;  %v2032_v59 = vcombine.low %v573_v49, %v8496_v14  ;;  %v2014_v1 = vcombine.low %v2006_v48, %v2013_v50  ;;  %v4729_v41 = vor.u32 %v4728_v28, %v4725_v58  ;;  %v46_v14 = vld [vmem:[%s12851_s0 + $0x48] sm:$0xf]  ;;  %v8223_v49 = vld [vmem:[%s12851_s0 + $0xbc] sm:$0x1] }
 0x120   :  { %v4734_v55 = vrot.slane %v4732_v38, 5  ;;  %v4738_v40 = vrot.slane %v4736_v53, 4  ;;  %v3304_v39 = vsel %vm3286_vm3, %v1997_v36, 0.0  ;;  %v4744_v9 = vrot.slane %v4742_v11, 5 }
 0x121   :  { %v2031_v8 = vcombine.low %v2023_v63, %v2030_v30  ;;  %v2040_v19 = vrot.slane %v2032_v59, %v8444_v25  ;;  %v3306_v10 = vsel %vm3286_vm3, %v2014_v1, 0.0  ;;  %v4730_v18 = vrot.slane %v4729_v41, 4 }
 0x122   :  { %v4739_v23 = vor.u32 %v4738_v40, %v4734_v55  ;;  %v3305_v45 = vadd.f32 %v3304_v39, %v3303_v60  ;;  %v13043_v32 = vrot.slane %v8509_v33, %v8444_v25  ;;  %v7820_v60 = vrot.slane %v8221_v22, 9 }
 0x123   :  { %v3308_v51 = vsel %vm3286_vm3, %v2031_v8, 0.0  ;;  %v5600_v31 = vrot.slane %v8222_v12, 5  ;;  %v4735_v33 = vsel %vm8453_vm2, %v4730_v18, %v4734_v55  ;;  %v5603_v2 = vrot.slane %v8223_v49, 5 }
 0x124   :  { %v2048_v37 = vcombine.low %v2040_v19, %v13043_v32  ;;  %v4740_v48 = vrot.slane %v4739_v23, 4  ;;  %v3307_v58 = vadd.f32 %v3306_v10, %v3305_v45  ;;  %v154_v28 = vunpack.c.l.bf16 %v46_v14 }
 0x125   :  { %v5601_v63 = vsel %vm9243_vm6, %v7820_v60, %v5600_v31  ;;  %v5602_v50 = vrot.slane %v5600_v31, 4  ;;  %v155_v36 = vunpack.c.l.bf16 %v9530_v15  ;;  %v156_v30 = vunpack.c.l.bf16 %v9545_v7 }
 0x126   :  { %v3310_v5 = vsel %vm3286_vm3, %v2048_v37, 0.0  ;;  %v4745_v38 = vsel %vm8453_vm2, %v4740_v48, %v4744_v9  ;;  %v3309_v53 = vadd.f32 %v3308_v51, %v3307_v58  ;;  %v157_v1 = vunpack.c.l.bf16 %v9299_v3 }
 0x127   :  { %v9559_v59 = vcombine.low %v4735_v33, %v4745_v38  ;;  %v5604_v11 = vsel %vm9243_vm6, %v5602_v50, %v5603_v2  ;;  %v598_v41 = vcombine.high %v154_v28, %v154_v28  ;;  %v605_v8 = vrot.slane %v154_v28, %v8444_v25 }
 0x128   :  { %v3311_v55 = vadd.f32 %v3310_v5, %v3309_v53  ;;  %v9564_v40 = vcombine.low %v5601_v63, %v5604_v11  ;;  %v615_v19 = vcombine.high %v155_v36, %v155_v36  ;;  %v622_v9 = vrot.slane %v155_v36, %v8444_v25 }
 0x129   :  { %13044 = vst [vmem:[#allocation38_spill] sm:$0xff] %v9559_v59  ;;  %6053 = vrot.lane.b32.xlu0 %v9559_v59, %s8363_s15  ;;  %v612_v39 = vrot.slane %v598_v41, %v8444_v25  ;;  %v638_v10 = vrot.slane %v156_v30, %v8444_v25  ;;  %v639_v18 = vcombine.high %v157_v1, %v157_v1  ;;  %v4771_v32 = vshrl.u32 %v46_v14, 16 }
 0x12a   :  { %13045 = vst [vmem:[#allocation39_spill] sm:$0xff] %v9564_v40  ;;  %6235 = vrot.lane.b32.xlu1 %v9564_v40, %s8364_s18  ;;  %v613_v3 = vcombine.high %v605_v8, %v605_v8  ;;  %v629_v23 = vrot.slane %v615_v19, %v8444_v25  ;;  %v646_v45 = vrot.slane %v157_v1, %v8444_v25  ;;  %v4774_v60 = vshll.u32 %v46_v14, 16 }
 0x12b   :  { %v614_v37 = vcombine.high %v612_v39, %v612_v39  ;;  %v630_v51 = vcombine.high %v622_v9, %v622_v9  ;;  %v653_v22 = vrot.slane %v639_v18, %v8444_v25  ;;  %v4773_v5 = vrot.slane %v4771_v32, 4 }
 0x12c   :  { %v631_v12 = vcombine.high %v629_v23, %v629_v23  ;;  %v654_v31 = vcombine.high %v646_v45, %v646_v45  ;;  %v2050_v33 = vcombine.low %v605_v8, %v613_v3  ;;  %v2084_v48 = vcombine.low %v638_v10, %v646_v45 }
 0x12d   :  { %v655_v58 = vcombine.high %v653_v22, %v653_v22  ;;  %v2066_v49 = vcombine.low %v612_v39, %v614_v37  ;;  %v2067_v2 = vcombine.low %v622_v9, %v630_v51  ;;  %v4776_v30 = vrot.slane %v4774_v60, 5 }
 0x12e   :  { %v2064_v63 = vrot.slane %v2050_v33, %v8444_v25  ;;  %v2083_v50 = vcombine.low %v629_v23, %v631_v12  ;;  %v2098_v28 = vrot.slane %v2084_v48, %v8444_v25  ;;  %v2100_v38 = vcombine.low %v654_v31, %v653_v22  ;;  %v9610_v48 = vld [vmem:[%s12851_s0 + $0x68] sm:$0x1] }
 0x12f   :  { %v2074_v53 = vrot.slane %v2066_v49, %v8444_v25  ;;  %v2081_v36 = vrot.slane %v2067_v2, %v8444_v25  ;;  %v2101_v14 = vcombine.low %v655_v58, %v8525_v46  ;;  %v13046_v11 = vrot.slane %v8527_v47, %v8444_v25  ;;  %v9595_v47 = vld [vmem:[%s12851_s0 + $0x60] sm:$0xf] }
 0x130   :  { %v2091_v41 = vrot.slane %v2083_v50, %v8444_v25  ;;  %v2108_v8 = vrot.slane %v2100_v38, %v8444_v25  ;;  %v4780_v19 = vshll.u32 %v9530_v15, 16  ;;  %v4777_v10 = vor.u32 %v4776_v30, %v4773_v5 }
 0x131   :  { %v2065_v1 = vcombine.low %v13046_v11, %v2064_v63  ;;  %v2082_v39 = vcombine.low %v2074_v53, %v2081_v36  ;;  %v2115_v9 = vrot.slane %v2101_v14, %v8444_v25  ;;  %v4784_v18 = vshrl.u32 %v9530_v15, 16  ;;  %v9601_v15 = vld [vmem:[%s12851_s0 + $0x64] sm:$0xf]  ;;  %v9621_v63 = vld [vmem:[%s12851_s0 + $0x90] sm:$0xf] }
 0x132   :  { %v2099_v3 = vcombine.low %v2091_v41, %v2098_v28  ;;  %v4782_v23 = vrot.slane %v4780_v19, 5  ;;  %v4790_v45 = vshll.u32 %v9545_v7, 16  ;;  %v4778_v51 = vrot.slane %v4777_v10, 4  ;;  %v8224_v7 = vld [vmem:[%s12851_s0 + $0xe4] sm:$0xf]  ;;  %13047 = vst [vmem:[#allocation40_spill] sm:$0xff] %v9621_v63 }
 0x133   :  { %v3312_v46 = vsel %vm3286_vm3, %v2065_v1, 0.0  ;;  %v2116_v32 = vcombine.low %v2108_v8, %v2115_v9  ;;  %v3314_v37 = vsel %vm3286_vm3, %v2082_v39, 0.0  ;;  %v4786_v22 = vrot.slane %v4784_v18, 4  ;;  %v8226_v28 = vld [vmem:[%s12851_s0 + $0xec] sm:$0x1] }
 0x134   :  { %v3316_v60 = vsel %vm3286_vm3, %v2099_v3, 0.0  ;;  %v4792_v12 = vrot.slane %v4790_v45, 5  ;;  %v3313_v31 = vadd.f32 %v3312_v46, %v3311_v55  ;;  %v7822_v33 = vrot.slane %v8224_v7, 9  ;;  %v8225_v55 = vld [vmem:[%s12851_s0 + $0xe8] sm:$0xf] }
 0x135   :  { %v3318_v58 = vsel %vm3286_vm3, %v2116_v32, 0.0  ;;  %v4783_v49 = vsel %vm8453_vm2, %v4778_v51, %v4782_v23  ;;  %v4787_v2 = vor.u32 %v4786_v22, %v4782_v23  ;;  %v5614_v5 = vrot.slane %v8225_v55, 5 }
 0x136   :  { %v3315_v50 = vadd.f32 %v3314_v37, %v3313_v31  ;;  %v5617_v38 = vrot.slane %v8226_v28, 5  ;;  %v160_v53 = vunpack.c.l.bf16 %v9595_v47  ;;  %v161_v36 = vunpack.c.l.bf16 %v9601_v15 }
 0x137   :  { %v4788_v14 = vrot.slane %v4787_v2, 4  ;;  %v5615_v30 = vsel %vm9243_vm6, %v7822_v33, %v5614_v5  ;;  %v5616_v11 = vrot.slane %v5614_v5, 4  ;;  %v162_v1 = vunpack.c.l.bf16 %v9610_v48 }
 0x138   :  { %v3317_v41 = vadd.f32 %v3316_v60, %v3315_v50  ;;  %v163_v8 = vunpack.c.l.bf16 %v9325_v26  ;;  %v172_v19 = vunpack.c.l.bf16 %v9621_v63  ;;  %v680_v39 = vcombine.high %v160_v53, %v160_v53 }
 0x139   :  { %v4793_v9 = vsel %vm8453_vm2, %v4788_v14, %v4792_v12  ;;  %v5618_v10 = vsel %vm9243_vm6, %v5616_v11, %v5617_v38  ;;  %v687_v18 = vrot.slane %v160_v53, %v8444_v25  ;;  %v697_v3 = vcombine.high %v161_v36, %v161_v36 }
 0x13a   :  { %v9638_v46 = vcombine.low %v4783_v49, %v4793_v9  ;;  %v3319_v23 = vadd.f32 %v3318_v58, %v3317_v41  ;;  %v9640_v45 = vcombine.low %v5615_v30, %v5618_v10  ;;  %v694_v32 = vrot.slane %v680_v39, %v8444_v25 }
 0x13b   :  { %v695_v26 = vcombine.high %v687_v18, %v687_v18  ;;  %v704_v37 = vrot.slane %v161_v36, %v8444_v25  ;;  %v711_v51 = vrot.slane %v697_v3, %v8444_v25  ;;  %v720_v22 = vrot.slane %v162_v1, %v8444_v25 }
 0x13c   :  { %13048 = vst [vmem:[#allocation41_spill] sm:$0xff] %v9638_v46  ;;  %13049 = vst [vmem:[#allocation42_spill] sm:$0xff] %v9640_v45  ;;  %v9648_v60 = vsel %vm3286_vm3, %v9265_v52, 0.0  ;;  %6057 = vrot.lane.b32.xlu0 %v9638_v46, %s8363_s15  ;;  %v3321_v12 = vadd.f32 %v8568_v42, %v3319_v23  ;;  %6239 = vrot.lane.b32.xlu1 %v9640_v45, %s8364_s18  ;;  %v696_v31 = vcombine.high %v694_v32, %v694_v32  ;;  %vm3474_vm9 = vcmask 1041409  }
 0x13d   :  { %13050 = vst [vmem:[#allocation43_spill] sm:$0xff] %v9648_v60  ;;  %v721_v7 = vcombine.high %v163_v8, %v163_v8  ;;  %v712_v33 = vcombine.high %v704_v37, %v704_v37  ;;  %v713_v58 = vcombine.high %v711_v51, %v711_v51  ;;  %v728_v49 = vrot.slane %v163_v8, %v8444_v25 }
 0x13e   :  { %v786_v2 = vrot.slane %v8592_v13, %v8444_v25  ;;  %v844_v55 = vcombine.high %v172_v19, %v172_v19  ;;  %v851_v5 = vrot.slane %v172_v19, %v8444_v25  ;;  %v2134_v50 = vcombine.low %v687_v18, %v695_v26 }
 0x13f   :  { %v735_v52 = vrot.slane %v721_v7, %v8444_v25  ;;  %v736_v28 = vcombine.high %v728_v49, %v728_v49  ;;  %v2135_v38 = vcombine.low %v694_v32, %v696_v31  ;;  %v2151_v53 = vcombine.low %v704_v37, %v712_v33 }
 0x140   :  { %v794_v42 = vcombine.high %v786_v2, %v786_v2  ;;  %v858_v14 = vrot.slane %v844_v55, %v8444_v25  ;;  %v859_v30 = vcombine.high %v851_v5, %v851_v5  ;;  %v2142_v11 = vrot.slane %v2134_v50, %v8444_v25 }
 0x141   :  { %v737_v36 = vcombine.high %v735_v52, %v735_v52  ;;  %v2149_v1 = vrot.slane %v2135_v38, %v8444_v25  ;;  %v2152_v41 = vcombine.low %v711_v51, %v713_v58  ;;  %v2159_v13 = vrot.slane %v2151_v53, %v8444_v25 }
 0x142   :  { %v2168_v8 = vcombine.low %v720_v22, %v728_v49  ;;  %v860_v39 = vcombine.high %v858_v14, %v858_v14  ;;  %v2169_v9 = vcombine.low %v736_v28, %v735_v52  ;;  %v2220_v10 = vcombine.low %v786_v2, %v794_v42 }
 0x143   :  { %v2185_v19 = vcombine.low %v737_v36, %v8556_v24  ;;  %v2150_v18 = vcombine.low %v2142_v11, %v2149_v1  ;;  %v2166_v3 = vrot.slane %v2152_v41, %v8444_v25  ;;  %v2227_v32 = vrot.slane %v8600_v21, %v8444_v25  ;;  %v3464_v11 = vld [vmem:[%s12852_s1] sm:$0xff] }
 0x144   :  { %v2176_v23 = vrot.slane %v2168_v8, %v8444_v25  ;;  %v2183_v26 = vrot.slane %v2169_v9, %v8444_v25  ;;  %v2234_v51 = vrot.slane %v2220_v10, %v8444_v25  ;;  %v2287_v22 = vcombine.low %v851_v5, %v859_v30  ;;  %v8227_v10 = vld [vmem:[%s12851_s0 + $0xfc] sm:$0xf] }
 0x145   :  { %v2193_v37 = vrot.slane %v2185_v19, %v8444_v25  ;;  %v2167_v31 = vcombine.low %v2159_v13, %v2166_v3  ;;  %v2288_v7 = vcombine.low %v858_v14, %v860_v39  ;;  %v9674_v24 = vsel %vm3286_vm3, %v8637_v56, 0.0  ;;  %v9701_v13 = vld [vmem:[%s12851_s0 + $0xac] sm:$0xf]  ;;  %v8228_v3 = vld [vmem:[%s12851_s0 + $0x100] sm:$0xf] }
 0x146   :  { %v4819_v33 = vshrl.u32 %v9595_v47, 16  ;;  %v2184_v58 = vcombine.low %v2176_v23, %v2183_v26  ;;  %v13051_v49 = vrot.slane %v8575_v54, %v8444_v25  ;;  %v2295_v2 = vrot.slane %v2287_v22, %v8444_v25  ;;  %13053 = vst [vmem:[#allocation45_spill] sm:$0xff] %v9701_v13 }
 0x147   :  { %v3322_v52 = vsel %vm3286_vm3, %v2150_v18, 0.0  ;;  %v2235_v55 = vcombine.low %v2227_v32, %v2234_v51  ;;  %v2302_v5 = vrot.slane %v2288_v7, %v8444_v25  ;;  %v4822_v28 = vshll.u32 %v9595_v47, 16  ;;  %v9696_v47 = vld [vmem:[%s12851_s0 + $0x94] sm:$0xf]  ;;  %v8229_v32 = vld [vmem:[%s12851_s0 + $0x104] sm:$0x1] }
 0x148   :  { %v2201_v21 = vcombine.low %v2193_v37, %v13051_v49  ;;  %v4821_v50 = vrot.slane %v4819_v33, 4  ;;  %v3324_v56 = vsel %vm3286_vm3, %v2167_v31, 0.0  ;;  %v3326_v42 = vsel %vm3286_vm3, %v2184_v58, 0.0  ;;  %13052 = vst [vmem:[#allocation44_spill] sm:$0xff] %v9696_v47  ;;  %v77_v37 = vld [vmem:[%s12851_s0 + $0xc4] sm:$0xf] }
 0x149   :  { %v4828_v53 = vshll.u32 %v9601_v15, 16  ;;  %v2303_v54 = vcombine.low %v2295_v2, %v2302_v5  ;;  %v4824_v36 = vrot.slane %v4822_v28, 5  ;;  %v4832_v14 = vshrl.u32 %v9601_v15, 16  ;;  %v78_v7 = vld [vmem:[%s12851_s0 + $0xc8] sm:$0x1] }
 0x14a   :  { %v3328_v38 = vsel %vm3286_vm3, %v2201_v21, 0.0  ;;  %v4838_v30 = vshll.u32 %v9610_v48, 16  ;;  %v3323_v41 = vadd.f32 %v3322_v52, %v3321_v12  ;;  %v3332_v15 = vsel %vm3286_vm3, %v2235_v55, 0.0  ;;  %v76_v12 = vld [vmem:[%s12851_s0 + $0xc0] sm:$0xf] }
 0x14b   :  { %v4830_v1 = vrot.slane %v4828_v53, 5  ;;  %v9705_v48 = vsel %vm3286_vm3, %v2303_v54, 0.0  ;;  %v4825_v8 = vor.u32 %v4824_v36, %v4821_v50  ;;  %v4834_v39 = vrot.slane %v4832_v14, 4  ;;  %v79_v33 = vld [vmem:[%s12851_s0 + $0xcc] sm:$0xf] }
 0x14c   :  { %v12902_v9 = vmov 0.0   ;;  %v3325_v19 = vadd.f32 %v3324_v56, %v3323_v41  ;;  %v7824_v18 = vrot.slane %v8227_v10, 9  ;;  %v5628_v23 = vrot.slane %v8228_v3, 5  ;;  %v80_v52 = vld [vmem:[%s12851_s0 + $0xd0] sm:$0xf] }
 0x14d   :  { %8031 = vmatprep.subr.mxu0 %v12902_v9  ;;  %8033 = vmatprep.mubr.msk.f32.mxu0 %vm8366_vm7, %v12902_v9  ;;  %v5631_v26 = vrot.slane %v8229_v32, 5  ;;  %v4826_v51 = vrot.slane %v4825_v8, 4  ;;  %v4835_v22 = vor.u32 %v4834_v39, %v4830_v1  ;;  %v4840_v31 = vrot.slane %v4838_v30, 5  ;;  %v9743_v55 = vld [vmem:[%s12851_s0 + $0xd4] sm:$0x1] }
 0x14e   :  { %8032 = vmatpush3.msra.mxu0 %v3464_v11  ;;  %8036 = vmatprep.subr.mxu1 %v12902_v9  ;;  %v173_v58 = vunpack.c.l.bf16 %v9696_v47  ;;  %v3327_v49 = vadd.f32 %v3326_v42, %v3325_v19  ;;  %v5629_v21 = vsel %vm9243_vm6, %v7824_v18, %v5628_v23  ;;  %v5630_v2 = vrot.slane %v5628_v23, 4  ;;  %v130_v56 = vld [vmem:[%s12851_s0 + $0x198] sm:$0xf]  ;;  %v131_v42 = vld [vmem:[%s12851_s0 + $0x19c] sm:$0xf] }
 0x14f   :  { %8038 = vmatprep.mubr.msk.f32.mxu1 %vm8366_vm7, %v12902_v9  ;;  %v179_v5 = vunpack.c.l.bf16 %v9701_v13  ;;  %v4831_v50 = vsel %vm8453_vm2, %v4826_v51, %v4830_v1  ;;  %v4836_v28 = vrot.slane %v4835_v22, 4  ;;  %v184_v53 = vunpack.c.l.bf16 %v76_v12  ;;  %v9759_v30 = vld [vmem:[%s12851_s0 + $0x1a0] sm:$0x1]  ;;  %v133_v11 = vld [vmem:[%s12851_s0 + $0x1a4] sm:$0xf] }
 0x150   :  { %v185_v54 = vunpack.c.l.bf16 %v77_v37  ;;  %v3329_v36 = vadd.f32 %v3328_v38, %v3327_v49  ;;  %v5632_v14 = vsel %vm9243_vm6, %v5630_v2, %v5631_v26  ;;  %v134_v1 = vld [vmem:[%s12851_s0 + $0x1a8] sm:$0xf]  ;;  %v186_v41 = vunpack.c.l.bf16 %v78_v7  ;;  %v9780_v32 = vld [vmem:[%s12851_s0 + $0x1ac] sm:$0x1] }
 0x151   :  { %v187_v8 = vunpack.c.l.bf16 %v79_v33  ;;  %v4841_v38 = vsel %vm8453_vm2, %v4836_v28, %v4840_v31  ;;  %v9769_v39 = vcombine.low %v5629_v21, %v5632_v14  ;;  %v188_v12 = vunpack.c.l.bf16 %v80_v52 }
 0x152   :  { %v189_v19 = vunpack.c.l.bf16 %v9743_v55  ;;  %v9772_v10 = vcombine.low %v4831_v50, %v4841_v38  ;;  %v3331_v18 = vadd.f32 %v8628_v29, %v3329_v36  ;;  %v238_v3 = vunpack.c.l.bf16 %v130_v56 }
 0x153   :  { %13054 = vst [vmem:[#allocation46_spill] sm:$0xff] %v9769_v39  ;;  %v239_v23 = vunpack.c.l.bf16 %v131_v42  ;;  %6243 = vrot.lane.b32.xlu1 %v9769_v39, %s8364_s18  ;;  %v240_v26 = vunpack.c.l.bf16 %v9759_v30  ;;  %v241_v37 = vunpack.c.l.bf16 %v133_v11  ;;  %v9783_v51 = vunpack.c.l.bf16 %v134_v1 }
 0x154   :  { %13055 = vst [vmem:[#allocation47_spill] sm:$0xff] %v9772_v10  ;;  %v861_v22 = vcombine.high %v173_v58, %v173_v58  ;;  %6061 = vrot.lane.b32.xlu0 %v9772_v10, %s8363_s15  ;;  %v3333_v29 = vadd.f32 %v3332_v15, %v3331_v18  ;;  %v868_v31 = vrot.slane %v173_v58, %v8444_v25  ;;  %v243_v50 = vunpack.c.l.bf16 %v9780_v32 }
 0x155   :  { %v943_v7 = vcombine.high %v179_v5, %v179_v5  ;;  %v950_v33 = vrot.slane %v179_v5, %v8444_v25  ;;  %v1008_v21 = vcombine.high %v184_v53, %v184_v53  ;;  %v9791_v2 = vrot.slane %v184_v53, %v8444_v25 }
 0x156   :  { %v875_v49 = vrot.slane %v861_v22, %v8444_v25  ;;  %v1025_v52 = vcombine.high %v185_v54, %v185_v54  ;;  %v3335_v55 = vadd.f32 %v9674_v24, %v3333_v29  ;;  %v876_v28 = vcombine.high %v868_v31, %v868_v31 }
 0x157   :  { %v957_v56 = vrot.slane %v943_v7, %v8444_v25  ;;  %v958_v42 = vcombine.high %v950_v33, %v950_v33  ;;  %v1022_v58 = vrot.slane %v1008_v21, %v8444_v25  ;;  %v1032_v5 = vrot.slane %v185_v54, %v8444_v25 }
 0x158   :  { %v877_v15 = vcombine.high %v875_v49, %v875_v49  ;;  %v3337_v36 = vadd.f32 %v8649_v0, %v3335_v55  ;;  %v1023_v53 = vcombine.high %v9791_v2, %v9791_v2  ;;  %v1039_v30 = vrot.slane %v1025_v52, %v8444_v25 }
 0x159   :  { %v959_v14 = vcombine.high %v957_v56, %v957_v56  ;;  %v1024_v24 = vcombine.high %v1022_v58, %v1022_v58  ;;  %v9803_v11 = vrot.slane %v186_v41, %v8444_v25  ;;  %v1049_v1 = vcombine.high %v187_v8, %v187_v8 }
 0x15a   :  { %v9806_v38 = vrot.slane %v187_v8, %v8444_v25  ;;  %v3339_v18 = vadd.f32 %v8669_v4, %v3337_v36  ;;  %v1040_v32 = vcombine.high %v1032_v5, %v1032_v5  ;;  %v1066_v54 = vcombine.high %v188_v12, %v188_v12 }
 0x15b   :  { %v1073_v0 = vrot.slane %v188_v12, %v8444_v25  ;;  %v1041_v22 = vcombine.high %v1039_v30, %v1039_v30  ;;  %v1063_v29 = vrot.slane %v1049_v1, %v8444_v25  ;;  %v1681_v41 = vcombine.high %v9165_v62, %v9165_v62 }
 0x15c   :  { %v1064_v7 = vcombine.high %v9806_v38, %v9806_v38  ;;  %v9816_v21 = vadd.f32 %v9705_v48, %v3339_v18  ;;  %v1080_v8 = vrot.slane %v1066_v54, %v8444_v25  ;;  %v1089_v4 = vrot.slane %v189_v19, %v8444_v25 }
 0x15d   :  { %v1746_v52 = vcombine.high %v238_v3, %v238_v3  ;;  %v1081_v55 = vcombine.high %v1073_v0, %v1073_v0  ;;  %v1695_v12 = vrot.slane %v1681_v41, %v8444_v25  ;;  %v1753_v36 = vrot.slane %v238_v3, %v8444_v25 }
 0x15e   :  { %v1763_v1 = vcombine.high %v239_v23, %v239_v23  ;;  %v1065_v9 = vcombine.high %v1063_v29, %v1063_v29  ;;  %v1082_v40 = vcombine.high %v1080_v8, %v1080_v8  ;;  %v1770_v62 = vrot.slane %v239_v23, %v8444_v25 }
 0x15f   :  { %v1760_v61 = vrot.slane %v1746_v52, %v8444_v25  ;;  %v1697_v39 = vcombine.high %v1695_v12, %v1695_v12  ;;  %v9826_v18 = vrot.slane %v240_v26, %v8444_v25  ;;  %v1787_v19 = vcombine.high %v241_v37, %v241_v37 }
 0x160   :  { %v1777_v48 = vrot.slane %v1763_v1, %v8444_v25  ;;  %v1761_v54 = vcombine.high %v1753_v36, %v1753_v36  ;;  %v9829_v41 = vrot.slane %v241_v37, %v8444_v25  ;;  %v1804_v3 = vcombine.high %v9783_v51, %v9783_v51 }
 0x161   :  { %v1762_v45 = vcombine.high %v1760_v61, %v1760_v61  ;;  %v1778_v10 = vcombine.high %v1770_v62, %v1770_v62  ;;  %v1801_v52 = vrot.slane %v1787_v19, %v8444_v25  ;;  %v1811_v23 = vrot.slane %v9783_v51, %v8444_v25 }
 0x162   :  { %v1779_v46 = vcombine.high %v1777_v48, %v1777_v48  ;;  %v1802_v26 = vcombine.high %v9829_v41, %v9829_v41  ;;  %v1827_v1 = vrot.slane %v243_v50, %v8444_v25  ;;  %v2304_v59 = vcombine.low %v868_v31, %v876_v28 }
 0x163   :  { %v2305_v16 = vcombine.low %v875_v49, %v877_v15  ;;  %v1803_v13 = vcombine.high %v1801_v52, %v1801_v52  ;;  %v1818_v37 = vrot.slane %v1804_v3, %v8444_v25  ;;  %v2373_v35 = vcombine.low %v950_v33, %v958_v42 }
 0x164   :  { %v2380_v47 = vrot.slane %v8679_v27, %v8444_v25  ;;  %v1819_v43 = vcombine.high %v1811_v23, %v1811_v23  ;;  %v2312_v19 = vrot.slane %v2304_v59, %v8444_v25  ;;  %v2389_v51 = vcombine.low %v957_v56, %v959_v14 }
 0x165   :  { %v2319_v63 = vrot.slane %v2305_v16, %v8444_v25  ;;  %v2387_v60 = vrot.slane %v2373_v35, %v8444_v25  ;;  %v2414_v50 = vrot.slane %v8726_v6, %v8444_v25  ;;  %v2440_v31 = vcombine.low %v9791_v2, %v1023_v53 }
 0x166   :  { %v2441_v49 = vcombine.low %v1022_v58, %v1024_v24  ;;  %v1820_v28 = vcombine.high %v1818_v37, %v1818_v37  ;;  %v2397_v33 = vrot.slane %v2389_v51, %v8444_v25  ;;  %v2457_v15 = vcombine.low %v1032_v5, %v1040_v32 }
 0x167   :  { %v2458_v42 = vcombine.low %v1039_v30, %v1041_v22  ;;  %v2320_v27 = vcombine.low %v2312_v19, %v2319_v63  ;;  %v2388_v3 = vcombine.low %v2380_v47, %v2387_v60  ;;  %v2448_v59 = vrot.slane %v2440_v31, %v8444_v25 }
 0x168   :  { %v2455_v16 = vrot.slane %v2441_v49, %v8444_v25  ;;  %v13056_v35 = vrot.slane %v8747_v20, %v8444_v25  ;;  %v2465_v6 = vrot.slane %v2457_v15, %v8444_v25  ;;  %v2474_v58 = vcombine.low %v9803_v11, %v9806_v38 }
 0x169   :  { %v2472_v2 = vrot.slane %v2458_v42, %v8444_v25  ;;  %v2405_v5 = vcombine.low %v2397_v33, %v8716_v44  ;;  %v2475_v14 = vcombine.low %v1064_v7, %v1063_v29  ;;  %v2491_v63 = vcombine.low %v1065_v9, %v1073_v0  ;;  %v13059_v42 = vld [vmem:[#allocation15_spill] sm:$0xff] }
 0x16a   :  { %v2422_v56 = vcombine.low %v2414_v50, %v13056_v35  ;;  %v2492_v60 = vcombine.low %v1081_v55, %v1080_v8  ;;  %v2456_v47 = vcombine.low %v2448_v59, %v2455_v16  ;;  %v2482_v53 = vrot.slane %v2474_v58, %v8444_v25  ;;  %v13060_v59 = vld [vmem:[#allocation26_spill] sm:$0xff] }
 0x16b   :  { %v2508_v30 = vcombine.low %v1082_v40, %v1089_v4  ;;  %v3077_v24 = vcombine.low %v1695_v12, %v1697_v39  ;;  %v2489_v20 = vrot.slane %v2475_v14, %v8444_v25  ;;  %v2499_v32 = vrot.slane %v2491_v63, %v8444_v25 }
 0x16c   :  { %v2506_v22 = vrot.slane %v2492_v60, %v8444_v25  ;;  %v3102_v19 = vrot.slane %v9230_v57, %v8444_v25  ;;  %v2473_v11 = vcombine.low %v2465_v6, %v2472_v2  ;;  %v3128_v38 = vcombine.low %v1753_v36, %v1761_v54 }
 0x16d   :  { %v3085_v44 = vrot.slane %v3077_v24, %v8444_v25  ;;  %v3129_v9 = vcombine.low %v1760_v61, %v1762_v45  ;;  %v2490_v0 = vcombine.low %v2482_v53, %v2489_v20  ;;  %v2515_v7 = vrot.slane %v2508_v30, %v8444_v25  ;;  %v9912_v53 = vld [vmem:[%s12851_s0 + $0x78] sm:$0xf]  ;;  %v9919_v20 = vld [vmem:[%s12851_s0 + $0x7c] sm:$0xf] }
 0x16e   :  { %v2507_v29 = vcombine.low %v2499_v32, %v2506_v22  ;;  %v3145_v40 = vcombine.low %v1770_v62, %v1778_v10  ;;  %v13057_v39 = vrot.slane %v9232_v34, %v8444_v25  ;;  %v3136_v4 = vrot.slane %v3128_v38, %v8444_v25 }
 0x16f   :  { %v3143_v55 = vrot.slane %v3129_v9, %v8444_v25  ;;  %v3146_v12 = vcombine.low %v1777_v48, %v1779_v46  ;;  %v3162_v36 = vcombine.low %v9826_v18, %v9829_v41  ;;  %v3163_v61 = vcombine.low %v1802_v26, %v1801_v52  ;;  %v13058_v26 = vld [vmem:[#allocation14_spill] sm:$0xff]  ;;  %v9929_v9 = vld [vmem:[%s12851_s0 + $0x80] sm:$0x1] }
 0x170   :  { %v3110_v8 = vcombine.low %v3102_v19, %v13057_v39  ;;  %v3153_v57 = vrot.slane %v3145_v40, %v8444_v25  ;;  %v3179_v45 = vcombine.low %v1803_v13, %v1811_v23  ;;  %v3093_v54 = vcombine.low %v3085_v44, %v9237_v17  ;;  %v9923_v19 = vpop.permute.xlu1 %6047  ;;  %v13063_v44 = vld [vmem:[#allocation43_spill] sm:$0xff] }
 0x171   :  { %v3160_v10 = vrot.slane %v3146_v12, %v8444_v25  ;;  %v3180_v62 = vcombine.low %v1819_v43, %v1818_v37  ;;  %v3196_v51 = vcombine.low %v1820_v28, %v1827_v1  ;;  %v3170_v34 = vrot.slane %v3162_v36, %v8444_v25  ;;  %13062 = vst [vmem:[#allocation14_spill] sm:$0xff] %v9923_v19  ;;  %v8234_v36 = vld [vmem:[%s12851_s0 + $0x118] sm:$0xf] }
 0x172   :  { %v3177_v50 = vrot.slane %v3163_v61, %v8444_v25  ;;  %v3187_v31 = vrot.slane %v3179_v45, %v8444_v25  ;;  %v3342_v46 = vsel %vm3286_vm3, %v2320_v27, 0.0  ;;  %v3144_v48 = vcombine.low %v3136_v4, %v3143_v55 }
 0x173   :  { %v3161_v49 = vcombine.low %v3153_v57, %v3160_v10  ;;  %v3194_v18 = vrot.slane %v3180_v62, %v8444_v25  ;;  %v3343_v13 = vadd.f32 %v3342_v46, %v9816_v21  ;;  %v3203_v17 = vrot.slane %v3196_v51, %v8444_v25  ;;  %v8235_v10 = vld [vmem:[%s12851_s0 + $0x11c] sm:$0x1] }
 0x174   :  { %v3178_v41 = vcombine.low %v3170_v34, %v3177_v50  ;;  %v3350_v43 = vsel %vm3286_vm3, %v2388_v3, 0.0  ;;  %v3352_v52 = vsel %vm3286_vm3, %v2405_v5, 0.0  ;;  %v3354_v37 = vsel %vm3286_vm3, %v2422_v56, 0.0  ;;  %v13061_v5 = vld [vmem:[#allocation16_spill] sm:$0xff] }
 0x175   :  { %v3195_v23 = vcombine.low %v3187_v31, %v3194_v18  ;;  %v3345_v1 = vadd.f32 %v13058_v26, %v3343_v13  ;;  %v3358_v28 = vsel %vm3286_vm3, %v2456_v47, 0.0  ;;  %v9890_v33 = vsel %vm3286_vm3, %v2473_v11, 0.0  ;;  %v13064_v51 = vld [vmem:[#allocation40_spill] sm:$0xff] }
 0x176   :  { %v9893_v15 = vsel %vm3286_vm3, %v2490_v0, 0.0  ;;  %v3440_v21 = vsel %vm3286_vm3, %v3093_v54, 0.0  ;;  %v9898_v3 = vsel %vm3286_vm3, %v2507_v29, 0.0  ;;  %v3442_v35 = vsel %vm3286_vm3, %v3110_v8, 0.0  ;;  %v8233_v29 = vld [vmem:[%s12851_s0 + $0x114] sm:$0xf] }
 0x177   :  { %v3347_v27 = vadd.f32 %v13059_v42, %v3345_v1  ;;  %v3441_v16 = vadd.f32 %v3440_v21, %v13060_v59  ;;  %v9902_v56 = vsel %vm3366_vm8, %v2515_v7, 0.0  ;;  %v3446_v6 = vsel %vm3286_vm3, %v3144_v48, 0.0  ;;  %v13068_v21 = vld [vmem:[#allocation44_spill] sm:$0xff] }
 0x178   :  { %v3448_v2 = vsel %vm3286_vm3, %v3161_v49, 0.0  ;;  %v3450_v58 = vsel %vm3286_vm3, %v3178_v41, 0.0  ;;  %v3452_v60 = vsel %vm3286_vm3, %v3195_v23, 0.0  ;;  %v3454_v47 = vsel %vm3366_vm8, %v3203_v17, 0.0 }
 0x179   :  { %v3349_v14 = vadd.f32 %v13061_v5, %v3347_v27  ;;  %v3443_v63 = vadd.f32 %v3442_v35, %v3441_v16  ;;  %v4867_v30 = vshrl.u32 %v9912_v53, 16  ;;  %v4870_v24 = vshll.u32 %v9912_v53, 16 }
 0x17a   :  { %v4876_v32 = vshll.u32 %v9919_v20, 16  ;;  %v4880_v22 = vshrl.u32 %v9919_v20, 16  ;;  %v4886_v0 = vshll.u32 %v9929_v9, 16  ;;  %v7826_v7 = vrot.slane %v8233_v29, 9 }
 0x17b   :  { %v3351_v11 = vadd.f32 %v3350_v43, %v3349_v14  ;;  %v3445_v38 = vadd.f32 %v13063_v44, %v3443_v63  ;;  %v4869_v40 = vrot.slane %v4867_v30, 4  ;;  %v4872_v39 = vrot.slane %v4870_v24, 5  ;;  %v9945_v43 = vpop.permute.xlu1 %6051  ;;  %v9965_v30 = vld [vmem:[%s12851_s0 + $0x98] sm:$0x1] }
 0x17c   :  { %v4878_v8 = vrot.slane %v4876_v32, 5  ;;  %v4882_v4 = vrot.slane %v4880_v22, 4  ;;  %v4888_v57 = vrot.slane %v4886_v0, 5  ;;  %v5642_v61 = vrot.slane %v8234_v36, 5  ;;  %13066 = vst [vmem:[#allocation15_spill] sm:$0xff] %v9945_v43 }
 0x17d   :  { %v3353_v55 = vadd.f32 %v3352_v52, %v3351_v11  ;;  %v3447_v12 = vadd.f32 %v3446_v6, %v3445_v38  ;;  %v4873_v45 = vor.u32 %v4872_v39, %v4869_v40  ;;  %v5645_v62 = vrot.slane %v8235_v10, 5  ;;  %v13067_v52 = vld [vmem:[#allocation18_spill] sm:$0xff]  ;;  %v9980_v11 = vld [vmem:[%s12851_s0 + $0x130] sm:$0xf]  ;;  %v8239_v38 = vld [vmem:[%s12851_s0 + $0x134] sm:$0x1] }
 0x17e   :  { %v4883_v54 = vor.u32 %v4882_v4, %v4878_v8  ;;  %v4915_v34 = vshrl.u32 %v13064_v51, 16  ;;  %v5643_v48 = vsel %vm9243_vm6, %v7826_v7, %v5642_v61  ;;  %v5644_v49 = vrot.slane %v5642_v61, 4  ;;  %13072 = vst [vmem:[#allocation43_spill] sm:$0xff] %v9980_v11 }
 0x17f   :  { %v3355_v50 = vadd.f32 %v3354_v37, %v3353_v55  ;;  %v3449_v31 = vadd.f32 %v3448_v2, %v3447_v12  ;;  %v4874_v18 = vrot.slane %v4873_v45, 4  ;;  %v4918_v17 = vshll.u32 %v13064_v51, 16  ;;  %v9992_v39 = vpop.permute.xlu1 %6055  ;;  %v13074_v51 = vld [vmem:[#allocation45_spill] sm:$0xff] }
 0x180   :  { %v4884_v13 = vrot.slane %v4883_v54, 4  ;;  %v4917_v41 = vrot.slane %v4915_v34, 4  ;;  %v5646_v1 = vsel %vm9243_vm6, %v5644_v49, %v5645_v62  ;;  %v4924_v37 = vshll.u32 %v13068_v21, 16  ;;  %13073 = vst [vmem:[#allocation40_spill] sm:$0xff] %v9992_v39 }
 0x181   :  { %v3357_v23 = vadd.f32 %v13067_v52, %v3355_v50  ;;  %v3451_v26 = vadd.f32 %v3450_v58, %v3449_v31  ;;  %v4879_v27 = vsel %vm8453_vm2, %v4874_v18, %v4878_v8  ;;  %v9955_v16 = vcombine.low %v5643_v48, %v5646_v1 }
 0x182   :  { %v4889_v59 = vsel %vm8453_vm2, %v4884_v13, %v4888_v57  ;;  %v4920_v35 = vrot.slane %v4918_v17, 5  ;;  %v4926_v14 = vrot.slane %v4924_v37, 5  ;;  %v4928_v63 = vshrl.u32 %v13068_v21, 16 }
 0x183   :  { %13070 = vst [vmem:[#allocation26_spill] sm:$0xff] %v9955_v16  ;;  %v3359_v6 = vadd.f32 %v3358_v28, %v3357_v23  ;;  %v3453_v2 = vadd.f32 %v3452_v60, %v3451_v26  ;;  %v9957_v5 = vcombine.low %v4879_v27, %v4889_v59  ;;  %6247 = vrot.lane.b32.xlu1 %v9955_v16, %s8364_s18  ;;  %v4934_v24 = vshll.u32 %v9965_v30, 16  ;;  %v9971_v28 = vld [vmem:[%s12851_s0 + $0x12c] sm:$0xf]  ;;  %v10024_v1 = vpop.permute.xlu1 %6059 }
 0x184   :  { %v4921_v58 = vor.u32 %v4920_v35, %v4917_v41  ;;  %13071 = vst [vmem:[#allocation16_spill] sm:$0xff] %v9971_v28  ;;  %v7828_v60 = vrot.slane %v9971_v28, 9  ;;  %v5656_v44 = vrot.slane %v9980_v11, 5  ;;  %v5659_v0 = vrot.slane %v8239_v38, 5  ;;  %13077 = vst [vmem:[#allocation44_spill] sm:$0xff] %v10024_v1 }
 0x185   :  { %v3361_v32 = vadd.f32 %v9890_v33, %v3359_v6  ;;  %v3455_v22 = vadd.f32 %v3454_v47, %v3453_v2  ;;  %6065 = vrot.lane.b32.xlu0 %v9957_v5, %s8363_s15  ;;  %v4930_v7 = vrot.slane %v4928_v63, 4  ;;  %v4936_v40 = vrot.slane %v4934_v24, 5  ;;  %v9989_v33 = vld [vmem:[%s12851_s0 + $0xa8] sm:$0xf]  ;;  %v8244_v63 = vld [vmem:[%s12851_s0 + $0x14c] sm:$0x1] }
 0x186   :  { %v4922_v29 = vrot.slane %v4921_v58, 4  ;;  %v4963_v47 = vshrl.u32 %v9989_v33, 16  ;;  %v5657_v55 = vsel %vm9243_vm6, %v7828_v60, %v5656_v44  ;;  %v5658_v12 = vrot.slane %v5656_v44, 4 }
 0x187   :  { %v3363_v8 = vadd.f32 %v9893_v15, %v3361_v32  ;;  %v3456_v4 = vrot.slane %v3455_v22, 4  ;;  %v4931_v36 = vor.u32 %v4930_v7, %v4926_v14  ;;  %v4966_v45 = vshll.u32 %v9989_v33, 16 }
 0x188   :  { %v4927_v57 = vsel %vm8453_vm2, %v4922_v29, %v4926_v14  ;;  %v4965_v61 = vrot.slane %v4963_v47, 4  ;;  %v5660_v62 = vsel %vm9243_vm6, %v5658_v12, %v5659_v0  ;;  %v4972_v15 = vshll.u32 %v13074_v51, 16  ;;  %v10031_v14 = vld [vmem:[%s12851_s0 + $0x148] sm:$0xf] }
 0x189   :  { %v3365_v54 = vadd.f32 %v9898_v3, %v3363_v8  ;;  %v3457_v10 = vadd.f32 %v3456_v4, %v3455_v22  ;;  %v4932_v34 = vrot.slane %v4931_v36, 4  ;;  %v10004_v50 = vcombine.low %v5657_v55, %v5660_v62  ;;  %v10011_v3 = vld [vmem:[%s12851_s0 + $0xb0] sm:$0x1]  ;;  %13078 = vst [vmem:[#allocation45_spill] sm:$0xff] %v10031_v14  ;;  %v10042_v22 = vld [vmem:[%s12851_s0 + $0xd8] sm:$0xf] }
 0x18a   :  { %v4968_v31 = vrot.slane %v4966_v45, 5  ;;  %v4976_v48 = vshrl.u32 %v13074_v51, 16  ;;  %v4974_v13 = vrot.slane %v4972_v15, 5  ;;  %v4982_v41 = vshll.u32 %v10011_v3, 16 }
 0x18b   :  { %13075 = vst [vmem:[#allocation28_spill] sm:$0xff] %v10004_v50  ;;  %v3368_v49 = vadd.f32 %v9902_v56, %v3365_v54  ;;  %v3458_v18 = vrot.slane %v3457_v10, 2  ;;  %v4937_v17 = vsel %vm8453_vm2, %v4932_v34, %v4936_v40  ;;  %6251 = vrot.lane.b32.xlu1 %v10004_v50, %s8364_s18  ;;  %v10021_v56 = vld [vmem:[%s12851_s0 + $0x144] sm:$0xf]  ;;  %v5670_v58 = vrot.slane %v10031_v14, 5 }
 0x18c   :  { %v4969_v52 = vor.u32 %v4968_v31, %v4965_v61  ;;  %v4978_v23 = vrot.slane %v4976_v48, 4  ;;  %13076 = vst [vmem:[#allocation18_spill] sm:$0xff] %v10021_v56  ;;  %v7830_v26 = vrot.slane %v10021_v56, 9  ;;  %v10026_v59 = vcombine.low %v4927_v57, %v4937_v17  ;;  %v10057_v57 = vld [vmem:[%s12851_s0 + $0xdc] sm:$0xf]  ;;  %v10060_v61 = vpop.permute.xlu1 %6063 }
 0x18d   :  { %v3369_v37 = vrot.slane %v3368_v49, 4  ;;  %v3459_v27 = vadd.f32 %v3458_v18, %v3457_v10  ;;  %v4984_v35 = vrot.slane %v4982_v41, 5  ;;  %v5673_v24 = vrot.slane %v8244_v63, 5  ;;  %13079 = vst [vmem:[#allocation48_spill] sm:$0xff] %v10060_v61  ;;  %v10070_v34 = vld [vmem:[%s12851_s0 + $0xe0] sm:$0x1] }
 0x18e   :  { %v4970_v6 = vrot.slane %v4969_v52, 4  ;;  %v4979_v2 = vor.u32 %v4978_v23, %v4974_v13  ;;  %6069 = vrot.lane.b32.xlu0 %v10026_v59, %s8363_s15  ;;  %v5011_v44 = vshrl.u32 %v10042_v22, 16  ;;  %v5671_v29 = vsel %vm9243_vm6, %v7830_v26, %v5670_v58  ;;  %v8250_v17 = vld [vmem:[%s12851_s0 + $0x164] sm:$0x1] }
 0x18f   :  { %v3370_v60 = vadd.f32 %v3369_v37, %v3368_v49  ;;  %v3460_v32 = vrot.slane %v3459_v27, 1  ;;  %v5672_v7 = vrot.slane %v5670_v58, 4  ;;  %v5014_v12 = vshll.u32 %v10042_v22, 16  ;;  %v10080_v49 = vld [vmem:[%s12851_s0 + $0x15c] sm:$0xf] }
 0x190   :  { %v4975_v38 = vsel %vm8453_vm2, %v4970_v6, %v4974_v13  ;;  %v4980_v0 = vrot.slane %v4979_v2, 4  ;;  %v5013_v8 = vrot.slane %v5011_v44, 4  ;;  %v5020_v36 = vshll.u32 %v10057_v57, 16  ;;  %13081 = vst [vmem:[#allocation50_spill] sm:$0xff] %v10080_v49  ;;  %v10086_v13 = vld [vmem:[%s12851_s0 + $0x160] sm:$0xf]  ;;  %v10101_v44 = vpop.permute.xlu1 %6067 }
 0x191   :  { %v3371_v40 = vrot.slane %v3370_v60, 2  ;;  %v3461_v47 = vadd.f32 %v3460_v32, %v3459_v27  ;;  %v5674_v55 = vsel %vm9243_vm6, %v5672_v7, %v5673_v24  ;;  %v5016_v62 = vrot.slane %v5014_v12, 5  ;;  %13082 = vst [vmem:[#allocation51_spill] sm:$0xff] %v10086_v13  ;;  %v10097_v2 = vld [vmem:[%s12851_s0 + $0xf0] sm:$0xf]  ;;  %13083 = vst [vmem:[#allocation52_spill] sm:$0xff] %v10101_v44 }
 0x192   :  { %v4985_v4 = vsel %vm8453_vm2, %v4980_v0, %v4984_v35  ;;  %v10064_v10 = vcombine.low %v5671_v29, %v5674_v55  ;;  %v5022_v51 = vrot.slane %v5020_v36, 5  ;;  %v5024_v15 = vshrl.u32 %v10057_v57, 16  ;;  %v10108_v7 = vld [vmem:[%s12851_s0 + $0xf4] sm:$0xf] }
 0x193   :  { %v3372_v45 = vadd.f32 %v3371_v40, %v3370_v60  ;;  %v10062_v54 = vcombine.low %v4975_v38, %v4985_v4  ;;  %v5030_v31 = vshll.u32 %v10070_v34, 16  ;;  %v7832_v18 = vrot.slane %v10080_v49, 9 }
 0x194   :  { %13080 = vst [vmem:[#allocation49_spill] sm:$0xff] %v10064_v10  ;;  %6255 = vrot.lane.b32.xlu1 %v10064_v10, %s8364_s18  ;;  %v5684_v41 = vrot.slane %v10086_v13, 5  ;;  %v5687_v52 = vrot.slane %v8250_v17, 5  ;;  %v3463_v23 = vmul.f32 0.00390625, %v3461_v47  ;;  %v5017_v26 = vor.u32 %v5016_v62, %v5013_v8  ;;  %v10120_v62 = vld [vmem:[%s12851_s0 + $0xf8] sm:$0x1] }
 0x195   :  { %v3373_v48 = vrot.slane %v3372_v45, 1  ;;  %6073 = vrot.lane.b32.xlu0 %v10062_v54, %s8363_s15  ;;  %v5026_v37 = vrot.slane %v5024_v15, 4  ;;  %v5059_v58 = vshrl.u32 %v10097_v2, 16  ;;  %v5032_v60 = vrot.slane %v5030_v31, 5  ;;  %v10387_v13 = vld [vmem:[%s12851_s0 + $0x180] sm:$0xf] }
 0x196   :  { %v5685_v35 = vsel %vm9243_vm6, %v7832_v18, %v5684_v41  ;;  %v5686_v6 = vrot.slane %v5684_v41, 4  ;;  %v5018_v63 = vrot.slane %v5017_v26, 4  ;;  %v5062_v32 = vshll.u32 %v10097_v2, 16  ;;  %v10137_v41 = vld [vmem:[%s12851_s0 + $0x178] sm:$0xf] }
 0x197   :  { %v3374_v27 = vadd.f32 %v3373_v48, %v3372_v45  ;;  %v5027_v24 = vor.u32 %v5026_v37, %v5022_v51  ;;  %v5061_v29 = vrot.slane %v5059_v58, 4  ;;  %v5068_v40 = vshll.u32 %v10108_v7, 16  ;;  %v10131_v48 = vld [vmem:[%s12851_s0 + $0x174] sm:$0xf]  ;;  %13086 = vst [vmem:[#allocation55_spill] sm:$0xff] %v10137_v41 }
 0x198   :  { %v5688_v0 = vsel %vm9243_vm6, %v5686_v6, %v5687_v52  ;;  %v5023_v47 = vsel %vm8453_vm2, %v5018_v63, %v5022_v51  ;;  %v5064_v55 = vrot.slane %v5062_v32, 5  ;;  %v5072_v45 = vshrl.u32 %v10108_v7, 16  ;;  %13085 = vst [vmem:[#allocation54_spill] sm:$0xff] %v10131_v48  ;;  %v8256_v26 = vld [vmem:[%s12851_s0 + $0x17c] sm:$0x1] }
 0x199   :  { %v3462_v38 = vmul.f32 0.00390625, %v3374_v27  ;;  %v5028_v8 = vrot.slane %v5027_v24, 4  ;;  %v10113_v4 = vcombine.low %v5685_v35, %v5688_v0  ;;  %v5070_v36 = vrot.slane %v5068_v40, 5  ;;  %v10146_v24 = vpop.permute.xlu1 %6071  ;;  %v10152_v32 = vld [vmem:[%s12851_s0 + $0x108] sm:$0xf] }
 0x19a   :  { %v5078_v15 = vshll.u32 %v10120_v62, 16  ;;  %v5065_v31 = vor.u32 %v5064_v55, %v5061_v29  ;;  %v7834_v18 = vrot.slane %v10131_v48, 9  ;;  %v5698_v17 = vrot.slane %v10137_v41, 5  ;;  %13088 = vst [vmem:[#allocation56_spill] sm:$0xff] %v10146_v24  ;;  %v10159_v29 = vld [vmem:[%s12851_s0 + $0x10c] sm:$0xf] }
 0x19b   :  { %13084 = vst [vmem:[#allocation53_spill] sm:$0xff] %v10113_v4  ;;  %v3475_v12 = vsel %vm3474_vm9, %v3463_v23, %v3462_v38  ;;  %v5033_v51 = vsel %vm8453_vm2, %v5028_v8, %v5032_v60  ;;  %6259 = vrot.lane.b32.xlu1 %v10113_v4, %s8364_s18  ;;  %v5074_v23 = vrot.slane %v5072_v45, 4  ;;  %v5701_v37 = vrot.slane %v8256_v26, 5 }
 0x19c   :  { %8034 = vmatmul.mubr.msk.f32.vlgmr.msra.gmra.mrb[0].mxu0 %vm3286_vm3, %v3475_v12  ;;  %v7889_v52 = vcombine.low %v5023_v47, %v5033_v51  ;;  %v13087_v27 = vmov 0.0   ;;  %v5066_v35 = vrot.slane %v5065_v31, 4  ;;  %v5080_v6 = vrot.slane %v5078_v15, 5 }
 0x19d   :  { %3735 = vmatprep.mubr.f32.mxu0 %v13087_v27  ;;  %v5699_v58 = vsel %vm9243_vm6, %v7834_v18, %v5698_v17  ;;  %v5700_v63 = vrot.slane %v5698_v17, 4  ;;  %v5075_v60 = vor.u32 %v5074_v23, %v5070_v36  ;;  %v5107_v38 = vshrl.u32 %v10152_v32, 16  ;;  %v10172_v17 = vld [vmem:[%s12851_s0 + $0x110] sm:$0x1] }
 0x19e   :  { %6077 = vrot.lane.b32.xlu0 %v7889_v52, %s8363_s15  ;;  %v5110_v0 = vshll.u32 %v10152_v32, 16  ;;  %v5116_v40 = vshll.u32 %v10159_v29, 16  ;;  %v5071_v47 = vsel %vm8453_vm2, %v5066_v35, %v5070_v36  ;;  %v5120_v55 = vshrl.u32 %v10159_v29, 16  ;;  %v10178_v36 = vld [vmem:[%s12851_s0 + $0x18c] sm:$0xf] }
 0x19f   :  { %v5702_v8 = vsel %vm9243_vm6, %v5700_v63, %v5701_v37  ;;  %v5076_v12 = vrot.slane %v5075_v60, 4  ;;  %v5109_v15 = vrot.slane %v5107_v38, 4  ;;  %v5126_v52 = vshll.u32 %v10172_v17, 16  ;;  %13090 = vst [vmem:[#allocation58_spill] sm:$0xff] %v10178_v36  ;;  %v10188_v35 = vld [vmem:[%s12851_s0 + $0x190] sm:$0xf] }
 0x1a0   :  { %v10167_v45 = vcombine.low %v5699_v58, %v5702_v8  ;;  %v5112_v51 = vrot.slane %v5110_v0, 5  ;;  %v5118_v31 = vrot.slane %v5116_v40, 5  ;;  %v5122_v18 = vrot.slane %v5120_v55, 4  ;;  %13091 = vst [vmem:[#allocation59_spill] sm:$0xff] %v10188_v35  ;;  %v8262_v63 = vld [vmem:[%s12851_s0 + $0x194] sm:$0x1]  ;;  %v10196_v40 = vpop.permute.xlu1 %6075 }
 0x1a1   :  { %v7836_v23 = vrot.slane %v10178_v36, 9  ;;  %v5081_v26 = vsel %vm8453_vm2, %v5076_v12, %v5080_v6  ;;  %v5712_v58 = vrot.slane %v10188_v35, 5  ;;  %v5715_v60 = vrot.slane %v8262_v63, 5  ;;  %13092 = vst [vmem:[#allocation60_spill] sm:$0xff] %v10196_v40 }
 0x1a2   :  { %13089 = vst [vmem:[#allocation57_spill] sm:$0xff] %v10167_v45  ;;  %6263 = vrot.lane.b32.xlu1 %v10167_v45, %s8364_s18  ;;  %v5113_v37 = vor.u32 %v5112_v51, %v5109_v15  ;;  %v10194_v38 = vcombine.low %v5071_v47, %v5081_v26  ;;  %v5123_v0 = vor.u32 %v5122_v18, %v5118_v31  ;;  %v5128_v6 = vrot.slane %v5126_v52, 5  ;;  %v10203_v15 = vld [vmem:[%s12851_s0 + $0x120] sm:$0xf]  ;;  %v10212_v52 = vld [vmem:[%s12851_s0 + $0x124] sm:$0xf] }
 0x1a3   :  { %v5713_v55 = vsel %vm9243_vm6, %v7836_v23, %v5712_v58  ;;  %v5714_v12 = vrot.slane %v5712_v58, 4  ;;  %v5155_v51 = vshrl.u32 %v10203_v15, 16  ;;  %v5158_v18 = vshll.u32 %v10203_v15, 16 }
 0x1a4   :  { %v5114_v8 = vrot.slane %v5113_v37, 4  ;;  %6081 = vrot.lane.b32.xlu0 %v10194_v38, %s8363_s15  ;;  %v5124_v47 = vrot.slane %v5123_v0, 4  ;;  %v5164_v23 = vshll.u32 %v10212_v52, 16  ;;  %v5168_v63 = vshrl.u32 %v10212_v52, 16 }
 0x1a5   :  { %v5716_v37 = vsel %vm9243_vm6, %v5714_v12, %v5715_v60  ;;  %v5157_v58 = vrot.slane %v5155_v51, 4  ;;  %v5160_v24 = vrot.slane %v5158_v18, 5  ;;  %v10251_v51 = vld [vmem:[%s12851_s0 + $0x138] sm:$0xf]  ;;  %v10255_v18 = vpop.permute.xlu1 %6079  ;;  %v5347_v56 = vshrl.u32 %v10387_v13, 16 }
 0x1a6   :  { %v5119_v26 = vsel %vm8453_vm2, %v5114_v8, %v5118_v31  ;;  %v5129_v0 = vsel %vm8453_vm2, %v5124_v47, %v5128_v6  ;;  %v10222_v40 = vcombine.low %v5713_v55, %v5716_v37  ;;  %v5166_v44 = vrot.slane %v5164_v23, 5  ;;  %v10229_v31 = vld [vmem:[%s12851_s0 + $0x128] sm:$0x1]  ;;  %v10237_v6 = vld [vmem:[%s12851_s0 + $0x18] sm:$0xf]  ;;  %13095 = vst [vmem:[#allocation63_spill] sm:$0xff] %v10255_v18 }
 0x1a7   :  { %v10224_v61 = vcombine.low %v5119_v26, %v5129_v0  ;;  %v5170_v1 = vrot.slane %v5168_v63, 4  ;;  %v5174_v60 = vshll.u32 %v10229_v31, 16  ;;  %v5161_v8 = vor.u32 %v5160_v24, %v5157_v58  ;;  %v10242_v55 = vld [vmem:[%s12851_s0 + $0x1c] sm:$0xf] }
 0x1a8   :  { %13093 = vst [vmem:[#allocation61_spill] sm:$0xff] %v10222_v40  ;;  %6267 = vrot.lane.b32.xlu1 %v10222_v40, %s8364_s18  ;;  %v10246_v12 = vcombine.low %v10237_v6, %v10242_v55  ;;  %v5203_v24 = vshrl.u32 %v10251_v51, 16  ;;  %v5206_v47 = vshll.u32 %v10251_v51, 16  ;;  %v10262_v37 = vld [vmem:[%s12851_s0 + $0x13c] sm:$0xf]  ;;  %v5350_v14 = vshll.u32 %v10387_v13, 16 }
 0x1a9   :  { %6085 = vrot.lane.b32.xlu0 %v10224_v61, %s8363_s15  ;;  %v5171_v23 = vor.u32 %v5170_v1, %v5166_v44  ;;  %v5176_v26 = vrot.slane %v5174_v60, 5  ;;  %v5212_v58 = vshll.u32 %v10262_v37, 16  ;;  %v5216_v63 = vshrl.u32 %v10262_v37, 16  ;;  %v10269_v1 = vld [vmem:[%s12851_s0 + $0x140] sm:$0x1]  ;;  %v10301_v10 = vpop.permute.xlu1 %6083 }
 0x1aa   :  { %13094 = vst [vmem:[#allocation62_spill] sm:$0xff] %v10246_v12  ;;  %v5162_v0 = vrot.slane %v5161_v8, 4  ;;  %v5205_v39 = vrot.slane %v5203_v24, 4  ;;  %v5208_v43 = vrot.slane %v5206_v47, 5  ;;  %v5222_v60 = vshll.u32 %v10269_v1, 16  ;;  %13098 = vst [vmem:[#allocation66_spill] sm:$0xff] %v10301_v10 }
 0x1ab   :  { %v5172_v19 = vrot.slane %v5171_v23, 4  ;;  %v5214_v40 = vrot.slane %v5212_v58, 5  ;;  %v5218_v18 = vrot.slane %v5216_v63, 4  ;;  %v10279_v24 = vld [vmem:[%s12851_s0 + $0x30] sm:$0xf]  ;;  %vm3561_vm10 = vcmask 1041408  }
 0x1ac   :  { %v5167_v45 = vsel %vm8453_vm2, %v5162_v0, %v5166_v44  ;;  %6277 = vrot.lane.b32.xlu1 %v10246_v12, %s8367_s11  ;;  %v5209_v8 = vor.u32 %v5208_v43, %v5205_v39  ;;  %v10284_v47 = vld [vmem:[%s12851_s0 + $0x34] sm:$0xf]  ;;  %v5224_v63 = vrot.slane %v5222_v60, 5  ;;  %v10295_v43 = vld [vmem:[%s12851_s0 + $0x150] sm:$0xf]  ;;  %vm3557_vm11 = vcmask 15360  }
 0x1ad   :  { %v10288_v23 = vcombine.low %v10279_v24, %v10284_v47  ;;  %v5177_v44 = vsel %vm8453_vm2, %v5172_v19, %v5176_v26  ;;  %v5219_v58 = vor.u32 %v5218_v18, %v5214_v40  ;;  %v5251_v39 = vshrl.u32 %v10295_v43, 16  ;;  %v10306_v19 = vld [vmem:[%s12851_s0 + $0x154] sm:$0xf]  ;;  %v10343_v12 = vld [vmem:[%s12851_s0 + $0x168] sm:$0xf] }
 0x1ae   :  { %v10298_v0 = vcombine.low %v5167_v45, %v5177_v44  ;;  %v5210_v25 = vrot.slane %v5209_v8, 4  ;;  %v5254_v4 = vshll.u32 %v10295_v43, 16  ;;  %v5260_v18 = vshll.u32 %v10306_v19, 16  ;;  %v10319_v8 = vld [vmem:[%s12851_s0 + $0x158] sm:$0x1] }
 0x1af   :  { %13096 = vst [vmem:[#allocation64_spill] sm:$0xff] %v10288_v23  ;;  %v5220_v50 = vrot.slane %v5219_v58, 4  ;;  %v5253_v16 = vrot.slane %v5251_v39, 4  ;;  %v5264_v26 = vshrl.u32 %v10306_v19, 16  ;;  %v5270_v44 = vshll.u32 %v10319_v8, 16 }
 0x1b0   :  { %13097 = vst [vmem:[#allocation65_spill] sm:$0xff] %v10298_v0  ;;  %6089 = vrot.lane.b32.xlu0 %v10298_v0, %s8363_s15  ;;  %v5215_v45 = vsel %vm8453_vm2, %v5210_v25, %v5214_v40  ;;  %6281 = vrot.lane.b32.xlu1 %v10288_v23, %s8367_s11  ;;  %v5256_v60 = vrot.slane %v5254_v4, 5  ;;  %v10325_v58 = vld [vmem:[%s12851_s0 + $0x48] sm:$0xf]  ;;  %v10330_v25 = vld [vmem:[%s12851_s0 + $0x4c] sm:$0xf] }
 0x1b1   :  { %v10334_v4 = vcombine.low %v10325_v58, %v10330_v25  ;;  %v5225_v40 = vsel %vm8453_vm2, %v5220_v50, %v5224_v63  ;;  %v5262_v39 = vrot.slane %v5260_v18, 5  ;;  %v5266_v10 = vrot.slane %v5264_v26, 4  ;;  %v10350_v50 = vld [vmem:[%s12851_s0 + $0x16c] sm:$0xf]  ;;  %v10361_v26 = vld [vmem:[%s12851_s0 + $0x170] sm:$0x1] }
 0x1b2   :  { %v10338_v27 = vcombine.low %v5215_v45, %v5225_v40  ;;  %v5257_v23 = vor.u32 %v5256_v60, %v5253_v16  ;;  %v5299_v36 = vshrl.u32 %v10343_v12, 16  ;;  %v5272_v48 = vrot.slane %v5270_v44, 5  ;;  %v10364_v60 = vpop.permute.xlu1 %6087 }
 0x1b3   :  { %13099 = vst [vmem:[#allocation67_spill] sm:$0xff] %v10334_v4  ;;  %v5267_v35 = vor.u32 %v5266_v10, %v5262_v39  ;;  %v5302_v41 = vshll.u32 %v10343_v12, 16  ;;  %v5308_v63 = vshll.u32 %v10350_v50, 16  ;;  %v5312_v10 = vshrl.u32 %v10350_v50, 16  ;;  %13101 = vst [vmem:[#allocation69_spill] sm:$0xff] %v10364_v60 }
 0x1b4   :  { %13100 = vst [vmem:[#allocation68_spill] sm:$0xff] %v10338_v27  ;;  %6093 = vrot.lane.b32.xlu0 %v10338_v27, %s8363_s15  ;;  %v5258_v16 = vrot.slane %v5257_v23, 4  ;;  %6285 = vrot.lane.b32.xlu1 %v10334_v4, %s8367_s11  ;;  %v5301_v18 = vrot.slane %v5299_v36, 4  ;;  %v5318_v45 = vshll.u32 %v10361_v26, 16  ;;  %v10369_v23 = vld [vmem:[%s12851_s0 + $0x60] sm:$0xf] }
 0x1b5   :  { %v5268_v44 = vrot.slane %v5267_v35, 4  ;;  %v5304_v40 = vrot.slane %v5302_v41, 5  ;;  %v5310_v49 = vrot.slane %v5308_v63, 5  ;;  %v10374_v36 = vld [vmem:[%s12851_s0 + $0x64] sm:$0xf]  ;;  %v5314_v35 = vrot.slane %v5312_v10, 4 }
 0x1b6   :  { %v10378_v4 = vcombine.low %v10369_v23, %v10374_v36  ;;  %v5263_v60 = vsel %vm8453_vm2, %v5258_v16, %v5262_v39  ;;  %v5320_v27 = vrot.slane %v5318_v45, 5  ;;  %v5352_v10 = vrot.slane %v5350_v14, 5 }
 0x1b7   :  { %v5273_v41 = vsel %vm8453_vm2, %v5268_v44, %v5272_v48  ;;  %v5305_v63 = vor.u32 %v5304_v40, %v5301_v18  ;;  %v5315_v11 = vor.u32 %v5314_v35, %v5310_v49  ;;  %v10398_v48 = vld [vmem:[%s12851_s0 + $0x184] sm:$0xf]  ;;  %v5349_v18 = vrot.slane %v5347_v56, 4  ;;  %v10407_v40 = vld [vmem:[%s12851_s0 + $0x188] sm:$0x1]  ;;  %v10414_v56 = vpop.permute.xlu1 %6091 }
 0x1b8   :  { %13102 = vst [vmem:[#allocation70_spill] sm:$0xff] %v10378_v4  ;;  %v10391_v28 = vcombine.low %v5263_v60, %v5273_v41  ;;  %6289 = vrot.lane.b32.xlu1 %v10378_v4, %s8367_s11  ;;  %v5356_v39 = vshll.u32 %v10398_v48, 16  ;;  %v5360_v44 = vshrl.u32 %v10398_v48, 16  ;;  %v5366_v35 = vshll.u32 %v10407_v40, 16  ;;  %13105 = vst [vmem:[#allocation73_spill] sm:$0xff] %v10414_v56 }
 0x1b9   :  { %v5306_v16 = vrot.slane %v5305_v63, 4  ;;  %v5316_v60 = vrot.slane %v5315_v11, 4  ;;  %v10412_v41 = vcombine.low %v9912_v53, %v9919_v20  ;;  %v5353_v63 = vor.u32 %v5352_v10, %v5349_v18  ;;  %v10431_v56 = vld [vmem:[%s12851_s0 + $0x4] sm:$0xf] }
 0x1ba   :  { %13103 = vst [vmem:[#allocation71_spill] sm:$0xff] %v10391_v28  ;;  %6097 = vrot.lane.b32.xlu0 %v10391_v28, %s8363_s15  ;;  %v5358_v45 = vrot.slane %v5356_v39, 5  ;;  %v5362_v4 = vrot.slane %v5360_v44, 4  ;;  %v10425_v39 = vld [vmem:[%s12851_s0] sm:$0xf]  ;;  %13107 = vst [vmem:[#allocation75_spill] sm:$0xff] %v10431_v56 }
 0x1bb   :  { %13104 = vst [vmem:[#allocation72_spill] sm:$0xff] %v10412_v41  ;;  %v5311_v14 = vsel %vm8453_vm2, %v5306_v16, %v5310_v49  ;;  %v5321_v11 = vsel %vm8453_vm2, %v5316_v60, %v5320_v27  ;;  %13106 = vst [vmem:[#allocation74_spill] sm:$0xff] %v10425_v39  ;;  %v7805_v28 = vrot.slane %v10425_v39, 9  ;;  %v5495_v49 = vrot.slane %v10431_v56, 5  ;;  %v8288_v60 = vld [vmem:[%s12851_s0 + $0x8] sm:$0x1] }
 0x1bc   :  { %6293 = vrot.lane.b32.xlu1 %v10412_v41, %s8367_s11  ;;  %v10434_v16 = vcombine.low %v5311_v14, %v5321_v11  ;;  %v5354_v27 = vrot.slane %v5353_v63, 4  ;;  %v5363_v18 = vor.u32 %v5362_v4, %v5358_v45  ;;  %v5368_v10 = vrot.slane %v5366_v35, 5  ;;  %v10442_v39 = vld [vmem:[%s12851_s0 + $0x90] sm:$0xf] }
 0x1bd   :  { %v5497_v44 = vrot.slane %v5495_v49, 4  ;;  %v5498_v41 = vrot.slane %v8288_v60, 5  ;;  %v10446_v0 = vcombine.low %v10442_v39, %v13068_v21  ;;  %v5496_v14 = vsel %vm9243_vm6, %v7805_v28, %v5495_v49  ;;  %v8290_v60 = vld [vmem:[%s12851_s0 + $0x20] sm:$0x1] }
 0x1be   :  { %6101 = vrot.lane.b32.xlu0 %v10434_v16, %s8363_s15  ;;  %v5359_v4 = vsel %vm8453_vm2, %v5354_v27, %v5358_v45  ;;  %v5364_v35 = vrot.slane %v5363_v18, 4  ;;  %v7807_v63 = vrot.slane %v10237_v6, 9  ;;  %v5509_v21 = vrot.slane %v10242_v55, 5  ;;  %v10466_v45 = vld [vmem:[%s12851_s0 + $0xac] sm:$0xf]  ;;  %v10472_v6 = vpop.permute.xlu1 %6095 }
 0x1bf   :  { %13108 = vst [vmem:[#allocation76_spill] sm:$0xff] %v10446_v0  ;;  %v5499_v11 = vsel %vm9243_vm6, %v5497_v44, %v5498_v41  ;;  %v5512_v56 = vrot.slane %v8290_v60, 5  ;;  %v10470_v28 = vcombine.low %v9989_v33, %v10466_v45  ;;  %13110 = vst [vmem:[#allocation78_spill] sm:$0xff] %v10472_v6  ;;  %v7809_v44 = vrot.slane %v10279_v24, 9  ;;  %v10494_v24 = vld [vmem:[%s12851_s0 + $0xc0] sm:$0xf] }
 0x1c0   :  { %6297 = vrot.lane.b32.xlu1 %v10446_v0, %s8367_s11  ;;  %v5369_v41 = vsel %vm8453_vm2, %v5364_v35, %v5368_v10  ;;  %v5511_v49 = vrot.slane %v5509_v21, 4  ;;  %v7905_v27 = vcombine.low %v5496_v14, %v5499_v11  ;;  %v5510_v18 = vsel %vm9243_vm6, %v7807_v63, %v5509_v21  ;;  %v8292_v10 = vld [vmem:[%s12851_s0 + $0x38] sm:$0x1] }
 0x1c1   :  { %13109 = vst [vmem:[#allocation77_spill] sm:$0xff] %v10470_v28  ;;  %v10476_v55 = vcombine.low %v5359_v4, %v5369_v41  ;;  %v5523_v60 = vrot.slane %v10284_v47, 5  ;;  %v5526_v4 = vrot.slane %v8292_v10, 5  ;;  %v10499_v47 = vld [vmem:[%s12851_s0 + $0xc4] sm:$0xf]  ;;  %v5537_v35 = vrot.slane %v10330_v25, 5 }
 0x1c2   :  { %v5513_v6 = vsel %vm9243_vm6, %v5511_v49, %v5512_v56  ;;  %v10503_v56 = vcombine.low %v10494_v24, %v10499_v47  ;;  %v10506_v63 = vpop.permute.xlu1 %6099  ;;  %v7811_v21 = vrot.slane %v10325_v58, 9  ;;  %v8295_v49 = vld [vmem:[%s12851_s0 + $0x50] sm:$0x1]  ;;  %v10523_v58 = vcombine.low %v10097_v2, %v10108_v7 }
 0x1c3   :  { %13111 = vst [vmem:[#allocation79_spill] sm:$0xff] %v10476_v55  ;;  %6105 = vrot.lane.b32.xlu0 %v10476_v55, %s8363_s15  ;;  %v5525_v14 = vrot.slane %v5523_v60, 4  ;;  %13113 = vst [vmem:[#allocation81_spill] sm:$0xff] %v10506_v63  ;;  %v10508_v11 = vcombine.low %v5510_v18, %v5513_v6  ;;  %v5539_v41 = vrot.slane %v5537_v35, 4  ;;  %v5540_v10 = vrot.slane %v8295_v49, 5  ;;  %v13146_v63 = vld [vmem:[#allocation68_spill] sm:$0xff] }
 0x1c4   :  { %6301 = vrot.lane.b32.xlu1 %v10470_v28, %s8367_s11  ;;  %13112 = vst [vmem:[#allocation80_spill] sm:$0xff] %v10503_v56  ;;  %v5524_v28 = vsel %vm9243_vm6, %v7809_v44, %v5523_v60  ;;  %v5551_v6 = vrot.slane %v10374_v36, 5  ;;  %v7813_v60 = vrot.slane %v10369_v23, 9  ;;  %v8296_v36 = vld [vmem:[%s12851_s0 + $0x68] sm:$0x1]  ;;  %v7815_v49 = vrot.slane %v9912_v53, 9 }
 0x1c5   :  { %v5527_v25 = vsel %vm9243_vm6, %v5525_v14, %v5526_v4  ;;  %v5541_v44 = vsel %vm9243_vm6, %v5539_v41, %v5540_v10  ;;  %v5565_v14 = vrot.slane %v9919_v20, 5  ;;  %v5568_v10 = vrot.slane %v9929_v9, 5  ;;  %v8297_v53 = vld [vmem:[%s12851_s0 + $0x94] sm:$0xf] }
 0x1c6   :  { %v10526_v18 = vcombine.low %v5524_v28, %v5527_v25  ;;  %v5553_v4 = vrot.slane %v5551_v6, 4  ;;  %v5554_v28 = vrot.slane %v8296_v36, 5  ;;  %v5552_v41 = vsel %vm9243_vm6, %v7813_v60, %v5551_v6 }
 0x1c7   :  { %6205 = vrot.lane.b32.xlu0 %v7905_v27, %s8364_s18  ;;  %v5538_v27 = vsel %vm9243_vm6, %v7811_v21, %v5537_v35  ;;  %v10542_v35 = vcombine.low %v10152_v32, %v10159_v29  ;;  %v10545_v21 = vpop.permute.xlu1 %6103  ;;  %v5567_v20 = vrot.slane %v5565_v14, 4  ;;  %v5579_v6 = vrot.slane %v8297_v53, 5 }
 0x1c8   :  { %6305 = vrot.lane.b32.xlu1 %v10503_v56, %s8367_s11  ;;  %13114 = vst [vmem:[#allocation82_spill] sm:$0xff] %v10545_v21  ;;  %v10547_v23 = vcombine.low %v5538_v27, %v5541_v44  ;;  %v5555_v25 = vsel %vm9243_vm6, %v5553_v4, %v5554_v28  ;;  %v10561_v27 = vcombine.low %v10203_v15, %v10212_v52  ;;  %v7817_v4 = vrot.slane %v10442_v39, 9 }
 0x1c9   :  { %v10568_v44 = vcombine.low %v5552_v41, %v5555_v25  ;;  %v5566_v60 = vsel %vm9243_vm6, %v7815_v49, %v5565_v14  ;;  %v5593_v36 = vrot.slane %v10466_v45, 5  ;;  %v5569_v28 = vsel %vm9243_vm6, %v5567_v20, %v5568_v10 }
 0x1ca   :  { %13115 = vst [vmem:[#allocation83_spill] sm:$0xff] %v10561_v27  ;;  %v5581_v53 = vrot.slane %v5579_v6, 4  ;;  %v5582_v41 = vrot.slane %v9965_v30, 5  ;;  %v10583_v25 = vcombine.low %v10251_v51, %v10262_v37  ;;  %v10585_v14 = vcombine.low %v5566_v60, %v5569_v28 }
 0x1cb   :  { %6209 = vrot.lane.b32.xlu0 %v10508_v11, %s8364_s18  ;;  %v10566_v9 = vpop.permute.xlu1 %6107  ;;  %v7819_v39 = vrot.slane %v9989_v33, 9  ;;  %v5595_v45 = vrot.slane %v5593_v36, 4  ;;  %v5596_v49 = vrot.slane %v10011_v3, 5  ;;  %v5580_v10 = vsel %vm9243_vm6, %v7817_v4, %v5579_v6 }
 0x1cc   :  { %6309 = vrot.lane.b32.xlu1 %v10523_v58, %s8367_s11  ;;  %13116 = vst [vmem:[#allocation84_spill] sm:$0xff] %v10566_v9  ;;  %13117 = vst [vmem:[#allocation85_spill] sm:$0xff] %v10583_v25  ;;  %v5583_v30 = vsel %vm9243_vm6, %v5581_v53, %v5582_v41  ;;  %v10599_v20 = vcombine.low %v10295_v43, %v10306_v19  ;;  %v5607_v3 = vrot.slane %v10057_v57, 5  ;;  %v7821_v4 = vrot.slane %v10042_v22, 9 }
 0x1cd   :  { %v10604_v60 = vcombine.low %v5580_v10, %v5583_v30  ;;  %v5594_v28 = vsel %vm9243_vm6, %v7819_v39, %v5593_v36  ;;  %v5597_v6 = vsel %vm9243_vm6, %v5595_v45, %v5596_v49  ;;  %v5610_v41 = vrot.slane %v10070_v34, 5 }
 0x1ce   :  { %13118 = vst [vmem:[#allocation86_spill] sm:$0xff] %v10599_v20  ;;  %v5609_v53 = vrot.slane %v5607_v3, 4  ;;  %v10618_v57 = vcombine.low %v10343_v12, %v10350_v50  ;;  %v5621_v36 = vrot.slane %v10108_v7, 5  ;;  %v10623_v45 = vcombine.low %v5594_v28, %v5597_v6 }
 0x1cf   :  { %6213 = vrot.lane.b32.xlu0 %v10526_v18, %s8364_s18  ;;  %v10601_v33 = vpop.permute.xlu1 %6207  ;;  %v5608_v22 = vsel %vm9243_vm6, %v7821_v4, %v5607_v3  ;;  %v7823_v49 = vrot.slane %v10097_v2, 9  ;;  %v5624_v10 = vrot.slane %v10120_v62, 5  ;;  %v10637_v30 = vcombine.low %v10387_v13, %v10398_v48 }
 0x1d0   :  { %6313 = vrot.lane.b32.xlu1 %v10542_v35, %s8367_s11  ;;  %13119 = vst [vmem:[#allocation87_spill] sm:$0xff] %v10601_v33  ;;  %13120 = vst [vmem:[#allocation88_spill] sm:$0xff] %v10618_v57  ;;  %v5611_v34 = vsel %vm9243_vm6, %v5609_v53, %v5610_v41  ;;  %v5623_v7 = vrot.slane %v5621_v36, 4  ;;  %v5635_v3 = vrot.slane %v10159_v29, 5  ;;  %v7825_v62 = vrot.slane %v10152_v32, 9 }
 0x1d1   :  { %13122 = vst [vmem:[#allocation90_spill] sm:$0xff] %v10637_v30  ;;  %v7921_v28 = vcombine.low %v5608_v22, %v5611_v34  ;;  %v5622_v2 = vsel %vm9243_vm6, %v7823_v49, %v5621_v36  ;;  %v5638_v6 = vrot.slane %v10172_v17, 5  ;;  %v10655_v41 = vld [vmem:[%s12851_s0 + $0x198] sm:$0xf]  ;;  %v10660_v32 = vld [vmem:[%s12851_s0 + $0x19c] sm:$0xf] }
 0x1d2   :  { %v5625_v4 = vsel %vm9243_vm6, %v5623_v7, %v5624_v10  ;;  %v5637_v29 = vrot.slane %v5635_v3, 4  ;;  %v10664_v17 = vcombine.low %v10655_v41, %v10660_v32  ;;  %v5649_v36 = vrot.slane %v10212_v52, 5 }
 0x1d3   :  { %6217 = vrot.lane.b32.xlu0 %v10547_v23, %s8364_s18  ;;  %v10621_v39 = vpop.permute.xlu1 %6211  ;;  %v10667_v22 = vcombine.low %v5622_v2, %v5625_v4  ;;  %v5636_v49 = vsel %vm9243_vm6, %v7825_v62, %v5635_v3  ;;  %v7827_v10 = vrot.slane %v10203_v15, 9  ;;  %v5652_v9 = vrot.slane %v10229_v31, 5  ;;  %v13126_v31 = vld [vmem:[#allocation36_spill] sm:$0xff] }
 0x1d4   :  { %6317 = vrot.lane.b32.xlu1 %v10561_v27, %s8367_s11  ;;  %13121 = vst [vmem:[#allocation89_spill] sm:$0xff] %v10621_v39  ;;  %13124 = vst [vmem:[#allocation92_spill] sm:$0xff] %v10664_v17  ;;  %v5639_v34 = vsel %vm9243_vm6, %v5637_v29, %v5638_v6  ;;  %v5651_v7 = vrot.slane %v5649_v36, 4  ;;  %v5663_v52 = vrot.slane %v10262_v37, 5  ;;  %v7829_v3 = vrot.slane %v10251_v51, 9 }
 0x1d5   :  { %v10681_v4 = vcombine.low %v5636_v49, %v5639_v34  ;;  %v5650_v15 = vsel %vm9243_vm6, %v7827_v10, %v5649_v36  ;;  %v5666_v62 = vrot.slane %v10269_v1, 5  ;;  %v5677_v6 = vrot.slane %v10306_v19, 5  ;;  %v13128_v1 = vld [vmem:[#allocation38_spill] sm:$0xff] }
 0x1d6   :  { %v5665_v37 = vrot.slane %v5663_v52, 4  ;;  %v5664_v51 = vsel %vm9243_vm6, %v7829_v3, %v5663_v52  ;;  %v7831_v36 = vrot.slane %v10295_v43, 9  ;;  %v5680_v49 = vrot.slane %v10319_v8, 5  ;;  %v3549_v43 = vld [vmem:[%s12854_s3] sm:$0x3] }
 0x1d7   :  { %6221 = vrot.lane.b32.xlu0 %v10568_v44, %s8364_s18  ;;  %v10650_v53 = vpop.permute.xlu1 %6215  ;;  %v5679_v19 = vrot.slane %v5677_v6, 4  ;;  %v5691_v34 = vrot.slane %v10350_v50, 5  ;;  %v5718_v8 = vshrl.u32 %v10494_v24, 16  ;;  %v5727_v52 = vshll.u32 %v10499_v47, 16  ;;  %8037 = vmatpush3.msk.msra.mxu1 %vm3561_vm10, %v3549_v43 }
 0x1d8   :  { %6321 = vrot.lane.b32.xlu1 %v10583_v25, %s8367_s11  ;;  %13123 = vst [vmem:[#allocation91_spill] sm:$0xff] %v10650_v53  ;;  %v5667_v10 = vsel %vm9243_vm6, %v5665_v37, %v5666_v62  ;;  %v7833_v50 = vrot.slane %v10343_v12, 9  ;;  %v7835_v12 = vrot.slane %v10387_v13, 9  ;;  %v8300_v13 = vld [vmem:[%s12851_s0 + $0xc8] sm:$0x1]  ;;  %v13206_v56 = vmov 0.0  }
 0x1d9   :  { %v10716_v3 = vcombine.low %v5664_v51, %v5667_v10  ;;  %v5681_v37 = vsel %vm9243_vm6, %v5679_v19, %v5680_v49  ;;  %v5693_v62 = vrot.slane %v5691_v34, 4  ;;  %v5705_v51 = vrot.slane %v10398_v48, 5  ;;  %v13131_v48 = vld [vmem:[#allocation47_spill] sm:$0xff] }
 0x1da   :  { %v5720_v10 = vrot.slane %v5718_v8, 4  ;;  %v5729_v21 = vrot.slane %v5727_v52, 5  ;;  %v5692_v19 = vsel %vm9243_vm6, %v7833_v50, %v5691_v34  ;;  %v5708_v8 = vrot.slane %v10407_v40, 5 }
 0x1db   :  { %6225 = vrot.lane.b32.xlu0 %v10585_v14, %s8364_s18  ;;  %v10679_v2 = vpop.permute.xlu1 %6219  ;;  %vm3636_vm12 = vcmask 25600   ;;  %vm3660_vm13 = vcmask 1043456   ;;  %vm6785_vm14 = vcmask 130048   ;;  %vm6850_vm15 = vcmask 195584  }
 0x1dc   :  { %6325 = vrot.lane.b32.xlu1 %v10599_v20, %s8367_s11  ;;  %13125 = vst [vmem:[#allocation93_spill] sm:$0xff] %v10679_v2  ;;  %vm6915_vm0 = vcmask 261120   ;;  %vm6980_vm1 = vcmask 326656   ;;  %vm7045_vm4 = vcmask 392192   ;;  %vm3656_vm5 = vcmask 31744  }
 0x1dd   :  { %vm7110_vm8 = vcmask 457728   ;;  %vm7175_vm9 = vcmask 523264   ;;  %vm7244_vm10 = vcmask 588800  }
 0x1df   :  { %6229 = vrot.lane.b32.xlu0 %v10604_v60, %s8364_s18 }
 0x1e0   :  { %6329 = vrot.lane.b32.xlu1 %v10618_v57, %s8367_s11 }
 0x1e3   :  { %6233 = vrot.lane.b32.xlu0 %v10623_v45, %s8364_s18 }
 0x1e4   :  { %6333 = vrot.lane.b32.xlu1 %v10637_v30, %s8367_s11 }
 0x1e7   :  { %6237 = vrot.lane.b32.xlu0 %v7921_v28, %s8364_s18  ;;  %v5653_v28 = vsel %vm9243_vm6, %v5651_v7, %v5652_v9  ;;  %v10702_v9 = vpop.permute.xlu1 %6223  ;;  %v5721_v7 = vshll.u32 %v10494_v24, 16  ;;  %v13129_v24 = vld [vmem:[#allocation41_spill] sm:$0xff] }
 0x1e8   :  { %6337 = vrot.lane.b32.xlu1 %v10664_v17, %s8367_s11  ;;  %v10694_v29 = vcombine.low %v5650_v15, %v5653_v28  ;;  %13127 = vst [vmem:[#allocation36_spill] sm:$0xff] %v10702_v9  ;;  %v5731_v15 = vshrl.u32 %v10499_v47, 16  ;;  %v5678_v28 = vsel %vm9243_vm6, %v7831_v36, %v5677_v6  ;;  %v5694_v47 = vrot.slane %v10361_v26, 5 }
 0x1e9   :  { %v5723_v43 = vrot.slane %v5721_v7, 5  ;;  %v10734_v49 = vcombine.low %v5678_v28, %v5681_v37  ;;  %v5707_v7 = vrot.slane %v5705_v51, 4  ;;  %v5737_v28 = vshll.u32 %v8300_v13, 16 }
 0x1ea   :  { %v5733_v6 = vrot.slane %v5731_v15, 4  ;;  %v5695_v26 = vsel %vm9243_vm6, %v5693_v62, %v5694_v47  ;;  %v5706_v37 = vsel %vm9243_vm6, %v7835_v12, %v5705_v51 }
 0x1eb   :  { %6241 = vrot.lane.b32.xlu0 %v10667_v22, %s8364_s18  ;;  %v10729_v36 = vpop.permute.xlu1 %6227  ;;  %v5724_v52 = vor.u32 %v5723_v43, %v5720_v10  ;;  %v10750_v50 = vcombine.low %v5692_v19, %v5695_v26  ;;  %v5709_v40 = vsel %vm9243_vm6, %v5707_v7, %v5708_v8  ;;  %v5739_v10 = vrot.slane %v5737_v28, 5  ;;  %v8301_v19 = vld [vmem:[%s12851_s0 + $0xc] sm:$0xf]  ;;  %v8302_v26 = vld [vmem:[%s12851_s0 + $0x10] sm:$0xf] }
 0x1ec   :  { %6347 = vrot.lane.b32.xlu1 %v13126_v31, %s8368_s30  ;;  %13130 = vst [vmem:[#allocation38_spill] sm:$0xff] %v10729_v36  ;;  %v5734_v15 = vor.u32 %v5733_v6, %v5729_v21  ;;  %v10760_v43 = vcombine.low %v5706_v37, %v5709_v40  ;;  %v10776_v8 = vcombine.low %v8301_v19, %v8302_v26  ;;  %v8303_v7 = vld [vmem:[%s12851_s0 + $0x28] sm:$0xf]  ;;  %v8305_v28 = vld [vmem:[%s12851_s0 + $0x3c] sm:$0xf]  ;;  %v5745_v19 = vshll.u32 %v10655_v41, 16 }
 0x1ed   :  { %v5725_v62 = vrot.slane %v5724_v52, 4  ;;  %v8304_v52 = vld [vmem:[%s12851_s0 + $0x24] sm:$0xf]  ;;  %v8306_v37 = vld [vmem:[%s12851_s0 + $0x40] sm:$0xf]  ;;  %v5751_v26 = vshll.u32 %v10660_v32, 16 }
 0x1ee   :  { %v5735_v47 = vrot.slane %v5734_v15, 4  ;;  %13133 = vst [vmem:[#allocation47_spill] sm:$0xff] %v10760_v43  ;;  %13135 = vst [vmem:[#allocation95_spill] sm:$0xff] %v10776_v8  ;;  %v10790_v15 = vcombine.low %v8304_v52, %v8303_v7  ;;  %v10804_v40 = vcombine.low %v8305_v28, %v8306_v37  ;;  %v5755_v7 = vshrl.u32 %v10660_v32, 16  ;;  %v8309_v52 = vld [vmem:[%s12851_s0 + $0x6c] sm:$0xf] }
 0x1ef   :  { %6245 = vrot.lane.b32.xlu0 %v10681_v4, %s8364_s18  ;;  %v10748_v34 = vpop.permute.xlu1 %6231  ;;  %v5730_v51 = vsel %vm8453_vm2, %v5725_v62, %v5729_v21  ;;  %v8310_v28 = vld [vmem:[%s12851_s0 + $0x70] sm:$0xf]  ;;  %v5747_v32 = vrot.slane %v5745_v19, 5  ;;  %v8311_v36 = vld [vmem:[%s12851_s0 + $0x84] sm:$0xf] }
 0x1f0   :  { %6351 = vrot.lane.b32.xlu1 %v13128_v1, %s8368_s30  ;;  %13132 = vst [vmem:[#allocation41_spill] sm:$0xff] %v10748_v34  ;;  %v5740_v6 = vsel %vm8453_vm2, %v5735_v47, %v5739_v10  ;;  %13137 = vst [vmem:[#allocation97_spill] sm:$0xff] %v10790_v15  ;;  %v8307_v47 = vld [vmem:[%s12851_s0 + $0x58] sm:$0xf]  ;;  %v8308_v10 = vld [vmem:[%s12851_s0 + $0x54] sm:$0xf]  ;;  %v10834_v37 = vcombine.low %v8309_v52, %v8310_v28 }
 0x1f1   :  { %v10782_v21 = vcombine.low %v5730_v51, %v5740_v6  ;;  %13139 = vst [vmem:[#allocation99_spill] sm:$0xff] %v10804_v40  ;;  %v10818_v51 = vcombine.low %v8308_v10, %v8307_v47  ;;  %v5742_v6 = vshrl.u32 %v10655_v41, 16  ;;  %v13144_v41 = vld [vmem:[#allocation65_spill] sm:$0xff]  ;;  %v5757_v34 = vrot.slane %v5755_v7, 4  ;;  %v8312_v52 = vld [vmem:[%s12851_s0 + $0x88] sm:$0xf] }
 0x1f2   :  { %13142 = vst [vmem:[#allocation102_spill] sm:$0xff] %v10834_v37  ;;  %v10848_v28 = vcombine.low %v8311_v36, %v8312_v52  ;;  %v8314_v36 = vld [vmem:[%s12851_s0 + $0x9c] sm:$0xf]  ;;  %v8315_v52 = vld [vmem:[%s12851_s0 + $0xa0] sm:$0xf] }
 0x1f3   :  { %6249 = vrot.lane.b32.xlu0 %v10694_v29, %s8364_s18  ;;  %v10768_v12 = vpop.permute.xlu1 %6235  ;;  %13136 = vst [vmem:[#allocation96_spill] sm:$0xff] %v10782_v21  ;;  %13141 = vst [vmem:[#allocation101_spill] sm:$0xff] %v10818_v51  ;;  %v5744_v10 = vrot.slane %v5742_v6, 4 }
 0x1f4   :  { %6355 = vrot.lane.b32.xlu1 %v13129_v24, %s8368_s30  ;;  %13134 = vst [vmem:[#allocation94_spill] sm:$0xff] %v10768_v12  ;;  %v5753_v12 = vrot.slane %v5751_v26, 5  ;;  %13145 = vst [vmem:[#allocation65_spill] sm:$0xff] %v10848_v28  ;;  %v8313_v26 = vld [vmem:[%s12851_s0 + $0x1a0] sm:$0x1] }
 0x1f5   :  { %v5748_v6 = vor.u32 %v5747_v32, %v5744_v10  ;;  %v5761_v7 = vshll.u32 %v8313_v26, 16 }
 0x1f6   :  { %v5758_v19 = vor.u32 %v5757_v34, %v5753_v12  ;;  %v13149_v34 = vld [vmem:[#allocation71_spill] sm:$0xff] }
 0x1f7   :  { %6253 = vrot.lane.b32.xlu0 %v10716_v3, %s8364_s18  ;;  %v10792_v13 = vpop.permute.xlu1 %6239  ;;  %v5749_v10 = vrot.slane %v5748_v6, 4  ;;  %v5763_v26 = vrot.slane %v5761_v7, 5  ;;  %v8318_v7 = vld [vmem:[%s12851_s0 + $0xe4] sm:$0xf] }
 0x1f8   :  { %6359 = vrot.lane.b32.xlu1 %v13131_v48, %s8368_s30  ;;  %13138 = vst [vmem:[#allocation98_spill] sm:$0xff] %v10792_v13  ;;  %v5759_v32 = vrot.slane %v5758_v19, 4 }
 0x1f9   :  { %v5754_v6 = vsel %vm8453_vm2, %v5749_v10, %v5753_v12  ;;  %v8320_v10 = vld [vmem:[%s12851_s0 + $0xfc] sm:$0xf] }
 0x1fa   :  { %v5764_v19 = vsel %vm8453_vm2, %v5759_v32, %v5763_v26  ;;  %v8321_v32 = vld [vmem:[%s12851_s0 + $0x100] sm:$0xf] }
 0x1fb   :  { %6257 = vrot.lane.b32.xlu0 %v10734_v49, %s8364_s18  ;;  %v10810_v62 = vpop.permute.xlu1 %6243  ;;  %v10901_v12 = vcombine.low %v5754_v6, %v5764_v19  ;;  %v10911_v26 = vcombine.low %v8320_v10, %v8321_v32  ;;  %v8322_v6 = vld [vmem:[%s12851_s0 + $0x114] sm:$0xf]  ;;  %v8323_v19 = vld [vmem:[%s12851_s0 + $0x118] sm:$0xf] }
 0x1fc   :  { %6363 = vrot.lane.b32.xlu1 %v9957_v5, %s8368_s30  ;;  %13140 = vst [vmem:[#allocation100_spill] sm:$0xff] %v10810_v62  ;;  %v8317_v62 = vld [vmem:[%s12851_s0 + $0xb8] sm:$0xf]  ;;  %v13156_v10 = vld [vmem:[#allocation43_spill] sm:$0xff] }
 0x1fd   :  { %13153 = vst [vmem:[#allocation107_spill] sm:$0xff] %v10901_v12  ;;  %v13157_v32 = vld [vmem:[#allocation16_spill] sm:$0xff] }
 0x1ff   :  { %6261 = vrot.lane.b32.xlu0 %v10750_v50, %s8364_s18  ;;  %v10836_v47 = vpop.permute.xlu1 %6247 }
 0x200   :  { %6367 = vrot.lane.b32.xlu1 %v10026_v59, %s8368_s30  ;;  %13143 = vst [vmem:[#allocation103_spill] sm:$0xff] %v10836_v47  ;;  %v10865_v47 = vcombine.low %v8314_v36, %v8315_v52 }
 0x202   :  { %13148 = vst [vmem:[#allocation104_spill] sm:$0xff] %v10865_v47 }
 0x203   :  { %6265 = vrot.lane.b32.xlu0 %v10760_v43, %s8364_s18  ;;  %v10857_v9 = vpop.permute.xlu1 %6251 }
 0x204   :  { %6371 = vrot.lane.b32.xlu1 %v10062_v54, %s8368_s30  ;;  %13147 = vst [vmem:[#allocation68_spill] sm:$0xff] %v10857_v9  ;;  %v8316_v9 = vld [vmem:[%s12851_s0 + $0xb4] sm:$0xf] }
 0x205   :  { %v10877_v13 = vcombine.low %v8316_v9, %v8317_v62  ;;  %v8319_v9 = vld [vmem:[%s12851_s0 + $0xe8] sm:$0xf] }
 0x206   :  { %v10895_v62 = vcombine.low %v8318_v7, %v8319_v9  ;;  %v10923_v7 = vcombine.low %v8322_v6, %v8323_v19  ;;  %v13160_v19 = vld [vmem:[#allocation45_spill] sm:$0xff] }
 0x207   :  { %6275 = vrot.lane.b32.xlu0 %v10776_v8, %s8367_s11  ;;  %13150 = vst [vmem:[#allocation71_spill] sm:$0xff] %v10877_v13  ;;  %v10879_v36 = vpop.permute.xlu1 %6255 }
 0x208   :  { %6375 = vrot.lane.b32.xlu1 %v10782_v21, %s8368_s30  ;;  %13151 = vst [vmem:[#allocation105_spill] sm:$0xff] %v10879_v36  ;;  %13152 = vst [vmem:[#allocation106_spill] sm:$0xff] %v10895_v62 }
 0x20b   :  { %6279 = vrot.lane.b32.xlu0 %v10790_v15, %s8367_s11 }
 0x20c   :  { %6379 = vrot.lane.b32.xlu1 %v10194_v38, %s8368_s30 }
 0x20d   :  { %v10903_v52 = vpop.permute.xlu1 %6259 }
 0x20e   :  { %13154 = vst [vmem:[#allocation108_spill] sm:$0xff] %v10903_v52  ;;  %v10933_v52 = vcombine.low %v13157_v32, %v13156_v10  ;;  %v13163_v10 = vld [vmem:[#allocation51_spill] sm:$0xff]  ;;  %v13164_v32 = vld [vmem:[#allocation50_spill] sm:$0xff] }
 0x20f   :  { %6283 = vrot.lane.b32.xlu0 %v10804_v40, %s8367_s11  ;;  %v10951_v2 = vcombine.low %v13164_v32, %v13163_v10  ;;  %v13171_v32 = vld [vmem:[#allocation59_spill] sm:$0xff] }
 0x210   :  { %6383 = vrot.lane.b32.xlu1 %v10224_v61, %s8368_s30  ;;  %13158 = vst [vmem:[#allocation43_spill] sm:$0xff] %v10933_v52 }
 0x213   :  { %6287 = vrot.lane.b32.xlu0 %v10818_v51, %s8367_s11 }
 0x214   :  { %6387 = vrot.lane.b32.xlu1 %v13144_v41, %s8368_s30  ;;  %v10925_v9 = vpop.permute.xlu1 %6263 }
 0x215   :  { %13155 = vst [vmem:[#allocation109_spill] sm:$0xff] %v10925_v9  ;;  %v13161_v9 = vld [vmem:[#allocation18_spill] sm:$0xff] }
 0x216   :  { %v10943_v36 = vcombine.low %v13161_v9, %v13160_v19  ;;  %13165 = vst [vmem:[#allocation18_spill] sm:$0xff] %v10951_v2  ;;  %v10959_v9 = vpop.permute.xlu0 %6045  ;;  %v13167_v19 = vld [vmem:[#allocation55_spill] sm:$0xff] }
 0x217   :  { %6291 = vrot.lane.b32.xlu0 %v10834_v37, %s8367_s11 }
 0x218   :  { %6391 = vrot.lane.b32.xlu1 %v13146_v63, %s8368_s30  ;;  %13162 = vst [vmem:[#allocation45_spill] sm:$0xff] %v10943_v36 }
 0x21a   :  { %v10939_v6 = vpop.permute.xlu1 %6267  ;;  %v10975_v33 = vpop.permute.xlu0 %6049 }
 0x21b   :  { %6295 = vrot.lane.b32.xlu0 %v10848_v28, %s8367_s11  ;;  %13159 = vst [vmem:[#allocation16_spill] sm:$0xff] %v10939_v6  ;;  %v13168_v6 = vld [vmem:[#allocation54_spill] sm:$0xff]  ;;  %13174 = vst [vmem:[#allocation59_spill] sm:$0xff] %v10975_v33 }
 0x21c   :  { %6395 = vrot.lane.b32.xlu1 %v13149_v34, %s8368_s30  ;;  %v10963_v39 = vcombine.low %v13168_v6, %v13167_v19  ;;  %v13175_v6 = vld [vmem:[#allocation42_spill] sm:$0xff] }
 0x21d   :  { %v13193_v33 = vld [vmem:[#allocation46_spill] sm:$0xff] }
 0x21e   :  { %v10953_v53 = vpop.permute.xlu1 %6277  ;;  %13169 = vst [vmem:[#allocation50_spill] sm:$0xff] %v10963_v39  ;;  %v10987_v8 = vpop.permute.xlu0 %6053 }
 0x21f   :  { %6299 = vrot.lane.b32.xlu0 %v10865_v47, %s8367_s11  ;;  %13166 = vst [vmem:[#allocation51_spill] sm:$0xff] %v10953_v53  ;;  %13178 = vst [vmem:[#allocation42_spill] sm:$0xff] %v10987_v8  ;;  %v13184_v8 = vld [vmem:[#allocation10_spill] sm:$0xff] }
 0x220   :  { %6399 = vrot.lane.b32.xlu1 %v10434_v16, %s8368_s30 }
 0x222   :  { %v10969_v10 = vpop.permute.xlu1 %6281 }
 0x223   :  { %6303 = vrot.lane.b32.xlu0 %v10877_v13, %s8367_s11  ;;  %13170 = vst [vmem:[#allocation55_spill] sm:$0xff] %v10969_v10  ;;  %v13177_v10 = vld [vmem:[#allocation62_spill] sm:$0xff] }
 0x224   :  { %6403 = vrot.lane.b32.xlu1 %v10476_v55, %s8368_s30 }
 0x226   :  { %v10981_v19 = vpop.permute.xlu1 %6285 }
 0x227   :  { %6307 = vrot.lane.b32.xlu0 %v10895_v62, %s8367_s11  ;;  %v13172_v62 = vld [vmem:[#allocation58_spill] sm:$0xff] }
 0x228   :  { %6407 = vrot.lane.b32.xlu1 %v10901_v12, %s8368_s30  ;;  %v10973_v53 = vcombine.low %v13172_v62, %v13171_v32  ;;  %13176 = vst [vmem:[#allocation58_spill] sm:$0xff] %v10981_v19  ;;  %v13179_v62 = vld [vmem:[#allocation8_spill] sm:$0xff]  ;;  %v13182_v19 = vld [vmem:[#allocation9_spill] sm:$0xff] }
 0x22a   :  { %13173 = vst [vmem:[#allocation54_spill] sm:$0xff] %v10973_v53  ;;  %v10993_v32 = vpop.permute.xlu1 %6289 }
 0x22b   :  { %6311 = vrot.lane.b32.xlu0 %v10911_v26, %s8367_s11  ;;  %13180 = vst [vmem:[#allocation8_spill] sm:$0xff] %v10993_v32  ;;  %v13186_v32 = vld [vmem:[#allocation11_spill] sm:$0xff] }
 0x22c   :  { %6417 = vrot.lane.b32.xlu1 %v10508_v11, %s8369_s16 }
 0x22f   :  { %6315 = vrot.lane.b32.xlu0 %v10923_v7, %s8367_s11 }
 0x230   :  { %6421 = vrot.lane.b32.xlu1 %v10526_v18, %s8369_s16 }
 0x233   :  { %6319 = vrot.lane.b32.xlu0 %v10933_v52, %s8367_s11 }
 0x234   :  { %6425 = vrot.lane.b32.xlu1 %v10547_v23, %s8369_s16 }
 0x237   :  { %6323 = vrot.lane.b32.xlu0 %v10943_v36, %s8367_s11 }
 0x238   :  { %6429 = vrot.lane.b32.xlu1 %v10568_v44, %s8369_s16 }
 0x23b   :  { %6327 = vrot.lane.b32.xlu0 %v10951_v2, %s8367_s11 }
 0x23c   :  { %6433 = vrot.lane.b32.xlu1 %v10585_v14, %s8369_s16 }
 0x23f   :  { %6331 = vrot.lane.b32.xlu0 %v10963_v39, %s8367_s11 }
 0x240   :  { %6447 = vrot.lane.b32.xlu1 %v13175_v6, %s8369_s16  ;;  %v10995_v6 = vpop.permute.xlu0 %6057 }
 0x241   :  { %13181 = vst [vmem:[#allocation110_spill] sm:$0xff] %v10995_v6 }
 0x243   :  { %6335 = vrot.lane.b32.xlu0 %v10973_v53, %s8367_s11  ;;  %v13205_v53 = vld [vmem:[#allocation22_spill] sm:$0xff] }
 0x244   :  { %6485 = vrot.lane.b32.xlu1 %v13177_v10, %s8370_s17  ;;  %v11001_v10 = vpop.permute.xlu1 %6293 }
 0x245   :  { %13183 = vst [vmem:[#allocation9_spill] sm:$0xff] %v11001_v10  ;;  %v13189_v10 = vld [vmem:[#allocation12_spill] sm:$0xff] }
 0x247   :  { %6345 = vrot.lane.b32.xlu0 %v13179_v62, %s8368_s30  ;;  %v11007_v62 = vpop.permute.xlu0 %6061 }
 0x248   :  { %6487 = vrot.lane.b32.xlu1 %v10790_v15, %s8370_s17  ;;  %13185 = vst [vmem:[#allocation10_spill] sm:$0xff] %v11007_v62  ;;  %v11013_v6 = vpop.permute.xlu1 %6297  ;;  %v13190_v15 = vld [vmem:[#allocation31_spill] sm:$0xff]  ;;  %v13192_v62 = vld [vmem:[#allocation13_spill] sm:$0xff] }
 0x249   :  { %13187 = vst [vmem:[#allocation11_spill] sm:$0xff] %v11013_v6  ;;  %v13196_v6 = vld [vmem:[#allocation64_spill] sm:$0xff] }
 0x24b   :  { %6349 = vrot.lane.b32.xlu0 %v13182_v19, %s8368_s30 }
 0x24c   :  { %6555 = vrot.lane.b32.xlu1 %v13126_v31, %s8371_s19  ;;  %v11015_v31 = vpop.permute.xlu0 %6065 }
 0x24d   :  { %13188 = vst [vmem:[#allocation111_spill] sm:$0xff] %v11015_v31 }
 0x24f   :  { %6353 = vrot.lane.b32.xlu0 %v13184_v8, %s8368_s30 }
 0x250   :  { %6557 = vrot.lane.b32.xlu1 %v13182_v19, %s8371_s19  ;;  %v11021_v19 = vpop.permute.xlu1 %6301  ;;  %v11027_v12 = vpop.permute.xlu0 %6069 }
 0x251   :  { %13191 = vst [vmem:[#allocation12_spill] sm:$0xff] %v11021_v19  ;;  %13194 = vst [vmem:[#allocation31_spill] sm:$0xff] %v11027_v12  ;;  %v13199_v19 = vld [vmem:[#allocation19_spill] sm:$0xff]  ;;  %v13201_v12 = vld [vmem:[#allocation20_spill] sm:$0xff] }
 0x253   :  { %6357 = vrot.lane.b32.xlu0 %v13186_v32, %s8368_s30 }
 0x254   :  { %6625 = vrot.lane.b32.xlu1 %v10508_v11, %s8372_s20  ;;  %v13195_v11 = vld [vmem:[#allocation17_spill] sm:$0xff]  ;;  %v11033_v31 = vpop.permute.xlu1 %6305  ;;  %v11035_v17 = vpop.permute.xlu0 %6073 }
 0x255   :  { %13197 = vst [vmem:[#allocation13_spill] sm:$0xff] %v11033_v31  ;;  %13198 = vst [vmem:[#allocation46_spill] sm:$0xff] %v11035_v17  ;;  %v7790_v31 = vld [vmem:[%s12853_s2] ss:$0 sm:$0xff] }
 0x256   :  { %v13202_v17 = vld [vmem:[#allocation21_spill] sm:$0xff] }
 0x257   :  { %6361 = vrot.lane.b32.xlu0 %v13189_v10, %s8368_s30 }
 0x258   :  { %6627 = vrot.lane.b32.xlu1 %v13190_v15, %s8372_s20  ;;  %v11041_v21 = vpop.permute.xlu1 %6309  ;;  %v11047_v42 = vpop.permute.xlu0 %6077 }
 0x259   :  { %13200 = vst [vmem:[#allocation17_spill] sm:$0xff] %v11041_v21 }
 0x25b   :  { %6365 = vrot.lane.b32.xlu0 %v13192_v62, %s8368_s30 }
 0x25c   :  { %6451 = vrot.lane.b32.xlu1 %v13193_v33, %s8369_s16  ;;  %v11056_v21 = vpop.permute.xlu1 %6313  ;;  %v11058_v55 = vpop.permute.xlu0 %6081 }
 0x25d   :  { %13203 = vst [vmem:[#allocation19_spill] sm:$0xff] %v11056_v21  ;;  %13204 = vst [vmem:[#allocation20_spill] sm:$0xff] %v11058_v55 }
 0x25f   :  { %6369 = vrot.lane.b32.xlu0 %v13195_v11, %s8368_s30 }
 0x260   :  { %6489 = vrot.lane.b32.xlu1 %v13196_v6, %s8370_s17  ;;  %v11065_v30 = vpop.permute.xlu1 %6317 }
 0x261   :  { %13207 = vst [vmem:[#allocation21_spill] sm:$0xff] %v11065_v30  ;;  %v13217_v30 = vld [vmem:[#allocation28_spill] sm:$0xff] }
 0x263   :  { %6373 = vrot.lane.b32.xlu0 %v13199_v19, %s8368_s30 }
 0x264   :  { %6491 = vrot.lane.b32.xlu1 %v10804_v40, %s8370_s17 }
 0x267   :  { %6377 = vrot.lane.b32.xlu0 %v13201_v12, %s8368_s30 }
 0x268   :  { %6559 = vrot.lane.b32.xlu1 %v13128_v1, %s8371_s19 }
 0x26b   :  { %6381 = vrot.lane.b32.xlu0 %v13202_v17, %s8368_s30 }
 0x26c   :  { %6561 = vrot.lane.b32.xlu1 %v13184_v8, %s8371_s19  ;;  %v13208_v8 = vld [vmem:[#allocation32_spill] sm:$0xff] }
 0x26f   :  { %v3544_v6 = vpop.f32.mrb[0].mxu0  ;;  %6385 = vrot.lane.b32.xlu0 %v13205_v53, %s8368_s30 }
 0x270   :  { %v3545_v40 = vadd.f32 %v7790_v31, %v3544_v6  ;;  %v8035_v12 = vpop.f32.mrb[1].mxu0  ;;  %6629 = vrot.lane.b32.xlu1 %v10526_v18, %s8372_s20  ;;  %v13209_v6 = vld [vmem:[#allocation26_spill] sm:$0xff]  ;;  %v11071_v31 = vpop.permute.xlu1 %6321 }
 0x271   :  { %13210 = vst [vmem:[#allocation22_spill] sm:$0xff] %v11071_v31  ;;  %v13215_v31 = vld [vmem:[#allocation33_spill] sm:$0xff] }
 0x272   :  { %v3548_v1 = vmax.f32 %v3545_v40, 0.0  ;;  %v13211_v40 = vld [vmem:[#allocation67_spill] sm:$0xff] }
 0x274   :  { %8039 = vmatmul.mubr.msk.f32.vlgmr.msra.gmra.mrb[0].mxu1 %vm3557_vm11, %v3548_v1  ;;  %6631 = vrot.lane.b32.xlu1 %v13208_v8, %s8372_s20  ;;  %v11075_v12 = vpop.permute.xlu1 %6325 }
 0x275   :  { %3806 = vmatprep.mubr.f32.mxu1 %v13206_v56  ;;  %13212 = vst [vmem:[#allocation32_spill] sm:$0xff] %v11075_v12 }
 0x278   :  { %6455 = vrot.lane.b32.xlu1 %v13209_v6, %s8369_s16  ;;  %v11081_v18 = vpop.permute.xlu1 %6329 }
 0x279   :  { %13213 = vst [vmem:[#allocation26_spill] sm:$0xff] %v11081_v18 }
 0x27c   :  { %6493 = vrot.lane.b32.xlu1 %v13211_v40, %s8370_s17  ;;  %v11085_v1 = vpop.permute.xlu1 %6333 }
 0x27d   :  { %13214 = vst [vmem:[#allocation112_spill] sm:$0xff] %v11085_v1  ;;  %v13223_v1 = vld [vmem:[#allocation34_spill] sm:$0xff] }
 0x280   :  { %6495 = vrot.lane.b32.xlu1 %v10818_v51, %s8370_s17  ;;  %v11091_v12 = vpop.permute.xlu1 %6337  ;;  %v13264_v51 = vld [vmem:[#allocation23_spill] sm:$0xff] }
 0x281   :  { %13216 = vst [vmem:[#allocation33_spill] sm:$0xff] %v11091_v12 }
 0x284   :  { %6563 = vrot.lane.b32.xlu1 %v13129_v24, %s8371_s19  ;;  %v11095_v21 = vpop.permute.xlu1 %6347  ;;  %v13219_v24 = vld [vmem:[#allocation70_spill] sm:$0xff] }
 0x285   :  { %13218 = vst [vmem:[#allocation28_spill] sm:$0xff] %v11095_v21 }
 0x288   :  { %6565 = vrot.lane.b32.xlu1 %v13186_v32, %s8371_s19  ;;  %v11101_v32 = vpop.permute.xlu1 %6351 }
 0x289   :  { %13220 = vst [vmem:[#allocation113_spill] sm:$0xff] %v11101_v32  ;;  %v11119_v32 = vpop.permute.xlu0 %6085 }
 0x28c   :  { %6633 = vrot.lane.b32.xlu1 %v10547_v23, %s8372_s20  ;;  %v11105_v23 = vpop.permute.xlu1 %6355 }
 0x28d   :  { %13221 = vst [vmem:[#allocation114_spill] sm:$0xff] %v11105_v23 }
 0x290   :  { %6635 = vrot.lane.b32.xlu1 %v13215_v31, %s8372_s20  ;;  %v11111_v12 = vpop.permute.xlu1 %6359 }
 0x291   :  { %13222 = vst [vmem:[#allocation115_spill] sm:$0xff] %v11111_v12 }
 0x294   :  { %6459 = vrot.lane.b32.xlu1 %v13217_v30, %s8369_s16  ;;  %v11115_v18 = vpop.permute.xlu1 %6363 }
 0x295   :  { %13224 = vst [vmem:[#allocation34_spill] sm:$0xff] %v11115_v18 }
 0x298   :  { %6497 = vrot.lane.b32.xlu1 %v13219_v24, %s8370_s17  ;;  %v13225_v24 = vld [vmem:[#allocation49_spill] sm:$0xff]  ;;  %v11123_v23 = vpop.permute.xlu1 %6367 }
 0x299   :  { %13226 = vst [vmem:[#allocation49_spill] sm:$0xff] %v11119_v32  ;;  %13228 = vst [vmem:[#allocation116_spill] sm:$0xff] %v11123_v23 }
 0x29c   :  { %6499 = vrot.lane.b32.xlu1 %v10834_v37, %s8370_s17 }
 0x2a0   :  { %6567 = vrot.lane.b32.xlu1 %v13131_v48, %s8371_s19  ;;  %v13227_v48 = vld [vmem:[#allocation72_spill] sm:$0xff] }
 0x2a4   :  { %6569 = vrot.lane.b32.xlu1 %v13189_v10, %s8371_s19  ;;  %v11129_v10 = vpop.permute.xlu1 %6371 }
 0x2a5   :  { %13230 = vst [vmem:[#allocation118_spill] sm:$0xff] %v11129_v10 }
 0x2a8   :  { %6637 = vrot.lane.b32.xlu1 %v10568_v44, %s8372_s20  ;;  %v11127_v44 = vpop.permute.xlu0 %6089  ;;  %v11137_v12 = vpop.permute.xlu1 %6375 }
 0x2a9   :  { %13229 = vst [vmem:[#allocation117_spill] sm:$0xff] %v11127_v44  ;;  %13232 = vst [vmem:[#allocation120_spill] sm:$0xff] %v11137_v12 }
 0x2ac   :  { %6639 = vrot.lane.b32.xlu1 %v13223_v1, %s8372_s20  ;;  %v11133_v18 = vpop.permute.xlu0 %6093 }
 0x2ad   :  { %13231 = vst [vmem:[#allocation119_spill] sm:$0xff] %v11133_v18 }
 0x2b0   :  { %6463 = vrot.lane.b32.xlu1 %v13225_v24, %s8369_s16  ;;  %v11141_v23 = vpop.permute.xlu0 %6097 }
 0x2b1   :  { %13233 = vst [vmem:[#allocation121_spill] sm:$0xff] %v11141_v23 }
 0x2b4   :  { %6501 = vrot.lane.b32.xlu1 %v13227_v48, %s8370_s17  ;;  %v13235_v48 = vld [vmem:[#allocation35_spill] sm:$0xff]  ;;  %v11147_v10 = vpop.permute.xlu0 %6101 }
 0x2b5   :  { %13236 = vst [vmem:[#allocation35_spill] sm:$0xff] %v11147_v10 }
 0x2b8   :  { %6503 = vrot.lane.b32.xlu1 %v10848_v28, %s8370_s17  ;;  %v11143_v28 = vpop.permute.xlu1 %6379 }
 0x2b9   :  { %13234 = vst [vmem:[#allocation122_spill] sm:$0xff] %v11143_v28 }
 0x2bc   :  { %6571 = vrot.lane.b32.xlu1 %v9957_v5, %s8371_s19  ;;  %v13237_v5 = vld [vmem:[#allocation53_spill] sm:$0xff]  ;;  %v11151_v18 = vpop.permute.xlu1 %6383 }
 0x2bd   :  { %13238 = vst [vmem:[#allocation53_spill] sm:$0xff] %v11151_v18 }
 0x2c0   :  { %6573 = vrot.lane.b32.xlu1 %v13192_v62, %s8371_s19  ;;  %v11155_v62 = vpop.permute.xlu0 %6105 }
 0x2c1   :  { %13239 = vst [vmem:[#allocation123_spill] sm:$0xff] %v11155_v62  ;;  %v13244_v62 = vld [vmem:[#allocation27_spill] sm:$0xff] }
 0x2c4   :  { %6641 = vrot.lane.b32.xlu1 %v10585_v14, %s8372_s20  ;;  %v11157_v14 = vpop.permute.xlu1 %6387  ;;  %v11161_v12 = vpop.permute.xlu0 %6205 }
 0x2c5   :  { %13240 = vst [vmem:[#allocation124_spill] sm:$0xff] %v11157_v14 }
 0x2c8   :  { %6643 = vrot.lane.b32.xlu1 %v13235_v48, %s8372_s20  ;;  %v11165_v10 = vpop.permute.xlu1 %6391  ;;  %v11169_v23 = vpop.permute.xlu0 %6209 }
 0x2c9   :  { %13241 = vst [vmem:[#allocation125_spill] sm:$0xff] %v11165_v10  ;;  %13242 = vst [vmem:[#allocation126_spill] sm:$0xff] %v11169_v23 }
 0x2cc   :  { %6467 = vrot.lane.b32.xlu1 %v13237_v5, %s8369_s16  ;;  %v11171_v18 = vpop.permute.xlu1 %6395  ;;  %v11175_v14 = vpop.permute.xlu0 %6213 }
 0x2cd   :  { %13243 = vst [vmem:[#allocation127_spill] sm:$0xff] %v11171_v18  ;;  %13245 = vst [vmem:[#allocation27_spill] sm:$0xff] %v11175_v14 }
 0x2d0   :  { %6469 = vrot.lane.b32.xlu1 %v10750_v50, %s8369_s16 }
 0x2d4   :  { %6537 = vrot.lane.b32.xlu1 %v10618_v57, %s8370_s17  ;;  %v11177_v57 = vpop.permute.xlu0 %6217 }
 0x2d5   :  { %13246 = vst [vmem:[#allocation128_spill] sm:$0xff] %v11177_v57 }
 0x2d8   :  { %6539 = vrot.lane.b32.xlu1 %v10963_v39, %s8370_s17  ;;  %v11179_v44 = vpop.permute.xlu0 %6221 }
 0x2d9   :  { %13247 = vst [vmem:[#allocation129_spill] sm:$0xff] %v11179_v44 }
 0x2dc   :  { %6607 = vrot.lane.b32.xlu1 %v10434_v16, %s8371_s19  ;;  %v11181_v28 = vpop.permute.xlu0 %6225 }
 0x2dd   :  { %13248 = vst [vmem:[#allocation130_spill] sm:$0xff] %v11181_v28 }
 0x2e0   :  { %6609 = vrot.lane.b32.xlu1 %v13244_v62, %s8371_s19  ;;  %v11183_v39 = vpop.permute.xlu0 %6229 }
 0x2e1   :  { %13249 = vst [vmem:[#allocation131_spill] sm:$0xff] %v11183_v39 }
 0x2e4   :  { %v11185_v10 = vpop.permute.xlu0 %6233 }
 0x2e5   :  { %13250 = vst [vmem:[#allocation132_spill] sm:$0xff] %v11185_v10  ;;  %v7792_v10 = vld [vmem:[%s12855_s4] ss:$0 sm:$0xff] }
 0x2e8   :  { %v11187_v16 = vpop.permute.xlu0 %6237 }
 0x2ec   :  { %v11189_v40 = vpop.permute.xlu0 %6241 }
 0x2ed   :  { %13251 = vst [vmem:[#allocation133_spill] sm:$0xff] %v11189_v40 }
 0x2f0   :  { %v11191_v18 = vpop.permute.xlu0 %6245 }
 0x2f1   :  { %13252 = vst [vmem:[#allocation134_spill] sm:$0xff] %v11191_v18 }
 0x2f4   :  { %v11193_v32 = vpop.permute.xlu0 %6249 }
 0x2f5   :  { %13253 = vst [vmem:[#allocation135_spill] sm:$0xff] %v11193_v32 }
 0x2f8   :  { %v11195_v21 = vpop.permute.xlu0 %6253 }
 0x2f9   :  { %13254 = vst [vmem:[#allocation136_spill] sm:$0xff] %v11195_v21 }
 0x2fc   :  { %v11197_v14 = vpop.permute.xlu0 %6257 }
 0x2fd   :  { %13255 = vst [vmem:[#allocation137_spill] sm:$0xff] %v11197_v14 }
 0x300   :  { %v11199_v57 = vpop.permute.xlu0 %6261 }
 0x301   :  { %13256 = vst [vmem:[#allocation138_spill] sm:$0xff] %v11199_v57 }
 0x304   :  { %v11201_v44 = vpop.permute.xlu0 %6265 }
 0x305   :  { %13257 = vst [vmem:[#allocation139_spill] sm:$0xff] %v11201_v44 }
 0x308   :  { %v11203_v28 = vpop.permute.xlu0 %6275 }
 0x30c   :  { %v11205_v39 = vpop.permute.xlu0 %6279 }
 0x30d   :  { %13258 = vst [vmem:[#allocation140_spill] sm:$0xff] %v11205_v39 }
 0x310   :  { %v11210_v40 = vpop.permute.xlu0 %6283 }
 0x311   :  { %13259 = vst [vmem:[#allocation141_spill] sm:$0xff] %v11210_v40 }
 0x314   :  { %v11212_v14 = vpop.permute.xlu0 %6287 }
 0x315   :  { %13260 = vst [vmem:[#allocation142_spill] sm:$0xff] %v11212_v14 }
 0x318   :  { %v11215_v44 = vpop.permute.xlu0 %6291 }
 0x319   :  { %13261 = vst [vmem:[#allocation143_spill] sm:$0xff] %v11215_v44 }
 0x31c   :  { %v11217_v55 = vpop.permute.xlu0 %6295 }
 0x31d   :  { %13262 = vst [vmem:[#allocation144_spill] sm:$0xff] %v11217_v55 }
 0x320   :  { %v11219_v39 = vpop.permute.xlu0 %6299 }
 0x321   :  { %13263 = vst [vmem:[#allocation145_spill] sm:$0xff] %v11219_v39 }
 0x324   :  { %v11223_v40 = vpop.permute.xlu0 %6303 }
 0x325   :  { %13265 = vst [vmem:[#allocation23_spill] sm:$0xff] %v11223_v40  ;;  %v13271_v40 = vld [vmem:[#allocation29_spill] sm:$0xff] }
 0x347   :  { %v3631_v18 = vpop.f32.mrb[0].mxu1 }
 0x348   :  { %v3632_v32 = vadd.f32 %v7792_v10, %v3631_v18  ;;  %v8040_v37 = vpop.f32.mrb[1].mxu1  ;;  %v11227_v18 = vpop.permute.xlu0 %6307  ;;  %v13269_v10 = vld [vmem:[#allocation30_spill] sm:$0xff] }
 0x349   :  { %v13266_v37 = vld [vmem:[#allocation24_spill] sm:$0xff] }
 0x34a   :  { %v3635_v21 = vmul.f32 0.033333335, %v3632_v32  ;;  %v13267_v32 = vld [vmem:[#allocation25_spill] sm:$0xff] }
 0x34c   :  { %v3637_v57 = vsel %vm3636_vm12, %v3635_v21, -inf }
 0x34d   :  { %3638 = vmax.xlane.f32.xlu0 %v3637_v57  ;;  %v11233_v57 = vpop.permute.xlu0 %6311 }
 0x34e   :  { %13268 = vst [vmem:[#allocation24_spill] sm:$0xff] %v11233_v57 }
 0x351   :  { %v11237_v39 = vpop.permute.xlu0 %6315 }
 0x352   :  { %13270 = vst [vmem:[#allocation25_spill] sm:$0xff] %v11237_v39 }
 0x355   :  { %v11243_v55 = vpop.permute.xlu0 %6319 }
 0x356   :  { %13272 = vst [vmem:[#allocation29_spill] sm:$0xff] %v11243_v55 }
 0x359   :  { %v11247_v44 = vpop.permute.xlu0 %6323 }
 0x35a   :  { %13273 = vst [vmem:[#allocation146_spill] sm:$0xff] %v11247_v44 }
 0x363   :  { %6389 = vrot.lane.b32.xlu0 %v13264_v51, %s8368_s30 }
 0x367   :  { %6393 = vrot.lane.b32.xlu0 %v13266_v37, %s8368_s30 }
 0x36b   :  { %6397 = vrot.lane.b32.xlu0 %v13267_v32, %s8368_s30 }
 0x36f   :  { %6401 = vrot.lane.b32.xlu0 %v13244_v62, %s8368_s30  ;;  %v11251_v62 = vpop.permute.xlu0 %6327 }
 0x370   :  { %13274 = vst [vmem:[#allocation147_spill] sm:$0xff] %v11251_v62 }
 0x373   :  { %6405 = vrot.lane.b32.xlu0 %v13269_v10, %s8368_s30  ;;  %v11253_v14 = vpop.permute.xlu0 %6331 }
 0x374   :  { %13275 = vst [vmem:[#allocation148_spill] sm:$0xff] %v11253_v14 }
 0x377   :  { %6415 = vrot.lane.b32.xlu0 %v13271_v40, %s8369_s16  ;;  %v11255_v39 = vpop.permute.xlu0 %6335 }
 0x378   :  { %13276 = vst [vmem:[#allocation149_spill] sm:$0xff] %v11255_v39 }
 0x37b   :  { %6419 = vrot.lane.b32.xlu0 %v13190_v15, %s8369_s16  ;;  %v11257_v40 = vpop.permute.xlu0 %6345 }
 0x37f   :  { %6423 = vrot.lane.b32.xlu0 %v13208_v8, %s8369_s16  ;;  %v11259_v57 = vpop.permute.xlu0 %6349 }
 0x380   :  { %13277 = vst [vmem:[#allocation150_spill] sm:$0xff] %v11259_v57 }
 0x383   :  { %6427 = vrot.lane.b32.xlu0 %v13215_v31, %s8369_s16  ;;  %v11261_v15 = vpop.permute.xlu0 %6353 }
 0x384   :  { %13278 = vst [vmem:[#allocation151_spill] sm:$0xff] %v11261_v15 }
 0x387   :  { %v11263_v55 = vpop.permute.xlu0 %6357 }
 0x388   :  { %13279 = vst [vmem:[#allocation152_spill] sm:$0xff] %v11263_v55 }
 0x38b   :  { %v11265_v8 = vpop.permute.xlu0 %6361 }
 0x38c   :  { %13280 = vst [vmem:[#allocation153_spill] sm:$0xff] %v11265_v8 }
 0x38f   :  { %v11267_v44 = vpop.permute.xlu0 %6365 }
 0x390   :  { %13281 = vst [vmem:[#allocation154_spill] sm:$0xff] %v11267_v44 }
 0x393   :  { %v11269_v23 = vpop.permute.xlu0 %6369 }
 0x394   :  { %13282 = vst [vmem:[#allocation155_spill] sm:$0xff] %v11269_v23 }
 0x397   :  { %v11271_v31 = vpop.permute.xlu0 %6373 }
 0x398   :  { %13283 = vst [vmem:[#allocation156_spill] sm:$0xff] %v11271_v31  ;;  %v3648_v31 = vld [vmem:[%s12856_s5] sm:$0xff] }
 0x39b   :  { %v11273_v62 = vpop.permute.xlu0 %6377 }
 0x39f   :  { %v11275_v14 = vpop.permute.xlu0 %6381 }
 0x3a0   :  { %13284 = vst [vmem:[#allocation157_spill] sm:$0xff] %v11275_v14 }
 0x3a3   :  { %v11277_v39 = vpop.permute.xlu0 %6385 }
 0x3a4   :  { %13285 = vst [vmem:[#allocation158_spill] sm:$0xff] %v11277_v39 }
 0x3da   :  { %v3639_v10 = vpop.xlane.xlu0 %3638 }
 0x3db   :  { %v3640_v57 = vsub.f32 %v3635_v21, %v3639_v10  ;;  %v3649_v21 = vld [vmem:[%s12856_s5 + $0x8] sm:$0xff] }
 0x3dd   :  { %v3641_v43 = vmul.f32 1.442695, %v3640_v57  ;;  %v3654_v57 = vcombine.high %v3648_v31, %v3648_v31 }
 0x3df   :  { %8196 = vpow2.f32 %v3641_v43  ;;  %v3655_v43 = vcombine.high %v3649_v21, %v3649_v21  ;;  %7795 = vmatprep.subr.msk.mxu0 %vm3660_vm13, %v3654_v57  ;;  %v13300_v57 = vld [vmem:[#allocation75_spill] sm:$0xff] }
 0x3e0   :  { %7796 = vmatpush1.msk.msra.mxu0 %vm3660_vm13, %v3648_v31 }
 0x3e1   :  { %7798 = vmatprep.subr.msk.mxu1 %vm3660_vm13, %v3655_v43  ;;  %8041 = vmatprep.subr.mxu0 %v13206_v56  ;;  %v13301_v43 = vld [vmem:[#allocation74_spill] sm:$0xff] }
 0x3e2   :  { %7799 = vmatpush1.msk.msra.mxu1 %vm3660_vm13, %v3649_v21 }
 0x3e3   :  { %8046 = vmatprep.subr.mxu1 %v13206_v56 }
 0x3e9   :  { %v11279_v15 = vpop.eup %8196 }
 0x3ea   :  { %v3643_v8 = vsel %vm3636_vm12, %v11279_v15, 0.0 }
 0x3eb   :  { %3644 = vadd.xlane.f32.xlu0 %v3643_v8 }
 0x401   :  { %6431 = vrot.lane.b32.xlu0 %v13223_v1, %s8369_s16 }
 0x405   :  { %6435 = vrot.lane.b32.xlu0 %v13235_v48, %s8369_s16 }
 0x409   :  { %6449 = vrot.lane.b32.xlu0 %v10667_v22, %s8369_s16 }
 0x40d   :  { %6517 = vrot.lane.b32.xlu0 %v10523_v58, %s8370_s17 }
 0x411   :  { %6519 = vrot.lane.b32.xlu0 %v10911_v26, %s8370_s17 }
 0x415   :  { %6587 = vrot.lane.b32.xlu0 %v10194_v38, %s8371_s19  ;;  %v11325_v38 = vpop.permute.xlu1 %6399 }
 0x416   :  { %13286 = vst [vmem:[#allocation159_spill] sm:$0xff] %v11325_v38 }
 0x419   :  { %6589 = vrot.lane.b32.xlu0 %v13202_v17, %s8371_s19  ;;  %v11333_v17 = vpop.permute.xlu0 %6389 }
 0x41a   :  { %13288 = vst [vmem:[#allocation161_spill] sm:$0xff] %v11333_v17 }
 0x41d   :  { %6657 = vrot.lane.b32.xlu0 %v10667_v22, %s8372_s20 }
 0x421   :  { %6659 = vrot.lane.b32.xlu0 %v13193_v33, %s8372_s20  ;;  %v11329_v33 = vpop.permute.xlu1 %6403 }
 0x422   :  { %13287 = vst [vmem:[#allocation160_spill] sm:$0xff] %v11329_v33 }
 0x425   :  { %6453 = vrot.lane.b32.xlu0 %v10681_v4, %s8369_s16 }
 0x429   :  { %6521 = vrot.lane.b32.xlu0 %v10542_v35, %s8370_s17 }
 0x42d   :  { %6523 = vrot.lane.b32.xlu0 %v10923_v7, %s8370_s17 }
 0x431   :  { %6591 = vrot.lane.b32.xlu0 %v10224_v61, %s8371_s19  ;;  %v11337_v61 = vpop.permute.xlu1 %6407 }
 0x432   :  { %13289 = vst [vmem:[#allocation162_spill] sm:$0xff] %v11337_v61  ;;  %v7841_v61 = vcombine.low %v13301_v43, %v13300_v57 }
 0x435   :  { %6593 = vrot.lane.b32.xlu0 %v13205_v53, %s8371_s19  ;;  %v11341_v53 = vpop.permute.xlu0 %6393  ;;  %v11343_v22 = vpop.permute.xlu1 %6417 }
 0x436   :  { %13290 = vst [vmem:[#allocation163_spill] sm:$0xff] %v11341_v53 }
 0x439   :  { %6661 = vrot.lane.b32.xlu0 %v10681_v4, %s8372_s20  ;;  %v11347_v4 = vpop.permute.xlu0 %6397 }
 0x43a   :  { %13291 = vst [vmem:[#allocation164_spill] sm:$0xff] %v11347_v4 }
 0x43d   :  { %6663 = vrot.lane.b32.xlu0 %v13209_v6, %s8372_s20  ;;  %v11351_v6 = vpop.permute.xlu1 %6421  ;;  %v11355_v1 = vpop.permute.xlu0 %6401 }
 0x43e   :  { %13292 = vst [vmem:[#allocation165_spill] sm:$0xff] %v11351_v6  ;;  %13293 = vst [vmem:[#allocation166_spill] sm:$0xff] %v11355_v1 }
 0x441   :  { %6457 = vrot.lane.b32.xlu0 %v10694_v29, %s8369_s16  ;;  %v11357_v48 = vpop.permute.xlu1 %6425  ;;  %v11361_v10 = vpop.permute.xlu0 %6405 }
 0x442   :  { %13294 = vst [vmem:[#allocation167_spill] sm:$0xff] %v11357_v48  ;;  %13295 = vst [vmem:[#allocation168_spill] sm:$0xff] %v11361_v10  ;;  %v8380_v48 = vmov 1934713408  }
 0x445   :  { %6525 = vrot.lane.b32.xlu0 %v10561_v27, %s8370_s17  ;;  %v13384_v27 = vld [vmem:[#allocation5_spill] sm:$0xff] }
 0x449   :  { %6527 = vrot.lane.b32.xlu0 %v10933_v52, %s8370_s17 }
 0x44d   :  { %6595 = vrot.lane.b32.xlu0 %v13144_v41, %s8371_s19  ;;  %v11365_v41 = vpop.permute.xlu1 %6429 }
 0x44e   :  { %13296 = vst [vmem:[#allocation169_spill] sm:$0xff] %v11365_v41 }
 0x451   :  { %6597 = vrot.lane.b32.xlu0 %v13264_v51, %s8371_s19  ;;  %v6416_v51 = vpop.permute.xlu0 %6415  ;;  %v11369_v8 = vpop.permute.xlu1 %6433 }
 0x452   :  { %13297 = vst [vmem:[#allocation170_spill] sm:$0xff] %v11369_v8 }
 0x455   :  { %6665 = vrot.lane.b32.xlu0 %v10694_v29, %s8372_s20  ;;  %v11373_v29 = vpop.permute.xlu0 %6419 }
 0x456   :  { %13298 = vst [vmem:[#allocation171_spill] sm:$0xff] %v11373_v29 }
 0x459   :  { %6667 = vrot.lane.b32.xlu0 %v13217_v30, %s8372_s20  ;;  %v11377_v30 = vpop.permute.xlu1 %6447  ;;  %v11381_v31 = vpop.permute.xlu0 %6423 }
 0x45a   :  { %13299 = vst [vmem:[#allocation172_spill] sm:$0xff] %v11381_v31 }
 0x45d   :  { %6461 = vrot.lane.b32.xlu0 %v10716_v3, %s8369_s16  ;;  %v6486_v21 = vpop.permute.xlu1 %6485  ;;  %v11387_v10 = vpop.permute.xlu0 %6427 }
 0x45e   :  { %13302 = vst [vmem:[#allocation75_spill] sm:$0xff] %v11387_v10 }
 0x461   :  { %6529 = vrot.lane.b32.xlu0 %v10583_v25, %s8370_s17  ;;  %v11393_v33 = vpop.permute.xlu1 %6487  ;;  %v13380_v25 = vld [vmem:[#allocation37_spill] sm:$0xff] }
 0x462   :  { %13303 = vst [vmem:[#allocation74_spill] sm:$0xff] %v11393_v33  ;;  %v13396_v33 = vld [vmem:[#allocation107_spill] sm:$0xff] }
 0x465   :  { %6531 = vrot.lane.b32.xlu0 %v10943_v36, %s8370_s17  ;;  %v6556_v43 = vpop.permute.xlu1 %6555 }
 0x469   :  { %6599 = vrot.lane.b32.xlu0 %v13146_v63, %s8371_s19  ;;  %v6691_v63 = vsel %vm3286_vm3, %v7841_v61, %v10959_v9 }
 0x46d   :  { %6601 = vrot.lane.b32.xlu0 %v13266_v37, %s8371_s19 }
 0x471   :  { %6669 = vrot.lane.b32.xlu0 %v10716_v3, %s8372_s20  ;;  %v6787_v3 = vsel %vm6785_vm14, %v6691_v63, %v11161_v12  ;;  %v11412_v63 = vpop.permute.xlu1 %6557 }
 0x472   :  { %13306 = vst [vmem:[#allocation175_spill] sm:$0xff] %v11412_v63 }
 0x475   :  { %6671 = vrot.lane.b32.xlu0 %v13225_v24, %s8372_s20  ;;  %v6852_v24 = vsel %vm6850_vm15, %v6787_v3, %v11203_v28 }
 0x476   :  { %v6917_v9 = vsel %vm6915_vm0, %v6852_v24, %v11257_v40  ;;  %v3650_v40 = vld [vmem:[%s12856_s5 + $0x10] sm:$0xf]  ;;  %v8324_v24 = vld [vmem:[%s12851_s0 + $0xd8] sm:$0xf]  ;;  %s8373_s5 = smov 104  }
 0x478   :  { %v3645_v37 = vpop.xlane.xlu0 %3644 }
 0x479   :  { %8198 = vrcp.f32 %v3645_v37  ;;  %6465 = vrot.lane.b32.xlu0 %v10734_v49, %s8369_s16  ;;  %v6982_v37 = vsel %vm6980_vm1, %v6917_v9, %v6416_v51  ;;  %v4549_v51 = vld [vmem:[%s12857_s6] sm:$0xf]  ;;  %s8374_s6 = smov 120  }
 0x47a   :  { %v7047_v28 = vsel %vm7045_vm4, %v6982_v37, %v6486_v21  ;;  %v8325_v21 = vld [vmem:[%s12851_s0 + $0xdc] sm:$0xf]  ;;  %v6626_v37 = vpop.permute.xlu1 %6625 }
 0x47c   :  { %v11399_v57 = vpop.permute.xlu0 %6431 }
 0x47d   :  { %13304 = vst [vmem:[#allocation173_spill] sm:$0xff] %v11399_v57  ;;  %6533 = vrot.lane.b32.xlu0 %v10599_v20, %s8370_s17 }
 0x480   :  { %v11407_v61 = vpop.permute.xlu0 %6435 }
 0x481   :  { %13305 = vst [vmem:[#allocation174_spill] sm:$0xff] %v11407_v61  ;;  %6535 = vrot.lane.b32.xlu0 %v10951_v2, %s8370_s17 }
 0x483   :  { %v8199_v12 = vpop.eup %8198 }
 0x484   :  { %v11415_v3 = vpop.permute.xlu0 %6449  ;;  %v3647_v1 = vmul.f32 %v8199_v12, %v11279_v15  ;;  %v7857_v15 = vcombine.low %v8324_v24, %v8325_v21 }
 0x485   :  { %13307 = vst [vmem:[#allocation176_spill] sm:$0xff] %v11415_v3  ;;  %6603 = vrot.lane.b32.xlu0 %v13149_v34, %s8371_s19  ;;  %v7112_v34 = vsel %vm7110_vm8, %v7047_v28, %v6556_v43 }
 0x486   :  { %7797 = vmatmul.mubr.msk.f32.vlgmr.msra.gmra.mrb[2].mxu0 %vm3656_vm5, %v3647_v1  ;;  %7800 = vmatmul.mubr.msk.f32.vlgmr.msra.gmra.mrb[2].mxu1 %vm3656_vm5, %v3647_v1  ;;  %v6739_v12 = vsel %vm3286_vm3, %v7857_v15, %v11047_v42  ;;  %v7177_v43 = vsel %vm7175_vm9, %v7112_v34, %v6626_v37 }
 0x487   :  { %8042 = vmatpush3.msk.msra.mxu0 %vm3660_vm13, %v3650_v40  ;;  %8043 = vmatprep.mubr.msk.f32.mxu0 %vm8366_vm7, %v13206_v56 }
 0x488   :  { %v6518_v9 = vpop.permute.xlu0 %6517  ;;  %8047 = vmatpush3.msk.msra.mxu1 %vm3660_vm13, %v4549_v51  ;;  %8048 = vmatprep.mubr.msk.f32.mxu1 %vm8366_vm7, %v13206_v56  ;;  %v6819_v56 = vsel %vm6785_vm14, %v6739_v12, %v11187_v16 }
 0x489   :  { %6605 = vrot.lane.b32.xlu0 %v13267_v32, %s8371_s19  ;;  %v6884_v32 = vsel %vm6850_vm15, %v6819_v56, %v11227_v18 }
 0x48a   :  { %8044 = vmatmul.mubr.msk.f32.vlgmr.msra.gmra.mrb[4].mxu0 %vm3656_vm5, %v3647_v1  ;;  %8049 = vmatmul.mubr.msk.f32.vlgmr.msra.gmra.mrb[4].mxu1 %vm3656_vm5, %v3647_v1  ;;  %v6949_v1 = vsel %vm6915_vm0, %v6884_v32, %v11273_v62 }
 0x48b   :  { %8061 = vmatprep.mubr.msk.bf16.mxu0 %vm7244_vm10, %v7177_v43  ;;  %v7014_v16 = vsel %vm6980_vm1, %v6949_v1, %v11377_v30 }
 0x48c   :  { %v11449_v28 = vpop.permute.xlu0 %6519 }
 0x48d   :  { %13308 = vst [vmem:[#allocation177_spill] sm:$0xff] %v11449_v28  ;;  %6673 = vrot.lane.b32.xlu0 %v10734_v49, %s8372_s20  ;;  %v7079_v49 = vsel %vm7045_vm4, %v7014_v16, %v6518_v9 }
 0x490   :  { %v6588_v42 = vpop.permute.xlu0 %6587 }
 0x491   :  { %6675 = vrot.lane.b32.xlu0 %v13237_v5, %s8372_s20  ;;  %v7144_v51 = vsel %vm7110_vm8, %v7079_v49, %v6588_v42  ;;  %v11479_v5 = vpop.permute.xlu1 %6627 }
 0x492   :  { %13310 = vst [vmem:[#allocation179_spill] sm:$0xff] %v11479_v5 }
 0x494   :  { %v11461_v40 = vpop.permute.xlu0 %6589 }
 0x495   :  { %13309 = vst [vmem:[#allocation178_spill] sm:$0xff] %v11461_v40  ;;  %6437 = vrot.lane.b32.xlu0 %v10604_v60, %s8369_s16  ;;  %v11483_v30 = vpop.permute.xlu1 %6451 }
 0x496   :  { %13312 = vst [vmem:[#allocation181_spill] sm:$0xff] %v11483_v30 }
 0x498   :  { %v6658_v18 = vpop.permute.xlu0 %6657 }
 0x499   :  { %v7209_v24 = vsel %vm7175_vm9, %v7144_v51, %v6658_v18  ;;  %6505 = vrot.lane.b32.xlu0 %v10446_v0, %s8370_s17  ;;  %v11487_v15 = vpop.permute.xlu1 %6489 }
 0x49a   :  { %8103 = vmatprep.mubr.msk.bf16.mxu1 %vm7244_vm10, %v7209_v24  ;;  %13314 = vst [vmem:[#allocation183_spill] sm:$0xff] %v11487_v15 }
 0x49c   :  { %v11481_v62 = vpop.permute.xlu0 %6659 }
 0x49d   :  { %6507 = vrot.lane.b32.xlu0 %v10865_v47, %s8370_s17  ;;  %13311 = vst [vmem:[#allocation180_spill] sm:$0xff] %v11481_v62  ;;  %v11491_v9 = vpop.permute.xlu1 %6491 }
 0x49e   :  { %13316 = vst [vmem:[#allocation185_spill] sm:$0xff] %v11491_v9 }
 0x4a0   :  { %v11485_v21 = vpop.permute.xlu0 %6453 }
 0x4a1   :  { %6575 = vrot.lane.b32.xlu0 %v10026_v59, %s8371_s19  ;;  %13313 = vst [vmem:[#allocation182_spill] sm:$0xff] %v11485_v21  ;;  %v11495_v59 = vpop.permute.xlu1 %6559 }
 0x4a2   :  { %13318 = vst [vmem:[#allocation187_spill] sm:$0xff] %v11495_v59 }
 0x4a4   :  { %v11489_v34 = vpop.permute.xlu0 %6521 }
 0x4a5   :  { %6577 = vrot.lane.b32.xlu0 %v13195_v11, %s8371_s19  ;;  %13315 = vst [vmem:[#allocation184_spill] sm:$0xff] %v11489_v34  ;;  %v11499_v11 = vpop.permute.xlu1 %6561 }
 0x4a6   :  { %13320 = vst [vmem:[#allocation189_spill] sm:$0xff] %v11499_v11 }
 0x4a8   :  { %v11493_v37 = vpop.permute.xlu0 %6523 }
 0x4a9   :  { %13317 = vst [vmem:[#allocation186_spill] sm:$0xff] %v11493_v37  ;;  %v11503_v56 = vpop.permute.xlu1 %6629 }
 0x4aa   :  { %13322 = vst [vmem:[#allocation191_spill] sm:$0xff] %v11503_v56 }
 0x4ac   :  { %v11497_v12 = vpop.permute.xlu0 %6591 }
 0x4ad   :  { %13319 = vst [vmem:[#allocation188_spill] sm:$0xff] %v11497_v12  ;;  %v11507_v42 = vpop.permute.xlu1 %6631 }
 0x4ae   :  { %13324 = vst [vmem:[#allocation193_spill] sm:$0xff] %v11507_v42 }
 0x4b0   :  { %v11501_v43 = vpop.permute.xlu0 %6593 }
 0x4b1   :  { %13321 = vst [vmem:[#allocation190_spill] sm:$0xff] %v11501_v43  ;;  %v11511_v16 = vpop.permute.xlu1 %6455 }
 0x4b2   :  { %13326 = vst [vmem:[#allocation195_spill] sm:$0xff] %v11511_v16 }
 0x4b4   :  { %v11505_v32 = vpop.permute.xlu0 %6661 }
 0x4b5   :  { %13323 = vst [vmem:[#allocation192_spill] sm:$0xff] %v11505_v32  ;;  %v11513_v49 = vpop.permute.xlu1 %6493 }
 0x4b6   :  { %13327 = vst [vmem:[#allocation196_spill] sm:$0xff] %v11513_v49 }
 0x4b8   :  { %v11509_v1 = vpop.permute.xlu0 %6663 }
 0x4b9   :  { %13325 = vst [vmem:[#allocation194_spill] sm:$0xff] %v11509_v1  ;;  %v11517_v18 = vpop.permute.xlu1 %6495  ;;  %v13381_v1 = vld [vmem:[#allocation77_spill] sm:$0xff] }
 0x4ba   :  { %13329 = vst [vmem:[#allocation198_spill] sm:$0xff] %v11517_v18 }
 0x4bc   :  { %v11515_v51 = vpop.permute.xlu0 %6457 }
 0x4bd   :  { %13328 = vst [vmem:[#allocation197_spill] sm:$0xff] %v11515_v51  ;;  %v11521_v23 = vpop.permute.xlu1 %6563 }
 0x4be   :  { %13331 = vst [vmem:[#allocation200_spill] sm:$0xff] %v11521_v23  ;;  %v4123_v23 = vunpack.c.l.s4 %v8380_v48 }
 0x4c0   :  { %v11519_v24 = vpop.permute.xlu0 %6525  ;;  %v4124_v49 = vunpack.c.0.s8 %v4123_v23 }
 0x4c1   :  { %13330 = vst [vmem:[#allocation199_spill] sm:$0xff] %v11519_v24  ;;  %v11525_v38 = vpop.permute.xlu1 %6565 }
 0x4c2   :  { %13333 = vst [vmem:[#allocation202_spill] sm:$0xff] %v11525_v38  ;;  %v11825_v52 = vsub.s32 %v4124_v49, %v13384_v27 }
 0x4c4   :  { %v11523_v61 = vpop.permute.xlu0 %6527 }
 0x4c5   :  { %13332 = vst [vmem:[#allocation201_spill] sm:$0xff] %v11523_v61  ;;  %v11529_v0 = vpop.permute.xlu1 %6633 }
 0x4c6   :  { %13335 = vst [vmem:[#allocation204_spill] sm:$0xff] %v11529_v0 }
 0x4c8   :  { %v11527_v44 = vpop.permute.xlu0 %6595 }
 0x4c9   :  { %13334 = vst [vmem:[#allocation203_spill] sm:$0xff] %v11527_v44  ;;  %v11533_v4 = vpop.permute.xlu1 %6635 }
 0x4ca   :  { %13337 = vst [vmem:[#allocation206_spill] sm:$0xff] %v11533_v4 }
 0x4cc   :  { %v11531_v47 = vpop.permute.xlu0 %6597 }
 0x4cd   :  { %13336 = vst [vmem:[#allocation205_spill] sm:$0xff] %v11531_v47  ;;  %v11537_v2 = vpop.permute.xlu1 %6459 }
 0x4ce   :  { %13339 = vst [vmem:[#allocation208_spill] sm:$0xff] %v11537_v2 }
 0x4d0   :  { %v11535_v8 = vpop.permute.xlu0 %6665 }
 0x4d1   :  { %13338 = vst [vmem:[#allocation207_spill] sm:$0xff] %v11535_v8  ;;  %v11553_v47 = vpop.permute.xlu1 %6497 }
 0x4d2   :  { %13341 = vst [vmem:[#allocation210_spill] sm:$0xff] %v11553_v47 }
 0x4d4   :  { %v11539_v53 = vpop.permute.xlu0 %6667 }
 0x4d5   :  { %13340 = vst [vmem:[#allocation209_spill] sm:$0xff] %v11539_v53 }
 0x4d8   :  { %v11555_v2 = vpop.permute.xlu0 %6461 }
 0x4d9   :  { %13342 = vst [vmem:[#allocation211_spill] sm:$0xff] %v11555_v2  ;;  %v11571_v2 = vpop.permute.xlu1 %6499 }
 0x4da   :  { %13345 = vst [vmem:[#allocation214_spill] sm:$0xff] %v11571_v2 }
 0x4dc   :  { %v11565_v17 = vpop.permute.xlu0 %6529 }
 0x4dd   :  { %13344 = vst [vmem:[#allocation213_spill] sm:$0xff] %v11565_v17 }
 0x559   :  { %v11541_v57 = vpop.f32.mrb[2].mxu0  ;;  %v11543_v41 = vpop.f32.mrb[2].mxu1 }
 0x55a   :  { %v11545_v61 = vpop.f32.mrb[3].mxu1  ;;  %3890 = vrot.lane.b32.xlu0 %v11541_v57, %s8373_s5  ;;  %3884 = vrot.lane.b32.xlu1 %v11541_v57, %s8374_s6  ;;  %v11551_v4 = vpop.f32.mrb[3].mxu0 }
 0x55d   :  { %v11557_v53 = vpop.f32.mrb[4].mxu0  ;;  %v11559_v51 = vpop.f32.mrb[4].mxu1 }
 0x55e   :  { %13343 = vst [vmem:[#allocation212_spill] sm:$0xff] %v11559_v51  ;;  %v8050_v38 = vpop.f32.mrb[5].mxu1  ;;  %3911 = vrot.lane.b32.xlu0 %v11541_v57, %s8370_s17  ;;  %3887 = vrot.lane.b32.xlu1 %v11541_v57, %s8375_s12  ;;  %v8045_v20 = vpop.f32.mrb[5].mxu0 }
 0x55f   :  { %v11577_v38 = vpop.permute.xlu0 %6531  ;;  %v11579_v20 = vpop.permute.xlu1 %6567 }
 0x560   :  { %13346 = vst [vmem:[#allocation215_spill] sm:$0xff] %v11577_v38  ;;  %13347 = vst [vmem:[#allocation216_spill] sm:$0xff] %v11579_v20 }
 0x562   :  { %3917 = vrot.lane.b32.xlu0 %v11541_v57, %s8368_s30  ;;  %3893 = vrot.lane.b32.xlu1 %v11541_v57, %s8376_s13 }
 0x563   :  { %v11585_v51 = vpop.permute.xlu0 %6599  ;;  %v11591_v2 = vpop.permute.xlu1 %6569 }
 0x564   :  { %13348 = vst [vmem:[#allocation217_spill] sm:$0xff] %v11585_v51  ;;  %13349 = vst [vmem:[#allocation218_spill] sm:$0xff] %v11591_v2 }
 0x566   :  { %3923 = vrot.lane.b32.xlu0 %v11541_v57, %s8364_s18  ;;  %3896 = vrot.lane.b32.xlu1 %v11541_v57, %s8377_s14 }
 0x567   :  { %v11597_v38 = vpop.permute.xlu0 %6601  ;;  %v11599_v17 = vpop.permute.xlu1 %6637 }
 0x568   :  { %13350 = vst [vmem:[#allocation219_spill] sm:$0xff] %v11597_v38  ;;  %13351 = vst [vmem:[#allocation220_spill] sm:$0xff] %v11599_v17 }
 0x56a   :  { %3979 = vrot.lane.b32.xlu0 %v11543_v41, %s8375_s12  ;;  %3899 = vrot.lane.b32.xlu1 %v11541_v57, %s8378_s21 }
 0x56b   :  { %v11605_v51 = vpop.permute.xlu0 %6669  ;;  %v11611_v2 = vpop.permute.xlu1 %6639 }
 0x56c   :  { %13352 = vst [vmem:[#allocation221_spill] sm:$0xff] %v11605_v51  ;;  %13353 = vst [vmem:[#allocation222_spill] sm:$0xff] %v11611_v2 }
 0x56e   :  { %3985 = vrot.lane.b32.xlu0 %v11543_v41, %s8376_s13  ;;  %3902 = vrot.lane.b32.xlu1 %v11541_v57, %s8379_s22 }
 0x56f   :  { %v11617_v38 = vpop.permute.xlu0 %6671  ;;  %v11619_v17 = vpop.permute.xlu1 %6463 }
 0x570   :  { %13354 = vst [vmem:[#allocation223_spill] sm:$0xff] %v11617_v38  ;;  %13355 = vst [vmem:[#allocation224_spill] sm:$0xff] %v11619_v17 }
 0x572   :  { %3991 = vrot.lane.b32.xlu0 %v11543_v41, %s8378_s21  ;;  %3905 = vrot.lane.b32.xlu1 %v11541_v57, %s8372_s20 }
 0x573   :  { %v11625_v51 = vpop.permute.xlu0 %6465  ;;  %v11631_v2 = vpop.permute.xlu1 %6501 }
 0x574   :  { %13356 = vst [vmem:[#allocation225_spill] sm:$0xff] %v11625_v51  ;;  %13357 = vst [vmem:[#allocation226_spill] sm:$0xff] %v11631_v2 }
 0x576   :  { %3997 = vrot.lane.b32.xlu0 %v11543_v41, %s8372_s20  ;;  %3908 = vrot.lane.b32.xlu1 %v11541_v57, %s8371_s19 }
 0x577   :  { %v11637_v38 = vpop.permute.xlu0 %6533  ;;  %v11639_v17 = vpop.permute.xlu1 %6503 }
 0x578   :  { %13358 = vst [vmem:[#allocation227_spill] sm:$0xff] %v11637_v38  ;;  %13359 = vst [vmem:[#allocation228_spill] sm:$0xff] %v11639_v17 }
 0x57a   :  { %4003 = vrot.lane.b32.xlu0 %v11543_v41, %s8370_s17  ;;  %3914 = vrot.lane.b32.xlu1 %v11541_v57, %s8369_s16 }
 0x57b   :  { %v11645_v51 = vpop.permute.xlu0 %6535  ;;  %v11651_v2 = vpop.permute.xlu1 %6571 }
 0x57c   :  { %13360 = vst [vmem:[#allocation229_spill] sm:$0xff] %v11645_v51  ;;  %13361 = vst [vmem:[#allocation230_spill] sm:$0xff] %v11651_v2 }
 0x57e   :  { %4009 = vrot.lane.b32.xlu0 %v11543_v41, %s8368_s30  ;;  %3920 = vrot.lane.b32.xlu1 %v11541_v57, %s8367_s11 }
 0x57f   :  { %v11657_v17 = vpop.permute.xlu0 %6603  ;;  %v11659_v38 = vpop.permute.xlu1 %6573 }
 0x580   :  { %13362 = vst [vmem:[#allocation231_spill] sm:$0xff] %v11657_v17  ;;  %13363 = vst [vmem:[#allocation232_spill] sm:$0xff] %v11659_v38 }
 0x582   :  { %4015 = vrot.lane.b32.xlu0 %v11543_v41, %s8364_s18  ;;  %3926 = vrot.lane.b32.xlu1 %v11541_v57, %s8363_s15 }
 0x583   :  { %v11665_v51 = vpop.permute.xlu0 %6605  ;;  %v11671_v2 = vpop.permute.xlu1 %6641 }
 0x584   :  { %13364 = vst [vmem:[#allocation233_spill] sm:$0xff] %v11665_v51  ;;  %13365 = vst [vmem:[#allocation234_spill] sm:$0xff] %v11671_v2 }
 0x586   :  { %3976 = vrot.lane.b32.xlu1 %v11543_v41, %s8374_s6  ;;  %3930 = vrot.lane.b32.xlu0 %v11551_v4, %s8374_s6 }
 0x587   :  { %v11677_v38 = vpop.permute.xlu0 %6673  ;;  %v11679_v17 = vpop.permute.xlu1 %6643 }
 0x588   :  { %13366 = vst [vmem:[#allocation235_spill] sm:$0xff] %v11677_v38  ;;  %13367 = vst [vmem:[#allocation236_spill] sm:$0xff] %v11679_v17 }
 0x58a   :  { %3982 = vrot.lane.b32.xlu1 %v11543_v41, %s8373_s5  ;;  %3936 = vrot.lane.b32.xlu0 %v11551_v4, %s8373_s5 }
 0x58b   :  { %v11685_v51 = vpop.permute.xlu0 %6675  ;;  %v11691_v2 = vpop.permute.xlu1 %6467 }
 0x58c   :  { %13368 = vst [vmem:[#allocation237_spill] sm:$0xff] %v11685_v51  ;;  %13369 = vst [vmem:[#allocation238_spill] sm:$0xff] %v11691_v2 }
 0x58e   :  { %3988 = vrot.lane.b32.xlu1 %v11543_v41, %s8377_s14  ;;  %3942 = vrot.lane.b32.xlu0 %v11551_v4, %s8377_s14 }
 0x58f   :  { %v11697_v17 = vpop.permute.xlu0 %6437  ;;  %v11699_v38 = vpop.permute.xlu1 %6469 }
 0x590   :  { %13370 = vst [vmem:[#allocation239_spill] sm:$0xff] %v11697_v17  ;;  %13371 = vst [vmem:[#allocation240_spill] sm:$0xff] %v11699_v38 }
 0x592   :  { %3994 = vrot.lane.b32.xlu1 %v11543_v41, %s8379_s22  ;;  %3948 = vrot.lane.b32.xlu0 %v11551_v4, %s8379_s22 }
 0x593   :  { %v11705_v51 = vpop.permute.xlu0 %6505  ;;  %v11711_v2 = vpop.permute.xlu1 %6537 }
 0x594   :  { %13372 = vst [vmem:[#allocation241_spill] sm:$0xff] %v11705_v51  ;;  %13373 = vst [vmem:[#allocation242_spill] sm:$0xff] %v11711_v2 }
 0x596   :  { %4000 = vrot.lane.b32.xlu1 %v11543_v41, %s8371_s19  ;;  %3954 = vrot.lane.b32.xlu0 %v11551_v4, %s8371_s19 }
 0x597   :  { %v11717_v17 = vpop.permute.xlu0 %6507  ;;  %v11719_v38 = vpop.permute.xlu1 %6539 }
 0x598   :  { %13374 = vst [vmem:[#allocation243_spill] sm:$0xff] %v11717_v17  ;;  %13375 = vst [vmem:[#allocation244_spill] sm:$0xff] %v11719_v38 }
 0x59a   :  { %4006 = vrot.lane.b32.xlu1 %v11543_v41, %s8369_s16  ;;  %3960 = vrot.lane.b32.xlu0 %v11551_v4, %s8369_s16 }
 0x59b   :  { %v11725_v51 = vpop.permute.xlu0 %6575  ;;  %v11731_v2 = vpop.permute.xlu1 %6607 }
 0x59c   :  { %13376 = vst [vmem:[#allocation245_spill] sm:$0xff] %v11725_v51  ;;  %13377 = vst [vmem:[#allocation246_spill] sm:$0xff] %v11731_v2 }
 0x59e   :  { %4012 = vrot.lane.b32.xlu1 %v11543_v41, %s8367_s11  ;;  %3966 = vrot.lane.b32.xlu0 %v11551_v4, %s8367_s11 }
 0x59f   :  { %v11737_v17 = vpop.permute.xlu1 %6609  ;;  %v11739_v38 = vpop.permute.xlu0 %6577 }
 0x5a0   :  { %13378 = vst [vmem:[#allocation247_spill] sm:$0xff] %v11737_v17  ;;  %13379 = vst [vmem:[#allocation248_spill] sm:$0xff] %v11739_v38 }
 0x5a2   :  { %4018 = vrot.lane.b32.xlu1 %v11543_v41, %s8363_s15  ;;  %3972 = vrot.lane.b32.xlu0 %v11551_v4, %s8363_s15 }
 0x5a6   :  { %3933 = vrot.lane.b32.xlu1 %v11551_v4, %s8375_s12  ;;  %4022 = vrot.lane.b32.xlu0 %v11545_v61, %s8374_s6 }
 0x5aa   :  { %3939 = vrot.lane.b32.xlu1 %v11551_v4, %s8376_s13  ;;  %4028 = vrot.lane.b32.xlu0 %v11545_v61, %s8373_s5 }
 0x5ae   :  { %3945 = vrot.lane.b32.xlu1 %v11551_v4, %s8378_s21  ;;  %4034 = vrot.lane.b32.xlu0 %v11545_v61, %s8377_s14 }
 0x5b2   :  { %3951 = vrot.lane.b32.xlu1 %v11551_v4, %s8372_s20  ;;  %4040 = vrot.lane.b32.xlu0 %v11545_v61, %s8379_s22 }
 0x5b6   :  { %3957 = vrot.lane.b32.xlu1 %v11551_v4, %s8370_s17  ;;  %4046 = vrot.lane.b32.xlu0 %v11545_v61, %s8371_s19 }
 0x5ba   :  { %3963 = vrot.lane.b32.xlu1 %v11551_v4, %s8368_s30  ;;  %4052 = vrot.lane.b32.xlu0 %v11545_v61, %s8369_s16 }
 0x5be   :  { %3969 = vrot.lane.b32.xlu1 %v11551_v4, %s8364_s18  ;;  %4058 = vrot.lane.b32.xlu0 %v11545_v61, %s8367_s11 }
 0x5c2   :  { %4025 = vrot.lane.b32.xlu1 %v11545_v61, %s8375_s12  ;;  %4064 = vrot.lane.b32.xlu0 %v11545_v61, %s8363_s15 }
 0x5c6   :  { %4031 = vrot.lane.b32.xlu1 %v11545_v61, %s8376_s13  ;;  %4071 = vrot.lane.b32.xlu0 %v11557_v53, %s8375_s12 }
 0x5ca   :  { %4037 = vrot.lane.b32.xlu1 %v11545_v61, %s8378_s21  ;;  %4077 = vrot.lane.b32.xlu0 %v11557_v53, %s8376_s13 }
 0x5cc   :  { %v11745_v51 = vpop.permute.xlu0 %3890  ;;  %v11747_v20 = vpop.permute.xlu1 %3884 }
 0x5cd   :  { %v4097_v48 = vcombine.low %v11747_v20, %v11745_v51 }
 0x5ce   :  { %4043 = vrot.lane.b32.xlu1 %v11545_v61, %s8372_s20  ;;  %4083 = vrot.lane.b32.xlu0 %v11557_v53, %s8378_s21 }
 0x5d0   :  { %v3912_v2 = vpop.permute.xlu0 %3911  ;;  %v3888_v17 = vpop.permute.xlu1 %3887 }
 0x5d1   :  { %v4089_v37 = vcombine.low %v11541_v57, %v3888_v17  ;;  %v8328_v57 = vld [vmem:[%s12851_s0 + $0xc8] sm:$0x1] }
 0x5d2   :  { %4049 = vrot.lane.b32.xlu1 %v11545_v61, %s8370_s17  ;;  %6645 = vrot.lane.b32.xlu0 %v10604_v60, %s8372_s20 }
 0x5d4   :  { %v11757_v38 = vpop.permute.xlu0 %3917  ;;  %v3894_v47 = vpop.permute.xlu1 %3893 }
 0x5d6   :  { %4055 = vrot.lane.b32.xlu1 %v11545_v61, %s8368_s30  ;;  %6647 = vrot.lane.b32.xlu0 %v13380_v25, %s8372_s20 }
 0x5d8   :  { %v3924_v36 = vpop.permute.xlu0 %3923  ;;  %v3897_v18 = vpop.permute.xlu1 %3896 }
 0x5da   :  { %4061 = vrot.lane.b32.xlu1 %v11545_v61, %s8364_s18  ;;  %6439 = vrot.lane.b32.xlu0 %v13380_v25, %s8369_s16 }
 0x5dc   :  { %v11767_v0 = vpop.permute.xlu0 %3979  ;;  %v3900_v60 = vpop.permute.xlu1 %3899 }
 0x5dd   :  { %v4105_v16 = vcombine.low %v3894_v47, %v3900_v60 }
 0x5de   :  { %6441 = vrot.lane.b32.xlu0 %v10623_v45, %s8369_s16  ;;  %4068 = vrot.lane.b32.xlu1 %v11557_v53, %s8374_s6 }
 0x5e0   :  { %v11773_v8 = vpop.permute.xlu0 %3985  ;;  %v3903_v44 = vpop.permute.xlu1 %3902 }
 0x5e1   :  { %v4113_v55 = vcombine.low %v3897_v18, %v3903_v44  ;;  %v13382_v18 = vld [vmem:[#allocation6_spill] sm:$0xff] }
 0x5e2   :  { %6509 = vrot.lane.b32.xlu0 %v13381_v1, %s8370_s17  ;;  %4074 = vrot.lane.b32.xlu1 %v11557_v53, %s8373_s5  ;;  %v4104_v20 = vrot.slane %v4097_v48, %v13382_v18 }
 0x5e4   :  { %v11779_v10 = vpop.permute.xlu0 %3991  ;;  %v3906_v25 = vpop.permute.xlu1 %3905 }
 0x5e5   :  { %v4139_v39 = vcombine.low %v3906_v25, %v3912_v2  ;;  %v4155_v2 = vcombine.low %v11757_v38, %v3924_v36 }
 0x5e6   :  { %6511 = vrot.lane.b32.xlu0 %v10877_v13, %s8370_s17  ;;  %4080 = vrot.lane.b32.xlu1 %v11557_v53, %s8377_s14  ;;  %v8326_v13 = vld [vmem:[%s12851_s0 + $0xc4] sm:$0xf] }
 0x5e7   :  { %v4146_v25 = vrot.slane %v4139_v39, %v13382_v18  ;;  %v4162_v38 = vrot.slane %v4155_v2, %v13382_v18  ;;  %v13386_v2 = vld [vmem:[#allocation47_spill] sm:$0xff] }
 0x5e8   :  { %v11785_v42 = vpop.permute.xlu0 %3997  ;;  %v3909_v24 = vpop.permute.xlu1 %3908 }
 0x5ea   :  { %6579 = vrot.lane.b32.xlu0 %v10062_v54, %s8371_s19  ;;  %4086 = vrot.lane.b32.xlu1 %v11557_v53, %s8379_s22  ;;  %v5773_v54 = vrot.slane %v8326_v13, 5  ;;  %v8327_v13 = vld [vmem:[%s12851_s0 + $0xc0] sm:$0xf] }
 0x5eb   :  { %v7837_v47 = vrot.slane %v8327_v13, 9 }
 0x5ec   :  { %v11791_v1 = vpop.permute.xlu0 %4003  ;;  %v3915_v43 = vpop.permute.xlu1 %3914  ;;  %v5775_v17 = vrot.slane %v5773_v54, 4 }
 0x5ed   :  { %v4147_v21 = vcombine.low %v3909_v24, %v3915_v43  ;;  %v5776_v43 = vrot.slane %v8328_v57, 5  ;;  %v5774_v36 = vsel %vm9243_vm6, %v7837_v47, %v5773_v54  ;;  %v11851_v47 = vld [vmem:[%s12851_s0 + $0xd0] sm:$0xf] }
 0x5ee   :  { %6581 = vrot.lane.b32.xlu0 %v13199_v19, %s8371_s19  ;;  %6677 = vrot.lane.b32.xlu1 %v10750_v50, %s8372_s20  ;;  %v4120_v19 = vrot.slane %v4113_v55, %v13382_v18  ;;  %v13383_v50 = vld [vmem:[#allocation57_spill] sm:$0xff]  ;;  %v4096_v55 = vrot.slane %v4089_v37, %v13382_v18  ;;  %v13385_v37 = vld [vmem:[#allocation39_spill] sm:$0xff]  ;;  %v5799_v57 = vshrl.u32 %v11851_v47, 16 }
 0x5ef   :  { %v4154_v23 = vrot.slane %v4147_v21, %v13382_v18  ;;  %v5777_v21 = vsel %vm9243_vm6, %v5775_v17, %v5776_v43  ;;  %v5795_v17 = vshll.u32 %v11851_v47, 16 }
 0x5f0   :  { %v11801_v11 = vpop.permute.xlu0 %4009  ;;  %v3921_v44 = vpop.permute.xlu1 %3920  ;;  %v5801_v27 = vrot.slane %v5799_v57, 4 }
 0x5f1   :  { %v4171_v39 = vcombine.low %v4146_v25, %v4154_v23 }
 0x5f2   :  { %6649 = vrot.lane.b32.xlu0 %v10623_v45, %s8372_s20  ;;  %6679 = vrot.lane.b32.xlu1 %v13383_v50, %s8372_s20  ;;  %v4112_v45 = vrot.slane %v4105_v16, %v13382_v18  ;;  %v4121_v16 = vcombine.low %v4096_v55, %v4104_v20 }
 0x5f4   :  { %v11820_v51 = vpop.permute.xlu0 %4015  ;;  %v3927_v24 = vpop.permute.xlu1 %3926  ;;  %v4129_v60 = vcombine.low %v4112_v45, %v4120_v19  ;;  %v11844_v19 = vld [vmem:[%s12851_s0 + $0xcc] sm:$0xf]  ;;  %v11860_v45 = vcombine.low %v5774_v36, %v5777_v21  ;;  %v4128_v23 = vrot.slane %v4121_v16, %v11825_v52 }
 0x5f5   :  { %v4163_v13 = vcombine.low %v3921_v44, %v3927_v24  ;;  %v5786_v54 = vshrl.u32 %v11844_v19, 16  ;;  %v4178_v24 = vrot.slane %v4171_v39, %v11825_v52  ;;  %v13387_v36 = vld [vmem:[#allocation90_spill] sm:$0xff] }
 0x5f6   :  { %6651 = vrot.lane.b32.xlu0 %v13385_v37, %s8372_s20  ;;  %6471 = vrot.lane.b32.xlu1 %v13383_v50, %s8369_s16  ;;  %v5789_v50 = vshll.u32 %v11844_v19, 16  ;;  %v4136_v43 = vrot.slane %v4129_v60, %v11825_v52 }
 0x5f7   :  { %v4170_v44 = vrot.slane %v4163_v13, %v13382_v18  ;;  %v5788_v60 = vrot.slane %v5786_v54, 4 }
 0x5f8   :  { %v11837_v49 = vpop.permute.xlu1 %3976  ;;  %v11839_v48 = vpop.permute.xlu0 %3930  ;;  %v4138_v56 = vcombine.high %v4128_v23, %v4136_v43 }
 0x5f9   :  { %v4179_v55 = vcombine.low %v4162_v38, %v4170_v44  ;;  %v5791_v38 = vrot.slane %v5789_v50, 5  ;;  %v5797_v44 = vrot.slane %v5795_v17, 5  ;;  %v8331_v17 = vld [vmem:[%s12851_s0 + $0xd4] sm:$0x1] }
 0x5fa   :  { %6443 = vrot.lane.b32.xlu0 %v13385_v37, %s8369_s16  ;;  %6473 = vrot.lane.b32.xlu1 %v13386_v2, %s8369_s16  ;;  %v4137_v37 = vcombine.low %v4128_v23, %v4136_v43  ;;  %v5805_v57 = vshll.u32 %v8331_v17, 16  ;;  %v13388_v43 = vld [vmem:[#allocation80_spill] sm:$0xff] }
 0x5fb   :  { %v4186_v20 = vrot.slane %v4179_v55, %v11825_v52  ;;  %v5792_v54 = vor.u32 %v5791_v38, %v5788_v60  ;;  %v5802_v50 = vor.u32 %v5801_v27, %v5797_v44  ;;  %v13390_v60 = vld [vmem:[#allocation79_spill] sm:$0xff] }
 0x5fc   :  { %v11865_v25 = vpop.permute.xlu1 %3982  ;;  %v11867_v13 = vpop.permute.xlu0 %3936 }
 0x5fd   :  { %v4187_v9 = vcombine.low %v4178_v24, %v4186_v20  ;;  %v4188_v32 = vcombine.high %v4178_v24, %v4186_v20  ;;  %v5793_v23 = vrot.slane %v5792_v54, 4  ;;  %v5803_v24 = vrot.slane %v5802_v50, 4  ;;  %v13392_v54 = vld [vmem:[#allocation96_spill] sm:$0xff]  ;;  %v13393_v50 = vld [vmem:[#allocation30_spill] sm:$0xff] }
 0x5fe   :  { %6445 = vrot.lane.b32.xlu0 %v11860_v45, %s8369_s16  ;;  %6541 = vrot.lane.b32.xlu1 %v13387_v36, %s8370_s17  ;;  %v5807_v20 = vrot.slane %v5805_v57, 5 }
 0x5ff   :  { %v4539_v21 = vpack.c.bf16 %v4187_v9, %v4137_v37  ;;  %v4544_v16 = vpack.c.bf16 %v4188_v32, %v4138_v56  ;;  %v13389_v9 = vld [vmem:[#allocation54_spill] sm:$0xff]  ;;  %v7943_v56 = vcombine.low %v11844_v19, %v11851_v47 }
 0x600   :  { %v11873_v39 = vpop.permute.xlu1 %3988  ;;  %v11875_v55 = vpop.permute.xlu0 %3942 }
 0x601   :  { %8051 = vmatprep.subr.bf16.mxu0 %v4539_v21  ;;  %8093 = vmatprep.subr.bf16.mxu1 %v4544_v16 }
 0x602   :  { %8052 = vmatpush3.bf16.msra.mxu0 %v4539_v21  ;;  %8094 = vmatpush3.bf16.msra.mxu1 %v4544_v16  ;;  %v5798_v16 = vsel %vm8453_vm2, %v5793_v23, %v5797_v44  ;;  %v7839_v23 = vrot.slane %v11844_v19, 9 }
 0x603   :  { %6513 = vrot.lane.b32.xlu0 %v13388_v43, %s8370_s17  ;;  %6543 = vrot.lane.b32.xlu1 %v13389_v9, %s8370_s17  ;;  %v5808_v43 = vsel %vm8453_vm2, %v5803_v24, %v5807_v20  ;;  %v5841_v9 = vrot.slane %v11851_v47, 5  ;;  %v5844_v47 = vrot.slane %v8331_v17, 5  ;;  %v8333_v20 = vld [vmem:[%s12851_s0 + $0x198] sm:$0xf] }
 0x604   :  { %v11886_v32 = vpop.permute.xlu1 %3994  ;;  %v11888_v27 = vpop.permute.xlu0 %3948  ;;  %v7945_v57 = vcombine.low %v5798_v16, %v5808_v43  ;;  %v7838_v16 = vrot.slane %v8333_v20, 9 }
 0x605   :  { %v5843_v24 = vrot.slane %v5841_v9, 4  ;;  %v5842_v17 = vsel %vm9243_vm6, %v7839_v23, %v5841_v9  ;;  %v8335_v9 = vld [vmem:[%s12851_s0 + $0x1a4] sm:$0xf] }
 0x606   :  { %v5810_v23 = vshrl.u32 %v8335_v9, 16 }
 0x607   :  { %6515 = vrot.lane.b32.xlu0 %v7943_v56, %s8370_s17  ;;  %6611 = vrot.lane.b32.xlu1 %v13390_v60, %s8371_s19  ;;  %v8332_v56 = vld [vmem:[%s12851_s0 + $0x19c] sm:$0xf] }
 0x608   :  { %v11893_v38 = vpop.permute.xlu1 %4000  ;;  %v11895_v37 = vpop.permute.xlu0 %3954  ;;  %v5780_v60 = vrot.slane %v8332_v56, 5 }
 0x60a   :  { %v5782_v43 = vrot.slane %v5780_v60, 4 }
 0x60b   :  { %6583 = vrot.lane.b32.xlu0 %v13392_v54, %s8371_s19  ;;  %6613 = vrot.lane.b32.xlu1 %v13393_v50, %s8371_s19  ;;  %v8334_v54 = vld [vmem:[%s12851_s0 + $0x1a0] sm:$0x1] }
 0x60c   :  { %v11909_v36 = vpop.permute.xlu1 %4006  ;;  %v11911_v44 = vpop.permute.xlu0 %3960  ;;  %v5783_v50 = vrot.slane %v8334_v54, 5  ;;  %v5781_v54 = vsel %vm9243_vm6, %v7838_v16, %v5780_v60 }
 0x60e   :  { %v5784_v12 = vsel %vm9243_vm6, %v5782_v43, %v5783_v50  ;;  %v5812_v50 = vrot.slane %v5810_v23, 4 }
 0x60f   :  { %6585 = vrot.lane.b32.xlu0 %v7945_v57, %s8371_s19  ;;  %6681 = vrot.lane.b32.xlu1 %v13386_v2, %s8372_s20  ;;  %v5845_v2 = vsel %vm9243_vm6, %v5843_v24, %v5844_v47  ;;  %v13394_v57 = vld [vmem:[#allocation61_spill] sm:$0xff]  ;;  %v5813_v24 = vshll.u32 %v8335_v9, 16  ;;  %v11950_v60 = vcombine.low %v5781_v54, %v5784_v12  ;;  %v8337_v12 = vld [vmem:[%s12851_s0 + $0x1ac] sm:$0x1]  ;;  %v13395_v54 = vld [vmem:[#allocation92_spill] sm:$0xff] }
 0x610   :  { %v11923_v56 = vpop.permute.xlu1 %4012  ;;  %v11925_v19 = vpop.permute.xlu0 %3966  ;;  %v7947_v20 = vcombine.low %v5842_v17, %v5845_v2  ;;  %v5851_v14 = vrot.slane %v8337_v12, 5 }
 0x611   :  { %v5815_v2 = vrot.slane %v5813_v24, 5 }
 0x613   :  { %6653 = vrot.lane.b32.xlu0 %v11860_v45, %s8372_s20  ;;  %6683 = vrot.lane.b32.xlu1 %v13394_v57, %s8372_s20  ;;  %v8336_v45 = vld [vmem:[%s12851_s0 + $0x1a8] sm:$0xf]  ;;  %v5816_v59 = vor.u32 %v5815_v2, %v5812_v50  ;;  %s8381_s0 = smov [#allocation2]  }
 0x614   :  { %v4019_v62 = vpop.permute.xlu1 %4018  ;;  %v11939_v31 = vpop.permute.xlu0 %3972  ;;  %v5819_v47 = vshll.u32 %v8336_v45, 16  ;;  %v5823_v17 = vshrl.u32 %v8336_v45, 16  ;;  %v7944_v23 = vcombine.low %v8335_v9, %v8336_v45  ;;  %v5848_v3 = vrot.slane %v8336_v45, 5 }
 0x615   :  { %v4363_v45 = vcombine.low %v11923_v56, %v4019_v62 }
 0x616   :  { %v5821_v5 = vrot.slane %v5819_v47, 5  ;;  %v5825_v34 = vrot.slane %v5823_v17, 4  ;;  %v5817_v17 = vrot.slane %v5816_v59, 4  ;;  %v5850_v15 = vrot.slane %v5848_v3, 4 }
 0x617   :  { %6655 = vrot.lane.b32.xlu0 %v7947_v20, %s8372_s20  ;;  %6475 = vrot.lane.b32.xlu1 %v13394_v57, %s8369_s16  ;;  %v5829_v57 = vshll.u32 %v8337_v12, 16  ;;  %v4370_v46 = vrot.slane %v4363_v45, %v13382_v18 }
 0x618   :  { %v3934_v16 = vpop.permute.xlu1 %3933  ;;  %v11952_v43 = vpop.permute.xlu0 %4022  ;;  %v5826_v20 = vor.u32 %v5825_v34, %v5821_v5  ;;  %v5822_v2 = vsel %vm8453_vm2, %v5817_v17, %v5821_v5  ;;  %v4355_v5 = vcombine.low %v11801_v11, %v11820_v51  ;;  %v4339_v11 = vcombine.low %v11785_v42, %v11791_v1 }
 0x619   :  { %v5831_v28 = vrot.slane %v5829_v57, 5  ;;  %v4297_v51 = vcombine.low %v11837_v49, %v11865_v25 }
 0x61a   :  { %v5827_v30 = vrot.slane %v5826_v20, 4  ;;  %v4362_v42 = vrot.slane %v4355_v5, %v13382_v18 }
 0x61b   :  { %6477 = vrot.lane.b32.xlu1 %v11950_v60, %s8369_s16  ;;  %s7779_s16 = sshll.u32 %s8381_s0, 4  ;;  %s7780_s16 = int_to_ptr.vmem [resolvable:$true] %s7779_s16 }
 0x61c   :  { %v3940_v40 = vpop.permute.xlu1 %3939  ;;  %v11956_v6 = vpop.permute.xlu0 %4028  ;;  %v5832_v63 = vsel %vm8453_vm2, %v5827_v30, %v5831_v28  ;;  %v4313_v28 = vcombine.low %v11873_v39, %v11886_v32  ;;  %v4347_v30 = vcombine.low %v11893_v38, %v11909_v36  ;;  %v4247_v36 = vcombine.low %v11895_v37, %v11911_v44  ;;  %p8343_p1 = scmp.lt.s32.totalorder %s7780_s16, %s7780_s16 }
 0x61d   :  { %v7946_v59 = vcombine.low %v5822_v2, %v5832_v63  ;;  %v4213_v63 = vcombine.low %v11875_v55, %v11888_v27  ;;  %v4379_v32 = vcombine.low %v4362_v42, %v4370_v46 }
 0x61e   :  { %v4320_v1 = vrot.slane %v4313_v28, %v13382_v18  ;;  %v4354_v49 = vrot.slane %v4347_v30, %v13382_v18 }
 0x61f   :  { %6545 = vrot.lane.b32.xlu1 %v13395_v54, %s8370_s17  ;;  %v7840_v54 = vrot.slane %v8335_v9, 9  ;;  %v4220_v25 = vrot.slane %v4213_v63, %v13382_v18 }
 0x620   :  { %v3946_v24 = vpop.permute.xlu1 %3945  ;;  %v11963_v47 = vpop.permute.xlu0 %4034 }
 0x621   :  { %v5849_v29 = vsel %vm9243_vm6, %v7840_v54, %v5848_v3  ;;  %v4305_v3 = vcombine.low %v11773_v8, %v11779_v10  ;;  %v4289_v8 = vcombine.low %v11543_v41, %v11767_v0  ;;  %v4346_v41 = vrot.slane %v4339_v11, %v13382_v18 }
 0x623   :  { %6547 = vrot.lane.b32.xlu1 %v7944_v23, %s8370_s17  ;;  %v4205_v23 = vcombine.low %v3940_v40, %v3946_v24  ;;  %v4189_v40 = vcombine.low %v11551_v4, %v3934_v16  ;;  %v4197_v4 = vcombine.low %v11839_v48, %v11867_v13  ;;  %v4263_v48 = vcombine.low %v11925_v19, %v11939_v31  ;;  %s8338_s17 = scalar_lea.vmem %s7780_s16, 512 }
 0x624   :  { %v3952_v50 = vpop.permute.xlu1 %3951  ;;  %v11966_v34 = vpop.permute.xlu0 %4040  ;;  %v4312_v0 = vrot.slane %v4305_v3, %v13382_v18  ;;  %v4254_v31 = vrot.slane %v4247_v36, %v13382_v18  ;;  %v4296_v56 = vrot.slane %v4289_v8, %v13382_v18  ;;  %v4371_v9 = vcombine.low %v4346_v41, %v4354_v49  ;;  %p8339_p0 = scmp.ne.s32.totalorder %s7780_s16, %s8338_s17  ;;  %p8344_p2 = scmp.lt.s32.totalorder %s8338_s17, %s8338_s17 }
 0x625   :  { %v4212_v39 = vrot.slane %v4205_v23, %v13382_v18  ;;  %v4196_v13 = vrot.slane %v4189_v40, %v13382_v18  ;;  %v4204_v37 = vrot.slane %v4197_v4, %v13382_v18  ;;  %v4413_v41 = vcombine.low %v11963_v47, %v11966_v34 }
 0x626   :  { %v4329_v19 = vcombine.low %v4312_v0, %v4320_v1  ;;  %p8345_p3 = por %p8344_p2, %p8343_p1 }
 0x627   :  { %6615 = vrot.lane.b32.xlu1 %v13396_v33, %s8371_s19  ;;  %v5852_v33 = vsel %vm9243_vm6, %v5850_v15, %v5851_v14  ;;  %v4229_v21 = vcombine.low %v4212_v39, %v4220_v25  ;;  %v4221_v16 = vcombine.low %v4196_v13, %v4204_v37 }
 0x628   :  { %v3958_v20 = vpop.permute.xlu1 %3957  ;;  %v11975_v57 = vpop.permute.xlu0 %4046  ;;  %v7948_v10 = vcombine.low %v5849_v29, %v5852_v33  ;;  %v4304_v29 = vrot.slane %v4297_v51, %v13382_v18  ;;  %v4336_v23 = vrot.slane %v4329_v19, %v11825_v52  ;;  %p8346_p4 = pnand %p8345_p3, %p8339_p0 }
 0x629   :  { %v4239_v62 = vcombine.low %v3952_v50, %v3958_v20  ;;  %v4386_v50 = vrot.slane %v4379_v32, %v11825_v52  ;;  %v4378_v20 = vrot.slane %v4371_v9, %v11825_v52  ;;  %v4228_v5 = vrot.slane %v4221_v16, %v11825_v52 }
 0x62a   :  { %v4321_v17 = vcombine.low %v4296_v56, %v4304_v29  ;;  %v4420_v56 = vrot.slane %v4413_v41, %v13382_v18  ;;  %v13403_v41 = vld [vmem:[#allocation97_spill] sm:$0xff] }
 0x62b   :  { %6617 = vrot.lane.b32.xlu1 %v7946_v59, %s8371_s19  ;;  %v4246_v55 = vrot.slane %v4239_v62, %v13382_v18  ;;  %v4236_v59 = vrot.slane %v4229_v21, %v11825_v52  ;;  %v4387_v62 = vcombine.low %v4378_v20, %v4386_v50  ;;  %v4388_v3 = vcombine.high %v4378_v20, %v4386_v50 }
 0x62c   :  { %v3964_v14 = vpop.permute.xlu1 %3963  ;;  %v11998_v15 = vpop.permute.xlu0 %4052  ;;  %v4328_v33 = vrot.slane %v4321_v17, %v11825_v52 }
 0x62d   :  { %v4271_v12 = vcombine.low %v4246_v55, %v4254_v31  ;;  %v4237_v11 = vcombine.low %v4228_v5, %v4236_v59  ;;  %v4238_v46 = vcombine.high %v4228_v5, %v4236_v59  ;;  %v4397_v31 = vcombine.low %v11952_v43, %v11956_v6 }
 0x62e   :  { %v4337_v39 = vcombine.low %v4328_v33, %v4336_v23  ;;  %v4447_v21 = vcombine.low %v11975_v57, %v11998_v15 }
 0x62f   :  { %6685 = vrot.lane.b32.xlu1 %v11950_v60, %s8372_s20  ;;  %v4270_v60 = vrot.slane %v4263_v48, %v13382_v18  ;;  %v4278_v28 = vrot.slane %v4271_v12, %v11825_v52 }
 0x630   :  { %v3970_v27 = vpop.permute.xlu1 %3969  ;;  %v12020_v38 = vpop.permute.xlu0 %4058  ;;  %v4541_v1 = vpack.c.bf16 %v4387_v62, %v4337_v39  ;;  %v4454_v6 = vrot.slane %v4447_v21, %v13382_v18  ;;  %v13398_v62 = vld [vmem:[#allocation95_spill] sm:$0xff] }
 0x631   :  { %v4255_v44 = vcombine.low %v3964_v14, %v3970_v27  ;;  %v13399_v39 = vld [vmem:[#allocation87_spill] sm:$0xff] }
 0x633   :  { %v4262_v24 = vrot.slane %v4255_v44, %v13382_v18  ;;  %6687 = vrot.lane.b32.xlu1 %v7948_v10, %s8372_s20  ;;  %v4338_v10 = vcombine.high %v4328_v33, %v4336_v23 }
 0x634   :  { %v4026_v2 = vpop.permute.xlu1 %4025  ;;  %v4065_v54 = vpop.permute.xlu0 %4064 }
 0x635   :  { %v4279_v45 = vcombine.low %v4262_v24, %v4270_v60  ;;  %v4546_v49 = vpack.c.bf16 %v4388_v3, %v4338_v10  ;;  %v4389_v29 = vcombine.low %v11545_v61, %v4026_v2  ;;  %v4463_v47 = vcombine.low %v12020_v38, %v4065_v54 }
 0x636   :  { %v4404_v60 = vrot.slane %v4397_v31, %v13382_v18 }
 0x637   :  { %v4286_v30 = vrot.slane %v4279_v45, %v11825_v52  ;;  %v4396_v19 = vrot.slane %v4389_v29, %v13382_v18  ;;  %v4470_v15 = vrot.slane %v4463_v47, %v13382_v18  ;;  %v13404_v29 = vld [vmem:[#allocation51_spill] sm:$0xff]  ;;  %v13409_v47 = vld [vmem:[#allocation101_spill] sm:$0xff] }
 0x638   :  { %v4032_v63 = vpop.permute.xlu1 %4031  ;;  %v12036_v40 = vpop.permute.xlu0 %4071 }
 0x639   :  { %v4287_v51 = vcombine.low %v4278_v28, %v4286_v30  ;;  %v4288_v14 = vcombine.high %v4278_v28, %v4286_v30  ;;  %v4421_v57 = vcombine.low %v4396_v19, %v4404_v60  ;;  %v13407_v19 = vld [vmem:[#allocation99_spill] sm:$0xff]  ;;  %v13411_v60 = vld [vmem:[#allocation106_spill] sm:$0xff] }
 0x63b   :  { %v4540_v4 = vpack.c.bf16 %v4287_v51, %v4237_v11  ;;  %v4545_v36 = vpack.c.bf16 %v4288_v14, %v4238_v46  ;;  %v4428_v54 = vrot.slane %v4421_v57, %v11825_v52 }
 0x63c   :  { %v4038_v8 = vpop.permute.xlu1 %4037  ;;  %v12038_v42 = vpop.permute.xlu0 %4077 }
 0x63d   :  { %8053 = vmatprep.subr.bf16.mxu0 %v4540_v4  ;;  %8095 = vmatprep.subr.bf16.mxu1 %v4545_v36  ;;  %v4405_v0 = vcombine.low %v4032_v63, %v4038_v8  ;;  %v13397_v63 = vld [vmem:[#allocation14_spill] sm:$0xff]  ;;  %v13400_v8 = vld [vmem:[#allocation59_spill] sm:$0xff] }
 0x63e   :  { %8054 = vmatpush3.bf16.msra.mxu0 %v4540_v4  ;;  %8096 = vmatpush3.bf16.msra.mxu1 %v4545_v36  ;;  %v6694_v3 = vsel %vm3286_vm3, %v13398_v62, %v13397_v63  ;;  %v4489_v36 = vcombine.low %v11557_v53, %v12036_v40  ;;  %v13420_v63 = vld [vmem:[#allocation91_spill] sm:$0xff] }
 0x63f   :  { %8055 = vmatprep.subr.bf16.mxu0 %v4541_v1  ;;  %8097 = vmatprep.subr.bf16.mxu1 %v4546_v49  ;;  %v4412_v44 = vrot.slane %v4405_v0, %v13382_v18  ;;  %v6789_v10 = vsel %vm6785_vm14, %v6694_v3, %v13399_v39  ;;  %v13402_v0 = vld [vmem:[#allocation15_spill] sm:$0xff]  ;;  %v13421_v3 = vld [vmem:[#allocation133_spill] sm:$0xff] }
 0x640   :  { %v4044_v25 = vpop.permute.xlu1 %4043  ;;  %v12040_v48 = vpop.permute.xlu0 %4083  ;;  %v6700_v53 = vsel %vm3286_vm3, %v13403_v41, %v13402_v0  ;;  %v4496_v21 = vrot.slane %v4489_v36, %v13382_v18  ;;  %v13424_v36 = vld [vmem:[#allocation64_spill] sm:$0xff] }
 0x641   :  { %v4429_v43 = vcombine.low %v4412_v44, %v4420_v56  ;;  %v13406_v56 = vld [vmem:[#allocation40_spill] sm:$0xff] }
 0x642   :  { %8056 = vmatpush3.bf16.msra.mxu0 %v4541_v1  ;;  %8098 = vmatpush3.bf16.msra.mxu1 %v4546_v49  ;;  %v13401_v1 = vld [vmem:[#allocation62_spill] sm:$0xff] }
 0x643   :  { %v4436_v50 = vrot.slane %v4429_v43, %v11825_v52  ;;  %v6697_v49 = vsel %vm3286_vm3, %v13401_v1, %v13400_v8  ;;  %v13412_v43 = vld [vmem:[#allocation20_spill] sm:$0xff] }
 0x644   :  { %v4050_v13 = vpop.permute.xlu1 %4049  ;;  %v12042_v55 = vpop.permute.xlu0 %6645  ;;  %v13426_v1 = vld [vmem:[#allocation100_spill] sm:$0xff] }
 0x645   :  { %v4439_v32 = vcombine.low %v4044_v25, %v4050_v13  ;;  %v4437_v5 = vcombine.low %v4428_v54, %v4436_v50  ;;  %v4438_v30 = vcombine.high %v4428_v54, %v4436_v50  ;;  %v4505_v25 = vcombine.low %v12038_v42, %v12040_v48  ;;  %v13408_v48 = vld [vmem:[#allocation44_spill] sm:$0xff]  ;;  %v13415_v54 = vld [vmem:[#allocation102_spill] sm:$0xff] }
 0x646   :  { %v6706_v42 = vsel %vm3286_vm3, %v13407_v19, %v13406_v56 }
 0x647   :  { %v4446_v61 = vrot.slane %v4439_v32, %v13382_v18  ;;  %v6854_v32 = vsel %vm6850_vm15, %v6789_v10, %v13404_v29  ;;  %v6797_v62 = vsel %vm6785_vm14, %v6706_v42, %v13420_v63  ;;  %v13425_v10 = vld [vmem:[#allocation98_spill] sm:$0xff]  ;;  %v13432_v42 = vld [vmem:[#allocation27_spill] sm:$0xff]  ;;  %v13443_v63 = vld [vmem:[#allocation141_spill] sm:$0xff] }
 0x648   :  { %v4056_v27 = vpop.permute.xlu1 %4055  ;;  %v12047_v37 = vpop.permute.xlu0 %6647 }
 0x649   :  { %v4471_v12 = vcombine.low %v4446_v61, %v4454_v6  ;;  %v6712_v61 = vsel %vm3286_vm3, %v13409_v47, %v13408_v48  ;;  %v13433_v48 = vld [vmem:[#allocation17_spill] sm:$0xff] }
 0x64b   :  { %v4478_v59 = vrot.slane %v4471_v12, %v11825_v52 }
 0x64c   :  { %v4062_v34 = vpop.permute.xlu1 %4061  ;;  %v12058_v9 = vpop.permute.xlu0 %6439 }
 0x64d   :  { %v4455_v16 = vcombine.low %v4056_v27, %v4062_v34  ;;  %v13405_v27 = vld [vmem:[#allocation126_spill] sm:$0xff]  ;;  %v13410_v34 = vld [vmem:[#allocation63_spill] sm:$0xff] }
 0x64e   :  { %v6791_v31 = vsel %vm6785_vm14, %v6697_v49, %v13405_v27  ;;  %v6742_v6 = vsel %vm3286_vm3, %v13411_v60, %v13410_v34  ;;  %v13434_v34 = vld [vmem:[#allocation110_spill] sm:$0xff]  ;;  %v13435_v60 = vld [vmem:[#allocation67_spill] sm:$0xff] }
 0x64f   :  { %v4462_v24 = vrot.slane %v4455_v16, %v13382_v18  ;;  %v6745_v16 = vsel %vm3286_vm3, %v10523_v58, %v13412_v43  ;;  %v6821_v8 = vsel %vm6785_vm14, %v6742_v6, %v13425_v10  ;;  %v6709_v6 = vsel %vm3286_vm3, %v13435_v60, %v13434_v34  ;;  %v13436_v43 = vld [vmem:[#allocation58_spill] sm:$0xff]  ;;  %v13457_v34 = vld [vmem:[#allocation188_spill] sm:$0xff] }
 0x650   :  { %v12064_v17 = vpop.permute.xlu0 %6441  ;;  %v4069_v38 = vpop.permute.xlu1 %4068  ;;  %v6886_v47 = vsel %vm6850_vm15, %v6821_v8, %v13433_v48  ;;  %v13455_v48 = vld [vmem:[#allocation172_spill] sm:$0xff] }
 0x651   :  { %v4479_v2 = vcombine.low %v4462_v24, %v4470_v15  ;;  %v13413_v15 = vld [vmem:[#allocation66_spill] sm:$0xff]  ;;  %v4512_v24 = vrot.slane %v4505_v25, %v13382_v18 }
 0x652   :  { %v6748_v12 = vsel %vm3286_vm3, %v10911_v26, %v13413_v15  ;;  %v13437_v15 = vld [vmem:[#allocation19_spill] sm:$0xff] }
 0x653   :  { %v4486_v45 = vrot.slane %v4479_v2, %v11825_v52  ;;  %v13414_v2 = vld [vmem:[#allocation48_spill] sm:$0xff]  ;;  %v6825_v49 = vsel %vm6785_vm14, %v6748_v12, %v13426_v1  ;;  %v13447_v1 = vld [vmem:[#allocation177_spill] sm:$0xff] }
 0x654   :  { %v12070_v20 = vpop.permute.xlu0 %6509  ;;  %v4075_v23 = vpop.permute.xlu1 %4074  ;;  %v6890_v12 = vsel %vm6850_vm15, %v6825_v49, %v13437_v15  ;;  %v13458_v15 = vld [vmem:[#allocation128_spill] sm:$0xff] }
 0x655   :  { %v4487_v28 = vcombine.low %v4478_v59, %v4486_v45  ;;  %v4488_v33 = vcombine.high %v4478_v59, %v4486_v45  ;;  %v4497_v11 = vcombine.low %v4069_v38, %v4075_v23  ;;  %v12117_v59 = vsel %vm3286_vm3, %v13415_v54, %v13414_v2  ;;  %v13416_v45 = vld [vmem:[#allocation69_spill] sm:$0xff]  ;;  %v13417_v23 = vld [vmem:[#allocation28_spill] sm:$0xff]  ;;  %v13440_v54 = vld [vmem:[#allocation183_spill] sm:$0xff] }
 0x656   :  { %v12122_v58 = vsel %vm3286_vm3, %v10923_v7, %v13416_v45  ;;  %v13422_v7 = vld [vmem:[#allocation93_spill] sm:$0xff] }
 0x657   :  { %v4542_v51 = vpack.c.bf16 %v4487_v28, %v4437_v5  ;;  %v4547_v46 = vpack.c.bf16 %v4488_v33, %v4438_v30  ;;  %v4504_v13 = vrot.slane %v4497_v11, %v13382_v18  ;;  %v6919_v5 = vsel %vm6915_vm0, %v6854_v32, %v13417_v23  ;;  %v13418_v28 = vld [vmem:[#allocation140_spill] sm:$0xff]  ;;  %v13419_v33 = vld [vmem:[#allocation89_spill] sm:$0xff]  ;;  %v13429_v32 = vld [vmem:[#allocation55_spill] sm:$0xff] }
 0x658   :  { %v12075_v14 = vpop.permute.xlu0 %6511  ;;  %v4081_v4 = vpop.permute.xlu1 %4080  ;;  %v6856_v26 = vsel %vm6850_vm15, %v6791_v31, %v13418_v28  ;;  %v6823_v11 = vsel %vm6785_vm14, %v6745_v16, %v13421_v3  ;;  %v6984_v25 = vsel %vm6980_vm1, %v6919_v5, %v11343_v22  ;;  %v13430_v31 = vld [vmem:[#allocation24_spill] sm:$0xff]  ;;  %v6862_v16 = vsel %vm6850_vm15, %v6797_v62, %v13436_v43  ;;  %v13441_v28 = vld [vmem:[#allocation134_spill] sm:$0xff] }
 0x659   :  { %8057 = vmatprep.subr.bf16.mxu0 %v4542_v51  ;;  %8099 = vmatprep.subr.bf16.mxu1 %v4547_v46  ;;  %v4521_v38 = vcombine.low %v4496_v21, %v4504_v13  ;;  %v13427_v13 = vld [vmem:[#allocation150_spill] sm:$0xff]  ;;  %v6888_v21 = vsel %vm6850_vm15, %v6823_v11, %v13430_v31 }
 0x65a   :  { %8058 = vmatpush3.bf16.msra.mxu0 %v4542_v51  ;;  %8100 = vmatpush3.bf16.msra.mxu1 %v4547_v46  ;;  %v12138_v46 = vsel %vm6785_vm14, %v6712_v61, %v13422_v7  ;;  %v6921_v0 = vsel %vm6915_vm0, %v6856_v26, %v13427_v13  ;;  %v13444_v3 = vld [vmem:[#allocation122_spill] sm:$0xff]  ;;  %v13445_v7 = vld [vmem:[#allocation175_spill] sm:$0xff] }
 0x65b   :  { %v4528_v41 = vrot.slane %v4521_v38, %v11825_v52  ;;  %v6951_v11 = vsel %vm6915_vm0, %v6886_v47, %v13444_v3  ;;  %v13452_v31 = vld [vmem:[#allocation178_spill] sm:$0xff] }
 0x65c   :  { %v4087_v40 = vpop.permute.xlu1 %4086  ;;  %v12107_v57 = vpop.permute.xlu0 %6579  ;;  %v13466_v3 = vld [vmem:[#allocation10_spill] sm:$0xff] }
 0x65d   :  { %v4513_v44 = vcombine.low %v4081_v4, %v4087_v40  ;;  %v13423_v4 = vld [vmem:[#allocation42_spill] sm:$0xff]  ;;  %v13428_v40 = vld [vmem:[#allocation49_spill] sm:$0xff] }
 0x65e   :  { %v6703_v39 = vsel %vm3286_vm3, %v13424_v36, %v13423_v4  ;;  %v6751_v29 = vsel %vm3286_vm3, %v10542_v35, %v13428_v40  ;;  %v13446_v36 = vld [vmem:[#allocation176_spill] sm:$0xff]  ;;  %v13450_v40 = vld [vmem:[#allocation165_spill] sm:$0xff] }
 0x65f   :  { %v4520_v50 = vrot.slane %v4513_v44, %v13382_v18  ;;  %v6793_v18 = vsel %vm6785_vm14, %v6700_v53, %v13419_v33  ;;  %v13431_v44 = vld [vmem:[#allocation171_spill] sm:$0xff]  ;;  %v6827_v26 = vsel %vm6785_vm14, %v6751_v29, %v13441_v28  ;;  %v13442_v33 = vld [vmem:[#allocation113_spill] sm:$0xff] }
 0x660   :  { %v12128_v30 = vpop.permute.xlu1 %6677  ;;  %v6858_v27 = vsel %vm6850_vm15, %v6793_v18, %v13429_v32  ;;  %v6986_v22 = vsel %vm6980_vm1, %v6921_v0, %v13431_v44  ;;  %v12162_v56 = vpop.permute.xlu0 %6581  ;;  %v13451_v32 = vld [vmem:[#allocation151_spill] sm:$0xff]  ;;  %v13453_v44 = vld [vmem:[#allocation184_spill] sm:$0xff] }
 0x661   :  { %v4529_v51 = vcombine.low %v4512_v24, %v4520_v50  ;;  %v13438_v24 = vld [vmem:[#allocation74_spill] sm:$0xff]  ;;  %v13439_v50 = vld [vmem:[#allocation157_spill] sm:$0xff]  ;;  %v7051_v45 = vsel %vm7045_vm4, %v6986_v22, %v13440_v54  ;;  %v6923_v18 = vsel %vm6915_vm0, %v6858_v27, %v13442_v33 }
 0x662   :  { %v7049_v38 = vsel %vm7045_vm4, %v6984_v25, %v13438_v24  ;;  %v6953_v2 = vsel %vm6915_vm0, %v6888_v21, %v13439_v50  ;;  %v13448_v25 = vld [vmem:[#allocation181_spill] sm:$0xff]  ;;  %v6988_v29 = vsel %vm6980_vm1, %v6923_v18, %v13450_v40  ;;  %v6799_v24 = vsel %vm6785_vm14, %v6709_v6, %v13458_v15 }
 0x663   :  { %v4536_v53 = vrot.slane %v4529_v51, %v11825_v52  ;;  %v6795_v52 = vsel %vm6785_vm14, %v6703_v39, %v13432_v42  ;;  %v7114_v4 = vsel %vm7110_vm8, %v7049_v38, %v13445_v7  ;;  %v7016_v39 = vsel %vm6980_vm1, %v6951_v11, %v13446_v36  ;;  %v13454_v42 = vld [vmem:[#allocation179_spill] sm:$0xff]  ;;  %v13459_v38 = vld [vmem:[#allocation192_spill] sm:$0xff]  ;;  %v13463_v33 = vld [vmem:[#allocation185_spill] sm:$0xff] }
 0x664   :  { %v12164_v19 = vpop.permute.xlu1 %6679  ;;  %v6860_v62 = vsel %vm6850_vm15, %v6795_v52, %v13443_v63  ;;  %v7081_v49 = vsel %vm7045_vm4, %v7016_v39, %v13447_v1  ;;  %v7018_v13 = vsel %vm6980_vm1, %v6953_v2, %v13448_v25  ;;  %v12205_v0 = vpop.permute.xlu0 %6649  ;;  %v7179_v52 = vsel %vm7175_vm9, %v7114_v4, %v13454_v42  ;;  %v13460_v2 = vld [vmem:[#allocation191_spill] sm:$0xff]  ;;  %v13464_v18 = vld [vmem:[#allocation73_spill] sm:$0xff]  ;;  %v13467_v11 = vld [vmem:[#allocation70_spill] sm:$0xff] }
 0x665   :  { %v4537_v35 = vcombine.low %v4528_v41, %v4536_v53  ;;  %v4538_v61 = vcombine.high %v4528_v41, %v4536_v53  ;;  %v13449_v41 = vld [vmem:[#allocation187_spill] sm:$0xff]  ;;  %v6925_v27 = vsel %vm6915_vm0, %v6860_v62, %v13451_v32  ;;  %v7146_v21 = vsel %vm7110_vm8, %v7081_v49, %v13452_v31  ;;  %v13468_v4 = vld [vmem:[#allocation117_spill] sm:$0xff]  ;;  %v13472_v1 = vld [vmem:[#allocation114_spill] sm:$0xff] }
 0x666   :  { %v7116_v53 = vsel %vm7110_vm8, %v7051_v45, %v13449_v41  ;;  %v7083_v22 = vsel %vm7045_vm4, %v7018_v13, %v13453_v44  ;;  %v6990_v47 = vsel %vm6980_vm1, %v6925_v27, %v13455_v48  ;;  %v13461_v45 = vld [vmem:[#allocation103_spill] sm:$0xff]  ;;  %v7053_v6 = vsel %vm7045_vm4, %v6988_v29, %v13463_v33  ;;  %v13473_v25 = vld [vmem:[#allocation142_spill] sm:$0xff]  ;;  %v13474_v41 = vld [vmem:[#allocation53_spill] sm:$0xff] }
 0x667   :  { %v4543_v23 = vpack.c.bf16 %v4537_v35, %v4537_v35  ;;  %v4548_v5 = vpack.c.bf16 %v4538_v61, %v4538_v61  ;;  %v13456_v35 = vld [vmem:[#allocation180_spill] sm:$0xff]  ;;  %v7148_v60 = vsel %vm7110_vm8, %v7083_v22, %v13457_v34  ;;  %v7181_v54 = vsel %vm7175_vm9, %v7116_v53, %v13460_v2  ;;  %v13465_v63 = vld [vmem:[#allocation43_spill] sm:$0xff]  ;;  %v13475_v32 = vld [vmem:[#allocation21_spill] sm:$0xff] }
 0x668   :  { %v12191_v51 = vpop.permute.xlu1 %6471  ;;  %v7211_v61 = vsel %vm7175_vm9, %v7146_v21, %v13456_v35  ;;  %v7213_v50 = vsel %vm7175_vm9, %v7148_v60, %v13459_v38  ;;  %v6760_v62 = vsel %vm3286_vm3, %v13465_v63, %v13464_v18  ;;  %v6715_v7 = vsel %vm3286_vm3, %v13467_v11, %v13466_v3  ;;  %v12264_v40 = vpop.permute.xlu0 %6651  ;;  %v13476_v31 = vld [vmem:[#allocation158_spill] sm:$0xff]  ;;  %v13479_v42 = vld [vmem:[#allocation135_spill] sm:$0xff]  ;;  %v13491_v11 = vld [vmem:[#allocation129_spill] sm:$0xff] }
 0x669   :  { %8135 = vmatprep.subr.msk.bf16.mxu0 %vm3660_vm13, %v4543_v23  ;;  %8136 = vmatprep.subr.msk.bf16.mxu1 %vm3660_vm13, %v4548_v5  ;;  %v7278_v10 = vsel %vm3660_vm13, %v4543_v23, 0  ;;  %v7544_v8 = vsel %vm3660_vm13, %v4548_v5, 0  ;;  %v6829_v23 = vsel %vm6785_vm14, %v12122_v58, %v13461_v45  ;;  %v13462_v5 = vld [vmem:[#allocation25_spill] sm:$0xff]  ;;  %v13469_v58 = vld [vmem:[#allocation83_spill] sm:$0xff]  ;;  %v6927_v49 = vsel %vm6915_vm0, %v6862_v16, %v13472_v1  ;;  %v13478_v16 = vld [vmem:[#allocation182_spill] sm:$0xff] }
 0x66a   :  { %8060 = vmatpush3.bf16.msra.mxu0 %v7278_v10  ;;  %8102 = vmatpush3.bf16.msra.mxu1 %v7544_v8  ;;  %v6892_v28 = vsel %vm6850_vm15, %v6827_v26, %v13462_v5  ;;  %v6757_v36 = vsel %vm3286_vm3, %v13469_v58, %v13468_v4  ;;  %v13470_v26 = vld [vmem:[#allocation196_spill] sm:$0xff]  ;;  %v6864_v13 = vsel %vm6850_vm15, %v6799_v24, %v13473_v25  ;;  %v13483_v60 = vld [vmem:[#allocation167_spill] sm:$0xff]  ;;  %v13495_v25 = vld [vmem:[#allocation29_spill] sm:$0xff] }
 0x66b   :  { %v7055_v39 = vsel %vm7045_vm4, %v6990_v47, %v13470_v26  ;;  %v13471_v10 = vld [vmem:[#allocation8_spill] sm:$0xff]  ;;  %v6955_v53 = vsel %vm6915_vm0, %v6890_v12, %v13474_v41  ;;  %v6894_v27 = vsel %vm6850_vm15, %v6829_v23, %v13475_v32  ;;  %v6957_v21 = vsel %vm6915_vm0, %v6892_v28, %v13476_v31  ;;  %v13480_v12 = vld [vmem:[#allocation195_spill] sm:$0xff]  ;;  %v13481_v47 = vld [vmem:[#allocation186_spill] sm:$0xff] }
 0x66c   :  { %v12225_v43 = vpop.permute.xlu1 %6473  ;;  %v6866_v8 = vsel %vm6850_vm15, %v12138_v46, %v13471_v10  ;;  %v13477_v46 = vld [vmem:[#allocation189_spill] sm:$0xff]  ;;  %v7020_v22 = vsel %vm6980_vm1, %v6955_v53, %v13478_v16  ;;  %v7022_v48 = vsel %vm6980_vm1, %v6957_v21, %v13480_v12  ;;  %v6992_v15 = vsel %vm6980_vm1, %v6927_v49, %v13483_v60  ;;  %v13484_v24 = vld [vmem:[#allocation152_spill] sm:$0xff]  ;;  %v13488_v28 = vld [vmem:[#allocation75_spill] sm:$0xff]  ;;  %v12317_v53 = vpop.permute.xlu0 %6443 }
 0x66d   :  { %8062 = vmatmul.mubr.msk.bf16.vlgmr.msra.gmra.mrb[8].mxu0 %vm7244_vm10, %v7179_v52  ;;  %8104 = vmatmul.mubr.msk.bf16.vlgmr.msra.gmra.mrb[8].mxu1 %vm7244_vm10, %v7211_v61  ;;  %v7118_v44 = vsel %vm7110_vm8, %v7053_v6, %v13477_v46  ;;  %v6831_v52 = vsel %vm6785_vm14, %v6757_v36, %v13479_v42  ;;  %v7085_v35 = vsel %vm7045_vm4, %v7020_v22, %v13481_v47  ;;  %v13482_v61 = vld [vmem:[#allocation200_spill] sm:$0xff]  ;;  %v13487_v23 = vld [vmem:[#allocation193_spill] sm:$0xff]  ;;  %v13489_v6 = vld [vmem:[#allocation194_spill] sm:$0xff] }
 0x66e   :  { %8065 = vmatprep.mubr.msk.bf16.mxu0 %vm7244_vm10, %v7181_v54  ;;  %8107 = vmatprep.mubr.msk.bf16.mxu1 %vm7244_vm10, %v7213_v50  ;;  %v7120_v34 = vsel %vm7110_vm8, %v7055_v39, %v13482_v61  ;;  %v6929_v38 = vsel %vm6915_vm0, %v6864_v13, %v13484_v24  ;;  %v13485_v50 = vld [vmem:[#allocation190_spill] sm:$0xff]  ;;  %v13486_v54 = vld [vmem:[#allocation199_spill] sm:$0xff]  ;;  %v7183_v5 = vsel %vm7175_vm9, %v7118_v44, %v13487_v23  ;;  %v13493_v39 = vld [vmem:[#allocation204_spill] sm:$0xff] }
 0x66f   :  { %v7150_v2 = vsel %vm7110_vm8, %v7085_v35, %v13485_v50  ;;  %v7087_v45 = vsel %vm7045_vm4, %v7022_v48, %v13486_v54  ;;  %v6994_v33 = vsel %vm6980_vm1, %v6929_v38, %v13488_v28  ;;  %v13490_v63 = vld [vmem:[#allocation203_spill] sm:$0xff]  ;;  %v6803_v4 = vsel %vm6785_vm14, %v6715_v7, %v13491_v11  ;;  %v13494_v1 = vld [vmem:[#allocation36_spill] sm:$0xff]  ;;  %v13496_v7 = vld [vmem:[#allocation198_spill] sm:$0xff] }
 0x670   :  { %v12266_v29 = vpop.permute.xlu1 %6541  ;;  %v7215_v18 = vsel %vm7175_vm9, %v7150_v2, %v13489_v6  ;;  %v7152_v3 = vsel %vm7110_vm8, %v7087_v45, %v13490_v63  ;;  %v13492_v58 = vld [vmem:[#allocation207_spill] sm:$0xff]  ;;  %v7185_v10 = vsel %vm7175_vm9, %v7120_v34, %v13493_v39  ;;  %v6805_v49 = vsel %vm6785_vm14, %v12117_v59, %v13494_v1  ;;  %v13497_v32 = vld [vmem:[#allocation78_spill] sm:$0xff]  ;;  %v13498_v31 = vld [vmem:[#allocation45_spill] sm:$0xff] }
 0x671   :  { %v7217_v36 = vsel %vm7175_vm9, %v7152_v3, %v13492_v58  ;;  %v6896_v13 = vsel %vm6850_vm15, %v6831_v52, %v13495_v25  ;;  %v7057_v41 = vsel %vm7045_vm4, %v6992_v15, %v13496_v7  ;;  %v6766_v21 = vsel %vm3286_vm3, %v13498_v31, %v13497_v32  ;;  %v13499_v46 = vld [vmem:[#allocation119_spill] sm:$0xff]  ;;  %v13500_v44 = vld [vmem:[#allocation85_spill] sm:$0xff]  ;;  %v13502_v42 = vld [vmem:[#allocation210_spill] sm:$0xff] }
 0x672   :  { %v6763_v59 = vsel %vm3286_vm3, %v13500_v44, %v13499_v46  ;;  %v13501_v16 = vld [vmem:[#allocation161_spill] sm:$0xff]  ;;  %v7059_v52 = vsel %vm7045_vm4, %v6994_v33, %v13502_v42  ;;  %v13503_v12 = vld [vmem:[#allocation68_spill] sm:$0xff]  ;;  %v13504_v47 = vld [vmem:[#allocation115_spill] sm:$0xff] }
 0x673   :  { %v6961_v22 = vsel %vm6915_vm0, %v6896_v13, %v13501_v16  ;;  %v6833_v48 = vsel %vm6785_vm14, %v6760_v62, %v13503_v12  ;;  %v6931_v35 = vsel %vm6915_vm0, %v6866_v8, %v13504_v47  ;;  %v13505_v61 = vld [vmem:[#allocation143_spill] sm:$0xff]  ;;  %v13506_v60 = vld [vmem:[#allocation124_spill] sm:$0xff]  ;;  %v13507_v24 = vld [vmem:[#allocation121_spill] sm:$0xff]  ;;  %v12374_v16 = vpop.permute.xlu0 %6445 }
 0x674   :  { %v6868_v34 = vsel %vm6850_vm15, %v6803_v4, %v13505_v61  ;;  %v6959_v15 = vsel %vm6915_vm0, %v6894_v27, %v13506_v60  ;;  %v13508_v38 = vld [vmem:[#allocation86_spill] sm:$0xff]  ;;  %v13509_v2 = vld [vmem:[#allocation9_spill] sm:$0xff]  ;;  %v13512_v28 = vld [vmem:[#allocation136_spill] sm:$0xff] }
 0x675   :  { %v12304_v26 = vpop.permute.xlu1 %6543  ;;  %8066 = vmatmul.mubr.msk.bf16.gmra.mrb[12].mxu0 %vm7244_vm10, %v7183_v5  ;;  %8108 = vmatmul.mubr.msk.bf16.gmra.mrb[12].mxu1 %vm7244_vm10, %v7215_v18  ;;  %v6769_v50 = vsel %vm3286_vm3, %v13508_v38, %v13507_v24  ;;  %v6870_v54 = vsel %vm6850_vm15, %v6805_v49, %v13509_v2  ;;  %v13510_v45 = vld [vmem:[#allocation202_spill] sm:$0xff]  ;;  %v13511_v62 = vld [vmem:[#allocation197_spill] sm:$0xff]  ;;  %v6835_v33 = vsel %vm6785_vm14, %v6763_v59, %v13512_v28  ;;  %v13514_v18 = vld [vmem:[#allocation208_spill] sm:$0xff] }
 0x676   :  { %8069 = vmatprep.mubr.msk.bf16.mxu0 %vm7244_vm10, %v7185_v10  ;;  %8111 = vmatprep.mubr.msk.bf16.mxu1 %vm7244_vm10, %v7217_v36  ;;  %v7122_v23 = vsel %vm7110_vm8, %v7057_v41, %v13510_v45  ;;  %v7024_v5 = vsel %vm6980_vm1, %v6959_v15, %v13511_v62  ;;  %v13513_v6 = vld [vmem:[#allocation201_spill] sm:$0xff]  ;;  %v7026_v63 = vsel %vm6980_vm1, %v6961_v22, %v13514_v18  ;;  %v13515_v3 = vld [vmem:[#allocation216_spill] sm:$0xff]  ;;  %v13520_v13 = vld [vmem:[#allocation206_spill] sm:$0xff] }
 0x677   :  { %v7089_v27 = vsel %vm7045_vm4, %v7024_v5, %v13513_v6  ;;  %v7124_v11 = vsel %vm7110_vm8, %v7059_v52, %v13515_v3  ;;  %v13516_v4 = vld [vmem:[#allocation169_spill] sm:$0xff]  ;;  %v7187_v7 = vsel %vm7175_vm9, %v7122_v23, %v13520_v13  ;;  %v13524_v22 = vld [vmem:[#allocation22_spill] sm:$0xff]  ;;  %v13528_v60 = vld [vmem:[#allocation72_spill] sm:$0xff] }
 0x678   :  { %v6996_v58 = vsel %vm6980_vm1, %v6931_v35, %v13516_v4  ;;  %v13517_v36 = vld [vmem:[#allocation153_spill] sm:$0xff]  ;;  %v6898_v42 = vsel %vm6850_vm15, %v6833_v48, %v13524_v22  ;;  %v13526_v35 = vld [vmem:[#allocation220_spill] sm:$0xff]  ;;  %v13529_v24 = vld [vmem:[#allocation146_spill] sm:$0xff]  ;;  %v12427_v22 = vpop.permute.xlu0 %6513 }
 0x679   :  { %v12348_v8 = vpop.permute.xlu1 %6611  ;;  %v6933_v39 = vsel %vm6915_vm0, %v6868_v34, %v13517_v36  ;;  %v13518_v10 = vld [vmem:[#allocation205_spill] sm:$0xff]  ;;  %v7189_v61 = vsel %vm7175_vm9, %v7124_v11, %v13526_v35  ;;  %v13527_v34 = vld [vmem:[#allocation111_spill] sm:$0xff]  ;;  %v6900_v38 = vsel %vm6850_vm15, %v6835_v33, %v13529_v24  ;;  %v13530_v48 = vld [vmem:[#allocation214_spill] sm:$0xff] }
 0x67a   :  { %v7154_v1 = vsel %vm7110_vm8, %v7089_v27, %v13518_v10  ;;  %v13519_v49 = vld [vmem:[#allocation213_spill] sm:$0xff]  ;;  %v6721_v15 = vsel %vm3286_vm3, %v13528_v60, %v13527_v34  ;;  %v7061_v2 = vsel %vm7045_vm4, %v6996_v58, %v13530_v48  ;;  %v13532_v62 = vld [vmem:[#allocation163_spill] sm:$0xff]  ;;  %v13533_v28 = vld [vmem:[#allocation226_spill] sm:$0xff] }
 0x67b   :  { %v7091_v25 = vsel %vm7045_vm4, %v7026_v63, %v13519_v49  ;;  %v13521_v41 = vld [vmem:[#allocation173_spill] sm:$0xff]  ;;  %v6965_v5 = vsel %vm6915_vm0, %v6900_v38, %v13532_v62  ;;  %v13534_v27 = vld [vmem:[#allocation52_spill] sm:$0xff]  ;;  %v13537_v3 = vld [vmem:[#allocation18_spill] sm:$0xff] }
 0x67c   :  { %v6998_v32 = vsel %vm6980_vm1, %v6933_v39, %v13521_v41  ;;  %v13522_v31 = vld [vmem:[#allocation209_spill] sm:$0xff]  ;;  %v13538_v4 = vld [vmem:[#allocation34_spill] sm:$0xff]  ;;  %v13550_v60 = vld [vmem:[#allocation219_spill] sm:$0xff] }
 0x67d   :  { %v7219_v46 = vsel %vm7175_vm9, %v7154_v1, %v13522_v31  ;;  %v13523_v44 = vld [vmem:[#allocation217_spill] sm:$0xff]  ;;  %v12380_v47 = vpop.permute.xlu1 %6613  ;;  %8070 = vmatmul.mubr.msk.bf16.gmra.mrb[16].mxu0 %vm7244_vm10, %v7187_v7  ;;  %v7063_v6 = vsel %vm7045_vm4, %v6998_v32, %v13533_v28  ;;  %v6935_v58 = vsel %vm6915_vm0, %v6870_v54, %v13538_v4  ;;  %v13541_v1 = vld [vmem:[#allocation130_spill] sm:$0xff]  ;;  %v13543_v7 = vld [vmem:[#allocation211_spill] sm:$0xff] }
 0x67e   :  { %v7156_v59 = vsel %vm7110_vm8, %v7091_v25, %v13523_v44  ;;  %v13525_v52 = vld [vmem:[#allocation221_spill] sm:$0xff]  ;;  %8112 = vmatmul.mubr.msk.bf16.gmra.mrb[16].mxu1 %vm7244_vm10, %v7219_v46  ;;  %8073 = vmatprep.mubr.msk.bf16.mxu0 %vm7244_vm10, %v7189_v61  ;;  %v6807_v49 = vsel %vm6785_vm14, %v6721_v15, %v13541_v1  ;;  %v13542_v25 = vld [vmem:[#allocation218_spill] sm:$0xff]  ;;  %v13544_v31 = vld [vmem:[#allocation147_spill] sm:$0xff] }
 0x67f   :  { %v7221_v12 = vsel %vm7175_vm9, %v7156_v59, %v13525_v52  ;;  %v13531_v45 = vld [vmem:[#allocation137_spill] sm:$0xff]  ;;  %v7126_v13 = vsel %vm7110_vm8, %v7061_v2, %v13542_v25  ;;  %v13545_v46 = vld [vmem:[#allocation215_spill] sm:$0xff]  ;;  %v13546_v59 = vld [vmem:[#allocation224_spill] sm:$0xff] }
 0x680   :  { %8115 = vmatprep.mubr.msk.bf16.mxu1 %vm7244_vm10, %v7221_v12  ;;  %v6839_v23 = vsel %vm6785_vm14, %v6769_v50, %v13531_v45  ;;  %v13535_v18 = vld [vmem:[#allocation65_spill] sm:$0xff]  ;;  %v13548_v12 = vld [vmem:[#allocation170_spill] sm:$0xff]  ;;  %v13549_v61 = vld [vmem:[#allocation164_spill] sm:$0xff] }
 0x681   :  { %v6724_v33 = vsel %vm3286_vm3, %v13535_v18, %v13534_v27  ;;  %v13536_v63 = vld [vmem:[#allocation81_spill] sm:$0xff]  ;;  %v12419_v32 = vpop.permute.xlu1 %6681  ;;  %v6904_v54 = vsel %vm6850_vm15, %v6839_v23, %v13544_v31  ;;  %v7000_v35 = vsel %vm6980_vm1, %v6935_v58, %v13548_v12  ;;  %v13551_v24 = vld [vmem:[#allocation227_spill] sm:$0xff]  ;;  %v13552_v48 = vld [vmem:[#allocation108_spill] sm:$0xff] }
 0x682   :  { %v6772_v11 = vsel %vm3286_vm3, %v13537_v3, %v13536_v63  ;;  %v13539_v36 = vld [vmem:[#allocation125_spill] sm:$0xff]  ;;  %v6969_v34 = vsel %vm6915_vm0, %v6904_v54, %v13549_v61  ;;  %v13553_v45 = vld [vmem:[#allocation222_spill] sm:$0xff]  ;;  %v13554_v62 = vld [vmem:[#allocation223_spill] sm:$0xff] }
 0x683   :  { %v6963_v50 = vsel %vm6915_vm0, %v6898_v42, %v13539_v36  ;;  %v13540_v39 = vld [vmem:[#allocation105_spill] sm:$0xff]  ;;  %v13547_v42 = vld [vmem:[#allocation230_spill] sm:$0xff]  ;;  %v6841_v2 = vsel %vm6785_vm14, %v6772_v11, %v13552_v48  ;;  %v7191_v23 = vsel %vm7175_vm9, %v7126_v13, %v13553_v45  ;;  %v13555_v28 = vld [vmem:[#allocation231_spill] sm:$0xff] }
 0x684   :  { %v6837_v10 = vsel %vm6785_vm14, %v6766_v21, %v13540_v39  ;;  %v7028_v41 = vsel %vm6980_vm1, %v6963_v50, %v13543_v7  ;;  %v7030_v21 = vsel %vm6980_vm1, %v6965_v5, %v13546_v59  ;;  %v7128_v52 = vsel %vm7110_vm8, %v7063_v6, %v13547_v42  ;;  %v13556_v27 = vld [vmem:[#allocation32_spill] sm:$0xff]  ;;  %v13557_v63 = vld [vmem:[#allocation235_spill] sm:$0xff]  ;;  %v13558_v11 = vld [vmem:[#allocation234_spill] sm:$0xff] }
 0x685   :  { %v7093_v44 = vsel %vm7045_vm4, %v7028_v41, %v13545_v46  ;;  %v7095_v38 = vsel %vm7045_vm4, %v7030_v21, %v13551_v24  ;;  %v6902_v18 = vsel %vm6850_vm15, %v6837_v10, %v13556_v27  ;;  %v12451_v4 = vpop.permute.xlu1 %6683  ;;  %8074 = vmatmul.mubr.msk.bf16.gmra.mrb[20].mxu0 %vm7244_vm10, %v7191_v23  ;;  %v7193_v58 = vsel %vm7175_vm9, %v7128_v52, %v13558_v11  ;;  %v13559_v36 = vld [vmem:[#allocation144_spill] sm:$0xff]  ;;  %v13561_v25 = vld [vmem:[#allocation238_spill] sm:$0xff]  ;;  %v13568_v42 = vld [vmem:[#allocation31_spill] sm:$0xff]  ;;  %v12483_v24 = vpop.permute.xlu0 %6515 }
 0x686   :  { %v7158_v15 = vsel %vm7110_vm8, %v7093_v44, %v13550_v60  ;;  %v7160_v6 = vsel %vm7110_vm8, %v7095_v38, %v13555_v28  ;;  %v6872_v50 = vsel %vm6850_vm15, %v6807_v49, %v13559_v36  ;;  %v13560_v39 = vld [vmem:[#allocation228_spill] sm:$0xff]  ;;  %v7034_v10 = vsel %vm6980_vm1, %v6969_v34, %v13561_v25  ;;  %8077 = vmatprep.mubr.msk.bf16.mxu0 %vm7244_vm10, %v7193_v58  ;;  %v13564_v31 = vld [vmem:[#allocation38_spill] sm:$0xff]  ;;  %v13572_v60 = vld [vmem:[#allocation127_spill] sm:$0xff] }
 0x687   :  { %v7223_v5 = vsel %vm7175_vm9, %v7158_v15, %v13554_v62  ;;  %v7225_v3 = vsel %vm7175_vm9, %v7160_v6, %v13557_v63  ;;  %v7065_v1 = vsel %vm7045_vm4, %v7000_v35, %v13560_v39  ;;  %v13562_v13 = vld [vmem:[#allocation56_spill] sm:$0xff]  ;;  %v6809_v54 = vsel %vm6785_vm14, %v6724_v33, %v13564_v31  ;;  %v13565_v46 = vld [vmem:[#allocation26_spill] sm:$0xff]  ;;  %v13570_v35 = vld [vmem:[#allocation35_spill] sm:$0xff] }
 0x688   :  { %8116 = vmatmul.mubr.msk.bf16.gmra.mrb[20].mxu1 %vm7244_vm10, %v7223_v5  ;;  %v13563_v7 = vld [vmem:[#allocation104_spill] sm:$0xff]  ;;  %v6906_v49 = vsel %vm6850_vm15, %v6841_v2, %v13565_v46  ;;  %v13566_v44 = vld [vmem:[#allocation82_spill] sm:$0xff]  ;;  %v6967_v15 = vsel %vm6915_vm0, %v6902_v18, %v13572_v60  ;;  %v13576_v62 = vld [vmem:[#allocation225_spill] sm:$0xff] }
 0x689   :  { %8119 = vmatprep.mubr.msk.bf16.mxu1 %vm7244_vm10, %v7225_v3  ;;  %v6730_v41 = vsel %vm3286_vm3, %v13563_v7, %v13562_v13  ;;  %v13567_v59 = vld [vmem:[#allocation50_spill] sm:$0xff]  ;;  %v13569_v52 = vld [vmem:[#allocation76_spill] sm:$0xff]  ;;  %v7032_v5 = vsel %vm6980_vm1, %v6967_v15, %v13576_v62  ;;  %v12493_v28 = vpop.permute.xlu1 %6475  ;;  %v13577_v6 = vld [vmem:[#allocation11_spill] sm:$0xff] }
 0x68a   :  { %v6778_v21 = vsel %vm3286_vm3, %v13567_v59, %v13566_v44  ;;  %v6727_v12 = vsel %vm3286_vm3, %v13569_v52, %v13568_v42  ;;  %v13571_v61 = vld [vmem:[#allocation88_spill] sm:$0xff]  ;;  %v13573_v33 = vld [vmem:[#allocation154_spill] sm:$0xff]  ;;  %v6874_v27 = vsel %vm6850_vm15, %v6809_v54, %v13577_v6  ;;  %v13578_v18 = vld [vmem:[#allocation159_spill] sm:$0xff] }
 0x68b   :  { %v6775_v34 = vsel %vm3286_vm3, %v13571_v61, %v13570_v35  ;;  %v6937_v38 = vsel %vm6915_vm0, %v6872_v50, %v13573_v33  ;;  %v13574_v48 = vld [vmem:[#allocation232_spill] sm:$0xff]  ;;  %v13575_v45 = vld [vmem:[#allocation242_spill] sm:$0xff]  ;;  %v6971_v63 = vsel %vm6915_vm0, %v6906_v49, %v13578_v18  ;;  %v13580_v58 = vld [vmem:[#allocation229_spill] sm:$0xff] }
 0x68c   :  { %v7130_v2 = vsel %vm7110_vm8, %v7065_v1, %v13574_v48  ;;  %v7099_v23 = vsel %vm7045_vm4, %v7034_v10, %v13575_v45  ;;  %v13579_v3 = vld [vmem:[#allocation174_spill] sm:$0xff]  ;;  %v7097_v36 = vsel %vm7045_vm4, %v7032_v5, %v13580_v58  ;;  %v13581_v50 = vld [vmem:[#allocation131_spill] sm:$0xff]  ;;  %v13583_v10 = vld [vmem:[#allocation233_spill] sm:$0xff]  ;;  %v6584_v45 = vpop.permute.xlu0 %6583 }
 0x68d   :  { %v7002_v11 = vsel %vm6980_vm1, %v6937_v38, %v13579_v3  ;;  %v6811_v39 = vsel %vm6785_vm14, %v6727_v12, %v13581_v50  ;;  %v13582_v1 = vld [vmem:[#allocation138_spill] sm:$0xff]  ;;  %v7162_v13 = vsel %vm7110_vm8, %v7097_v36, %v13583_v10  ;;  %v13584_v7 = vld [vmem:[#allocation241_spill] sm:$0xff]  ;;  %v13585_v54 = vld [vmem:[#allocation236_spill] sm:$0xff]  ;;  %v12525_v15 = vpop.permute.xlu1 %6477 }
 0x68e   :  { %v6843_v25 = vsel %vm6785_vm14, %v6775_v34, %v13582_v1  ;;  %v7067_v31 = vsel %vm7045_vm4, %v7002_v11, %v13584_v7  ;;  %v7195_v46 = vsel %vm7175_vm9, %v7130_v2, %v13585_v54  ;;  %v13586_v49 = vld [vmem:[#allocation246_spill] sm:$0xff]  ;;  %v13587_v59 = vld [vmem:[#allocation237_spill] sm:$0xff]  ;;  %v13589_v35 = vld [vmem:[#allocation240_spill] sm:$0xff] }
 0x68f   :  { %v7164_v44 = vsel %vm7110_vm8, %v7099_v23, %v13586_v49  ;;  %v7227_v42 = vsel %vm7175_vm9, %v7162_v13, %v13587_v59  ;;  %v13588_v52 = vld [vmem:[#allocation245_spill] sm:$0xff]  ;;  %v7036_v61 = vsel %vm6980_vm1, %v6971_v63, %v13589_v35  ;;  %8078 = vmatmul.mubr.msk.bf16.gmra.mrb[24].mxu0 %vm7244_vm10, %v7195_v46  ;;  %v13595_v6 = vld [vmem:[#allocation116_spill] sm:$0xff]  ;;  %v13599_v50 = vld [vmem:[#allocation155_spill] sm:$0xff] }
 0x690   :  { %v7132_v12 = vsel %vm7110_vm8, %v7067_v31, %v13588_v52  ;;  %v7229_v60 = vsel %vm7175_vm9, %v7164_v44, %v12128_v30  ;;  %8120 = vmatmul.mubr.msk.bf16.gmra.mrb[24].mxu1 %vm7244_vm10, %v7227_v42  ;;  %v13590_v33 = vld [vmem:[#allocation41_spill] sm:$0xff]  ;;  %v6939_v18 = vsel %vm6915_vm0, %v6874_v27, %v13595_v6  ;;  %v13596_v63 = vld [vmem:[#allocation148_spill] sm:$0xff]  ;;  %v13600_v1 = vld [vmem:[#allocation166_spill] sm:$0xff] }
 0x691   :  { %v7197_v34 = vsel %vm7175_vm9, %v7132_v12, %v12042_v55  ;;  %v6813_v38 = vsel %vm6785_vm14, %v6730_v41, %v13590_v33  ;;  %v13591_v48 = vld [vmem:[#allocation145_spill] sm:$0xff]  ;;  %8123 = vmatprep.mubr.msk.bf16.mxu1 %vm7244_vm10, %v7229_v60  ;;  %v13592_v55 = vld [vmem:[#allocation46_spill] sm:$0xff]  ;;  %v6908_v41 = vsel %vm6850_vm15, %v6843_v25, %v13596_v63  ;;  %v13597_v3 = vld [vmem:[#allocation244_spill] sm:$0xff]  ;;  %v6546_v7 = vpop.permute.xlu1 %6545  ;;  %v6586_v60 = vpop.permute.xlu0 %6585 }
 0x692   :  { %v6876_v2 = vsel %vm6850_vm15, %v6811_v39, %v13591_v48  ;;  %8081 = vmatprep.mubr.msk.bf16.mxu0 %vm7244_vm10, %v7197_v34  ;;  %v13593_v23 = vld [vmem:[#allocation77_spill] sm:$0xff]  ;;  %v7101_v11 = vsel %vm7045_vm4, %v7036_v61, %v13597_v3  ;;  %v13598_v58 = vld [vmem:[#allocation12_spill] sm:$0xff]  ;;  %v6973_v10 = vsel %vm6915_vm0, %v6908_v41, %v13600_v1  ;;  %v13601_v13 = vld [vmem:[#allocation239_spill] sm:$0xff] }
 0x693   :  { %v6733_v30 = vsel %vm3286_vm3, %v13593_v23, %v13592_v55  ;;  %v13594_v62 = vld [vmem:[#allocation109_spill] sm:$0xff]  ;;  %v6878_v36 = vsel %vm6850_vm15, %v6813_v38, %v13598_v58  ;;  %v6941_v39 = vsel %vm6915_vm0, %v6876_v2, %v13599_v50  ;;  %v13602_v27 = vld [vmem:[#allocation132_spill] sm:$0xff]  ;;  %v13603_v25 = vld [vmem:[#allocation243_spill] sm:$0xff]  ;;  %v7038_v49 = vsel %vm6980_vm1, %v6973_v10, %v12191_v51 }
 0x694   :  { %v6845_v5 = vsel %vm6785_vm14, %v6778_v21, %v13594_v62  ;;  %v7004_v21 = vsel %vm6980_vm1, %v6939_v18, %v13601_v13  ;;  %v6815_v31 = vsel %vm6785_vm14, %v6733_v30, %v13602_v27  ;;  %v7006_v46 = vsel %vm6980_vm1, %v6941_v39, %v12058_v9  ;;  %v13604_v44 = vld [vmem:[#allocation247_spill] sm:$0xff]  ;;  %v13605_v42 = vld [vmem:[#allocation248_spill] sm:$0xff]  ;;  %v13611_v55 = vld [vmem:[#allocation90_spill] sm:$0xff] }
 0x695   :  { %v7069_v54 = vsel %vm7045_vm4, %v7004_v21, %v13603_v25  ;;  %v7166_v59 = vsel %vm7110_vm8, %v7101_v11, %v13604_v44  ;;  %v7071_v12 = vsel %vm7045_vm4, %v7006_v46, %v12070_v20  ;;  %v7103_v35 = vsel %vm7045_vm4, %v7038_v49, %v12266_v29  ;;  %v13606_v33 = vld [vmem:[#allocation112_spill] sm:$0xff]  ;;  %v13613_v30 = vld [vmem:[#allocation54_spill] sm:$0xff]  ;;  %v13618_v10 = vld [vmem:[#allocation139_spill] sm:$0xff] }
 0x696   :  { %v7134_v52 = vsel %vm7110_vm8, %v7069_v54, %v13605_v42  ;;  %v7136_v9 = vsel %vm7110_vm8, %v7071_v12, %v12107_v57  ;;  %v7231_v51 = vsel %vm7175_vm9, %v7166_v59, %v12164_v19  ;;  %v7168_v34 = vsel %vm7110_vm8, %v7103_v35, %v12348_v8  ;;  %v13607_v57 = vld [vmem:[#allocation60_spill] sm:$0xff]  ;;  %v13608_v19 = vld [vmem:[#allocation71_spill] sm:$0xff]  ;;  %v13616_v41 = vld [vmem:[#allocation94_spill] sm:$0xff] }
 0x697   :  { %v7199_v61 = vsel %vm7175_vm9, %v7134_v52, %v12047_v37  ;;  %v6910_v38 = vsel %vm6850_vm15, %v6845_v5, %v13606_v33  ;;  %v7201_v20 = vsel %vm7175_vm9, %v7136_v9, %v12205_v0  ;;  %v7233_v29 = vsel %vm7175_vm9, %v7168_v34, %v12419_v32  ;;  %v6548_v37 = vpop.permute.xlu1 %6547  ;;  %v13609_v8 = vld [vmem:[#allocation23_spill] sm:$0xff]  ;;  %v13612_v23 = vld [vmem:[#allocation84_spill] sm:$0xff]  ;;  %v13614_v5 = vld [vmem:[#allocation118_spill] sm:$0xff] }
 0x698   :  { %8082 = vmatmul.mubr.msk.bf16.gmra.mrb[28].mxu0 %vm7244_vm10, %v7199_v61  ;;  %8124 = vmatmul.mubr.msk.bf16.gmra.mrb[28].mxu1 %vm7244_vm10, %v7231_v51  ;;  %v6736_v48 = vsel %vm3286_vm3, %v13608_v19, %v13607_v57  ;;  %v6880_v2 = vsel %vm6850_vm15, %v6815_v31, %v13609_v8  ;;  %v13610_v0 = vld [vmem:[#allocation123_spill] sm:$0xff]  ;;  %v6784_v62 = vsel %vm3286_vm3, %v13613_v30, %v13612_v23  ;;  %v13615_v18 = vld [vmem:[#allocation160_spill] sm:$0xff]  ;;  %v6654_v31 = vpop.permute.xlu0 %6653  ;;  %v13620_v49 = vld [vmem:[#allocation13_spill] sm:$0xff] }
 0x699   :  { %8085 = vmatprep.mubr.msk.bf16.mxu0 %vm7244_vm10, %v7201_v20  ;;  %8127 = vmatprep.mubr.msk.bf16.mxu1 %vm7244_vm10, %v7233_v29  ;;  %v6781_v32 = vsel %vm3286_vm3, %v13611_v55, %v13610_v0  ;;  %v6943_v6 = vsel %vm6915_vm0, %v6878_v36, %v13614_v5  ;;  %v6975_v63 = vsel %vm6915_vm0, %v6910_v38, %v13615_v18  ;;  %v13617_v11 = vld [vmem:[#allocation156_spill] sm:$0xff]  ;;  %v13621_v44 = vld [vmem:[#allocation149_spill] sm:$0xff]  ;;  %v13625_v38 = vld [vmem:[#allocation162_spill] sm:$0xff] }
 0x69a   :  { %v6817_v3 = vsel %vm6785_vm14, %v6736_v48, %v13616_v41  ;;  %v6945_v58 = vsel %vm6915_vm0, %v6880_v2, %v13617_v11  ;;  %v7008_v50 = vsel %vm6980_vm1, %v6943_v6, %v12064_v17  ;;  %v7040_v39 = vsel %vm6980_vm1, %v6975_v63, %v12225_v43  ;;  %v13619_v54 = vld [vmem:[#allocation16_spill] sm:$0xff]  ;;  %v13626_v2 = vld [vmem:[#allocation5_spill] sm:$0xff] }
 0x69b   :  { %v6616_v1 = vpop.permute.xlu1 %6615  ;;  %v6847_v13 = vsel %vm6785_vm14, %v6781_v32, %v13618_v10  ;;  %v7073_v36 = vsel %vm7045_vm4, %v7008_v50, %v12075_v14  ;;  %v7010_v21 = vsel %vm6980_vm1, %v6945_v58, %v12317_v53  ;;  %v7105_v27 = vsel %vm7045_vm4, %v7040_v39, %v12304_v26  ;;  %v13622_v42 = vld [vmem:[#allocation168_spill] sm:$0xff] }
 0x69c   :  { %v7138_v17 = vsel %vm7110_vm8, %v7073_v36, %v12162_v56  ;;  %v7075_v43 = vsel %vm7045_vm4, %v7010_v21, %v12427_v22  ;;  %v7170_v25 = vsel %vm7110_vm8, %v7105_v27, %v12380_v47  ;;  %v6849_v46 = vsel %vm6785_vm14, %v6784_v62, %v13619_v54  ;;  %v13624_v12 = vld [vmem:[#allocation120_spill] sm:$0xff]  ;;  %v6656_v51 = vpop.permute.xlu0 %6655 }
 0x69d   :  { %v7203_v14 = vsel %vm7175_vm9, %v7138_v17, %v12264_v40  ;;  %v7140_v53 = vsel %vm7110_vm8, %v7075_v43, %v6584_v45  ;;  %v7235_v26 = vsel %vm7175_vm9, %v7170_v25, %v12451_v4  ;;  %v6882_v56 = vsel %vm6850_vm15, %v6817_v3, %v13620_v49  ;;  %v13623_v45 = vld [vmem:[#allocation33_spill] sm:$0xff] }
 0x69e   :  { %v6912_v22 = vsel %vm6850_vm15, %v6847_v13, %v13621_v44  ;;  %v7205_v59 = vsel %vm7175_vm9, %v7140_v53, %v6654_v31  ;;  %v6914_v4 = vsel %vm6850_vm15, %v6849_v46, %v13623_v45  ;;  %v6947_v35 = vsel %vm6915_vm0, %v6882_v56, %v13624_v12 }
 0x69f   :  { %v6618_v47 = vpop.permute.xlu1 %6617  ;;  %v6977_v40 = vsel %vm6915_vm0, %v6912_v22, %v13622_v42  ;;  %v7012_v9 = vsel %vm6980_vm1, %v6947_v35, %v12374_v16  ;;  %v6979_v20 = vsel %vm6915_vm0, %v6914_v4, %v13625_v38  ;;  %v7509_v0 = vsub.s32 1, %v13626_v2 }
 0x6a0   :  { %8086 = vmatmul.mubr.msk.bf16.gmra.mrb[32].mxu0 %vm7244_vm10, %v7203_v14  ;;  %8128 = vmatmul.mubr.msk.bf16.gmra.mrb[32].mxu1 %vm7244_vm10, %v7235_v26  ;;  %v7042_v52 = vsel %vm6980_vm1, %v6977_v40, %v12493_v28  ;;  %v7077_v29 = vsel %vm7045_vm4, %v7012_v9, %v12483_v24 }
 0x6a1   :  { %8089 = vmatprep.mubr.msk.bf16.mxu0 %vm7244_vm10, %v7205_v59  ;;  %v7107_v61 = vsel %vm7045_vm4, %v7042_v52, %v6546_v7  ;;  %v7142_v57 = vsel %vm7110_vm8, %v7077_v29, %v6586_v60  ;;  %v7044_v7 = vsel %vm6980_vm1, %v6979_v20, %v12525_v15  ;;  %v7242_v60 = vsub.s32 0, %v13626_v2  ;;  %v13627_v15 = vld [vmem:[#allocation212_spill] sm:$0xff] }
 0x6a2   :  { %v7172_v34 = vsel %vm7110_vm8, %v7107_v61, %v6616_v1  ;;  %v7207_v16 = vsel %vm7175_vm9, %v7142_v57, %v6656_v51  ;;  %v7109_v19 = vsel %vm7045_vm4, %v7044_v7, %v6548_v37  ;;  %v12673_v32 = vrot.slane %v13627_v15, %v7509_v0 }
 0x6a3   :  { %v6686_v33 = vpop.permute.xlu1 %6685  ;;  %v7174_v48 = vsel %vm7110_vm8, %v7109_v19, %v6618_v47  ;;  %v12670_v55 = vrot.slane %v13627_v15, %v7242_v60 }
 0x6a4   :  { %v7237_v28 = vsel %vm7175_vm9, %v7172_v34, %v6686_v33 }
 0x6a5   :  { %8131 = vmatprep.mubr.msk.bf16.mxu1 %vm7244_vm10, %v7237_v28 }
 0x6a7   :  { %v6688_v8 = vpop.permute.xlu1 %6687 }
 0x6a8   :  { %8090 = vmatmul.mubr.msk.bf16.gmra.mrb[36].mxu0 %vm7244_vm10, %v7207_v16  ;;  %v7239_v24 = vsel %vm7175_vm9, %v7174_v48, %v6688_v8 }
 0x6a9   :  { %8132 = vmatmul.mubr.msk.bf16.gmra.mrb[36].mxu1 %vm7244_vm10, %v7239_v24 }
 0x740   :  { %v8063_v37 = vpop.f32.mrb[8].mxu0  ;;  %v8105_v23 = vpop.f32.mrb[8].mxu1 }
 0x741   :  { %v7323_v30 = vadd.f32 %v8063_v37, %v12670_v55  ;;  %v12677_v62 = vadd.f32 %v8105_v23, %v12673_v32  ;;  %v7314_v5 = vpop.f32.mrb[9].mxu0  ;;  %v7580_v6 = vpop.f32.mrb[9].mxu1 }
 0x742   :  { %v7315_v18 = vadd.f32 %v7314_v5, %v12670_v55  ;;  %v12681_v63 = vadd.f32 %v7580_v6, %v12673_v32  ;;  %v8064_v41 = vpop.f32.mrb[10].mxu0  ;;  %v8106_v3 = vpop.f32.mrb[10].mxu1 }
 0x743   :  { %v7326_v11 = vadd.f32 %v8064_v41, %v12670_v55  ;;  %v12685_v58 = vadd.f32 %v8106_v3, %v12673_v32  ;;  %v7317_v50 = vpop.f32.mrb[11].mxu0  ;;  %v7583_v39 = vpop.f32.mrb[11].mxu1 }
 0x744   :  { %v7318_v1 = vadd.f32 %v7317_v50, %v12670_v55  ;;  %v12689_v10 = vadd.f32 %v7583_v39, %v12673_v32  ;;  %7441 = vxpose.xlu0.b32.start [1/16] (narrow) %v7315_v18, 8 }
 0x748   :  { %v8067_v13 = vpop.f32.mrb[12].mxu0  ;;  %v8109_v36 = vpop.f32.mrb[12].mxu1  ;;  %7442 = vxpose.xlu0.b32.cont [2/16] (narrow) %v7318_v1, 8 }
 0x749   :  { %v7339_v21 = vadd.f32 %v8067_v13, %v12670_v55  ;;  %v12693_v27 = vadd.f32 %v8109_v36, %v12673_v32  ;;  %v7330_v31 = vpop.f32.mrb[13].mxu0  ;;  %v7596_v17 = vpop.f32.mrb[13].mxu1 }
 0x74a   :  { %v7331_v43 = vadd.f32 %v7330_v31, %v12670_v55  ;;  %v12697_v25 = vadd.f32 %v7596_v17, %v12673_v32  ;;  %v8068_v54 = vpop.f32.mrb[14].mxu0  ;;  %v8110_v46 = vpop.f32.mrb[14].mxu1 }
 0x74b   :  { %v7342_v14 = vadd.f32 %v8068_v54, %v12670_v55  ;;  %v12701_v53 = vadd.f32 %v8110_v46, %v12673_v32  ;;  %v7333_v26 = vpop.f32.mrb[15].mxu0  ;;  %v7599_v49 = vpop.f32.mrb[15].mxu1 }
 0x74c   :  { %v7334_v56 = vadd.f32 %v7333_v26, %v12670_v55  ;;  %v12705_v44 = vadd.f32 %v7599_v49, %v12673_v32  ;;  %7443 = vxpose.xlu0.b32.cont [3/16] (narrow) %v7323_v30, 8 }
 0x750   :  { %v8071_v22 = vpop.f32.mrb[16].mxu0  ;;  %7444 = vxpose.xlu0.b32.cont [4/16] (narrow) %v7326_v11, 8 }
 0x751   :  { %v8113_v59 = vpop.f32.mrb[16].mxu1  ;;  %v12708_v47 = vadd.f32 %v8071_v22, %v12670_v55  ;;  %v7346_v40 = vpop.f32.mrb[17].mxu0 }
 0x752   :  { %v12711_v42 = vadd.f32 %v8113_v59, %v12673_v32  ;;  %v7612_v45 = vpop.f32.mrb[17].mxu1  ;;  %v7347_v4 = vadd.f32 %v7346_v40, %v12670_v55  ;;  %v8072_v12 = vpop.f32.mrb[18].mxu0 }
 0x753   :  { %v12715_v52 = vadd.f32 %v7612_v45, %v12673_v32  ;;  %v8114_v35 = vpop.f32.mrb[18].mxu1  ;;  %v12718_v61 = vadd.f32 %v8072_v12, %v12670_v55  ;;  %v7349_v51 = vpop.f32.mrb[19].mxu0 }
 0x754   :  { %v12721_v9 = vadd.f32 %v8114_v35, %v12673_v32  ;;  %v7615_v34 = vpop.f32.mrb[19].mxu1  ;;  %v7350_v33 = vadd.f32 %v7349_v51, %v12670_v55  ;;  %7445 = vxpose.xlu0.b32.cont [5/16] (narrow) %v7331_v43, 8 }
 0x755   :  { %v12725_v38 = vadd.f32 %v7615_v34, %v12673_v32 }
 0x758   :  { %v8075_v20 = vpop.f32.mrb[20].mxu0  ;;  %7446 = vxpose.xlu0.b32.cont [6/16] (narrow) %v7334_v56, 8 }
 0x759   :  { %v12728_v28 = vadd.f32 %v8075_v20, %v12670_v55  ;;  %v7362_v7 = vpop.f32.mrb[21].mxu0 }
 0x75a   :  { %v12734_v19 = vadd.f32 %v7362_v7, %v12670_v55  ;;  %v8076_v8 = vpop.f32.mrb[22].mxu0 }
 0x75b   :  { %v8117_v29 = vpop.f32.mrb[20].mxu1  ;;  %v12740_v2 = vadd.f32 %v8076_v8, %v12670_v55  ;;  %v7365_v0 = vpop.f32.mrb[23].mxu0 }
 0x75c   :  { %v12731_v57 = vadd.f32 %v8117_v29, %v12673_v32  ;;  %v7628_v16 = vpop.f32.mrb[21].mxu1  ;;  %v12746_v37 = vadd.f32 %v7365_v0, %v12670_v55  ;;  %7447 = vxpose.xlu0.b32.cont [7/16] (narrow) %v7339_v21, 8 }
 0x75d   :  { %v12737_v48 = vadd.f32 %v7628_v16, %v12673_v32  ;;  %v8118_v24 = vpop.f32.mrb[22].mxu1 }
 0x75e   :  { %v12743_v60 = vadd.f32 %v8118_v24, %v12673_v32  ;;  %v7631_v15 = vpop.f32.mrb[23].mxu1 }
 0x75f   :  { %v12749_v23 = vadd.f32 %v7631_v15, %v12673_v32 }
 0x760   :  { %7448 = vxpose.xlu0.b32.cont [8/16] (narrow) %v7342_v14, 8 }
 0x762   :  { %v8079_v30 = vpop.f32.mrb[24].mxu0 }
 0x763   :  { %v8121_v5 = vpop.f32.mrb[24].mxu1  ;;  %v7387_v6 = vadd.f32 %v8079_v30, %v12670_v55  ;;  %v7378_v41 = vpop.f32.mrb[25].mxu0 }
 0x764   :  { %v12753_v18 = vadd.f32 %v8121_v5, %v12673_v32  ;;  %v7644_v3 = vpop.f32.mrb[25].mxu1  ;;  %v7379_v11 = vadd.f32 %v7378_v41, %v12670_v55  ;;  %v8080_v39 = vpop.f32.mrb[26].mxu0  ;;  %7449 = vxpose.xlu0.b32.cont [9/16] (narrow) %v7347_v4, 8 }
 0x765   :  { %v12757_v50 = vadd.f32 %v7644_v3, %v12673_v32  ;;  %v8122_v1 = vpop.f32.mrb[26].mxu1  ;;  %v7390_v13 = vadd.f32 %v8080_v39, %v12670_v55  ;;  %v7381_v21 = vpop.f32.mrb[27].mxu0 }
 0x766   :  { %v12761_v36 = vadd.f32 %v8122_v1, %v12673_v32  ;;  %v7647_v31 = vpop.f32.mrb[27].mxu1  ;;  %v7382_v17 = vadd.f32 %v7381_v21, %v12670_v55  ;;  %7473 = vxpose.xlu1.b32.start [1/16] (narrow) %v7379_v11, 8 }
 0x767   :  { %v12765_v43 = vadd.f32 %v7647_v31, %v12673_v32 }
 0x768   :  { %7450 = vxpose.xlu0.b32.cont [10/16] (narrow) %v7350_v33, 8 }
 0x76a   :  { %7474 = vxpose.xlu1.b32.cont [2/16] (narrow) %v7382_v17, 8 }
 0x76b   :  { %v8083_v54 = vpop.f32.mrb[28].mxu0  ;;  %v8125_v46 = vpop.f32.mrb[28].mxu1 }
 0x76c   :  { %v7403_v14 = vadd.f32 %v8083_v54, %v12670_v55  ;;  %v12769_v26 = vadd.f32 %v8125_v46, %v12673_v32  ;;  %v7394_v49 = vpop.f32.mrb[29].mxu0  ;;  %v7660_v56 = vpop.f32.mrb[29].mxu1  ;;  %7451 = vxpose.xlu0.b32.cont [11/16] (narrow) %v12708_v47, 8 }
 0x76d   :  { %v7395_v22 = vadd.f32 %v7394_v49, %v12670_v55  ;;  %v12773_v59 = vadd.f32 %v7660_v56, %v12673_v32  ;;  %v8084_v40 = vpop.f32.mrb[30].mxu0  ;;  %v8126_v45 = vpop.f32.mrb[30].mxu1 }
 0x76e   :  { %v7406_v4 = vadd.f32 %v8084_v40, %v12670_v55  ;;  %v12777_v12 = vadd.f32 %v8126_v45, %v12673_v32  ;;  %v7397_v35 = vpop.f32.mrb[31].mxu0  ;;  %v7663_v51 = vpop.f32.mrb[31].mxu1  ;;  %7475 = vxpose.xlu1.b32.cont [3/16] (narrow) %v7387_v6, 8 }
 0x76f   :  { %v7398_v34 = vadd.f32 %v7397_v35, %v12670_v55  ;;  %v12781_v33 = vadd.f32 %v7663_v51, %v12673_v32 }
 0x770   :  { %7452 = vxpose.xlu0.b32.cont [12/16] (narrow) %v12718_v61, 8 }
 0x772   :  { %7476 = vxpose.xlu1.b32.cont [4/16] (narrow) %v7390_v13, 8 }
 0x773   :  { %v8087_v20 = vpop.f32.mrb[32].mxu0  ;;  %v8129_v29 = vpop.f32.mrb[32].mxu1 }
 0x774   :  { %v7419_v7 = vadd.f32 %v8087_v20, %v12670_v55  ;;  %v12787_v16 = vadd.f32 %v8129_v29, %v12673_v32  ;;  %v7410_v8 = vpop.f32.mrb[33].mxu0  ;;  %v7676_v24 = vpop.f32.mrb[33].mxu1  ;;  %7453 = vxpose.xlu0.b32.cont [13/16] (narrow) %v12734_v19, 8 }
 0x775   :  { %v7411_v0 = vadd.f32 %v7410_v8, %v12670_v55  ;;  %v12791_v15 = vadd.f32 %v7676_v24, %v12673_v32  ;;  %v8088_v30 = vpop.f32.mrb[34].mxu0  ;;  %v8130_v5 = vpop.f32.mrb[34].mxu1 }
 0x776   :  { %v7422_v47 = vadd.f32 %v8088_v30, %v12670_v55  ;;  %v12795_v6 = vadd.f32 %v8130_v5, %v12673_v32  ;;  %v7413_v61 = vpop.f32.mrb[35].mxu0  ;;  %v7679_v41 = vpop.f32.mrb[35].mxu1  ;;  %7477 = vxpose.xlu1.b32.cont [5/16] (narrow) %v7395_v22, 8 }
 0x777   :  { %v7414_v3 = vadd.f32 %v7413_v61, %v12670_v55  ;;  %v7680_v11 = vadd.f32 %v7679_v41, %v12673_v32 }
 0x778   :  { %7454 = vxpose.xlu0.b32.cont [14/16] (narrow) %v12746_v37, 8 }
 0x77a   :  { %7478 = vxpose.xlu1.b32.cont [6/16] (narrow) %v7398_v34, 8 }
 0x77b   :  { %v8091_v39 = vpop.f32.mrb[36].mxu0 }
 0x77c   :  { %v7435_v1 = vadd.f32 %v8091_v39, %v12670_v55  ;;  %v7426_v13 = vpop.f32.mrb[37].mxu0  ;;  %v8133_v31 = vpop.f32.mrb[36].mxu1  ;;  %7455 = vxpose.xlu0.b32.cont [15/16] (narrow) %v12728_v28, 8 }
 0x77d   :  { %v7427_v21 = vadd.f32 %v7426_v13, %v12670_v55  ;;  %v8092_v17 = vpop.f32.mrb[38].mxu0  ;;  %v7701_v54 = vadd.f32 %v8133_v31, %v12673_v32  ;;  %v7692_v49 = vpop.f32.mrb[37].mxu1 }
 0x77e   :  { %v7438_v46 = vadd.f32 %v8092_v17, %v12670_v55  ;;  %v7429_v56 = vpop.f32.mrb[39].mxu0  ;;  %v7693_v22 = vadd.f32 %v7692_v49, %v12673_v32  ;;  %v8134_v40 = vpop.f32.mrb[38].mxu1  ;;  %7479 = vxpose.xlu1.b32.cont [7/16] (narrow) %v7403_v14, 8 }
 0x77f   :  { %v7430_v19 = vadd.f32 %v7429_v56, %v12670_v55  ;;  %v7704_v37 = vadd.f32 %v8134_v40, %v12673_v32  ;;  %v7695_v45 = vpop.f32.mrb[39].mxu1 }
 0x780   :  { %v7696_v35 = vadd.f32 %v7695_v45, %v12673_v32  ;;  %7456 = vxpose.xlu0.b32.end [16/16] (narrow) %v12740_v2, 8 }
 0x782   :  { %7480 = vxpose.xlu1.b32.cont [8/16] (narrow) %v7406_v4, 8 }
 0x784   :  { %7707 = vxpose.xlu0.b32.start [1/16] (narrow) %v12681_v63, 8 }
 0x786   :  { %7481 = vxpose.xlu1.b32.cont [9/16] (narrow) %v7411_v0, 8 }
 0x788   :  { %7708 = vxpose.xlu0.b32.cont [2/16] (narrow) %v12689_v10, 8 }
 0x78a   :  { %7482 = vxpose.xlu1.b32.cont [10/16] (narrow) %v7414_v3, 8 }
 0x78c   :  { %7709 = vxpose.xlu0.b32.cont [3/16] (narrow) %v12677_v62, 8 }
 0x78e   :  { %7483 = vxpose.xlu1.b32.cont [11/16] (narrow) %v7419_v7, 8 }
 0x790   :  { %7710 = vxpose.xlu0.b32.cont [4/16] (narrow) %v12685_v58, 8 }
 0x792   :  { %7484 = vxpose.xlu1.b32.cont [12/16] (narrow) %v7422_v47, 8 }
 0x794   :  { %7711 = vxpose.xlu0.b32.cont [5/16] (narrow) %v12697_v25, 8 }
 0x796   :  { %7485 = vxpose.xlu1.b32.cont [13/16] (narrow) %v7427_v21, 8 }
 0x798   :  { %7712 = vxpose.xlu0.b32.cont [6/16] (narrow) %v12705_v44, 8 }
 0x79a   :  { %7486 = vxpose.xlu1.b32.cont [14/16] (narrow) %v7430_v19, 8 }
 0x79c   :  { %7713 = vxpose.xlu0.b32.cont [7/16] (narrow) %v12693_v27, 8 }
 0x79e   :  { %7487 = vxpose.xlu1.b32.cont [15/16] (narrow) %v7435_v1, 8 }
 0x7a0   :  { %7714 = vxpose.xlu0.b32.cont [8/16] (narrow) %v12701_v53, 8 }
 0x7a2   :  { %7488 = vxpose.xlu1.b32.end [16/16] (narrow) %v7438_v46, 8 }
 0x7a4   :  { %7715 = vxpose.xlu0.b32.cont [9/16] (narrow) %v12715_v52, 8 }
 0x7a6   :  { %7739 = vxpose.xlu1.b32.start [1/16] (narrow) %v12757_v50, 8 }
 0x7a8   :  { %7716 = vxpose.xlu0.b32.cont [10/16] (narrow) %v12725_v38, 8 }
 0x7aa   :  { %7740 = vxpose.xlu1.b32.cont [2/16] (narrow) %v12765_v43, 8 }
 0x7ac   :  { %7717 = vxpose.xlu0.b32.cont [11/16] (narrow) %v12711_v42, 8 }
 0x7ae   :  { %7741 = vxpose.xlu1.b32.cont [3/16] (narrow) %v12753_v18, 8 }
 0x7b0   :  { %7718 = vxpose.xlu0.b32.cont [12/16] (narrow) %v12721_v9, 8 }
 0x7b2   :  { %7742 = vxpose.xlu1.b32.cont [4/16] (narrow) %v12761_v36, 8 }
 0x7b4   :  { %7719 = vxpose.xlu0.b32.cont [13/16] (narrow) %v12737_v48, 8 }
 0x7b6   :  { %7743 = vxpose.xlu1.b32.cont [5/16] (narrow) %v12773_v59, 8 }
 0x7b8   :  { %7720 = vxpose.xlu0.b32.cont [14/16] (narrow) %v12749_v23, 8 }
 0x7ba   :  { %7744 = vxpose.xlu1.b32.cont [6/16] (narrow) %v12781_v33, 8 }
 0x7bc   :  { %7721 = vxpose.xlu0.b32.cont [15/16] (narrow) %v12731_v57, 8 }
 0x7be   :  { %7745 = vxpose.xlu1.b32.cont [7/16] (narrow) %v12769_v26, 8 }
 0x7c0   :  { %7722 = vxpose.xlu0.b32.end [16/16] (narrow) %v12743_v60, 8 }
 0x7c2   :  { %7746 = vxpose.xlu1.b32.cont [8/16] (narrow) %v12777_v12, 8 }
 0x7c4   :  { %v7457_v55 = vpop.trf.xlu0 }
 0x7c5   :  { %7505 = vst [vmem:[#allocation2] sm:$0xff] %v7457_v55 }
 0x7c6   :  { %7747 = vxpose.xlu1.b32.cont [9/16] (narrow) %v12791_v15, 8 }
 0x7ca   :  { %7748 = vxpose.xlu1.b32.cont [10/16] (narrow) %v7680_v11, 8 }
 0x7ce   :  { %7749 = vxpose.xlu1.b32.cont [11/16] (narrow) %v12787_v16, 8 }
 0x7d2   :  { %7750 = vxpose.xlu1.b32.cont [12/16] (narrow) %v12795_v6, 8 }
 0x7d6   :  { %7751 = vxpose.xlu1.b32.cont [13/16] (narrow) %v7693_v22, 8 }
 0x7da   :  { %7752 = vxpose.xlu1.b32.cont [14/16] (narrow) %v7696_v35, 8 }
 0x7de   :  { %7753 = vxpose.xlu1.b32.cont [15/16] (narrow) %v7701_v54, 8 }
 0x7e2   :  { %7754 = vxpose.xlu1.b32.end [16/16] (narrow) %v7704_v37, 8 }
 0x7e6   :  { %v7489_v32 = vpop.trf.xlu1 }
 0x7e7   :  { %7506 = vst [vmem:[#allocation2 + $0x8] sm:$0xff] %v7489_v32 }
 0x804   :  { %v7723_v62 = vpop.trf.xlu0 }
 0x805   :  { %7772 = vst [vmem:[#allocation2 + $0x10] sm:$0xff] %v7723_v62 }
 0x826   :  { %v7755_v63 = vpop.trf.xlu1 }
 0x827   :  { %7773 = vst [vmem:[#allocation2 + $0x18] sm:$0xff] %v7755_v63 }
 0x828   :  { %8349 = shalt.err (!%p8346_p4)
}
 0x829   :  { %s8350_s15 = scalar_lea.hbm %s12858_s7, 512 }
 0x82a   :  { %p8351_p5 = scmp.ne.s32.totalorder %s12858_s7, %s8350_s15  ;;  %p8354_p6 = scmp.lt.u32.totalorder %s8350_s15, %s12858_s7 }
 0x82c   :  { %p8356_p7 = pnand %p8354_p6, %p8351_p5 }
 0x82e   :  { %8359 = shalt.err (!%p8356_p7)
}
 0x82f   :  { %s8382_s4 = smov 256  }
 0x830   :  { %7785 = dma.vmem_to_hbm [thread:$0]  %s7780_s16, 512, %s12858_s7, [#allocation3], %s8382_s4, %s8382_s4, %s8364_s18  }
 0x831   :  { %8360 = dma.done.wait [#allocation3], 512  }
 0x832   :  { %8361 = vsyncadd [#allocation3], 4294966784 }
 0x833   :  { %7789 = vsyncpa [#allocation3], 1 }

</bundles_post_ra>
